<compile_context>
chip_gen: v6e
topology: v6e:2x2x1
jax: 0.10.0
libtpu: 0.0.40
codegen_flags: <defaults>
</compile_context>

<pallas_src>
import functools

import jax
import jax.numpy as jnp
from jax.experimental import pallas as pl
from jax.experimental.pallas import tpu as pltpu


# ----------------------------------------------------------------------------
# Pallas kernels
# ----------------------------------------------------------------------------
def _matmul_affine_kernel(a_ref, b_ref, s_ref, c_ref, o_ref, acc_ref, *, relu):
    """acc += A@B over k-grid; epilogue: out = acc*scale + bias (+ ReLU)."""
    @pl.when(pl.program_id(2) == 0)
    def _():
        acc_ref[...] = jnp.zeros_like(acc_ref)

    acc_ref[...] += jnp.dot(a_ref[...], b_ref[...],
                            preferred_element_type=jnp.float32)

    @pl.when(pl.program_id(2) == pl.num_programs(2) - 1)
    def _():
        out = acc_ref[...] * s_ref[...] + c_ref[...]
        if relu:
            out = jnp.maximum(out, 0.0)
        o_ref[...] = out.astype(o_ref.dtype)


def _matmul_affine_res_kernel(a_ref, b_ref, s_ref, c_ref, r_ref, o_ref,
                              acc_ref):
    """Same as above but epilogue fuses the residual add + ReLU."""
    @pl.when(pl.program_id(2) == 0)
    def _():
        acc_ref[...] = jnp.zeros_like(acc_ref)

    acc_ref[...] += jnp.dot(a_ref[...], b_ref[...],
                            preferred_element_type=jnp.float32)

    @pl.when(pl.program_id(2) == pl.num_programs(2) - 1)
    def _():
        out = acc_ref[...] * s_ref[...] + c_ref[...] + r_ref[...]
        o_ref[...] = jnp.maximum(out, 0.0).astype(o_ref.dtype)


def _avgpool_kernel(x_ref, o_ref):
    # x: (N, HW, C) -> mean over spatial axis -> (N, C)
    o_ref[...] = jnp.mean(x_ref[...], axis=1)


# ----------------------------------------------------------------------------
# Pallas wrappers
# ----------------------------------------------------------------------------
def _round_up(x, m):
    return (x + m - 1) // m * m


def matmul_affine(a, p, *, relu, residual=None):
    """out[:M,:N] of (A @ W) * scale + bias (+ residual) (+ ReLU).

    a: (M, K) activation (any float dtype; cast to bf16 here).
    p["w"]: (Kp, Np) bf16, pre-padded at init.  p["scale"]/p["bias"]: (1, Np) f32.
    p["n"]: true output width N (Python int, static).
    residual: optional (M, N) f32 added in the epilogue (implies ReLU).
    """
    M, K = a.shape
    Kp, Np = p["w"].shape
    N = p["n"]

    TM = min(_round_up(M, 8), 128)
    Mp = _round_up(M, TM)
    TK = 256 if Kp % 256 == 0 else 128
    TN = 256 if Np % 256 == 0 else 128

    a_p = jnp.pad(a.astype(jnp.bfloat16), ((0, Mp - M), (0, Kp - K)))

    inputs = [a_p, p["w"], p["scale"], p["bias"]]
    in_specs = [
        pl.BlockSpec((TM, TK), lambda i, j, k: (i, k)),
        pl.BlockSpec((TK, TN), lambda i, j, k: (k, j)),
        pl.BlockSpec((1, TN), lambda i, j, k: (0, j)),
        pl.BlockSpec((1, TN), lambda i, j, k: (0, j)),
    ]
    if residual is not None:
        r_p = jnp.pad(residual.astype(jnp.float32),
                      ((0, Mp - M), (0, Np - residual.shape[1])))
        inputs.append(r_p)
        in_specs.append(pl.BlockSpec((TM, TN), lambda i, j, k: (i, j)))
        kernel = _matmul_affine_res_kernel
    else:
        kernel = functools.partial(_matmul_affine_kernel, relu=relu)

    out = pl.pallas_call(
        kernel,
        out_shape=jax.ShapeDtypeStruct((Mp, Np), jnp.float32),
        grid_spec=pltpu.PrefetchScalarGridSpec(
            num_scalar_prefetch=0,
            grid=(Mp // TM, Np // TN, Kp // TK),
            in_specs=in_specs,
            out_specs=pl.BlockSpec((TM, TN), lambda i, j, k: (i, j)),
            scratch_shapes=[pltpu.VMEM((TM, TN), jnp.float32)],
        ),
        compiler_params=pltpu.CompilerParams(
            dimension_semantics=("parallel", "parallel", "arbitrary")),
    )(*inputs)
    return out[:M, :N]


def global_avgpool(x):
    # x: (N, HW, C) -> (N, C).  Tiny at this model's tail (2, 1, 512).
    return pl.pallas_call(
        _avgpool_kernel,
        out_shape=jax.ShapeDtypeStruct((x.shape[0], x.shape[2]), x.dtype),
    )(x)


# ----------------------------------------------------------------------------
# Conv / pooling glue (im2col etc.)
# ----------------------------------------------------------------------------
def _im2col(x, kh, kw, stride, padding):
    n, h, w, c = x.shape
    if padding:
        x = jnp.pad(x, ((0, 0), (padding, padding), (padding, padding), (0, 0)))
    ho = (h + 2 * padding - kh) // stride + 1
    wo = (w + 2 * padding - kw) // stride + 1
    cols = []
    for dy in range(kh):
        for dx in range(kw):
            sl = jax.lax.slice(
                x,
                (0, dy, dx, 0),
                (n, dy + (ho - 1) * stride + 1, dx + (wo - 1) * stride + 1, c),
                (1, stride, stride, 1),
            )
            cols.append(sl)  # (n, ho, wo, c)
    patches = jnp.concatenate(cols, axis=-1)  # order (dy, dx, c)
    return patches.reshape(n * ho * wo, kh * kw * c), ho, wo


def conv_bn(x, p, k, stride, padding, relu):
    """Conv (no bias) + folded eval-mode BN (+ optional ReLU), NHWC."""
    n = x.shape[0]
    patches, ho, wo = _im2col(x.astype(jnp.bfloat16), k, k, stride, padding)
    out = matmul_affine(patches, p, relu=relu)
    return out.reshape(n, ho, wo, -1)


def maxpool(x, k=3, stride=2, padding=1):
    return jax.lax.reduce_window(
        x, -jnp.inf, jax.lax.max,
        (1, k, k, 1), (1, stride, stride, 1),
        ((0, 0), (padding, padding), (padding, padding), (0, 0)),
    )


def basic_block(x, blk):
    stride = blk["stride"]  # static Python int (params are closed over jit)
    out = conv_bn(x, blk["conv1"], 3, stride, 1, relu=True)
    if "downsample" in blk:
        identity = conv_bn(x, blk["downsample"], 1, stride, 0, relu=False)
    else:
        identity = x
    n = out.shape[0]
    # conv2 + BN + residual add + ReLU fused into a single matmul epilogue.
    patches, ho, wo = _im2col(out.astype(jnp.bfloat16), 3, 3, 1, 1)
    res2d = identity.reshape(n * ho * wo, identity.shape[-1])
    y = matmul_affine(patches, blk["conv2"], relu=True, residual=res2d)
    return y.reshape(n, ho, wo, -1)


# ----------------------------------------------------------------------------
# Parameter init (deterministic, synthetic; weights pre-padded + bf16)
# ----------------------------------------------------------------------------
def _pad_to(arr, shape):
    return jnp.pad(arr, [(0, t - s) for s, t in zip(arr.shape, shape)])


def init_conv_bn(key, cin, cout, k):
    std = (2.0 / (k * k * cin)) ** 0.5  # He init (ResNet default)
    w = jax.random.normal(key, (k, k, cin, cout), jnp.float32) * std
    gamma = jnp.ones((cout,), jnp.float32)
    beta = jnp.zeros((cout,), jnp.float32)
    mean = jnp.zeros((cout,), jnp.float32)
    var = jnp.ones((cout,), jnp.float32)
    eps = 1e-5
    scale = gamma / jnp.sqrt(var + eps)
    bias = beta - mean * scale
    K = k * k * cin
    Kp, Np = _round_up(K, 128), _round_up(cout, 128)
    return {
        # (dy, dx, cin) x cout row order matches im2col column order.
        "w": _pad_to(w.reshape(K, cout), (Kp, Np)).astype(jnp.bfloat16),
        "scale": _pad_to(scale.reshape(1, cout), (1, Np)),
        "bias": _pad_to(bias.reshape(1, cout), (1, Np)),
        "n": cout,
    }


def init_linear(key, fin, fout):
    k1, k2 = jax.random.split(key)
    bound = 1.0 / (fin ** 0.5)
    w = jax.random.uniform(k1, (fin, fout), jnp.float32, -bound, bound)
    b = jax.random.uniform(k2, (fout,), jnp.float32, -bound, bound)
    Kp, Np = _round_up(fin, 128), _round_up(fout, 128)
    return {
        "w": _pad_to(w, (Kp, Np)).astype(jnp.bfloat16),
        "scale": _pad_to(jnp.ones((1, fout), jnp.float32), (1, Np)),
        "bias": _pad_to(b.reshape(1, fout), (1, Np)),
        "n": fout,
    }


def init_simclr_params(key, hidden_dim):
    keys = iter(jax.random.split(key, 64))
    params = {"conv1": init_conv_bn(next(keys), 3, 64, 7)}
    # ResNet-34: (channels, num_blocks, stride of first block)
    cfg = [(64, 3, 1), (128, 4, 2), (256, 6, 2), (512, 3, 2)]
    cin = 64
    layers = []
    for cout, nblocks, stride in cfg:
        blocks = []
        for bi in range(nblocks):
            s = stride if bi == 0 else 1
            blk = {
                "conv1": init_conv_bn(next(keys), cin, cout, 3),
                "conv2": init_conv_bn(next(keys), cout, cout, 3),
                "stride": s,
            }
            if s != 1 or cin != cout:
                blk["downsample"] = init_conv_bn(next(keys), cin, cout, 1)
            blocks.append(blk)
            cin = cout
        layers.append(blocks)
    params["layers"] = layers
    params["fc1"] = init_linear(next(keys), 512, 4 * hidden_dim)
    params["fc2"] = init_linear(next(keys), 4 * hidden_dim, hidden_dim)
    return params


# ----------------------------------------------------------------------------
# Forward pass: simclr(x) == resnet34-with-projection-head(x)
# ----------------------------------------------------------------------------
def simclr_forward(params, x_nchw):
    # layout: input is NCHW (PyTorch convention); transpose to NHWC for kernels.
    x = jnp.transpose(x_nchw, (0, 2, 3, 1)).astype(jnp.float32)
    x = conv_bn(x, params["conv1"], 7, 2, 3, relu=True)   # conv1 + bn1 + relu
    x = maxpool(x)                                         # 3x3 / s2 / p1
    for blocks in params["layers"]:
        for blk in blocks:
            x = basic_block(x, blk)
    n, h, w, c = x.shape
    feat = global_avgpool(x.reshape(n, h * w, c))          # adaptive avgpool -> (N, 512)
    h1 = matmul_affine(feat, params["fc1"], relu=True)     # Linear(512, 4H) + ReLU
    out = matmul_affine(h1, params["fc2"], relu=False)     # Linear(4H, H)
    return out


if __name__ == "__main__":
    hidden_dim = 32
    key = jax.random.PRNGKey(0)
    pkey, xkey = jax.random.split(key)
    params = init_simclr_params(pkey, hidden_dim)
    x = jax.random.normal(xkey, (2, 3, 32, 32), jnp.float32)  # NCHW, like PyTorch

    # Single whole-network jit; params are closed over so strides / widths stay static.
    fwd = jax.jit(functools.partial(simclr_forward, params))
    out = jax.block_until_ready(fwd(x))

    assert out.shape == (2, hidden_dim), out.shape
    assert bool(jnp.all(jnp.isfinite(out)))
    print("KERNEL_OK")
</pallas_src>

<mosaic_0001>
module attributes {stable_mosaic.version = 11 : i64} {
  func.func @_matmul_affine_kernel(%arg0: i32, %arg1: i32, %arg2: i32, %arg3: memref<128x256xbf16, #tpu.memory_space<vmem>>, %arg4: memref<256x128xbf16, #tpu.memory_space<vmem>>, %arg5: memref<1x128xf32, #tpu.memory_space<vmem>>, %arg6: memref<1x128xf32, #tpu.memory_space<vmem>>, %arg7: memref<128x128xf32, #tpu.memory_space<vmem>>, %arg8: memref<128x128xf32, #tpu.memory_space<vmem>>) attributes {dimension_semantics = [#tpu.dimension_semantics<parallel>, #tpu.dimension_semantics<parallel>, #tpu.dimension_semantics<arbitrary>], iteration_bounds = array<i64: 4, 1, 1>, scalar_prefetch = 0 : i64, scratch_operands = 1 : i64, tpu.core_type = #tpu.core_type<tc>, window_params = [{transform_indices = @transform_0, window_bounds = array<i64: 128, 256>}, {transform_indices = @transform_1, window_bounds = array<i64: 256, 128>}, {transform_indices = @transform_2, window_bounds = array<i64: 1, 128>}, {transform_indices = @transform_3, window_bounds = array<i64: 1, 128>}, {transform_indices = @transform_4, window_bounds = array<i64: 128, 128>}]} {
    %c0_i32 = arith.constant 0 : i32
    %0 = arith.cmpi eq, %arg2, %c0_i32 : i32
    %1 = arith.extui %0 : i1 to i32
    %c0_i32_0 = arith.constant 0 : i32
    %2 = arith.cmpi ne, %1, %c0_i32_0 : i32
    scf.if %2 {
      %cst_10 = arith.constant 0.000000e+00 : f32
      %12 = vector.broadcast %cst_10 : f32 to vector<128x128xf32>
      %c0_11 = arith.constant 0 : index
      %c0_12 = arith.constant 0 : index
      %13 = vector.load %arg8[%c0_11, %c0_12] : memref<128x128xf32, #tpu.memory_space<vmem>>, vector<128x128xf32>
      tpu.vector_store %arg8[%c0_11, %c0_12], %12 {strides = array<i32>} : memref<128x128xf32, #tpu.memory_space<vmem>>, vector<128x128xf32>,
    } else {
    }
    %c0 = arith.constant 0 : index
    %c0_1 = arith.constant 0 : index
    %3 = vector.load %arg8[%c0, %c0_1] : memref<128x128xf32, #tpu.memory_space<vmem>>, vector<128x128xf32>
    %c0_2 = arith.constant 0 : index
    %c0_3 = arith.constant 0 : index
    %4 = vector.load %arg3[%c0_2, %c0_3] : memref<128x256xbf16, #tpu.memory_space<vmem>>, vector<128x256xbf16>
    %c0_4 = arith.constant 0 : index
    %c0_5 = arith.constant 0 : index
    %5 = vector.load %arg4[%c0_4, %c0_5] : memref<256x128xbf16, #tpu.memory_space<vmem>>, vector<256x128xbf16>
    %cst = arith.constant dense<0.000000e+00> : vector<128x128xf32>
    %6 = tpu.matmul %4, %5, %cst {dimension_numbers = #tpu.dot_dimension_numbers<[1], [0], [0], [1], [0, 0, 1, 1], [], []>} : vector<128x256xbf16>, vector<256x128xbf16>, vector<128x128xf32> -> vector<128x128xf32>
    %7 = arith.addf %3, %6 : vector<128x128xf32>
    %c0_6 = arith.constant 0 : index
    %c0_7 = arith.constant 0 : index
    %8 = vector.load %arg8[%c0_6, %c0_7] : memref<128x128xf32, #tpu.memory_space<vmem>>, vector<128x128xf32>
    tpu.vector_store %arg8[%c0_6, %c0_7], %7 {strides = array<i32>} : memref<128x128xf32, #tpu.memory_space<vmem>>, vector<128x128xf32>,
    %c0_i32_8 = arith.constant 0 : i32
    %9 = arith.cmpi eq, %arg2, %c0_i32_8 : i32
    %10 = arith.extui %9 : i1 to i32
    %c0_i32_9 = arith.constant 0 : i32
    %11 = arith.cmpi ne, %10, %c0_i32_9 : i32
    scf.if %11 {
      %c0_10 = arith.constant 0 : index
      %c0_11 = arith.constant 0 : index
      %12 = vector.load %arg8[%c0_10, %c0_11] : memref<128x128xf32, #tpu.memory_space<vmem>>, vector<128x128xf32>
      %c0_12 = arith.constant 0 : index
      %c0_13 = arith.constant 0 : index
      %13 = vector.load %arg5[%c0_12, %c0_13] : memref<1x128xf32, #tpu.memory_space<vmem>>, vector<1x128xf32>
      %14 = vector.broadcast %13 : vector<1x128xf32> to vector<128x128xf32>
      %15 = arith.mulf %12, %14 : vector<128x128xf32>
      %c0_14 = arith.constant 0 : index
      %c0_15 = arith.constant 0 : index
      %16 = vector.load %arg6[%c0_14, %c0_15] : memref<1x128xf32, #tpu.memory_space<vmem>>, vector<1x128xf32>
      %17 = vector.broadcast %16 : vector<1x128xf32> to vector<128x128xf32>
      %18 = arith.addf %15, %17 : vector<128x128xf32>
      %cst_16 = arith.constant 0.000000e+00 : f32
      %19 = vector.broadcast %cst_16 : f32 to vector<128x128xf32>
      %20 = arith.maximumf %18, %19 : vector<128x128xf32>
      %c0_17 = arith.constant 0 : index
      %c0_18 = arith.constant 0 : index
      %21 = vector.load %arg7[%c0_17, %c0_18] : memref<128x128xf32, #tpu.memory_space<vmem>>, vector<128x128xf32>
      tpu.vector_store %arg7[%c0_17, %c0_18], %20 {strides = array<i32>} : memref<128x128xf32, #tpu.memory_space<vmem>>, vector<128x128xf32>,
    } else {
    }
    return
  }
  func.func @transform_0(%arg0: i32, %arg1: i32, %arg2: i32) -> (i32, i32) {
    %c0_i32 = arith.constant 0 : i32
    return %arg0, %arg2 : i32, i32
  }
  func.func @transform_1(%arg0: i32, %arg1: i32, %arg2: i32) -> (i32, i32) {
    %c0_i32 = arith.constant 0 : i32
    return %arg2, %arg1 : i32, i32
  }
  func.func @transform_2(%arg0: i32, %arg1: i32, %arg2: i32) -> (i32, i32) {
    %c0_i32 = arith.constant 0 : i32
    %c0_i32_0 = arith.constant 0 : i32
    return %c0_i32, %arg1 : i32, i32
  }
  func.func @transform_3(%arg0: i32, %arg1: i32, %arg2: i32) -> (i32, i32) {
    %c0_i32 = arith.constant 0 : i32
    %c0_i32_0 = arith.constant 0 : i32
    return %c0_i32, %arg1 : i32, i32
  }
  func.func @transform_4(%arg0: i32, %arg1: i32, %arg2: i32) -> (i32, i32) {
    %c0_i32 = arith.constant 0 : i32
    return %arg0, %arg1 : i32, i32
  }
}

module attributes {stable_mosaic.version = 11 : i64} {
  func.func @_matmul_affine_kernel(%arg0: i32, %arg1: i32, %arg2: i32, %arg3: memref<128x128xbf16, #tpu.memory_space<vmem>>, %arg4: memref<128x128xbf16, #tpu.memory_space<vmem>>, %arg5: memref<1x128xf32, #tpu.memory_space<vmem>>, %arg6: memref<1x128xf32, #tpu.memory_space<vmem>>, %arg7: memref<128x128xf32, #tpu.memory_space<vmem>>, %arg8: memref<128x128xf32, #tpu.memory_space<vmem>>) attributes {dimension_semantics = [#tpu.dimension_semantics<parallel>, #tpu.dimension_semantics<parallel>, #tpu.dimension_semantics<arbitrary>], iteration_bounds = array<i64: 1, 1, 5>, scalar_prefetch = 0 : i64, scratch_operands = 1 : i64, tpu.core_type = #tpu.core_type<tc>, window_params = [{transform_indices = @transform_0, window_bounds = array<i64: 128, 128>}, {transform_indices = @transform_1, window_bounds = array<i64: 128, 128>}, {transform_indices = @transform_2, window_bounds = array<i64: 1, 128>}, {transform_indices = @transform_3, window_bounds = array<i64: 1, 128>}, {transform_indices = @transform_4, window_bounds = array<i64: 128, 128>}]} {
    %c0_i32 = arith.constant 0 : i32
    %0 = arith.cmpi eq, %arg2, %c0_i32 : i32
    %1 = arith.extui %0 : i1 to i32
    %c0_i32_0 = arith.constant 0 : i32
    %2 = arith.cmpi ne, %1, %c0_i32_0 : i32
    scf.if %2 {
      %cst_9 = arith.constant 0.000000e+00 : f32
      %12 = vector.broadcast %cst_9 : f32 to vector<128x128xf32>
      %c0_10 = arith.constant 0 : index
      %c0_11 = arith.constant 0 : index
      %13 = vector.load %arg8[%c0_10, %c0_11] : memref<128x128xf32, #tpu.memory_space<vmem>>, vector<128x128xf32>
      tpu.vector_store %arg8[%c0_10, %c0_11], %12 {strides = array<i32>} : memref<128x128xf32, #tpu.memory_space<vmem>>, vector<128x128xf32>,
    } else {
    }
    %c0 = arith.constant 0 : index
    %c0_1 = arith.constant 0 : index
    %3 = vector.load %arg8[%c0, %c0_1] : memref<128x128xf32, #tpu.memory_space<vmem>>, vector<128x128xf32>
    %c0_2 = arith.constant 0 : index
    %c0_3 = arith.constant 0 : index
    %4 = vector.load %arg3[%c0_2, %c0_3] : memref<128x128xbf16, #tpu.memory_space<vmem>>, vector<128x128xbf16>
    %c0_4 = arith.constant 0 : index
    %c0_5 = arith.constant 0 : index
    %5 = vector.load %arg4[%c0_4, %c0_5] : memref<128x128xbf16, #tpu.memory_space<vmem>>, vector<128x128xbf16>
    %cst = arith.constant dense<0.000000e+00> : vector<128x128xf32>
    %6 = tpu.matmul %4, %5, %cst {dimension_numbers = #tpu.dot_dimension_numbers<[1], [0], [0], [1], [0, 0, 1, 1], [], []>} : vector<128x128xbf16>, vector<128x128xbf16>, vector<128x128xf32> -> vector<128x128xf32>
    %7 = arith.addf %3, %6 : vector<128x128xf32>
    %c0_6 = arith.constant 0 : index
    %c0_7 = arith.constant 0 : index
    %8 = vector.load %arg8[%c0_6, %c0_7] : memref<128x128xf32, #tpu.memory_space<vmem>>, vector<128x128xf32>
    tpu.vector_store %arg8[%c0_6, %c0_7], %7 {strides = array<i32>} : memref<128x128xf32, #tpu.memory_space<vmem>>, vector<128x128xf32>,
    %c4_i32 = arith.constant 4 : i32
    %9 = arith.cmpi eq, %arg2, %c4_i32 : i32
    %10 = arith.extui %9 : i1 to i32
    %c0_i32_8 = arith.constant 0 : i32
    %11 = arith.cmpi ne, %10, %c0_i32_8 : i32
    scf.if %11 {
      %c0_9 = arith.constant 0 : index
      %c0_10 = arith.constant 0 : index
      %12 = vector.load %arg8[%c0_9, %c0_10] : memref<128x128xf32, #tpu.memory_space<vmem>>, vector<128x128xf32>
      %c0_11 = arith.constant 0 : index
      %c0_12 = arith.constant 0 : index
      %13 = vector.load %arg5[%c0_11, %c0_12] : memref<1x128xf32, #tpu.memory_space<vmem>>, vector<1x128xf32>
      %14 = vector.broadcast %13 : vector<1x128xf32> to vector<128x128xf32>
      %15 = arith.mulf %12, %14 : vector<128x128xf32>
      %c0_13 = arith.constant 0 : index
      %c0_14 = arith.constant 0 : index
      %16 = vector.load %arg6[%c0_13, %c0_14] : memref<1x128xf32, #tpu.memory_space<vmem>>, vector<1x128xf32>
      %17 = vector.broadcast %16 : vector<1x128xf32> to vector<128x128xf32>
      %18 = arith.addf %15, %17 : vector<128x128xf32>
      %cst_15 = arith.constant 0.000000e+00 : f32
      %19 = vector.broadcast %cst_15 : f32 to vector<128x128xf32>
      %20 = arith.maximumf %18, %19 : vector<128x128xf32>
      %c0_16 = arith.constant 0 : index
      %c0_17 = arith.constant 0 : index
      %21 = vector.load %arg7[%c0_16, %c0_17] : memref<128x128xf32, #tpu.memory_space<vmem>>, vector<128x128xf32>
      tpu.vector_store %arg7[%c0_16, %c0_17], %20 {strides = array<i32>} : memref<128x128xf32, #tpu.memory_space<vmem>>, vector<128x128xf32>,
    } else {
    }
    return
  }
  func.func @transform_0(%arg0: i32, %arg1: i32, %arg2: i32) -> (i32, i32) {
    %c0_i32 = arith.constant 0 : i32
    return %arg0, %arg2 : i32, i32
  }
  func.func @transform_1(%arg0: i32, %arg1: i32, %arg2: i32) -> (i32, i32) {
    %c0_i32 = arith.constant 0 : i32
    return %arg2, %arg1 : i32, i32
  }
  func.func @transform_2(%arg0: i32, %arg1: i32, %arg2: i32) -> (i32, i32) {
    %c0_i32 = arith.constant 0 : i32
    %c0_i32_0 = arith.constant 0 : i32
    return %c0_i32, %arg1 : i32, i32
  }
  func.func @transform_3(%arg0: i32, %arg1: i32, %arg2: i32) -> (i32, i32) {
    %c0_i32 = arith.constant 0 : i32
    %c0_i32_0 = arith.constant 0 : i32
    return %c0_i32, %arg1 : i32, i32
  }
  func.func @transform_4(%arg0: i32, %arg1: i32, %arg2: i32) -> (i32, i32) {
    %c0_i32 = arith.constant 0 : i32
    return %arg0, %arg1 : i32, i32
  }
}

module attributes {stable_mosaic.version = 11 : i64} {
  func.func @_matmul_affine_res_kernel(%arg0: i32, %arg1: i32, %arg2: i32, %arg3: memref<128x128xbf16, #tpu.memory_space<vmem>>, %arg4: memref<128x128xbf16, #tpu.memory_space<vmem>>, %arg5: memref<1x128xf32, #tpu.memory_space<vmem>>, %arg6: memref<1x128xf32, #tpu.memory_space<vmem>>, %arg7: memref<128x128xf32, #tpu.memory_space<vmem>>, %arg8: memref<128x128xf32, #tpu.memory_space<vmem>>, %arg9: memref<128x128xf32, #tpu.memory_space<vmem>>) attributes {dimension_semantics = [#tpu.dimension_semantics<parallel>, #tpu.dimension_semantics<parallel>, #tpu.dimension_semantics<arbitrary>], iteration_bounds = array<i64: 1, 1, 5>, scalar_prefetch = 0 : i64, scratch_operands = 1 : i64, tpu.core_type = #tpu.core_type<tc>, window_params = [{transform_indices = @transform_0, window_bounds = array<i64: 128, 128>}, {transform_indices = @transform_1, window_bounds = array<i64: 128, 128>}, {transform_indices = @transform_2, window_bounds = array<i64: 1, 128>}, {transform_indices = @transform_3, window_bounds = array<i64: 1, 128>}, {transform_indices = @transform_4, window_bounds = array<i64: 128, 128>}, {transform_indices = @transform_5, window_bounds = array<i64: 128, 128>}]} {
    %c0_i32 = arith.constant 0 : i32
    %0 = arith.cmpi eq, %arg2, %c0_i32 : i32
    %1 = arith.extui %0 : i1 to i32
    %c0_i32_0 = arith.constant 0 : i32
    %2 = arith.cmpi ne, %1, %c0_i32_0 : i32
    scf.if %2 {
      %cst_9 = arith.constant 0.000000e+00 : f32
      %12 = vector.broadcast %cst_9 : f32 to vector<128x128xf32>
      %c0_10 = arith.constant 0 : index
      %c0_11 = arith.constant 0 : index
      %13 = vector.load %arg9[%c0_10, %c0_11] : memref<128x128xf32, #tpu.memory_space<vmem>>, vector<128x128xf32>
      tpu.vector_store %arg9[%c0_10, %c0_11], %12 {strides = array<i32>} : memref<128x128xf32, #tpu.memory_space<vmem>>, vector<128x128xf32>,
    } else {
    }
    %c0 = arith.constant 0 : index
    %c0_1 = arith.constant 0 : index
    %3 = vector.load %arg9[%c0, %c0_1] : memref<128x128xf32, #tpu.memory_space<vmem>>, vector<128x128xf32>
    %c0_2 = arith.constant 0 : index
    %c0_3 = arith.constant 0 : index
    %4 = vector.load %arg3[%c0_2, %c0_3] : memref<128x128xbf16, #tpu.memory_space<vmem>>, vector<128x128xbf16>
    %c0_4 = arith.constant 0 : index
    %c0_5 = arith.constant 0 : index
    %5 = vector.load %arg4[%c0_4, %c0_5] : memref<128x128xbf16, #tpu.memory_space<vmem>>, vector<128x128xbf16>
    %cst = arith.constant dense<0.000000e+00> : vector<128x128xf32>
    %6 = tpu.matmul %4, %5, %cst {dimension_numbers = #tpu.dot_dimension_numbers<[1], [0], [0], [1], [0, 0, 1, 1], [], []>} : vector<128x128xbf16>, vector<128x128xbf16>, vector<128x128xf32> -> vector<128x128xf32>
    %7 = arith.addf %3, %6 : vector<128x128xf32>
    %c0_6 = arith.constant 0 : index
    %c0_7 = arith.constant 0 : index
    %8 = vector.load %arg9[%c0_6, %c0_7] : memref<128x128xf32, #tpu.memory_space<vmem>>, vector<128x128xf32>
    tpu.vector_store %arg9[%c0_6, %c0_7], %7 {strides = array<i32>} : memref<128x128xf32, #tpu.memory_space<vmem>>, vector<128x128xf32>,
    %c4_i32 = arith.constant 4 : i32
    %9 = arith.cmpi eq, %arg2, %c4_i32 : i32
    %10 = arith.extui %9 : i1 to i32
    %c0_i32_8 = arith.constant 0 : i32
    %11 = arith.cmpi ne, %10, %c0_i32_8 : i32
    scf.if %11 {
      %c0_9 = arith.constant 0 : index
      %c0_10 = arith.constant 0 : index
      %12 = vector.load %arg9[%c0_9, %c0_10] : memref<128x128xf32, #tpu.memory_space<vmem>>, vector<128x128xf32>
      %c0_11 = arith.constant 0 : index
      %c0_12 = arith.constant 0 : index
      %13 = vector.load %arg5[%c0_11, %c0_12] : memref<1x128xf32, #tpu.memory_space<vmem>>, vector<1x128xf32>
      %14 = vector.broadcast %13 : vector<1x128xf32> to vector<128x128xf32>
      %15 = arith.mulf %12, %14 : vector<128x128xf32>
      %c0_13 = arith.constant 0 : index
      %c0_14 = arith.constant 0 : index
      %16 = vector.load %arg6[%c0_13, %c0_14] : memref<1x128xf32, #tpu.memory_space<vmem>>, vector<1x128xf32>
      %17 = vector.broadcast %16 : vector<1x128xf32> to vector<128x128xf32>
      %18 = arith.addf %15, %17 : vector<128x128xf32>
      %c0_15 = arith.constant 0 : index
      %c0_16 = arith.constant 0 : index
      %19 = vector.load %arg7[%c0_15, %c0_16] : memref<128x128xf32, #tpu.memory_space<vmem>>, vector<128x128xf32>
      %20 = arith.addf %18, %19 : vector<128x128xf32>
      %cst_17 = arith.constant 0.000000e+00 : f32
      %21 = vector.broadcast %cst_17 : f32 to vector<128x128xf32>
      %22 = arith.maximumf %20, %21 : vector<128x128xf32>
      %c0_18 = arith.constant 0 : index
      %c0_19 = arith.constant 0 : index
      %23 = vector.load %arg8[%c0_18, %c0_19] : memref<128x128xf32, #tpu.memory_space<vmem>>, vector<128x128xf32>
      tpu.vector_store %arg8[%c0_18, %c0_19], %22 {strides = array<i32>} : memref<128x128xf32, #tpu.memory_space<vmem>>, vector<128x128xf32>,
    } else {
    }
    return
  }
  func.func @transform_0(%arg0: i32, %arg1: i32, %arg2: i32) -> (i32, i32) {
    %c0_i32 = arith.constant 0 : i32
    return %arg0, %arg2 : i32, i32
  }
  func.func @transform_1(%arg0: i32, %arg1: i32, %arg2: i32) -> (i32, i32) {
    %c0_i32 = arith.constant 0 : i32
    return %arg2, %arg1 : i32, i32
  }
  func.func @transform_2(%arg0: i32, %arg1: i32, %arg2: i32) -> (i32, i32) {
    %c0_i32 = arith.constant 0 : i32
    %c0_i32_0 = arith.constant 0 : i32
    return %c0_i32, %arg1 : i32, i32
  }
  func.func @transform_3(%arg0: i32, %arg1: i32, %arg2: i32) -> (i32, i32) {
    %c0_i32 = arith.constant 0 : i32
    %c0_i32_0 = arith.constant 0 : i32
    return %c0_i32, %arg1 : i32, i32
  }
  func.func @transform_4(%arg0: i32, %arg1: i32, %arg2: i32) -> (i32, i32) {
    %c0_i32 = arith.constant 0 : i32
    return %arg0, %arg1 : i32, i32
  }
  func.func @transform_5(%arg0: i32, %arg1: i32, %arg2: i32) -> (i32, i32) {
    %c0_i32 = arith.constant 0 : i32
    return %arg0, %arg1 : i32, i32
  }
}

module attributes {stable_mosaic.version = 11 : i64} {
  func.func @_matmul_affine_kernel(%arg0: i32, %arg1: i32, %arg2: i32, %arg3: memref<32x128xbf16, #tpu.memory_space<vmem>>, %arg4: memref<128x128xbf16, #tpu.memory_space<vmem>>, %arg5: memref<1x128xf32, #tpu.memory_space<vmem>>, %arg6: memref<1x128xf32, #tpu.memory_space<vmem>>, %arg7: memref<32x128xf32, #tpu.memory_space<vmem>>, %arg8: memref<32x128xf32, #tpu.memory_space<vmem>>) attributes {dimension_semantics = [#tpu.dimension_semantics<parallel>, #tpu.dimension_semantics<parallel>, #tpu.dimension_semantics<arbitrary>], iteration_bounds = array<i64: 1, 1, 5>, scalar_prefetch = 0 : i64, scratch_operands = 1 : i64, tpu.core_type = #tpu.core_type<tc>, window_params = [{transform_indices = @transform_0, window_bounds = array<i64: 32, 128>}, {transform_indices = @transform_1, window_bounds = array<i64: 128, 128>}, {transform_indices = @transform_2, window_bounds = array<i64: 1, 128>}, {transform_indices = @transform_3, window_bounds = array<i64: 1, 128>}, {transform_indices = @transform_4, window_bounds = array<i64: 32, 128>}]} {
    %c0_i32 = arith.constant 0 : i32
    %0 = arith.cmpi eq, %arg2, %c0_i32 : i32
    %1 = arith.extui %0 : i1 to i32
    %c0_i32_0 = arith.constant 0 : i32
    %2 = arith.cmpi ne, %1, %c0_i32_0 : i32
    scf.if %2 {
      %cst_9 = arith.constant 0.000000e+00 : f32
      %12 = vector.broadcast %cst_9 : f32 to vector<32x128xf32>
      %c0_10 = arith.constant 0 : index
      %c0_11 = arith.constant 0 : index
      %13 = vector.load %arg8[%c0_10, %c0_11] : memref<32x128xf32, #tpu.memory_space<vmem>>, vector<32x128xf32>
      tpu.vector_store %arg8[%c0_10, %c0_11], %12 {strides = array<i32>} : memref<32x128xf32, #tpu.memory_space<vmem>>, vector<32x128xf32>,
    } else {
    }
    %c0 = arith.constant 0 : index
    %c0_1 = arith.constant 0 : index
    %3 = vector.load %arg8[%c0, %c0_1] : memref<32x128xf32, #tpu.memory_space<vmem>>, vector<32x128xf32>
    %c0_2 = arith.constant 0 : index
    %c0_3 = arith.constant 0 : index
    %4 = vector.load %arg3[%c0_2, %c0_3] : memref<32x128xbf16, #tpu.memory_space<vmem>>, vector<32x128xbf16>
    %c0_4 = arith.constant 0 : index
    %c0_5 = arith.constant 0 : index
    %5 = vector.load %arg4[%c0_4, %c0_5] : memref<128x128xbf16, #tpu.memory_space<vmem>>, vector<128x128xbf16>
    %cst = arith.constant dense<0.000000e+00> : vector<32x128xf32>
    %6 = tpu.matmul %4, %5, %cst {dimension_numbers = #tpu.dot_dimension_numbers<[1], [0], [0], [1], [0, 0, 1, 1], [], []>} : vector<32x128xbf16>, vector<128x128xbf16>, vector<32x128xf32> -> vector<32x128xf32>
    %7 = arith.addf %3, %6 : vector<32x128xf32>
    %c0_6 = arith.constant 0 : index
    %c0_7 = arith.constant 0 : index
    %8 = vector.load %arg8[%c0_6, %c0_7] : memref<32x128xf32, #tpu.memory_space<vmem>>, vector<32x128xf32>
    tpu.vector_store %arg8[%c0_6, %c0_7], %7 {strides = array<i32>} : memref<32x128xf32, #tpu.memory_space<vmem>>, vector<32x128xf32>,
    %c4_i32 = arith.constant 4 : i32
    %9 = arith.cmpi eq, %arg2, %c4_i32 : i32
    %10 = arith.extui %9 : i1 to i32
    %c0_i32_8 = arith.constant 0 : i32
    %11 = arith.cmpi ne, %10, %c0_i32_8 : i32
    scf.if %11 {
      %c0_9 = arith.constant 0 : index
      %c0_10 = arith.constant 0 : index
      %12 = vector.load %arg8[%c0_9, %c0_10] : memref<32x128xf32, #tpu.memory_space<vmem>>, vector<32x128xf32>
      %c0_11 = arith.constant 0 : index
      %c0_12 = arith.constant 0 : index
      %13 = vector.load %arg5[%c0_11, %c0_12] : memref<1x128xf32, #tpu.memory_space<vmem>>, vector<1x128xf32>
      %14 = vector.broadcast %13 : vector<1x128xf32> to vector<32x128xf32>
      %15 = arith.mulf %12, %14 : vector<32x128xf32>
      %c0_13 = arith.constant 0 : index
      %c0_14 = arith.constant 0 : index
      %16 = vector.load %arg6[%c0_13, %c0_14] : memref<1x128xf32, #tpu.memory_space<vmem>>, vector<1x128xf32>
      %17 = vector.broadcast %16 : vector<1x128xf32> to vector<32x128xf32>
      %18 = arith.addf %15, %17 : vector<32x128xf32>
      %cst_15 = arith.constant 0.000000e+00 : f32
      %19 = vector.broadcast %cst_15 : f32 to vector<32x128xf32>
      %20 = arith.maximumf %18, %19 : vector<32x128xf32>
      %c0_16 = arith.constant 0 : index
      %c0_17 = arith.constant 0 : index
      %21 = vector.load %arg7[%c0_16, %c0_17] : memref<32x128xf32, #tpu.memory_space<vmem>>, vector<32x128xf32>
      tpu.vector_store %arg7[%c0_16, %c0_17], %20 {strides = array<i32>} : memref<32x128xf32, #tpu.memory_space<vmem>>, vector<32x128xf32>,
    } else {
    }
    return
  }
  func.func @transform_0(%arg0: i32, %arg1: i32, %arg2: i32) -> (i32, i32) {
    %c0_i32 = arith.constant 0 : i32
    return %arg0, %arg2 : i32, i32
  }
  func.func @transform_1(%arg0: i32, %arg1: i32, %arg2: i32) -> (i32, i32) {
    %c0_i32 = arith.constant 0 : i32
    return %arg2, %arg1 : i32, i32
  }
  func.func @transform_2(%arg0: i32, %arg1: i32, %arg2: i32) -> (i32, i32) {
    %c0_i32 = arith.constant 0 : i32
    %c0_i32_0 = arith.constant 0 : i32
    return %c0_i32, %arg1 : i32, i32
  }
  func.func @transform_3(%arg0: i32, %arg1: i32, %arg2: i32) -> (i32, i32) {
    %c0_i32 = arith.constant 0 : i32
    %c0_i32_0 = arith.constant 0 : i32
    return %c0_i32, %arg1 : i32, i32
  }
  func.func @transform_4(%arg0: i32, %arg1: i32, %arg2: i32) -> (i32, i32) {
    %c0_i32 = arith.constant 0 : i32
    return %arg0, %arg1 : i32, i32
  }
}

module attributes {stable_mosaic.version = 11 : i64} {
  func.func @_matmul_affine_kernel(%arg0: i32, %arg1: i32, %arg2: i32, %arg3: memref<32x128xbf16, #tpu.memory_space<vmem>>, %arg4: memref<128x128xbf16, #tpu.memory_space<vmem>>, %arg5: memref<1x128xf32, #tpu.memory_space<vmem>>, %arg6: memref<1x128xf32, #tpu.memory_space<vmem>>, %arg7: memref<32x128xf32, #tpu.memory_space<vmem>>, %arg8: memref<32x128xf32, #tpu.memory_space<vmem>>) attributes {dimension_semantics = [#tpu.dimension_semantics<parallel>, #tpu.dimension_semantics<parallel>, #tpu.dimension_semantics<arbitrary>], iteration_bounds = array<i64: 1, 1, 1>, scalar_prefetch = 0 : i64, scratch_operands = 1 : i64, tpu.core_type = #tpu.core_type<tc>, window_params = [{transform_indices = @transform_0, window_bounds = array<i64: 32, 128>}, {transform_indices = @transform_1, window_bounds = array<i64: 128, 128>}, {transform_indices = @transform_2, window_bounds = array<i64: 1, 128>}, {transform_indices = @transform_3, window_bounds = array<i64: 1, 128>}, {transform_indices = @transform_4, window_bounds = array<i64: 32, 128>}]} {
    %c0_i32 = arith.constant 0 : i32
    %0 = arith.cmpi eq, %arg2, %c0_i32 : i32
    %1 = arith.extui %0 : i1 to i32
    %c0_i32_0 = arith.constant 0 : i32
    %2 = arith.cmpi ne, %1, %c0_i32_0 : i32
    scf.if %2 {
      %cst_10 = arith.constant 0.000000e+00 : f32
      %12 = vector.broadcast %cst_10 : f32 to vector<32x128xf32>
      %c0_11 = arith.constant 0 : index
      %c0_12 = arith.constant 0 : index
      %13 = vector.load %arg8[%c0_11, %c0_12] : memref<32x128xf32, #tpu.memory_space<vmem>>, vector<32x128xf32>
      tpu.vector_store %arg8[%c0_11, %c0_12], %12 {strides = array<i32>} : memref<32x128xf32, #tpu.memory_space<vmem>>, vector<32x128xf32>,
    } else {
    }
    %c0 = arith.constant 0 : index
    %c0_1 = arith.constant 0 : index
    %3 = vector.load %arg8[%c0, %c0_1] : memref<32x128xf32, #tpu.memory_space<vmem>>, vector<32x128xf32>
    %c0_2 = arith.constant 0 : index
    %c0_3 = arith.constant 0 : index
    %4 = vector.load %arg3[%c0_2, %c0_3] : memref<32x128xbf16, #tpu.memory_space<vmem>>, vector<32x128xbf16>
    %c0_4 = arith.constant 0 : index
    %c0_5 = arith.constant 0 : index
    %5 = vector.load %arg4[%c0_4, %c0_5] : memref<128x128xbf16, #tpu.memory_space<vmem>>, vector<128x128xbf16>
    %cst = arith.constant dense<0.000000e+00> : vector<32x128xf32>
    %6 = tpu.matmul %4, %5, %cst {dimension_numbers = #tpu.dot_dimension_numbers<[1], [0], [0], [1], [0, 0, 1, 1], [], []>} : vector<32x128xbf16>, vector<128x128xbf16>, vector<32x128xf32> -> vector<32x128xf32>
    %7 = arith.addf %3, %6 : vector<32x128xf32>
    %c0_6 = arith.constant 0 : index
    %c0_7 = arith.constant 0 : index
    %8 = vector.load %arg8[%c0_6, %c0_7] : memref<32x128xf32, #tpu.memory_space<vmem>>, vector<32x128xf32>
    tpu.vector_store %arg8[%c0_6, %c0_7], %7 {strides = array<i32>} : memref<32x128xf32, #tpu.memory_space<vmem>>, vector<32x128xf32>,
    %c0_i32_8 = arith.constant 0 : i32
    %9 = arith.cmpi eq, %arg2, %c0_i32_8 : i32
    %10 = arith.extui %9 : i1 to i32
    %c0_i32_9 = arith.constant 0 : i32
    %11 = arith.cmpi ne, %10, %c0_i32_9 : i32
    scf.if %11 {
      %c0_10 = arith.constant 0 : index
      %c0_11 = arith.constant 0 : index
      %12 = vector.load %arg8[%c0_10, %c0_11] : memref<32x128xf32, #tpu.memory_space<vmem>>, vector<32x128xf32>
      %c0_12 = arith.constant 0 : index
      %c0_13 = arith.constant 0 : index
      %13 = vector.load %arg5[%c0_12, %c0_13] : memref<1x128xf32, #tpu.memory_space<vmem>>, vector<1x128xf32>
      %14 = vector.broadcast %13 : vector<1x128xf32> to vector<32x128xf32>
      %15 = arith.mulf %12, %14 : vector<32x128xf32>
      %c0_14 = arith.constant 0 : index
      %c0_15 = arith.constant 0 : index
      %16 = vector.load %arg6[%c0_14, %c0_15] : memref<1x128xf32, #tpu.memory_space<vmem>>, vector<1x128xf32>
      %17 = vector.broadcast %16 : vector<1x128xf32> to vector<32x128xf32>
      %18 = arith.addf %15, %17 : vector<32x128xf32>
      %c0_16 = arith.constant 0 : index
      %c0_17 = arith.constant 0 : index
      %19 = vector.load %arg7[%c0_16, %c0_17] : memref<32x128xf32, #tpu.memory_space<vmem>>, vector<32x128xf32>
      tpu.vector_store %arg7[%c0_16, %c0_17], %18 {strides = array<i32>} : memref<32x128xf32, #tpu.memory_space<vmem>>, vector<32x128xf32>,
    } else {
    }
    return
  }
  func.func @transform_0(%arg0: i32, %arg1: i32, %arg2: i32) -> (i32, i32) {
    %c0_i32 = arith.constant 0 : i32
    return %arg0, %arg2 : i32, i32
  }
  func.func @transform_1(%arg0: i32, %arg1: i32, %arg2: i32) -> (i32, i32) {
    %c0_i32 = arith.constant 0 : i32
    return %arg2, %arg1 : i32, i32
  }
  func.func @transform_2(%arg0: i32, %arg1: i32, %arg2: i32) -> (i32, i32) {
    %c0_i32 = arith.constant 0 : i32
    %c0_i32_0 = arith.constant 0 : i32
    return %c0_i32, %arg1 : i32, i32
  }
  func.func @transform_3(%arg0: i32, %arg1: i32, %arg2: i32) -> (i32, i32) {
    %c0_i32 = arith.constant 0 : i32
    %c0_i32_0 = arith.constant 0 : i32
    return %c0_i32, %arg1 : i32, i32
  }
  func.func @transform_4(%arg0: i32, %arg1: i32, %arg2: i32) -> (i32, i32) {
    %c0_i32 = arith.constant 0 : i32
    return %arg0, %arg1 : i32, i32
  }
}

module attributes {stable_mosaic.version = 11 : i64} {
  func.func @_matmul_affine_res_kernel(%arg0: i32, %arg1: i32, %arg2: i32, %arg3: memref<32x128xbf16, #tpu.memory_space<vmem>>, %arg4: memref<128x128xbf16, #tpu.memory_space<vmem>>, %arg5: memref<1x128xf32, #tpu.memory_space<vmem>>, %arg6: memref<1x128xf32, #tpu.memory_space<vmem>>, %arg7: memref<32x128xf32, #tpu.memory_space<vmem>>, %arg8: memref<32x128xf32, #tpu.memory_space<vmem>>, %arg9: memref<32x128xf32, #tpu.memory_space<vmem>>) attributes {dimension_semantics = [#tpu.dimension_semantics<parallel>, #tpu.dimension_semantics<parallel>, #tpu.dimension_semantics<arbitrary>], iteration_bounds = array<i64: 1, 1, 9>, scalar_prefetch = 0 : i64, scratch_operands = 1 : i64, tpu.core_type = #tpu.core_type<tc>, window_params = [{transform_indices = @transform_0, window_bounds = array<i64: 32, 128>}, {transform_indices = @transform_1, window_bounds = array<i64: 128, 128>}, {transform_indices = @transform_2, window_bounds = array<i64: 1, 128>}, {transform_indices = @transform_3, window_bounds = array<i64: 1, 128>}, {transform_indices = @transform_4, window_bounds = array<i64: 32, 128>}, {transform_indices = @transform_5, window_bounds = array<i64: 32, 128>}]} {
    %c0_i32 = arith.constant 0 : i32
    %0 = arith.cmpi eq, %arg2, %c0_i32 : i32
    %1 = arith.extui %0 : i1 to i32
    %c0_i32_0 = arith.constant 0 : i32
    %2 = arith.cmpi ne, %1, %c0_i32_0 : i32
    scf.if %2 {
      %cst_9 = arith.constant 0.000000e+00 : f32
      %12 = vector.broadcast %cst_9 : f32 to vector<32x128xf32>
      %c0_10 = arith.constant 0 : index
      %c0_11 = arith.constant 0 : index
      %13 = vector.load %arg9[%c0_10, %c0_11] : memref<32x128xf32, #tpu.memory_space<vmem>>, vector<32x128xf32>
      tpu.vector_store %arg9[%c0_10, %c0_11], %12 {strides = array<i32>} : memref<32x128xf32, #tpu.memory_space<vmem>>, vector<32x128xf32>,
    } else {
    }
    %c0 = arith.constant 0 : index
    %c0_1 = arith.constant 0 : index
    %3 = vector.load %arg9[%c0, %c0_1] : memref<32x128xf32, #tpu.memory_space<vmem>>, vector<32x128xf32>
    %c0_2 = arith.constant 0 : index
    %c0_3 = arith.constant 0 : index
    %4 = vector.load %arg3[%c0_2, %c0_3] : memref<32x128xbf16, #tpu.memory_space<vmem>>, vector<32x128xbf16>
    %c0_4 = arith.constant 0 : index
    %c0_5 = arith.constant 0 : index
    %5 = vector.load %arg4[%c0_4, %c0_5] : memref<128x128xbf16, #tpu.memory_space<vmem>>, vector<128x128xbf16>
    %cst = arith.constant dense<0.000000e+00> : vector<32x128xf32>
    %6 = tpu.matmul %4, %5, %cst {dimension_numbers = #tpu.dot_dimension_numbers<[1], [0], [0], [1], [0, 0, 1, 1], [], []>} : vector<32x128xbf16>, vector<128x128xbf16>, vector<32x128xf32> -> vector<32x128xf32>
    %7 = arith.addf %3, %6 : vector<32x128xf32>
    %c0_6 = arith.constant 0 : index
    %c0_7 = arith.constant 0 : index
    %8 = vector.load %arg9[%c0_6, %c0_7] : memref<32x128xf32, #tpu.memory_space<vmem>>, vector<32x128xf32>
    tpu.vector_store %arg9[%c0_6, %c0_7], %7 {strides = array<i32>} : memref<32x128xf32, #tpu.memory_space<vmem>>, vector<32x128xf32>,
    %c8_i32 = arith.constant 8 : i32
    %9 = arith.cmpi eq, %arg2, %c8_i32 : i32
    %10 = arith.extui %9 : i1 to i32
    %c0_i32_8 = arith.constant 0 : i32
    %11 = arith.cmpi ne, %10, %c0_i32_8 : i32
    scf.if %11 {
      %c0_9 = arith.constant 0 : index
      %c0_10 = arith.constant 0 : index
      %12 = vector.load %arg9[%c0_9, %c0_10] : memref<32x128xf32, #tpu.memory_space<vmem>>, vector<32x128xf32>
      %c0_11 = arith.constant 0 : index
      %c0_12 = arith.constant 0 : index
      %13 = vector.load %arg5[%c0_11, %c0_12] : memref<1x128xf32, #tpu.memory_space<vmem>>, vector<1x128xf32>
      %14 = vector.broadcast %13 : vector<1x128xf32> to vector<32x128xf32>
      %15 = arith.mulf %12, %14 : vector<32x128xf32>
      %c0_13 = arith.constant 0 : index
      %c0_14 = arith.constant 0 : index
      %16 = vector.load %arg6[%c0_13, %c0_14] : memref<1x128xf32, #tpu.memory_space<vmem>>, vector<1x128xf32>
      %17 = vector.broadcast %16 : vector<1x128xf32> to vector<32x128xf32>
      %18 = arith.addf %15, %17 : vector<32x128xf32>
      %c0_15 = arith.constant 0 : index
      %c0_16 = arith.constant 0 : index
      %19 = vector.load %arg7[%c0_15, %c0_16] : memref<32x128xf32, #tpu.memory_space<vmem>>, vector<32x128xf32>
      %20 = arith.addf %18, %19 : vector<32x128xf32>
      %cst_17 = arith.constant 0.000000e+00 : f32
      %21 = vector.broadcast %cst_17 : f32 to vector<32x128xf32>
      %22 = arith.maximumf %20, %21 : vector<32x128xf32>
      %c0_18 = arith.constant 0 : index
      %c0_19 = arith.constant 0 : index
      %23 = vector.load %arg8[%c0_18, %c0_19] : memref<32x128xf32, #tpu.memory_space<vmem>>, vector<32x128xf32>
      tpu.vector_store %arg8[%c0_18, %c0_19], %22 {strides = array<i32>} : memref<32x128xf32, #tpu.memory_space<vmem>>, vector<32x128xf32>,
    } else {
    }
    return
  }
  func.func @transform_0(%arg0: i32, %arg1: i32, %arg2: i32) -> (i32, i32) {
    %c0_i32 = arith.constant 0 : i32
    return %arg0, %arg2 : i32, i32
  }
  func.func @transform_1(%arg0: i32, %arg1: i32, %arg2: i32) -> (i32, i32) {
    %c0_i32 = arith.constant 0 : i32
    return %arg2, %arg1 : i32, i32
  }
  func.func @transform_2(%arg0: i32, %arg1: i32, %arg2: i32) -> (i32, i32) {
    %c0_i32 = arith.constant 0 : i32
    %c0_i32_0 = arith.constant 0 : i32
    return %c0_i32, %arg1 : i32, i32
  }
  func.func @transform_3(%arg0: i32, %arg1: i32, %arg2: i32) -> (i32, i32) {
    %c0_i32 = arith.constant 0 : i32
    %c0_i32_0 = arith.constant 0 : i32
    return %c0_i32, %arg1 : i32, i32
  }
  func.func @transform_4(%arg0: i32, %arg1: i32, %arg2: i32) -> (i32, i32) {
    %c0_i32 = arith.constant 0 : i32
    return %arg0, %arg1 : i32, i32
  }
  func.func @transform_5(%arg0: i32, %arg1: i32, %arg2: i32) -> (i32, i32) {
    %c0_i32 = arith.constant 0 : i32
    return %arg0, %arg1 : i32, i32
  }
}

module attributes {stable_mosaic.version = 11 : i64} {
  func.func @_matmul_affine_kernel(%arg0: i32, %arg1: i32, %arg2: i32, %arg3: memref<32x128xbf16, #tpu.memory_space<vmem>>, %arg4: memref<128x128xbf16, #tpu.memory_space<vmem>>, %arg5: memref<1x128xf32, #tpu.memory_space<vmem>>, %arg6: memref<1x128xf32, #tpu.memory_space<vmem>>, %arg7: memref<32x128xf32, #tpu.memory_space<vmem>>, %arg8: memref<32x128xf32, #tpu.memory_space<vmem>>) attributes {dimension_semantics = [#tpu.dimension_semantics<parallel>, #tpu.dimension_semantics<parallel>, #tpu.dimension_semantics<arbitrary>], iteration_bounds = array<i64: 1, 1, 9>, scalar_prefetch = 0 : i64, scratch_operands = 1 : i64, tpu.core_type = #tpu.core_type<tc>, window_params = [{transform_indices = @transform_0, window_bounds = array<i64: 32, 128>}, {transform_indices = @transform_1, window_bounds = array<i64: 128, 128>}, {transform_indices = @transform_2, window_bounds = array<i64: 1, 128>}, {transform_indices = @transform_3, window_bounds = array<i64: 1, 128>}, {transform_indices = @transform_4, window_bounds = array<i64: 32, 128>}]} {
    %c0_i32 = arith.constant 0 : i32
    %0 = arith.cmpi eq, %arg2, %c0_i32 : i32
    %1 = arith.extui %0 : i1 to i32
    %c0_i32_0 = arith.constant 0 : i32
    %2 = arith.cmpi ne, %1, %c0_i32_0 : i32
    scf.if %2 {
      %cst_9 = arith.constant 0.000000e+00 : f32
      %12 = vector.broadcast %cst_9 : f32 to vector<32x128xf32>
      %c0_10 = arith.constant 0 : index
      %c0_11 = arith.constant 0 : index
      %13 = vector.load %arg8[%c0_10, %c0_11] : memref<32x128xf32, #tpu.memory_space<vmem>>, vector<32x128xf32>
      tpu.vector_store %arg8[%c0_10, %c0_11], %12 {strides = array<i32>} : memref<32x128xf32, #tpu.memory_space<vmem>>, vector<32x128xf32>,
    } else {
    }
    %c0 = arith.constant 0 : index
    %c0_1 = arith.constant 0 : index
    %3 = vector.load %arg8[%c0, %c0_1] : memref<32x128xf32, #tpu.memory_space<vmem>>, vector<32x128xf32>
    %c0_2 = arith.constant 0 : index
    %c0_3 = arith.constant 0 : index
    %4 = vector.load %arg3[%c0_2, %c0_3] : memref<32x128xbf16, #tpu.memory_space<vmem>>, vector<32x128xbf16>
    %c0_4 = arith.constant 0 : index
    %c0_5 = arith.constant 0 : index
    %5 = vector.load %arg4[%c0_4, %c0_5] : memref<128x128xbf16, #tpu.memory_space<vmem>>, vector<128x128xbf16>
    %cst = arith.constant dense<0.000000e+00> : vector<32x128xf32>
    %6 = tpu.matmul %4, %5, %cst {dimension_numbers = #tpu.dot_dimension_numbers<[1], [0], [0], [1], [0, 0, 1, 1], [], []>} : vector<32x128xbf16>, vector<128x128xbf16>, vector<32x128xf32> -> vector<32x128xf32>
    %7 = arith.addf %3, %6 : vector<32x128xf32>
    %c0_6 = arith.constant 0 : index
    %c0_7 = arith.constant 0 : index
    %8 = vector.load %arg8[%c0_6, %c0_7] : memref<32x128xf32, #tpu.memory_space<vmem>>, vector<32x128xf32>
    tpu.vector_store %arg8[%c0_6, %c0_7], %7 {strides = array<i32>} : memref<32x128xf32, #tpu.memory_space<vmem>>, vector<32x128xf32>,
    %c8_i32 = arith.constant 8 : i32
    %9 = arith.cmpi eq, %arg2, %c8_i32 : i32
    %10 = arith.extui %9 : i1 to i32
    %c0_i32_8 = arith.constant 0 : i32
    %11 = arith.cmpi ne, %10, %c0_i32_8 : i32
    scf.if %11 {
      %c0_9 = arith.constant 0 : index
      %c0_10 = arith.constant 0 : index
      %12 = vector.load %arg8[%c0_9, %c0_10] : memref<32x128xf32, #tpu.memory_space<vmem>>, vector<32x128xf32>
      %c0_11 = arith.constant 0 : index
      %c0_12 = arith.constant 0 : index
      %13 = vector.load %arg5[%c0_11, %c0_12] : memref<1x128xf32, #tpu.memory_space<vmem>>, vector<1x128xf32>
      %14 = vector.broadcast %13 : vector<1x128xf32> to vector<32x128xf32>
      %15 = arith.mulf %12, %14 : vector<32x128xf32>
      %c0_13 = arith.constant 0 : index
      %c0_14 = arith.constant 0 : index
      %16 = vector.load %arg6[%c0_13, %c0_14] : memref<1x128xf32, #tpu.memory_space<vmem>>, vector<1x128xf32>
      %17 = vector.broadcast %16 : vector<1x128xf32> to vector<32x128xf32>
      %18 = arith.addf %15, %17 : vector<32x128xf32>
      %cst_15 = arith.constant 0.000000e+00 : f32
      %19 = vector.broadcast %cst_15 : f32 to vector<32x128xf32>
      %20 = arith.maximumf %18, %19 : vector<32x128xf32>
      %c0_16 = arith.constant 0 : index
      %c0_17 = arith.constant 0 : index
      %21 = vector.load %arg7[%c0_16, %c0_17] : memref<32x128xf32, #tpu.memory_space<vmem>>, vector<32x128xf32>
      tpu.vector_store %arg7[%c0_16, %c0_17], %20 {strides = array<i32>} : memref<32x128xf32, #tpu.memory_space<vmem>>, vector<32x128xf32>,
    } else {
    }
    return
  }
  func.func @transform_0(%arg0: i32, %arg1: i32, %arg2: i32) -> (i32, i32) {
    %c0_i32 = arith.constant 0 : i32
    return %arg0, %arg2 : i32, i32
  }
  func.func @transform_1(%arg0: i32, %arg1: i32, %arg2: i32) -> (i32, i32) {
    %c0_i32 = arith.constant 0 : i32
    return %arg2, %arg1 : i32, i32
  }
  func.func @transform_2(%arg0: i32, %arg1: i32, %arg2: i32) -> (i32, i32) {
    %c0_i32 = arith.constant 0 : i32
    %c0_i32_0 = arith.constant 0 : i32
    return %c0_i32, %arg1 : i32, i32
  }
  func.func @transform_3(%arg0: i32, %arg1: i32, %arg2: i32) -> (i32, i32) {
    %c0_i32 = arith.constant 0 : i32
    %c0_i32_0 = arith.constant 0 : i32
    return %c0_i32, %arg1 : i32, i32
  }
  func.func @transform_4(%arg0: i32, %arg1: i32, %arg2: i32) -> (i32, i32) {
    %c0_i32 = arith.constant 0 : i32
    return %arg0, %arg1 : i32, i32
  }
}

module attributes {stable_mosaic.version = 11 : i64} {
  func.func @_matmul_affine_kernel(%arg0: i32, %arg1: i32, %arg2: i32, %arg3: memref<8x128xbf16, #tpu.memory_space<vmem>>, %arg4: memref<128x256xbf16, #tpu.memory_space<vmem>>, %arg5: memref<1x256xf32, #tpu.memory_space<vmem>>, %arg6: memref<1x256xf32, #tpu.memory_space<vmem>>, %arg7: memref<8x256xf32, #tpu.memory_space<vmem>>, %arg8: memref<8x256xf32, #tpu.memory_space<vmem>>) attributes {dimension_semantics = [#tpu.dimension_semantics<parallel>, #tpu.dimension_semantics<parallel>, #tpu.dimension_semantics<arbitrary>], iteration_bounds = array<i64: 1, 1, 9>, scalar_prefetch = 0 : i64, scratch_operands = 1 : i64, tpu.core_type = #tpu.core_type<tc>, window_params = [{transform_indices = @transform_0, window_bounds = array<i64: 8, 128>}, {transform_indices = @transform_1, window_bounds = array<i64: 128, 256>}, {transform_indices = @transform_2, window_bounds = array<i64: 1, 256>}, {transform_indices = @transform_3, window_bounds = array<i64: 1, 256>}, {transform_indices = @transform_4, window_bounds = array<i64: 8, 256>}]} {
    %c0_i32 = arith.constant 0 : i32
    %0 = arith.cmpi eq, %arg2, %c0_i32 : i32
    %1 = arith.extui %0 : i1 to i32
    %c0_i32_0 = arith.constant 0 : i32
    %2 = arith.cmpi ne, %1, %c0_i32_0 : i32
    scf.if %2 {
      %cst_9 = arith.constant 0.000000e+00 : f32
      %12 = vector.broadcast %cst_9 : f32 to vector<8x256xf32>
      %c0_10 = arith.constant 0 : index
      %c0_11 = arith.constant 0 : index
      %13 = vector.load %arg8[%c0_10, %c0_11] : memref<8x256xf32, #tpu.memory_space<vmem>>, vector<8x256xf32>
      tpu.vector_store %arg8[%c0_10, %c0_11], %12 {strides = array<i32>} : memref<8x256xf32, #tpu.memory_space<vmem>>, vector<8x256xf32>,
    } else {
    }
    %c0 = arith.constant 0 : index
    %c0_1 = arith.constant 0 : index
    %3 = vector.load %arg8[%c0, %c0_1] : memref<8x256xf32, #tpu.memory_space<vmem>>, vector<8x256xf32>
    %c0_2 = arith.constant 0 : index
    %c0_3 = arith.constant 0 : index
    %4 = vector.load %arg3[%c0_2, %c0_3] : memref<8x128xbf16, #tpu.memory_space<vmem>>, vector<8x128xbf16>
    %c0_4 = arith.constant 0 : index
    %c0_5 = arith.constant 0 : index
    %5 = vector.load %arg4[%c0_4, %c0_5] : memref<128x256xbf16, #tpu.memory_space<vmem>>, vector<128x256xbf16>
    %cst = arith.constant dense<0.000000e+00> : vector<8x256xf32>
    %6 = tpu.matmul %4, %5, %cst {dimension_numbers = #tpu.dot_dimension_numbers<[1], [0], [0], [1], [0, 0, 1, 1], [], []>} : vector<8x128xbf16>, vector<128x256xbf16>, vector<8x256xf32> -> vector<8x256xf32>
    %7 = arith.addf %3, %6 : vector<8x256xf32>
    %c0_6 = arith.constant 0 : index
    %c0_7 = arith.constant 0 : index
    %8 = vector.load %arg8[%c0_6, %c0_7] : memref<8x256xf32, #tpu.memory_space<vmem>>, vector<8x256xf32>
    tpu.vector_store %arg8[%c0_6, %c0_7], %7 {strides = array<i32>} : memref<8x256xf32, #tpu.memory_space<vmem>>, vector<8x256xf32>,
    %c8_i32 = arith.constant 8 : i32
    %9 = arith.cmpi eq, %arg2, %c8_i32 : i32
    %10 = arith.extui %9 : i1 to i32
    %c0_i32_8 = arith.constant 0 : i32
    %11 = arith.cmpi ne, %10, %c0_i32_8 : i32
    scf.if %11 {
      %c0_9 = arith.constant 0 : index
      %c0_10 = arith.constant 0 : index
      %12 = vector.load %arg8[%c0_9, %c0_10] : memref<8x256xf32, #tpu.memory_space<vmem>>, vector<8x256xf32>
      %c0_11 = arith.constant 0 : index
      %c0_12 = arith.constant 0 : index
      %13 = vector.load %arg5[%c0_11, %c0_12] : memref<1x256xf32, #tpu.memory_space<vmem>>, vector<1x256xf32>
      %14 = vector.broadcast %13 : vector<1x256xf32> to vector<8x256xf32>
      %15 = arith.mulf %12, %14 : vector<8x256xf32>
      %c0_13 = arith.constant 0 : index
      %c0_14 = arith.constant 0 : index
      %16 = vector.load %arg6[%c0_13, %c0_14] : memref<1x256xf32, #tpu.memory_space<vmem>>, vector<1x256xf32>
      %17 = vector.broadcast %16 : vector<1x256xf32> to vector<8x256xf32>
      %18 = arith.addf %15, %17 : vector<8x256xf32>
      %cst_15 = arith.constant 0.000000e+00 : f32
      %19 = vector.broadcast %cst_15 : f32 to vector<8x256xf32>
      %20 = arith.maximumf %18, %19 : vector<8x256xf32>
      %c0_16 = arith.constant 0 : index
      %c0_17 = arith.constant 0 : index
      %21 = vector.load %arg7[%c0_16, %c0_17] : memref<8x256xf32, #tpu.memory_space<vmem>>, vector<8x256xf32>
      tpu.vector_store %arg7[%c0_16, %c0_17], %20 {strides = array<i32>} : memref<8x256xf32, #tpu.memory_space<vmem>>, vector<8x256xf32>,
    } else {
    }
    return
  }
  func.func @transform_0(%arg0: i32, %arg1: i32, %arg2: i32) -> (i32, i32) {
    %c0_i32 = arith.constant 0 : i32
    return %arg0, %arg2 : i32, i32
  }
  func.func @transform_1(%arg0: i32, %arg1: i32, %arg2: i32) -> (i32, i32) {
    %c0_i32 = arith.constant 0 : i32
    return %arg2, %arg1 : i32, i32
  }
  func.func @transform_2(%arg0: i32, %arg1: i32, %arg2: i32) -> (i32, i32) {
    %c0_i32 = arith.constant 0 : i32
    %c0_i32_0 = arith.constant 0 : i32
    return %c0_i32, %arg1 : i32, i32
  }
  func.func @transform_3(%arg0: i32, %arg1: i32, %arg2: i32) -> (i32, i32) {
    %c0_i32 = arith.constant 0 : i32
    %c0_i32_0 = arith.constant 0 : i32
    return %c0_i32, %arg1 : i32, i32
  }
  func.func @transform_4(%arg0: i32, %arg1: i32, %arg2: i32) -> (i32, i32) {
    %c0_i32 = arith.constant 0 : i32
    return %arg0, %arg1 : i32, i32
  }
}

module attributes {stable_mosaic.version = 11 : i64} {
  func.func @_matmul_affine_kernel(%arg0: i32, %arg1: i32, %arg2: i32, %arg3: memref<8x128xbf16, #tpu.memory_space<vmem>>, %arg4: memref<128x256xbf16, #tpu.memory_space<vmem>>, %arg5: memref<1x256xf32, #tpu.memory_space<vmem>>, %arg6: memref<1x256xf32, #tpu.memory_space<vmem>>, %arg7: memref<8x256xf32, #tpu.memory_space<vmem>>, %arg8: memref<8x256xf32, #tpu.memory_space<vmem>>) attributes {dimension_semantics = [#tpu.dimension_semantics<parallel>, #tpu.dimension_semantics<parallel>, #tpu.dimension_semantics<arbitrary>], iteration_bounds = array<i64: 1, 1, 1>, scalar_prefetch = 0 : i64, scratch_operands = 1 : i64, tpu.core_type = #tpu.core_type<tc>, window_params = [{transform_indices = @transform_0, window_bounds = array<i64: 8, 128>}, {transform_indices = @transform_1, window_bounds = array<i64: 128, 256>}, {transform_indices = @transform_2, window_bounds = array<i64: 1, 256>}, {transform_indices = @transform_3, window_bounds = array<i64: 1, 256>}, {transform_indices = @transform_4, window_bounds = array<i64: 8, 256>}]} {
    %c0_i32 = arith.constant 0 : i32
    %0 = arith.cmpi eq, %arg2, %c0_i32 : i32
    %1 = arith.extui %0 : i1 to i32
    %c0_i32_0 = arith.constant 0 : i32
    %2 = arith.cmpi ne, %1, %c0_i32_0 : i32
    scf.if %2 {
      %cst_10 = arith.constant 0.000000e+00 : f32
      %12 = vector.broadcast %cst_10 : f32 to vector<8x256xf32>
      %c0_11 = arith.constant 0 : index
      %c0_12 = arith.constant 0 : index
      %13 = vector.load %arg8[%c0_11, %c0_12] : memref<8x256xf32, #tpu.memory_space<vmem>>, vector<8x256xf32>
      tpu.vector_store %arg8[%c0_11, %c0_12], %12 {strides = array<i32>} : memref<8x256xf32, #tpu.memory_space<vmem>>, vector<8x256xf32>,
    } else {
    }
    %c0 = arith.constant 0 : index
    %c0_1 = arith.constant 0 : index
    %3 = vector.load %arg8[%c0, %c0_1] : memref<8x256xf32, #tpu.memory_space<vmem>>, vector<8x256xf32>
    %c0_2 = arith.constant 0 : index
    %c0_3 = arith.constant 0 : index
    %4 = vector.load %arg3[%c0_2, %c0_3] : memref<8x128xbf16, #tpu.memory_space<vmem>>, vector<8x128xbf16>
    %c0_4 = arith.constant 0 : index
    %c0_5 = arith.constant 0 : index
    %5 = vector.load %arg4[%c0_4, %c0_5] : memref<128x256xbf16, #tpu.memory_space<vmem>>, vector<128x256xbf16>
    %cst = arith.constant dense<0.000000e+00> : vector<8x256xf32>
    %6 = tpu.matmul %4, %5, %cst {dimension_numbers = #tpu.dot_dimension_numbers<[1], [0], [0], [1], [0, 0, 1, 1], [], []>} : vector<8x128xbf16>, vector<128x256xbf16>, vector<8x256xf32> -> vector<8x256xf32>
    %7 = arith.addf %3, %6 : vector<8x256xf32>
    %c0_6 = arith.constant 0 : index
    %c0_7 = arith.constant 0 : index
    %8 = vector.load %arg8[%c0_6, %c0_7] : memref<8x256xf32, #tpu.memory_space<vmem>>, vector<8x256xf32>
    tpu.vector_store %arg8[%c0_6, %c0_7], %7 {strides = array<i32>} : memref<8x256xf32, #tpu.memory_space<vmem>>, vector<8x256xf32>,
    %c0_i32_8 = arith.constant 0 : i32
    %9 = arith.cmpi eq, %arg2, %c0_i32_8 : i32
    %10 = arith.extui %9 : i1 to i32
    %c0_i32_9 = arith.constant 0 : i32
    %11 = arith.cmpi ne, %10, %c0_i32_9 : i32
    scf.if %11 {
      %c0_10 = arith.constant 0 : index
      %c0_11 = arith.constant 0 : index
      %12 = vector.load %arg8[%c0_10, %c0_11] : memref<8x256xf32, #tpu.memory_space<vmem>>, vector<8x256xf32>
      %c0_12 = arith.constant 0 : index
      %c0_13 = arith.constant 0 : index
      %13 = vector.load %arg5[%c0_12, %c0_13] : memref<1x256xf32, #tpu.memory_space<vmem>>, vector<1x256xf32>
      %14 = vector.broadcast %13 : vector<1x256xf32> to vector<8x256xf32>
      %15 = arith.mulf %12, %14 : vector<8x256xf32>
      %c0_14 = arith.constant 0 : index
      %c0_15 = arith.constant 0 : index
      %16 = vector.load %arg6[%c0_14, %c0_15] : memref<1x256xf32, #tpu.memory_space<vmem>>, vector<1x256xf32>
      %17 = vector.broadcast %16 : vector<1x256xf32> to vector<8x256xf32>
      %18 = arith.addf %15, %17 : vector<8x256xf32>
      %c0_16 = arith.constant 0 : index
      %c0_17 = arith.constant 0 : index
      %19 = vector.load %arg7[%c0_16, %c0_17] : memref<8x256xf32, #tpu.memory_space<vmem>>, vector<8x256xf32>
      tpu.vector_store %arg7[%c0_16, %c0_17], %18 {strides = array<i32>} : memref<8x256xf32, #tpu.memory_space<vmem>>, vector<8x256xf32>,
    } else {
    }
    return
  }
  func.func @transform_0(%arg0: i32, %arg1: i32, %arg2: i32) -> (i32, i32) {
    %c0_i32 = arith.constant 0 : i32
    return %arg0, %arg2 : i32, i32
  }
  func.func @transform_1(%arg0: i32, %arg1: i32, %arg2: i32) -> (i32, i32) {
    %c0_i32 = arith.constant 0 : i32
    return %arg2, %arg1 : i32, i32
  }
  func.func @transform_2(%arg0: i32, %arg1: i32, %arg2: i32) -> (i32, i32) {
    %c0_i32 = arith.constant 0 : i32
    %c0_i32_0 = arith.constant 0 : i32
    return %c0_i32, %arg1 : i32, i32
  }
  func.func @transform_3(%arg0: i32, %arg1: i32, %arg2: i32) -> (i32, i32) {
    %c0_i32 = arith.constant 0 : i32
    %c0_i32_0 = arith.constant 0 : i32
    return %c0_i32, %arg1 : i32, i32
  }
  func.func @transform_4(%arg0: i32, %arg1: i32, %arg2: i32) -> (i32, i32) {
    %c0_i32 = arith.constant 0 : i32
    return %arg0, %arg1 : i32, i32
  }
}

module attributes {stable_mosaic.version = 11 : i64} {
  func.func @_matmul_affine_res_kernel(%arg0: i32, %arg1: i32, %arg2: i32, %arg3: memref<8x256xbf16, #tpu.memory_space<vmem>>, %arg4: memref<256x256xbf16, #tpu.memory_space<vmem>>, %arg5: memref<1x256xf32, #tpu.memory_space<vmem>>, %arg6: memref<1x256xf32, #tpu.memory_space<vmem>>, %arg7: memref<8x256xf32, #tpu.memory_space<vmem>>, %arg8: memref<8x256xf32, #tpu.memory_space<vmem>>, %arg9: memref<8x256xf32, #tpu.memory_space<vmem>>) attributes {dimension_semantics = [#tpu.dimension_semantics<parallel>, #tpu.dimension_semantics<parallel>, #tpu.dimension_semantics<arbitrary>], iteration_bounds = array<i64: 1, 1, 9>, scalar_prefetch = 0 : i64, scratch_operands = 1 : i64, tpu.core_type = #tpu.core_type<tc>, window_params = [{transform_indices = @transform_0, window_bounds = array<i64: 8, 256>}, {transform_indices = @transform_1, window_bounds = array<i64: 256, 256>}, {transform_indices = @transform_2, window_bounds = array<i64: 1, 256>}, {transform_indices = @transform_3, window_bounds = array<i64: 1, 256>}, {transform_indices = @transform_4, window_bounds = array<i64: 8, 256>}, {transform_indices = @transform_5, window_bounds = array<i64: 8, 256>}]} {
    %c0_i32 = arith.constant 0 : i32
    %0 = arith.cmpi eq, %arg2, %c0_i32 : i32
    %1 = arith.extui %0 : i1 to i32
    %c0_i32_0 = arith.constant 0 : i32
    %2 = arith.cmpi ne, %1, %c0_i32_0 : i32
    scf.if %2 {
      %cst_9 = arith.constant 0.000000e+00 : f32
      %12 = vector.broadcast %cst_9 : f32 to vector<8x256xf32>
      %c0_10 = arith.constant 0 : index
      %c0_11 = arith.constant 0 : index
      %13 = vector.load %arg9[%c0_10, %c0_11] : memref<8x256xf32, #tpu.memory_space<vmem>>, vector<8x256xf32>
      tpu.vector_store %arg9[%c0_10, %c0_11], %12 {strides = array<i32>} : memref<8x256xf32, #tpu.memory_space<vmem>>, vector<8x256xf32>,
    } else {
    }
    %c0 = arith.constant 0 : index
    %c0_1 = arith.constant 0 : index
    %3 = vector.load %arg9[%c0, %c0_1] : memref<8x256xf32, #tpu.memory_space<vmem>>, vector<8x256xf32>
    %c0_2 = arith.constant 0 : index
    %c0_3 = arith.constant 0 : index
    %4 = vector.load %arg3[%c0_2, %c0_3] : memref<8x256xbf16, #tpu.memory_space<vmem>>, vector<8x256xbf16>
    %c0_4 = arith.constant 0 : index
    %c0_5 = arith.constant 0 : index
    %5 = vector.load %arg4[%c0_4, %c0_5] : memref<256x256xbf16, #tpu.memory_space<vmem>>, vector<256x256xbf16>
    %cst = arith.constant dense<0.000000e+00> : vector<8x256xf32>
    %6 = tpu.matmul %4, %5, %cst {dimension_numbers = #tpu.dot_dimension_numbers<[1], [0], [0], [1], [0, 0, 1, 1], [], []>} : vector<8x256xbf16>, vector<256x256xbf16>, vector<8x256xf32> -> vector<8x256xf32>
    %7 = arith.addf %3, %6 : vector<8x256xf32>
    %c0_6 = arith.constant 0 : index
    %c0_7 = arith.constant 0 : index
    %8 = vector.load %arg9[%c0_6, %c0_7] : memref<8x256xf32, #tpu.memory_space<vmem>>, vector<8x256xf32>
    tpu.vector_store %arg9[%c0_6, %c0_7], %7 {strides = array<i32>} : memref<8x256xf32, #tpu.memory_space<vmem>>, vector<8x256xf32>,
    %c8_i32 = arith.constant 8 : i32
    %9 = arith.cmpi eq, %arg2, %c8_i32 : i32
    %10 = arith.extui %9 : i1 to i32
    %c0_i32_8 = arith.constant 0 : i32
    %11 = arith.cmpi ne, %10, %c0_i32_8 : i32
    scf.if %11 {
      %c0_9 = arith.constant 0 : index
      %c0_10 = arith.constant 0 : index
      %12 = vector.load %arg9[%c0_9, %c0_10] : memref<8x256xf32, #tpu.memory_space<vmem>>, vector<8x256xf32>
      %c0_11 = arith.constant 0 : index
      %c0_12 = arith.constant 0 : index
      %13 = vector.load %arg5[%c0_11, %c0_12] : memref<1x256xf32, #tpu.memory_space<vmem>>, vector<1x256xf32>
      %14 = vector.broadcast %13 : vector<1x256xf32> to vector<8x256xf32>
      %15 = arith.mulf %12, %14 : vector<8x256xf32>
      %c0_13 = arith.constant 0 : index
      %c0_14 = arith.constant 0 : index
      %16 = vector.load %arg6[%c0_13, %c0_14] : memref<1x256xf32, #tpu.memory_space<vmem>>, vector<1x256xf32>
      %17 = vector.broadcast %16 : vector<1x256xf32> to vector<8x256xf32>
      %18 = arith.addf %15, %17 : vector<8x256xf32>
      %c0_15 = arith.constant 0 : index
      %c0_16 = arith.constant 0 : index
      %19 = vector.load %arg7[%c0_15, %c0_16] : memref<8x256xf32, #tpu.memory_space<vmem>>, vector<8x256xf32>
      %20 = arith.addf %18, %19 : vector<8x256xf32>
      %cst_17 = arith.constant 0.000000e+00 : f32
      %21 = vector.broadcast %cst_17 : f32 to vector<8x256xf32>
      %22 = arith.maximumf %20, %21 : vector<8x256xf32>
      %c0_18 = arith.constant 0 : index
      %c0_19 = arith.constant 0 : index
      %23 = vector.load %arg8[%c0_18, %c0_19] : memref<8x256xf32, #tpu.memory_space<vmem>>, vector<8x256xf32>
      tpu.vector_store %arg8[%c0_18, %c0_19], %22 {strides = array<i32>} : memref<8x256xf32, #tpu.memory_space<vmem>>, vector<8x256xf32>,
    } else {
    }
    return
  }
  func.func @transform_0(%arg0: i32, %arg1: i32, %arg2: i32) -> (i32, i32) {
    %c0_i32 = arith.constant 0 : i32
    return %arg0, %arg2 : i32, i32
  }
  func.func @transform_1(%arg0: i32, %arg1: i32, %arg2: i32) -> (i32, i32) {
    %c0_i32 = arith.constant 0 : i32
    return %arg2, %arg1 : i32, i32
  }
  func.func @transform_2(%arg0: i32, %arg1: i32, %arg2: i32) -> (i32, i32) {
    %c0_i32 = arith.constant 0 : i32
    %c0_i32_0 = arith.constant 0 : i32
    return %c0_i32, %arg1 : i32, i32
  }
  func.func @transform_3(%arg0: i32, %arg1: i32, %arg2: i32) -> (i32, i32) {
    %c0_i32 = arith.constant 0 : i32
    %c0_i32_0 = arith.constant 0 : i32
    return %c0_i32, %arg1 : i32, i32
  }
  func.func @transform_4(%arg0: i32, %arg1: i32, %arg2: i32) -> (i32, i32) {
    %c0_i32 = arith.constant 0 : i32
    return %arg0, %arg1 : i32, i32
  }
  func.func @transform_5(%arg0: i32, %arg1: i32, %arg2: i32) -> (i32, i32) {
    %c0_i32 = arith.constant 0 : i32
    return %arg0, %arg1 : i32, i32
  }
}

module attributes {stable_mosaic.version = 11 : i64} {
  func.func @_matmul_affine_kernel(%arg0: i32, %arg1: i32, %arg2: i32, %arg3: memref<8x256xbf16, #tpu.memory_space<vmem>>, %arg4: memref<256x256xbf16, #tpu.memory_space<vmem>>, %arg5: memref<1x256xf32, #tpu.memory_space<vmem>>, %arg6: memref<1x256xf32, #tpu.memory_space<vmem>>, %arg7: memref<8x256xf32, #tpu.memory_space<vmem>>, %arg8: memref<8x256xf32, #tpu.memory_space<vmem>>) attributes {dimension_semantics = [#tpu.dimension_semantics<parallel>, #tpu.dimension_semantics<parallel>, #tpu.dimension_semantics<arbitrary>], iteration_bounds = array<i64: 1, 1, 9>, scalar_prefetch = 0 : i64, scratch_operands = 1 : i64, tpu.core_type = #tpu.core_type<tc>, window_params = [{transform_indices = @transform_0, window_bounds = array<i64: 8, 256>}, {transform_indices = @transform_1, window_bounds = array<i64: 256, 256>}, {transform_indices = @transform_2, window_bounds = array<i64: 1, 256>}, {transform_indices = @transform_3, window_bounds = array<i64: 1, 256>}, {transform_indices = @transform_4, window_bounds = array<i64: 8, 256>}]} {
    %c0_i32 = arith.constant 0 : i32
    %0 = arith.cmpi eq, %arg2, %c0_i32 : i32
    %1 = arith.extui %0 : i1 to i32
    %c0_i32_0 = arith.constant 0 : i32
    %2 = arith.cmpi ne, %1, %c0_i32_0 : i32
    scf.if %2 {
      %cst_9 = arith.constant 0.000000e+00 : f32
      %12 = vector.broadcast %cst_9 : f32 to vector<8x256xf32>
      %c0_10 = arith.constant 0 : index
      %c0_11 = arith.constant 0 : index
      %13 = vector.load %arg8[%c0_10, %c0_11] : memref<8x256xf32, #tpu.memory_space<vmem>>, vector<8x256xf32>
      tpu.vector_store %arg8[%c0_10, %c0_11], %12 {strides = array<i32>} : memref<8x256xf32, #tpu.memory_space<vmem>>, vector<8x256xf32>,
    } else {
    }
    %c0 = arith.constant 0 : index
    %c0_1 = arith.constant 0 : index
    %3 = vector.load %arg8[%c0, %c0_1] : memref<8x256xf32, #tpu.memory_space<vmem>>, vector<8x256xf32>
    %c0_2 = arith.constant 0 : index
    %c0_3 = arith.constant 0 : index
    %4 = vector.load %arg3[%c0_2, %c0_3] : memref<8x256xbf16, #tpu.memory_space<vmem>>, vector<8x256xbf16>
    %c0_4 = arith.constant 0 : index
    %c0_5 = arith.constant 0 : index
    %5 = vector.load %arg4[%c0_4, %c0_5] : memref<256x256xbf16, #tpu.memory_space<vmem>>, vector<256x256xbf16>
    %cst = arith.constant dense<0.000000e+00> : vector<8x256xf32>
    %6 = tpu.matmul %4, %5, %cst {dimension_numbers = #tpu.dot_dimension_numbers<[1], [0], [0], [1], [0, 0, 1, 1], [], []>} : vector<8x256xbf16>, vector<256x256xbf16>, vector<8x256xf32> -> vector<8x256xf32>
    %7 = arith.addf %3, %6 : vector<8x256xf32>
    %c0_6 = arith.constant 0 : index
    %c0_7 = arith.constant 0 : index
    %8 = vector.load %arg8[%c0_6, %c0_7] : memref<8x256xf32, #tpu.memory_space<vmem>>, vector<8x256xf32>
    tpu.vector_store %arg8[%c0_6, %c0_7], %7 {strides = array<i32>} : memref<8x256xf32, #tpu.memory_space<vmem>>, vector<8x256xf32>,
    %c8_i32 = arith.constant 8 : i32
    %9 = arith.cmpi eq, %arg2, %c8_i32 : i32
    %10 = arith.extui %9 : i1 to i32
    %c0_i32_8 = arith.constant 0 : i32
    %11 = arith.cmpi ne, %10, %c0_i32_8 : i32
    scf.if %11 {
      %c0_9 = arith.constant 0 : index
      %c0_10 = arith.constant 0 : index
      %12 = vector.load %arg8[%c0_9, %c0_10] : memref<8x256xf32, #tpu.memory_space<vmem>>, vector<8x256xf32>
      %c0_11 = arith.constant 0 : index
      %c0_12 = arith.constant 0 : index
      %13 = vector.load %arg5[%c0_11, %c0_12] : memref<1x256xf32, #tpu.memory_space<vmem>>, vector<1x256xf32>
      %14 = vector.broadcast %13 : vector<1x256xf32> to vector<8x256xf32>
      %15 = arith.mulf %12, %14 : vector<8x256xf32>
      %c0_13 = arith.constant 0 : index
      %c0_14 = arith.constant 0 : index
      %16 = vector.load %arg6[%c0_13, %c0_14] : memref<1x256xf32, #tpu.memory_space<vmem>>, vector<1x256xf32>
      %17 = vector.broadcast %16 : vector<1x256xf32> to vector<8x256xf32>
      %18 = arith.addf %15, %17 : vector<8x256xf32>
      %cst_15 = arith.constant 0.000000e+00 : f32
      %19 = vector.broadcast %cst_15 : f32 to vector<8x256xf32>
      %20 = arith.maximumf %18, %19 : vector<8x256xf32>
      %c0_16 = arith.constant 0 : index
      %c0_17 = arith.constant 0 : index
      %21 = vector.load %arg7[%c0_16, %c0_17] : memref<8x256xf32, #tpu.memory_space<vmem>>, vector<8x256xf32>
      tpu.vector_store %arg7[%c0_16, %c0_17], %20 {strides = array<i32>} : memref<8x256xf32, #tpu.memory_space<vmem>>, vector<8x256xf32>,
    } else {
    }
    return
  }
  func.func @transform_0(%arg0: i32, %arg1: i32, %arg2: i32) -> (i32, i32) {
    %c0_i32 = arith.constant 0 : i32
    return %arg0, %arg2 : i32, i32
  }
  func.func @transform_1(%arg0: i32, %arg1: i32, %arg2: i32) -> (i32, i32) {
    %c0_i32 = arith.constant 0 : i32
    return %arg2, %arg1 : i32, i32
  }
  func.func @transform_2(%arg0: i32, %arg1: i32, %arg2: i32) -> (i32, i32) {
    %c0_i32 = arith.constant 0 : i32
    %c0_i32_0 = arith.constant 0 : i32
    return %c0_i32, %arg1 : i32, i32
  }
  func.func @transform_3(%arg0: i32, %arg1: i32, %arg2: i32) -> (i32, i32) {
    %c0_i32 = arith.constant 0 : i32
    %c0_i32_0 = arith.constant 0 : i32
    return %c0_i32, %arg1 : i32, i32
  }
  func.func @transform_4(%arg0: i32, %arg1: i32, %arg2: i32) -> (i32, i32) {
    %c0_i32 = arith.constant 0 : i32
    return %arg0, %arg1 : i32, i32
  }
}

module attributes {stable_mosaic.version = 11 : i64} {
  func.func @_matmul_affine_kernel(%arg0: i32, %arg1: i32, %arg2: i32, %arg3: memref<8x256xbf16, #tpu.memory_space<vmem>>, %arg4: memref<256x256xbf16, #tpu.memory_space<vmem>>, %arg5: memref<1x256xf32, #tpu.memory_space<vmem>>, %arg6: memref<1x256xf32, #tpu.memory_space<vmem>>, %arg7: memref<8x256xf32, #tpu.memory_space<vmem>>, %arg8: memref<8x256xf32, #tpu.memory_space<vmem>>) attributes {dimension_semantics = [#tpu.dimension_semantics<parallel>, #tpu.dimension_semantics<parallel>, #tpu.dimension_semantics<arbitrary>], iteration_bounds = array<i64: 1, 2, 9>, scalar_prefetch = 0 : i64, scratch_operands = 1 : i64, tpu.core_type = #tpu.core_type<tc>, window_params = [{transform_indices = @transform_0, window_bounds = array<i64: 8, 256>}, {transform_indices = @transform_1, window_bounds = array<i64: 256, 256>}, {transform_indices = @transform_2, window_bounds = array<i64: 1, 256>}, {transform_indices = @transform_3, window_bounds = array<i64: 1, 256>}, {transform_indices = @transform_4, window_bounds = array<i64: 8, 256>}]} {
    %c0_i32 = arith.constant 0 : i32
    %0 = arith.cmpi eq, %arg2, %c0_i32 : i32
    %1 = arith.extui %0 : i1 to i32
    %c0_i32_0 = arith.constant 0 : i32
    %2 = arith.cmpi ne, %1, %c0_i32_0 : i32
    scf.if %2 {
      %cst_9 = arith.constant 0.000000e+00 : f32
      %12 = vector.broadcast %cst_9 : f32 to vector<8x256xf32>
      %c0_10 = arith.constant 0 : index
      %c0_11 = arith.constant 0 : index
      %13 = vector.load %arg8[%c0_10, %c0_11] : memref<8x256xf32, #tpu.memory_space<vmem>>, vector<8x256xf32>
      tpu.vector_store %arg8[%c0_10, %c0_11], %12 {strides = array<i32>} : memref<8x256xf32, #tpu.memory_space<vmem>>, vector<8x256xf32>,
    } else {
    }
    %c0 = arith.constant 0 : index
    %c0_1 = arith.constant 0 : index
    %3 = vector.load %arg8[%c0, %c0_1] : memref<8x256xf32, #tpu.memory_space<vmem>>, vector<8x256xf32>
    %c0_2 = arith.constant 0 : index
    %c0_3 = arith.constant 0 : index
    %4 = vector.load %arg3[%c0_2, %c0_3] : memref<8x256xbf16, #tpu.memory_space<vmem>>, vector<8x256xbf16>
    %c0_4 = arith.constant 0 : index
    %c0_5 = arith.constant 0 : index
    %5 = vector.load %arg4[%c0_4, %c0_5] : memref<256x256xbf16, #tpu.memory_space<vmem>>, vector<256x256xbf16>
    %cst = arith.constant dense<0.000000e+00> : vector<8x256xf32>
    %6 = tpu.matmul %4, %5, %cst {dimension_numbers = #tpu.dot_dimension_numbers<[1], [0], [0], [1], [0, 0, 1, 1], [], []>} : vector<8x256xbf16>, vector<256x256xbf16>, vector<8x256xf32> -> vector<8x256xf32>
    %7 = arith.addf %3, %6 : vector<8x256xf32>
    %c0_6 = arith.constant 0 : index
    %c0_7 = arith.constant 0 : index
    %8 = vector.load %arg8[%c0_6, %c0_7] : memref<8x256xf32, #tpu.memory_space<vmem>>, vector<8x256xf32>
    tpu.vector_store %arg8[%c0_6, %c0_7], %7 {strides = array<i32>} : memref<8x256xf32, #tpu.memory_space<vmem>>, vector<8x256xf32>,
    %c8_i32 = arith.constant 8 : i32
    %9 = arith.cmpi eq, %arg2, %c8_i32 : i32
    %10 = arith.extui %9 : i1 to i32
    %c0_i32_8 = arith.constant 0 : i32
    %11 = arith.cmpi ne, %10, %c0_i32_8 : i32
    scf.if %11 {
      %c0_9 = arith.constant 0 : index
      %c0_10 = arith.constant 0 : index
      %12 = vector.load %arg8[%c0_9, %c0_10] : memref<8x256xf32, #tpu.memory_space<vmem>>, vector<8x256xf32>
      %c0_11 = arith.constant 0 : index
      %c0_12 = arith.constant 0 : index
      %13 = vector.load %arg5[%c0_11, %c0_12] : memref<1x256xf32, #tpu.memory_space<vmem>>, vector<1x256xf32>
      %14 = vector.broadcast %13 : vector<1x256xf32> to vector<8x256xf32>
      %15 = arith.mulf %12, %14 : vector<8x256xf32>
      %c0_13 = arith.constant 0 : index
      %c0_14 = arith.constant 0 : index
      %16 = vector.load %arg6[%c0_13, %c0_14] : memref<1x256xf32, #tpu.memory_space<vmem>>, vector<1x256xf32>
      %17 = vector.broadcast %16 : vector<1x256xf32> to vector<8x256xf32>
      %18 = arith.addf %15, %17 : vector<8x256xf32>
      %cst_15 = arith.constant 0.000000e+00 : f32
      %19 = vector.broadcast %cst_15 : f32 to vector<8x256xf32>
      %20 = arith.maximumf %18, %19 : vector<8x256xf32>
      %c0_16 = arith.constant 0 : index
      %c0_17 = arith.constant 0 : index
      %21 = vector.load %arg7[%c0_16, %c0_17] : memref<8x256xf32, #tpu.memory_space<vmem>>, vector<8x256xf32>
      tpu.vector_store %arg7[%c0_16, %c0_17], %20 {strides = array<i32>} : memref<8x256xf32, #tpu.memory_space<vmem>>, vector<8x256xf32>,
    } else {
    }
    return
  }
  func.func @transform_0(%arg0: i32, %arg1: i32, %arg2: i32) -> (i32, i32) {
    %c0_i32 = arith.constant 0 : i32
    return %arg0, %arg2 : i32, i32
  }
  func.func @transform_1(%arg0: i32, %arg1: i32, %arg2: i32) -> (i32, i32) {
    %c0_i32 = arith.constant 0 : i32
    return %arg2, %arg1 : i32, i32
  }
  func.func @transform_2(%arg0: i32, %arg1: i32, %arg2: i32) -> (i32, i32) {
    %c0_i32 = arith.constant 0 : i32
    %c0_i32_0 = arith.constant 0 : i32
    return %c0_i32, %arg1 : i32, i32
  }
  func.func @transform_3(%arg0: i32, %arg1: i32, %arg2: i32) -> (i32, i32) {
    %c0_i32 = arith.constant 0 : i32
    %c0_i32_0 = arith.constant 0 : i32
    return %c0_i32, %arg1 : i32, i32
  }
  func.func @transform_4(%arg0: i32, %arg1: i32, %arg2: i32) -> (i32, i32) {
    %c0_i32 = arith.constant 0 : i32
    return %arg0, %arg1 : i32, i32
  }
}

module attributes {stable_mosaic.version = 11 : i64} {
  func.func @_matmul_affine_res_kernel(%arg0: i32, %arg1: i32, %arg2: i32, %arg3: memref<8x256xbf16, #tpu.memory_space<vmem>>, %arg4: memref<256x256xbf16, #tpu.memory_space<vmem>>, %arg5: memref<1x256xf32, #tpu.memory_space<vmem>>, %arg6: memref<1x256xf32, #tpu.memory_space<vmem>>, %arg7: memref<8x256xf32, #tpu.memory_space<vmem>>, %arg8: memref<8x256xf32, #tpu.memory_space<vmem>>, %arg9: memref<8x256xf32, #tpu.memory_space<vmem>>) attributes {dimension_semantics = [#tpu.dimension_semantics<parallel>, #tpu.dimension_semantics<parallel>, #tpu.dimension_semantics<arbitrary>], iteration_bounds = array<i64: 1, 2, 18>, scalar_prefetch = 0 : i64, scratch_operands = 1 : i64, tpu.core_type = #tpu.core_type<tc>, window_params = [{transform_indices = @transform_0, window_bounds = array<i64: 8, 256>}, {transform_indices = @transform_1, window_bounds = array<i64: 256, 256>}, {transform_indices = @transform_2, window_bounds = array<i64: 1, 256>}, {transform_indices = @transform_3, window_bounds = array<i64: 1, 256>}, {transform_indices = @transform_4, window_bounds = array<i64: 8, 256>}, {transform_indices = @transform_5, window_bounds = array<i64: 8, 256>}]} {
    %c0_i32 = arith.constant 0 : i32
    %0 = arith.cmpi eq, %arg2, %c0_i32 : i32
    %1 = arith.extui %0 : i1 to i32
    %c0_i32_0 = arith.constant 0 : i32
    %2 = arith.cmpi ne, %1, %c0_i32_0 : i32
    scf.if %2 {
      %cst_9 = arith.constant 0.000000e+00 : f32
      %12 = vector.broadcast %cst_9 : f32 to vector<8x256xf32>
      %c0_10 = arith.constant 0 : index
      %c0_11 = arith.constant 0 : index
      %13 = vector.load %arg9[%c0_10, %c0_11] : memref<8x256xf32, #tpu.memory_space<vmem>>, vector<8x256xf32>
      tpu.vector_store %arg9[%c0_10, %c0_11], %12 {strides = array<i32>} : memref<8x256xf32, #tpu.memory_space<vmem>>, vector<8x256xf32>,
    } else {
    }
    %c0 = arith.constant 0 : index
    %c0_1 = arith.constant 0 : index
    %3 = vector.load %arg9[%c0, %c0_1] : memref<8x256xf32, #tpu.memory_space<vmem>>, vector<8x256xf32>
    %c0_2 = arith.constant 0 : index
    %c0_3 = arith.constant 0 : index
    %4 = vector.load %arg3[%c0_2, %c0_3] : memref<8x256xbf16, #tpu.memory_space<vmem>>, vector<8x256xbf16>
    %c0_4 = arith.constant 0 : index
    %c0_5 = arith.constant 0 : index
    %5 = vector.load %arg4[%c0_4, %c0_5] : memref<256x256xbf16, #tpu.memory_space<vmem>>, vector<256x256xbf16>
    %cst = arith.constant dense<0.000000e+00> : vector<8x256xf32>
    %6 = tpu.matmul %4, %5, %cst {dimension_numbers = #tpu.dot_dimension_numbers<[1], [0], [0], [1], [0, 0, 1, 1], [], []>} : vector<8x256xbf16>, vector<256x256xbf16>, vector<8x256xf32> -> vector<8x256xf32>
    %7 = arith.addf %3, %6 : vector<8x256xf32>
    %c0_6 = arith.constant 0 : index
    %c0_7 = arith.constant 0 : index
    %8 = vector.load %arg9[%c0_6, %c0_7] : memref<8x256xf32, #tpu.memory_space<vmem>>, vector<8x256xf32>
    tpu.vector_store %arg9[%c0_6, %c0_7], %7 {strides = array<i32>} : memref<8x256xf32, #tpu.memory_space<vmem>>, vector<8x256xf32>,
    %c17_i32 = arith.constant 17 : i32
    %9 = arith.cmpi eq, %arg2, %c17_i32 : i32
    %10 = arith.extui %9 : i1 to i32
    %c0_i32_8 = arith.constant 0 : i32
    %11 = arith.cmpi ne, %10, %c0_i32_8 : i32
    scf.if %11 {
      %c0_9 = arith.constant 0 : index
      %c0_10 = arith.constant 0 : index
      %12 = vector.load %arg9[%c0_9, %c0_10] : memref<8x256xf32, #tpu.memory_space<vmem>>, vector<8x256xf32>
      %c0_11 = arith.constant 0 : index
      %c0_12 = arith.constant 0 : index
      %13 = vector.load %arg5[%c0_11, %c0_12] : memref<1x256xf32, #tpu.memory_space<vmem>>, vector<1x256xf32>
      %14 = vector.broadcast %13 : vector<1x256xf32> to vector<8x256xf32>
      %15 = arith.mulf %12, %14 : vector<8x256xf32>
      %c0_13 = arith.constant 0 : index
      %c0_14 = arith.constant 0 : index
      %16 = vector.load %arg6[%c0_13, %c0_14] : memref<1x256xf32, #tpu.memory_space<vmem>>, vector<1x256xf32>
      %17 = vector.broadcast %16 : vector<1x256xf32> to vector<8x256xf32>
      %18 = arith.addf %15, %17 : vector<8x256xf32>
      %c0_15 = arith.constant 0 : index
      %c0_16 = arith.constant 0 : index
      %19 = vector.load %arg7[%c0_15, %c0_16] : memref<8x256xf32, #tpu.memory_space<vmem>>, vector<8x256xf32>
      %20 = arith.addf %18, %19 : vector<8x256xf32>
      %cst_17 = arith.constant 0.000000e+00 : f32
      %21 = vector.broadcast %cst_17 : f32 to vector<8x256xf32>
      %22 = arith.maximumf %20, %21 : vector<8x256xf32>
      %c0_18 = arith.constant 0 : index
      %c0_19 = arith.constant 0 : index
      %23 = vector.load %arg8[%c0_18, %c0_19] : memref<8x256xf32, #tpu.memory_space<vmem>>, vector<8x256xf32>
      tpu.vector_store %arg8[%c0_18, %c0_19], %22 {strides = array<i32>} : memref<8x256xf32, #tpu.memory_space<vmem>>, vector<8x256xf32>,
    } else {
    }
    return
  }
  func.func @transform_0(%arg0: i32, %arg1: i32, %arg2: i32) -> (i32, i32) {
    %c0_i32 = arith.constant 0 : i32
    return %arg0, %arg2 : i32, i32
  }
  func.func @transform_1(%arg0: i32, %arg1: i32, %arg2: i32) -> (i32, i32) {
    %c0_i32 = arith.constant 0 : i32
    return %arg2, %arg1 : i32, i32
  }
  func.func @transform_2(%arg0: i32, %arg1: i32, %arg2: i32) -> (i32, i32) {
    %c0_i32 = arith.constant 0 : i32
    %c0_i32_0 = arith.constant 0 : i32
    return %c0_i32, %arg1 : i32, i32
  }
  func.func @transform_3(%arg0: i32, %arg1: i32, %arg2: i32) -> (i32, i32) {
    %c0_i32 = arith.constant 0 : i32
    %c0_i32_0 = arith.constant 0 : i32
    return %c0_i32, %arg1 : i32, i32
  }
  func.func @transform_4(%arg0: i32, %arg1: i32, %arg2: i32) -> (i32, i32) {
    %c0_i32 = arith.constant 0 : i32
    return %arg0, %arg1 : i32, i32
  }
  func.func @transform_5(%arg0: i32, %arg1: i32, %arg2: i32) -> (i32, i32) {
    %c0_i32 = arith.constant 0 : i32
    return %arg0, %arg1 : i32, i32
  }
}

module attributes {stable_mosaic.version = 11 : i64} {
  func.func @_matmul_affine_kernel(%arg0: i32, %arg1: i32, %arg2: i32, %arg3: memref<8x256xbf16, #tpu.memory_space<vmem>>, %arg4: memref<256x256xbf16, #tpu.memory_space<vmem>>, %arg5: memref<1x256xf32, #tpu.memory_space<vmem>>, %arg6: memref<1x256xf32, #tpu.memory_space<vmem>>, %arg7: memref<8x256xf32, #tpu.memory_space<vmem>>, %arg8: memref<8x256xf32, #tpu.memory_space<vmem>>) attributes {dimension_semantics = [#tpu.dimension_semantics<parallel>, #tpu.dimension_semantics<parallel>, #tpu.dimension_semantics<arbitrary>], iteration_bounds = array<i64: 1, 2, 1>, scalar_prefetch = 0 : i64, scratch_operands = 1 : i64, tpu.core_type = #tpu.core_type<tc>, window_params = [{transform_indices = @transform_0, window_bounds = array<i64: 8, 256>}, {transform_indices = @transform_1, window_bounds = array<i64: 256, 256>}, {transform_indices = @transform_2, window_bounds = array<i64: 1, 256>}, {transform_indices = @transform_3, window_bounds = array<i64: 1, 256>}, {transform_indices = @transform_4, window_bounds = array<i64: 8, 256>}]} {
    %c0_i32 = arith.constant 0 : i32
    %0 = arith.cmpi eq, %arg2, %c0_i32 : i32
    %1 = arith.extui %0 : i1 to i32
    %c0_i32_0 = arith.constant 0 : i32
    %2 = arith.cmpi ne, %1, %c0_i32_0 : i32
    scf.if %2 {
      %cst_10 = arith.constant 0.000000e+00 : f32
      %12 = vector.broadcast %cst_10 : f32 to vector<8x256xf32>
      %c0_11 = arith.constant 0 : index
      %c0_12 = arith.constant 0 : index
      %13 = vector.load %arg8[%c0_11, %c0_12] : memref<8x256xf32, #tpu.memory_space<vmem>>, vector<8x256xf32>
      tpu.vector_store %arg8[%c0_11, %c0_12], %12 {strides = array<i32>} : memref<8x256xf32, #tpu.memory_space<vmem>>, vector<8x256xf32>,
    } else {
    }
    %c0 = arith.constant 0 : index
    %c0_1 = arith.constant 0 : index
    %3 = vector.load %arg8[%c0, %c0_1] : memref<8x256xf32, #tpu.memory_space<vmem>>, vector<8x256xf32>
    %c0_2 = arith.constant 0 : index
    %c0_3 = arith.constant 0 : index
    %4 = vector.load %arg3[%c0_2, %c0_3] : memref<8x256xbf16, #tpu.memory_space<vmem>>, vector<8x256xbf16>
    %c0_4 = arith.constant 0 : index
    %c0_5 = arith.constant 0 : index
    %5 = vector.load %arg4[%c0_4, %c0_5] : memref<256x256xbf16, #tpu.memory_space<vmem>>, vector<256x256xbf16>
    %cst = arith.constant dense<0.000000e+00> : vector<8x256xf32>
    %6 = tpu.matmul %4, %5, %cst {dimension_numbers = #tpu.dot_dimension_numbers<[1], [0], [0], [1], [0, 0, 1, 1], [], []>} : vector<8x256xbf16>, vector<256x256xbf16>, vector<8x256xf32> -> vector<8x256xf32>
    %7 = arith.addf %3, %6 : vector<8x256xf32>
    %c0_6 = arith.constant 0 : index
    %c0_7 = arith.constant 0 : index
    %8 = vector.load %arg8[%c0_6, %c0_7] : memref<8x256xf32, #tpu.memory_space<vmem>>, vector<8x256xf32>
    tpu.vector_store %arg8[%c0_6, %c0_7], %7 {strides = array<i32>} : memref<8x256xf32, #tpu.memory_space<vmem>>, vector<8x256xf32>,
    %c0_i32_8 = arith.constant 0 : i32
    %9 = arith.cmpi eq, %arg2, %c0_i32_8 : i32
    %10 = arith.extui %9 : i1 to i32
    %c0_i32_9 = arith.constant 0 : i32
    %11 = arith.cmpi ne, %10, %c0_i32_9 : i32
    scf.if %11 {
      %c0_10 = arith.constant 0 : index
      %c0_11 = arith.constant 0 : index
      %12 = vector.load %arg8[%c0_10, %c0_11] : memref<8x256xf32, #tpu.memory_space<vmem>>, vector<8x256xf32>
      %c0_12 = arith.constant 0 : index
      %c0_13 = arith.constant 0 : index
      %13 = vector.load %arg5[%c0_12, %c0_13] : memref<1x256xf32, #tpu.memory_space<vmem>>, vector<1x256xf32>
      %14 = vector.broadcast %13 : vector<1x256xf32> to vector<8x256xf32>
      %15 = arith.mulf %12, %14 : vector<8x256xf32>
      %c0_14 = arith.constant 0 : index
      %c0_15 = arith.constant 0 : index
      %16 = vector.load %arg6[%c0_14, %c0_15] : memref<1x256xf32, #tpu.memory_space<vmem>>, vector<1x256xf32>
      %17 = vector.broadcast %16 : vector<1x256xf32> to vector<8x256xf32>
      %18 = arith.addf %15, %17 : vector<8x256xf32>
      %c0_16 = arith.constant 0 : index
      %c0_17 = arith.constant 0 : index
      %19 = vector.load %arg7[%c0_16, %c0_17] : memref<8x256xf32, #tpu.memory_space<vmem>>, vector<8x256xf32>
      tpu.vector_store %arg7[%c0_16, %c0_17], %18 {strides = array<i32>} : memref<8x256xf32, #tpu.memory_space<vmem>>, vector<8x256xf32>,
    } else {
    }
    return
  }
  func.func @transform_0(%arg0: i32, %arg1: i32, %arg2: i32) -> (i32, i32) {
    %c0_i32 = arith.constant 0 : i32
    return %arg0, %arg2 : i32, i32
  }
  func.func @transform_1(%arg0: i32, %arg1: i32, %arg2: i32) -> (i32, i32) {
    %c0_i32 = arith.constant 0 : i32
    return %arg2, %arg1 : i32, i32
  }
  func.func @transform_2(%arg0: i32, %arg1: i32, %arg2: i32) -> (i32, i32) {
    %c0_i32 = arith.constant 0 : i32
    %c0_i32_0 = arith.constant 0 : i32
    return %c0_i32, %arg1 : i32, i32
  }
  func.func @transform_3(%arg0: i32, %arg1: i32, %arg2: i32) -> (i32, i32) {
    %c0_i32 = arith.constant 0 : i32
    %c0_i32_0 = arith.constant 0 : i32
    return %c0_i32, %arg1 : i32, i32
  }
  func.func @transform_4(%arg0: i32, %arg1: i32, %arg2: i32) -> (i32, i32) {
    %c0_i32 = arith.constant 0 : i32
    return %arg0, %arg1 : i32, i32
  }
}

module attributes {stable_mosaic.version = 11 : i64} {
  func.func @_matmul_affine_kernel(%arg0: i32, %arg1: i32, %arg2: i32, %arg3: memref<8x256xbf16, #tpu.memory_space<vmem>>, %arg4: memref<256x256xbf16, #tpu.memory_space<vmem>>, %arg5: memref<1x256xf32, #tpu.memory_space<vmem>>, %arg6: memref<1x256xf32, #tpu.memory_space<vmem>>, %arg7: memref<8x256xf32, #tpu.memory_space<vmem>>, %arg8: memref<8x256xf32, #tpu.memory_space<vmem>>) attributes {dimension_semantics = [#tpu.dimension_semantics<parallel>, #tpu.dimension_semantics<parallel>, #tpu.dimension_semantics<arbitrary>], iteration_bounds = array<i64: 1, 2, 18>, scalar_prefetch = 0 : i64, scratch_operands = 1 : i64, tpu.core_type = #tpu.core_type<tc>, window_params = [{transform_indices = @transform_0, window_bounds = array<i64: 8, 256>}, {transform_indices = @transform_1, window_bounds = array<i64: 256, 256>}, {transform_indices = @transform_2, window_bounds = array<i64: 1, 256>}, {transform_indices = @transform_3, window_bounds = array<i64: 1, 256>}, {transform_indices = @transform_4, window_bounds = array<i64: 8, 256>}]} {
    %c0_i32 = arith.constant 0 : i32
    %0 = arith.cmpi eq, %arg2, %c0_i32 : i32
    %1 = arith.extui %0 : i1 to i32
    %c0_i32_0 = arith.constant 0 : i32
    %2 = arith.cmpi ne, %1, %c0_i32_0 : i32
    scf.if %2 {
      %cst_9 = arith.constant 0.000000e+00 : f32
      %12 = vector.broadcast %cst_9 : f32 to vector<8x256xf32>
      %c0_10 = arith.constant 0 : index
      %c0_11 = arith.constant 0 : index
      %13 = vector.load %arg8[%c0_10, %c0_11] : memref<8x256xf32, #tpu.memory_space<vmem>>, vector<8x256xf32>
      tpu.vector_store %arg8[%c0_10, %c0_11], %12 {strides = array<i32>} : memref<8x256xf32, #tpu.memory_space<vmem>>, vector<8x256xf32>,
    } else {
    }
    %c0 = arith.constant 0 : index
    %c0_1 = arith.constant 0 : index
    %3 = vector.load %arg8[%c0, %c0_1] : memref<8x256xf32, #tpu.memory_space<vmem>>, vector<8x256xf32>
    %c0_2 = arith.constant 0 : index
    %c0_3 = arith.constant 0 : index
    %4 = vector.load %arg3[%c0_2, %c0_3] : memref<8x256xbf16, #tpu.memory_space<vmem>>, vector<8x256xbf16>
    %c0_4 = arith.constant 0 : index
    %c0_5 = arith.constant 0 : index
    %5 = vector.load %arg4[%c0_4, %c0_5] : memref<256x256xbf16, #tpu.memory_space<vmem>>, vector<256x256xbf16>
    %cst = arith.constant dense<0.000000e+00> : vector<8x256xf32>
    %6 = tpu.matmul %4, %5, %cst {dimension_numbers = #tpu.dot_dimension_numbers<[1], [0], [0], [1], [0, 0, 1, 1], [], []>} : vector<8x256xbf16>, vector<256x256xbf16>, vector<8x256xf32> -> vector<8x256xf32>
    %7 = arith.addf %3, %6 : vector<8x256xf32>
    %c0_6 = arith.constant 0 : index
    %c0_7 = arith.constant 0 : index
    %8 = vector.load %arg8[%c0_6, %c0_7] : memref<8x256xf32, #tpu.memory_space<vmem>>, vector<8x256xf32>
    tpu.vector_store %arg8[%c0_6, %c0_7], %7 {strides = array<i32>} : memref<8x256xf32, #tpu.memory_space<vmem>>, vector<8x256xf32>,
    %c17_i32 = arith.constant 17 : i32
    %9 = arith.cmpi eq, %arg2, %c17_i32 : i32
    %10 = arith.extui %9 : i1 to i32
    %c0_i32_8 = arith.constant 0 : i32
    %11 = arith.cmpi ne, %10, %c0_i32_8 : i32
    scf.if %11 {
      %c0_9 = arith.constant 0 : index
      %c0_10 = arith.constant 0 : index
      %12 = vector.load %arg8[%c0_9, %c0_10] : memref<8x256xf32, #tpu.memory_space<vmem>>, vector<8x256xf32>
      %c0_11 = arith.constant 0 : index
      %c0_12 = arith.constant 0 : index
      %13 = vector.load %arg5[%c0_11, %c0_12] : memref<1x256xf32, #tpu.memory_space<vmem>>, vector<1x256xf32>
      %14 = vector.broadcast %13 : vector<1x256xf32> to vector<8x256xf32>
      %15 = arith.mulf %12, %14 : vector<8x256xf32>
      %c0_13 = arith.constant 0 : index
      %c0_14 = arith.constant 0 : index
      %16 = vector.load %arg6[%c0_13, %c0_14] : memref<1x256xf32, #tpu.memory_space<vmem>>, vector<1x256xf32>
      %17 = vector.broadcast %16 : vector<1x256xf32> to vector<8x256xf32>
      %18 = arith.addf %15, %17 : vector<8x256xf32>
      %cst_15 = arith.constant 0.000000e+00 : f32
      %19 = vector.broadcast %cst_15 : f32 to vector<8x256xf32>
      %20 = arith.maximumf %18, %19 : vector<8x256xf32>
      %c0_16 = arith.constant 0 : index
      %c0_17 = arith.constant 0 : index
      %21 = vector.load %arg7[%c0_16, %c0_17] : memref<8x256xf32, #tpu.memory_space<vmem>>, vector<8x256xf32>
      tpu.vector_store %arg7[%c0_16, %c0_17], %20 {strides = array<i32>} : memref<8x256xf32, #tpu.memory_space<vmem>>, vector<8x256xf32>,
    } else {
    }
    return
  }
  func.func @transform_0(%arg0: i32, %arg1: i32, %arg2: i32) -> (i32, i32) {
    %c0_i32 = arith.constant 0 : i32
    return %arg0, %arg2 : i32, i32
  }
  func.func @transform_1(%arg0: i32, %arg1: i32, %arg2: i32) -> (i32, i32) {
    %c0_i32 = arith.constant 0 : i32
    return %arg2, %arg1 : i32, i32
  }
  func.func @transform_2(%arg0: i32, %arg1: i32, %arg2: i32) -> (i32, i32) {
    %c0_i32 = arith.constant 0 : i32
    %c0_i32_0 = arith.constant 0 : i32
    return %c0_i32, %arg1 : i32, i32
  }
  func.func @transform_3(%arg0: i32, %arg1: i32, %arg2: i32) -> (i32, i32) {
    %c0_i32 = arith.constant 0 : i32
    %c0_i32_0 = arith.constant 0 : i32
    return %c0_i32, %arg1 : i32, i32
  }
  func.func @transform_4(%arg0: i32, %arg1: i32, %arg2: i32) -> (i32, i32) {
    %c0_i32 = arith.constant 0 : i32
    return %arg0, %arg1 : i32, i32
  }
}

module attributes {stable_mosaic.version = 11 : i64} {
  func.func @_avgpool_kernel(%arg0: memref<2x1x512xf32, #tpu.memory_space<vmem>>, %arg1: memref<2x512xf32, #tpu.memory_space<vmem>>) attributes {dimension_semantics = [], scalar_prefetch = 0 : i64, scratch_operands = 0 : i64, tpu.core_type = #tpu.core_type<tc>} {
    %c0 = arith.constant 0 : index
    %c0_0 = arith.constant 0 : index
    %c0_1 = arith.constant 0 : index
    %0 = vector.load %arg0[%c0, %c0_0, %c0_1] : memref<2x1x512xf32, #tpu.memory_space<vmem>>, vector<2x1x512xf32>
    %cst = arith.constant dense<0.000000e+00> : vector<2x512xf32>
    %1 = vector.multi_reduction <add>, %0, %cst [1] : vector<2x1x512xf32> to vector<2x512xf32>
    %cst_2 = arith.constant 1.000000e+00 : f32
    %2 = vector.broadcast %cst_2 : f32 to vector<2x512xf32>
    %3 = arith.divf %1, %2 : vector<2x512xf32>
    %c0_3 = arith.constant 0 : index
    %c0_4 = arith.constant 0 : index
    %4 = vector.load %arg1[%c0_3, %c0_4] : memref<2x512xf32, #tpu.memory_space<vmem>>, vector<2x512xf32>
    tpu.vector_store %arg1[%c0_3, %c0_4], %3 {strides = array<i32>} : memref<2x512xf32, #tpu.memory_space<vmem>>, vector<2x512xf32>,
    return
  }
}

module attributes {stable_mosaic.version = 11 : i64} {
  func.func @_matmul_affine_kernel(%arg0: i32, %arg1: i32, %arg2: i32, %arg3: memref<8x256xbf16, #tpu.memory_space<vmem>>, %arg4: memref<256x128xbf16, #tpu.memory_space<vmem>>, %arg5: memref<1x128xf32, #tpu.memory_space<vmem>>, %arg6: memref<1x128xf32, #tpu.memory_space<vmem>>, %arg7: memref<8x128xf32, #tpu.memory_space<vmem>>, %arg8: memref<8x128xf32, #tpu.memory_space<vmem>>) attributes {dimension_semantics = [#tpu.dimension_semantics<parallel>, #tpu.dimension_semantics<parallel>, #tpu.dimension_semantics<arbitrary>], iteration_bounds = array<i64: 1, 1, 2>, scalar_prefetch = 0 : i64, scratch_operands = 1 : i64, tpu.core_type = #tpu.core_type<tc>, window_params = [{transform_indices = @transform_0, window_bounds = array<i64: 8, 256>}, {transform_indices = @transform_1, window_bounds = array<i64: 256, 128>}, {transform_indices = @transform_2, window_bounds = array<i64: 1, 128>}, {transform_indices = @transform_3, window_bounds = array<i64: 1, 128>}, {transform_indices = @transform_4, window_bounds = array<i64: 8, 128>}]} {
    %c0_i32 = arith.constant 0 : i32
    %0 = arith.cmpi eq, %arg2, %c0_i32 : i32
    %1 = arith.extui %0 : i1 to i32
    %c0_i32_0 = arith.constant 0 : i32
    %2 = arith.cmpi ne, %1, %c0_i32_0 : i32
    scf.if %2 {
      %cst_9 = arith.constant 0.000000e+00 : f32
      %12 = vector.broadcast %cst_9 : f32 to vector<8x128xf32>
      %c0_10 = arith.constant 0 : index
      %c0_11 = arith.constant 0 : index
      %13 = vector.load %arg8[%c0_10, %c0_11] : memref<8x128xf32, #tpu.memory_space<vmem>>, vector<8x128xf32>
      tpu.vector_store %arg8[%c0_10, %c0_11], %12 {strides = array<i32>} : memref<8x128xf32, #tpu.memory_space<vmem>>, vector<8x128xf32>,
    } else {
    }
    %c0 = arith.constant 0 : index
    %c0_1 = arith.constant 0 : index
    %3 = vector.load %arg8[%c0, %c0_1] : memref<8x128xf32, #tpu.memory_space<vmem>>, vector<8x128xf32>
    %c0_2 = arith.constant 0 : index
    %c0_3 = arith.constant 0 : index
    %4 = vector.load %arg3[%c0_2, %c0_3] : memref<8x256xbf16, #tpu.memory_space<vmem>>, vector<8x256xbf16>
    %c0_4 = arith.constant 0 : index
    %c0_5 = arith.constant 0 : index
    %5 = vector.load %arg4[%c0_4, %c0_5] : memref<256x128xbf16, #tpu.memory_space<vmem>>, vector<256x128xbf16>
    %cst = arith.constant dense<0.000000e+00> : vector<8x128xf32>
    %6 = tpu.matmul %4, %5, %cst {dimension_numbers = #tpu.dot_dimension_numbers<[1], [0], [0], [1], [0, 0, 1, 1], [], []>} : vector<8x256xbf16>, vector<256x128xbf16>, vector<8x128xf32> -> vector<8x128xf32>
    %7 = arith.addf %3, %6 : vector<8x128xf32>
    %c0_6 = arith.constant 0 : index
    %c0_7 = arith.constant 0 : index
    %8 = vector.load %arg8[%c0_6, %c0_7] : memref<8x128xf32, #tpu.memory_space<vmem>>, vector<8x128xf32>
    tpu.vector_store %arg8[%c0_6, %c0_7], %7 {strides = array<i32>} : memref<8x128xf32, #tpu.memory_space<vmem>>, vector<8x128xf32>,
    %c1_i32 = arith.constant 1 : i32
    %9 = arith.cmpi eq, %arg2, %c1_i32 : i32
    %10 = arith.extui %9 : i1 to i32
    %c0_i32_8 = arith.constant 0 : i32
    %11 = arith.cmpi ne, %10, %c0_i32_8 : i32
    scf.if %11 {
      %c0_9 = arith.constant 0 : index
      %c0_10 = arith.constant 0 : index
      %12 = vector.load %arg8[%c0_9, %c0_10] : memref<8x128xf32, #tpu.memory_space<vmem>>, vector<8x128xf32>
      %c0_11 = arith.constant 0 : index
      %c0_12 = arith.constant 0 : index
      %13 = vector.load %arg5[%c0_11, %c0_12] : memref<1x128xf32, #tpu.memory_space<vmem>>, vector<1x128xf32>
      %14 = vector.broadcast %13 : vector<1x128xf32> to vector<8x128xf32>
      %15 = arith.mulf %12, %14 : vector<8x128xf32>
      %c0_13 = arith.constant 0 : index
      %c0_14 = arith.constant 0 : index
      %16 = vector.load %arg6[%c0_13, %c0_14] : memref<1x128xf32, #tpu.memory_space<vmem>>, vector<1x128xf32>
      %17 = vector.broadcast %16 : vector<1x128xf32> to vector<8x128xf32>
      %18 = arith.addf %15, %17 : vector<8x128xf32>
      %cst_15 = arith.constant 0.000000e+00 : f32
      %19 = vector.broadcast %cst_15 : f32 to vector<8x128xf32>
      %20 = arith.maximumf %18, %19 : vector<8x128xf32>
      %c0_16 = arith.constant 0 : index
      %c0_17 = arith.constant 0 : index
      %21 = vector.load %arg7[%c0_16, %c0_17] : memref<8x128xf32, #tpu.memory_space<vmem>>, vector<8x128xf32>
      tpu.vector_store %arg7[%c0_16, %c0_17], %20 {strides = array<i32>} : memref<8x128xf32, #tpu.memory_space<vmem>>, vector<8x128xf32>,
    } else {
    }
    return
  }
  func.func @transform_0(%arg0: i32, %arg1: i32, %arg2: i32) -> (i32, i32) {
    %c0_i32 = arith.constant 0 : i32
    return %arg0, %arg2 : i32, i32
  }
  func.func @transform_1(%arg0: i32, %arg1: i32, %arg2: i32) -> (i32, i32) {
    %c0_i32 = arith.constant 0 : i32
    return %arg2, %arg1 : i32, i32
  }
  func.func @transform_2(%arg0: i32, %arg1: i32, %arg2: i32) -> (i32, i32) {
    %c0_i32 = arith.constant 0 : i32
    %c0_i32_0 = arith.constant 0 : i32
    return %c0_i32, %arg1 : i32, i32
  }
  func.func @transform_3(%arg0: i32, %arg1: i32, %arg2: i32) -> (i32, i32) {
    %c0_i32 = arith.constant 0 : i32
    %c0_i32_0 = arith.constant 0 : i32
    return %c0_i32, %arg1 : i32, i32
  }
  func.func @transform_4(%arg0: i32, %arg1: i32, %arg2: i32) -> (i32, i32) {
    %c0_i32 = arith.constant 0 : i32
    return %arg0, %arg1 : i32, i32
  }
}

module attributes {stable_mosaic.version = 11 : i64} {
  func.func @_matmul_affine_kernel(%arg0: i32, %arg1: i32, %arg2: i32, %arg3: memref<8x128xbf16, #tpu.memory_space<vmem>>, %arg4: memref<128x128xbf16, #tpu.memory_space<vmem>>, %arg5: memref<1x128xf32, #tpu.memory_space<vmem>>, %arg6: memref<1x128xf32, #tpu.memory_space<vmem>>, %arg7: memref<8x128xf32, #tpu.memory_space<vmem>>, %arg8: memref<8x128xf32, #tpu.memory_space<vmem>>) attributes {dimension_semantics = [#tpu.dimension_semantics<parallel>, #tpu.dimension_semantics<parallel>, #tpu.dimension_semantics<arbitrary>], iteration_bounds = array<i64: 1, 1, 1>, scalar_prefetch = 0 : i64, scratch_operands = 1 : i64, tpu.core_type = #tpu.core_type<tc>, window_params = [{transform_indices = @transform_0, window_bounds = array<i64: 8, 128>}, {transform_indices = @transform_1, window_bounds = array<i64: 128, 128>}, {transform_indices = @transform_2, window_bounds = array<i64: 1, 128>}, {transform_indices = @transform_3, window_bounds = array<i64: 1, 128>}, {transform_indices = @transform_4, window_bounds = array<i64: 8, 128>}]} {
    %c0_i32 = arith.constant 0 : i32
    %0 = arith.cmpi eq, %arg2, %c0_i32 : i32
    %1 = arith.extui %0 : i1 to i32
    %c0_i32_0 = arith.constant 0 : i32
    %2 = arith.cmpi ne, %1, %c0_i32_0 : i32
    scf.if %2 {
      %cst_10 = arith.constant 0.000000e+00 : f32
      %12 = vector.broadcast %cst_10 : f32 to vector<8x128xf32>
      %c0_11 = arith.constant 0 : index
      %c0_12 = arith.constant 0 : index
      %13 = vector.load %arg8[%c0_11, %c0_12] : memref<8x128xf32, #tpu.memory_space<vmem>>, vector<8x128xf32>
      tpu.vector_store %arg8[%c0_11, %c0_12], %12 {strides = array<i32>} : memref<8x128xf32, #tpu.memory_space<vmem>>, vector<8x128xf32>,
    } else {
    }
    %c0 = arith.constant 0 : index
    %c0_1 = arith.constant 0 : index
    %3 = vector.load %arg8[%c0, %c0_1] : memref<8x128xf32, #tpu.memory_space<vmem>>, vector<8x128xf32>
    %c0_2 = arith.constant 0 : index
    %c0_3 = arith.constant 0 : index
    %4 = vector.load %arg3[%c0_2, %c0_3] : memref<8x128xbf16, #tpu.memory_space<vmem>>, vector<8x128xbf16>
    %c0_4 = arith.constant 0 : index
    %c0_5 = arith.constant 0 : index
    %5 = vector.load %arg4[%c0_4, %c0_5] : memref<128x128xbf16, #tpu.memory_space<vmem>>, vector<128x128xbf16>
    %cst = arith.constant dense<0.000000e+00> : vector<8x128xf32>
    %6 = tpu.matmul %4, %5, %cst {dimension_numbers = #tpu.dot_dimension_numbers<[1], [0], [0], [1], [0, 0, 1, 1], [], []>} : vector<8x128xbf16>, vector<128x128xbf16>, vector<8x128xf32> -> vector<8x128xf32>
    %7 = arith.addf %3, %6 : vector<8x128xf32>
    %c0_6 = arith.constant 0 : index
    %c0_7 = arith.constant 0 : index
    %8 = vector.load %arg8[%c0_6, %c0_7] : memref<8x128xf32, #tpu.memory_space<vmem>>, vector<8x128xf32>
    tpu.vector_store %arg8[%c0_6, %c0_7], %7 {strides = array<i32>} : memref<8x128xf32, #tpu.memory_space<vmem>>, vector<8x128xf32>,
    %c0_i32_8 = arith.constant 0 : i32
    %9 = arith.cmpi eq, %arg2, %c0_i32_8 : i32
    %10 = arith.extui %9 : i1 to i32
    %c0_i32_9 = arith.constant 0 : i32
    %11 = arith.cmpi ne, %10, %c0_i32_9 : i32
    scf.if %11 {
      %c0_10 = arith.constant 0 : index
      %c0_11 = arith.constant 0 : index
      %12 = vector.load %arg8[%c0_10, %c0_11] : memref<8x128xf32, #tpu.memory_space<vmem>>, vector<8x128xf32>
      %c0_12 = arith.constant 0 : index
      %c0_13 = arith.constant 0 : index
      %13 = vector.load %arg5[%c0_12, %c0_13] : memref<1x128xf32, #tpu.memory_space<vmem>>, vector<1x128xf32>
      %14 = vector.broadcast %13 : vector<1x128xf32> to vector<8x128xf32>
      %15 = arith.mulf %12, %14 : vector<8x128xf32>
      %c0_14 = arith.constant 0 : index
      %c0_15 = arith.constant 0 : index
      %16 = vector.load %arg6[%c0_14, %c0_15] : memref<1x128xf32, #tpu.memory_space<vmem>>, vector<1x128xf32>
      %17 = vector.broadcast %16 : vector<1x128xf32> to vector<8x128xf32>
      %18 = arith.addf %15, %17 : vector<8x128xf32>
      %c0_16 = arith.constant 0 : index
      %c0_17 = arith.constant 0 : index
      %19 = vector.load %arg7[%c0_16, %c0_17] : memref<8x128xf32, #tpu.memory_space<vmem>>, vector<8x128xf32>
      tpu.vector_store %arg7[%c0_16, %c0_17], %18 {strides = array<i32>} : memref<8x128xf32, #tpu.memory_space<vmem>>, vector<8x128xf32>,
    } else {
    }
    return
  }
  func.func @transform_0(%arg0: i32, %arg1: i32, %arg2: i32) -> (i32, i32) {
    %c0_i32 = arith.constant 0 : i32
    return %arg0, %arg2 : i32, i32
  }
  func.func @transform_1(%arg0: i32, %arg1: i32, %arg2: i32) -> (i32, i32) {
    %c0_i32 = arith.constant 0 : i32
    return %arg2, %arg1 : i32, i32
  }
  func.func @transform_2(%arg0: i32, %arg1: i32, %arg2: i32) -> (i32, i32) {
    %c0_i32 = arith.constant 0 : i32
    %c0_i32_0 = arith.constant 0 : i32
    return %c0_i32, %arg1 : i32, i32
  }
  func.func @transform_3(%arg0: i32, %arg1: i32, %arg2: i32) -> (i32, i32) {
    %c0_i32 = arith.constant 0 : i32
    %c0_i32_0 = arith.constant 0 : i32
    return %c0_i32, %arg1 : i32, i32
  }
  func.func @transform_4(%arg0: i32, %arg1: i32, %arg2: i32) -> (i32, i32) {
    %c0_i32 = arith.constant 0 : i32
    return %arg0, %arg1 : i32, i32
  }
}

</mosaic_0001>

<bundles_post_ra>
// kernel: simclr_forward.39
= control target key start
LH: loop header
LB: loop body
LE: loop exit
PB: predicated region body
PF: predicated region fallthrough
CT: control target
= control target key end

     0   :  { %s1164_s15 = smov 0   ;;  %s1166_s16 = smov 0   ;;  %s1330_s0 = inlined_call_operand.vmem [shape: bf16[512,256], index: 0, kind: input, shape index: {}]   ;;  %s1331_s1 = inlined_call_operand.vmem [shape: bf16[256,128], index: 1, kind: input, shape index: {}]   ;;  %s1332_s2 = inlined_call_operand.vmem [shape: f32[1,128], index: 2, kind: input, shape index: {}]   ;;  %s1333_s3 = inlined_call_operand.vmem [shape: f32[1,128], index: 3, kind: input, shape index: {}]   ;;  %s1334_s4 = inlined_call_operand.vmem [shape: f32[512,128], index: 4, kind: output, shape index: {}]  }
   0x1   :  { %s1168_s17 = smov 0  }
   0x2 LB: > { %s33_s18 = sadd.s32 1, %s1133_s16  ;;  %p928_p0 = scmp.ge.s32.totalorder %s1137_s17, 1  ;;  %s1137_s17 = sphi %s1168_s17, %s14_s17   ;;  %s1133_s16 = sphi %s1166_s16, %s1336_s16   ;;  %s1129_s15 = sphi %s1164_s15, %s1335_s15  }
   0x3   : > { %p35_p1 = scmp.ge.s32.totalorder %s33_s18, 4  ;;  %p224_p2 = scmp.lt.s32.totalorder %s1137_s17, 5 }
   0x5   : > { %s1338_s18 = smov (%p35_p1, %s33_s18), 0  ;;  %p225_p3 = pnand %p928_p0, %p224_p2 }
   0x6   : > { %s929_s21 = sshll.u32 (!%p225_p3), %s1129_s15, 4 }
   0x7   : > { %228 = sbr.rel (%p225_p3) target bundleno = 277 (0x115), region = 36  ;;  %p274_p4 = scmp.lt.s32.totalorder (!%p225_p3), %s929_s21, 63 }
   0xc   : > { %v1075_v0 = vld [vmem:[%s1331_s1 + $0x78] sm:$0xff]   ;;  %v1077_v2 = vld [vmem:[%s1331_s1 + $0x70] sm:$0xff]   ;;  %v1079_v4 = vld [vmem:[%s1331_s1 + $0x68] sm:$0xff]   ;;  %s1340_s21 = smov (!%p274_p4, %s929_s21), 63 }
   0xd   : > { %v1076_v1 = vld [vmem:[%s1331_s1 + $0x38] sm:$0xff]   ;;  %971 = vmatprep.subr.bf16.mxu0 %v1075_v0  ;;  %1035 = vmatprep.subr.bf16.mxu1 %v1075_v0  ;;  %v1078_v3 = vld [vmem:[%s1331_s1 + $0x30] sm:$0xff]   ;;  %v1080_v5 = vld [vmem:[%s1331_s1 + $0x28] sm:$0xff]   ;;  %s970_s10 = sshll.u32 %s1340_s21, 3 }
   0xe   : > { %972 = vmatpush3.bf16.msra.mxu0 %v1076_v1  ;;  %1043 = vmatpush3.bf16.msra.mxu1 %v1076_v1  ;;  %v1081_v6 = vld [vmem:[%s1331_s1 + $0x60] sm:$0xff]   ;;  %v1083_v8 = vld [vmem:[%s1331_s1 + $0x58] sm:$0xff]   ;;  %s1217_s15 = scalar_lea.vmem %s1330_s0, %s970_s10  ;;  %v1085_v10 = vld [vmem:[%s1331_s1 + $0x50] sm:$0xff]  }
   0xf   : > { %973 = vmatprep.subr.bf16.mxu0 %v1077_v2  ;;  %1036 = vmatprep.subr.bf16.mxu1 %v1077_v2  ;;  %v1082_v7 = vld [vmem:[%s1331_s1 + $0x20] sm:$0xff]   ;;  %v1084_v9 = vld [vmem:[%s1331_s1 + $0x18] sm:$0xff]   ;;  %v1086_v13 = vld [vmem:[%s1331_s1 + $0x10] sm:$0xff]  }
  0x10   : > { %v1093_v11 = vld [vmem:[%s1217_s15 + $0x4] ss:$8 sps:$4 sm:$0xff]   ;;  %v1091_v18 = vld [vmem:[%s1217_s15] ss:$8 sps:$4 sm:$0xff]   ;;  %v1097_v20 = vld [vmem:[%s1217_s15 + $0x14] ss:$8 sps:$4 sm:$0xff]  }
  0x11   : > { %v1096_v12 = vld [vmem:[%s1217_s15 + $0x44] ss:$8 sps:$4 sm:$0xff]   ;;  %601 = vmatprep.mubr.bf16.mxu0 %v1093_v11  ;;  %v1094_v19 = vld [vmem:[%s1217_s15 + $0x40] ss:$8 sps:$4 sm:$0xff]   ;;  %v1099_v21 = vld [vmem:[%s1217_s15 + $0x54] ss:$8 sps:$4 sm:$0xff]  }
  0x12   : > { %974 = vmatpush3.bf16.msra.mxu0 %v1078_v3  ;;  %1044 = vmatpush3.bf16.msra.mxu1 %v1078_v3  ;;  %v1087_v14 = vld [vmem:[%s1331_s1 + $0x48] sm:$0xff]   ;;  %v1089_v16 = vld [vmem:[%s1331_s1 + $0x40] sm:$0xff]   ;;  %v1101_v22 = vld [vmem:[%s1217_s15 + $0x10] ss:$8 sps:$4 sm:$0xff]  }
  0x13   : > { %975 = vmatprep.subr.bf16.mxu0 %v1079_v4  ;;  %1037 = vmatprep.subr.bf16.mxu1 %v1079_v4  ;;  %v1088_v15 = vld [vmem:[%s1331_s1 + $0x8] sm:$0xff]   ;;  %v1090_v17 = vld [vmem:[%s1331_s1] sm:$0xff]   ;;  %v1102_v23 = vld [vmem:[%s1217_s15 + $0x50] ss:$8 sps:$4 sm:$0xff]  }
  0x14   : > { %633 = vmatprep.mubr.bf16.mxu1 %v1096_v12  ;;  %v1103_v24 = vld [vmem:[%s1217_s15 + $0x24] ss:$8 sps:$4 sm:$0xff]   ;;  %v1107_v26 = vld [vmem:[%s1217_s15 + $0x20] ss:$8 sps:$4 sm:$0xff]   ;;  %v1109_v28 = vld [vmem:[%s1217_s15 + $0x34] ss:$8 sps:$4 sm:$0xff]  }
  0x15   : > { %v1105_v25 = vld [vmem:[%s1217_s15 + $0x64] ss:$8 sps:$4 sm:$0xff]   ;;  %v1108_v27 = vld [vmem:[%s1217_s15 + $0x60] ss:$8 sps:$4 sm:$0xff]   ;;  %v1111_v29 = vld [vmem:[%s1217_s15 + $0x74] ss:$8 sps:$4 sm:$0xff]  }
  0x16   : > { %976 = vmatpush3.bf16.msra.mxu0 %v1080_v5  ;;  %1045 = vmatpush3.bf16.msra.mxu1 %v1080_v5  ;;  %v1113_v30 = vld [vmem:[%s1217_s15 + $0x30] ss:$8 sps:$4 sm:$0xff]   ;;  %v1259_v35 = vld [vmem:[%s1332_s2] ss:$0 sm:$0xff] }
  0x17   : > { %977 = vmatprep.subr.bf16.mxu0 %v1081_v6  ;;  %1038 = vmatprep.subr.bf16.mxu1 %v1081_v6  ;;  %v1114_v31 = vld [vmem:[%s1217_s15 + $0x70] ss:$8 sps:$4 sm:$0xff]   ;;  %v1264_v39 = vld [vmem:[%s1333_s3] ss:$0 sm:$0xff]  ;;  %s1275_s15 = scalar_lea.vmem %s1334_s4, %s970_s10 }
  0x1a   : > { %978 = vmatpush3.bf16.msra.mxu0 %v1082_v7  ;;  %1046 = vmatpush3.bf16.msra.mxu1 %v1082_v7 }
  0x1b   : > { %979 = vmatprep.subr.bf16.mxu0 %v1083_v8  ;;  %1039 = vmatprep.subr.bf16.mxu1 %v1083_v8 }
  0x1e   : > { %980 = vmatpush3.bf16.msra.mxu0 %v1084_v9  ;;  %1047 = vmatpush3.bf16.msra.mxu1 %v1084_v9 }
  0x1f   : > { %981 = vmatprep.subr.bf16.mxu0 %v1085_v10  ;;  %1040 = vmatprep.subr.bf16.mxu1 %v1085_v10 }
  0x22   : > { %982 = vmatpush3.bf16.msra.mxu0 %v1086_v13  ;;  %1048 = vmatpush3.bf16.msra.mxu1 %v1086_v13 }
  0x23   : > { %983 = vmatprep.subr.bf16.mxu0 %v1087_v14  ;;  %1041 = vmatprep.subr.bf16.mxu1 %v1087_v14 }
  0x26   : > { %984 = vmatpush3.bf16.msra.mxu0 %v1088_v15  ;;  %1049 = vmatpush3.bf16.msra.mxu1 %v1088_v15 }
  0x27   : > { %985 = vmatprep.subr.bf16.mxu0 %v1089_v16  ;;  %1042 = vmatprep.subr.bf16.mxu1 %v1089_v16 }
  0x2a   : > { %986 = vmatpush3.bf16.msra.mxu0 %v1090_v17  ;;  %1050 = vmatpush3.bf16.msra.mxu1 %v1090_v17 }
  0x2d   : > { %602 = vmatmul.mubr.bf16.vlgmr.msra.gmra.mxu0 %v1091_v18  ;;  %634 = vmatmul.mubr.bf16.vlgmr.msra.gmra.mxu1 %v1094_v19 }
  0x2e   : > { %609 = vmatprep.mubr.bf16.mxu0 %v1097_v20  ;;  %641 = vmatprep.mubr.bf16.mxu1 %v1099_v21 }
  0x35   : > { %610 = vmatmul.mubr.bf16.gmra.mxu0 %v1101_v22  ;;  %642 = vmatmul.mubr.bf16.gmra.mxu1 %v1102_v23 }
  0x36   : > { %617 = vmatprep.mubr.bf16.mxu0 %v1103_v24  ;;  %649 = vmatprep.mubr.bf16.mxu1 %v1105_v25 }
  0x3d   : > { %618 = vmatmul.mubr.bf16.gmra.mxu0 %v1107_v26  ;;  %650 = vmatmul.mubr.bf16.gmra.mxu1 %v1108_v27 }
  0x3e   : > { %625 = vmatprep.mubr.bf16.mxu0 %v1109_v28  ;;  %657 = vmatprep.mubr.bf16.mxu1 %v1111_v29 }
  0x45   : > { %626 = vmatmul.mubr.bf16.gmra.mxu0 %v1113_v30  ;;  %658 = vmatmul.mubr.bf16.gmra.mxu1 %v1114_v31 }
  0xed   : > { %v987_v32 = vpop.f32.mrf.mxu0  ;;  %v1011_v33 = vpop.f32.mrf.mxu1 }
  0xef   : > { %v988_v34 = vpop.f32.mrf.mxu0  ;;  %v1012_v36 = vpop.f32.mrf.mxu1 }
  0xf0   : > { %v989_v37 = vadd.f32 %v988_v34, %v987_v32  ;;  %v1013_v38 = vadd.f32 %v1012_v36, %v1011_v33 }
  0xf1   : > { %v990_v40 = vpop.f32.mrf.mxu0  ;;  %v1014_v41 = vpop.f32.mrf.mxu1 }
  0xf2   : > { %v724_v42 = vmul.f32 %v989_v37, %v1259_v35  ;;  %v732_v43 = vmul.f32 %v1013_v38, %v1259_v35 }
  0xf3   : > { %v991_v44 = vpop.f32.mrf.mxu0  ;;  %v1015_v45 = vpop.f32.mrf.mxu1 }
  0xf4   : > { %v747_v46 = vadd.f32 %v1264_v39, %v724_v42  ;;  %v755_v47 = vadd.f32 %v1264_v39, %v732_v43  ;;  %v992_v48 = vadd.f32 %v991_v44, %v990_v40  ;;  %v1016_v49 = vadd.f32 %v1015_v45, %v1014_v41 }
  0xf5   : > { %v993_v50 = vpop.f32.mrf.mxu0  ;;  %v1017_v51 = vpop.f32.mrf.mxu1 }
  0xf6   : > { %v763_v52 = vmax.f32 %v747_v46, 0.0  ;;  %v771_v53 = vmax.f32 %v755_v47, 0.0  ;;  %v725_v54 = vmul.f32 %v992_v48, %v1259_v35  ;;  %v733_v55 = vmul.f32 %v1016_v49, %v1259_v35 }
  0xf7   : > { %v994_v56 = vpop.f32.mrf.mxu0  ;;  %v1018_v57 = vpop.f32.mrf.mxu1 }
  0xf8   : > { %779 = vst [vmem:[%s1275_s15] sm:$0xff] %v763_v52  ;;  %787 = vst [vmem:[%s1275_s15 + $0x40] sm:$0xff] %v771_v53  ;;  %v748_v58 = vadd.f32 %v1264_v39, %v725_v54  ;;  %v756_v59 = vadd.f32 %v1264_v39, %v733_v55  ;;  %v995_v60 = vadd.f32 %v994_v56, %v993_v50 }
  0xf9   : > { %v1019_v61 = vadd.f32 %v1018_v57, %v1017_v51  ;;  %v996_v62 = vpop.f32.mrf.mxu0  ;;  %v1020_v63 = vpop.f32.mrf.mxu1 }
  0xfa   : > { %v764_v0 = vmax.f32 %v748_v58, 0.0  ;;  %v772_v1 = vmax.f32 %v756_v59, 0.0  ;;  %v726_v2 = vmul.f32 %v995_v60, %v1259_v35 }
  0xfb   : > { %v734_v3 = vmul.f32 %v1019_v61, %v1259_v35  ;;  %v997_v4 = vpop.f32.mrf.mxu0  ;;  %v1021_v5 = vpop.f32.mrf.mxu1 }
  0xfc   : > { %780 = vst [vmem:[%s1275_s15 + $0x8] sm:$0xff] %v764_v0  ;;  %788 = vst [vmem:[%s1275_s15 + $0x48] sm:$0xff] %v772_v1  ;;  %v749_v6 = vadd.f32 %v1264_v39, %v726_v2  ;;  %v998_v8 = vadd.f32 %v997_v4, %v996_v62  ;;  %v1022_v9 = vadd.f32 %v1021_v5, %v1020_v63 }
  0xfd   : > { %v757_v7 = vadd.f32 %v1264_v39, %v734_v3  ;;  %v999_v10 = vpop.f32.mrf.mxu0  ;;  %v1023_v11 = vpop.f32.mrf.mxu1 }
  0xfe   : > { %v765_v12 = vmax.f32 %v749_v6, 0.0  ;;  %v727_v14 = vmul.f32 %v998_v8, %v1259_v35  ;;  %v735_v15 = vmul.f32 %v1022_v9, %v1259_v35 }
  0xff   : > { %v773_v13 = vmax.f32 %v757_v7, 0.0  ;;  %v1000_v16 = vpop.f32.mrf.mxu0  ;;  %v1024_v17 = vpop.f32.mrf.mxu1 }
 0x100   : > { %781 = vst [vmem:[%s1275_s15 + $0x10] sm:$0xff] %v765_v12  ;;  %v750_v18 = vadd.f32 %v1264_v39, %v727_v14  ;;  %v758_v19 = vadd.f32 %v1264_v39, %v735_v15  ;;  %v1001_v20 = vadd.f32 %v1000_v16, %v999_v10  ;;  %v1025_v21 = vadd.f32 %v1024_v17, %v1023_v11 }
 0x101   : > { %789 = vst [vmem:[%s1275_s15 + $0x50] sm:$0xff] %v773_v13  ;;  %v1002_v22 = vpop.f32.mrf.mxu0  ;;  %v1026_v23 = vpop.f32.mrf.mxu1 }
 0x102   : > { %v766_v24 = vmax.f32 %v750_v18, 0.0  ;;  %v774_v25 = vmax.f32 %v758_v19, 0.0  ;;  %v728_v26 = vmul.f32 %v1001_v20, %v1259_v35  ;;  %v736_v27 = vmul.f32 %v1025_v21, %v1259_v35 }
 0x103   : > { %v1003_v28 = vpop.f32.mrf.mxu0  ;;  %v1027_v29 = vpop.f32.mrf.mxu1 }
 0x104   : > { %782 = vst [vmem:[%s1275_s15 + $0x18] sm:$0xff] %v766_v24  ;;  %790 = vst [vmem:[%s1275_s15 + $0x58] sm:$0xff] %v774_v25  ;;  %v751_v30 = vadd.f32 %v1264_v39, %v728_v26  ;;  %v759_v31 = vadd.f32 %v1264_v39, %v736_v27  ;;  %v1004_v32 = vadd.f32 %v1003_v28, %v1002_v22 }
 0x105   : > { %v1028_v33 = vadd.f32 %v1027_v29, %v1026_v23  ;;  %v1005_v34 = vpop.f32.mrf.mxu0  ;;  %v1029_v36 = vpop.f32.mrf.mxu1 }
 0x106   : > { %v767_v37 = vmax.f32 %v751_v30, 0.0  ;;  %v775_v38 = vmax.f32 %v759_v31, 0.0  ;;  %v729_v40 = vmul.f32 %v1004_v32, %v1259_v35 }
 0x107   : > { %v737_v41 = vmul.f32 %v1028_v33, %v1259_v35  ;;  %v1006_v42 = vpop.f32.mrf.mxu0  ;;  %v1030_v43 = vpop.f32.mrf.mxu1 }
 0x108   : > { %783 = vst [vmem:[%s1275_s15 + $0x20] sm:$0xff] %v767_v37  ;;  %791 = vst [vmem:[%s1275_s15 + $0x60] sm:$0xff] %v775_v38  ;;  %v752_v44 = vadd.f32 %v1264_v39, %v729_v40  ;;  %v1007_v46 = vadd.f32 %v1006_v42, %v1005_v34  ;;  %v1031_v47 = vadd.f32 %v1030_v43, %v1029_v36 }
 0x109   : > { %v760_v45 = vadd.f32 %v1264_v39, %v737_v41  ;;  %v1008_v48 = vpop.f32.mrf.mxu0  ;;  %v1032_v49 = vpop.f32.mrf.mxu1 }
 0x10a   : > { %v768_v50 = vmax.f32 %v752_v44, 0.0  ;;  %v730_v52 = vmul.f32 %v1007_v46, %v1259_v35  ;;  %v738_v53 = vmul.f32 %v1031_v47, %v1259_v35 }
 0x10b   : > { %v776_v51 = vmax.f32 %v760_v45, 0.0  ;;  %v1009_v54 = vpop.f32.mrf.mxu0  ;;  %v1033_v55 = vpop.f32.mrf.mxu1 }
 0x10c   : > { %784 = vst [vmem:[%s1275_s15 + $0x28] sm:$0xff] %v768_v50  ;;  %v753_v56 = vadd.f32 %v1264_v39, %v730_v52  ;;  %v761_v57 = vadd.f32 %v1264_v39, %v738_v53  ;;  %v1010_v58 = vadd.f32 %v1009_v54, %v1008_v48  ;;  %v1034_v59 = vadd.f32 %v1033_v55, %v1032_v49 }
 0x10d   : > { %792 = vst [vmem:[%s1275_s15 + $0x68] sm:$0xff] %v776_v51 }
 0x10e   : > { %v769_v60 = vmax.f32 %v753_v56, 0.0  ;;  %v777_v61 = vmax.f32 %v761_v57, 0.0  ;;  %v731_v62 = vmul.f32 %v1010_v58, %v1259_v35  ;;  %v739_v63 = vmul.f32 %v1034_v59, %v1259_v35 }
 0x110   : > { %785 = vst [vmem:[%s1275_s15 + $0x30] sm:$0xff] %v769_v60  ;;  %793 = vst [vmem:[%s1275_s15 + $0x70] sm:$0xff] %v777_v61  ;;  %v754_v0 = vadd.f32 %v1264_v39, %v731_v62  ;;  %v762_v1 = vadd.f32 %v1264_v39, %v739_v63 }
 0x112   : > { %v770_v2 = vmax.f32 %v754_v0, 0.0  ;;  %v778_v3 = vmax.f32 %v762_v1, 0.0 }
 0x114   : > { %786 = vst [vmem:[%s1275_s15 + $0x38] sm:$0xff] %v770_v2  ;;  %794 = vst [vmem:[%s1275_s15 + $0x78] sm:$0xff] %v778_v3 }
 0x115 PF: > { %s14_s17 = sadd.s32 1, %s1137_s17   ;;  %s1335_s15 = smov %s1133_s16 }
 0x116   : > { %p11_p5 = scmp.ge.s32.totalorder %s14_s17, 6   ;;  %s1336_s16 = smov %s1338_s18 }
 0x118   :  { %13 = sbr.rel (!%p11_p5) target bundleno = 2 (0x2), region = 83 }

// kernel: simclr_forward.40
= control target key start
LH: loop header
LB: loop body
LE: loop exit
PB: predicated region body
PF: predicated region fallthrough
CT: control target
= control target key end

     0   :  { %s1132_s15 = smov 0   ;;  %s1134_s16 = smov 0   ;;  %s1309_s0 = inlined_call_operand.vmem [shape: bf16[128,640], index: 0, kind: input, shape index: {}]   ;;  %s1310_s1 = inlined_call_operand.vmem [shape: bf16[640,128], index: 1, kind: input, shape index: {}]   ;;  %s1311_s2 = inlined_call_operand.vmem [shape: f32[1,128], index: 2, kind: input, shape index: {}]   ;;  %s1312_s3 = inlined_call_operand.vmem [shape: f32[1,128], index: 3, kind: input, shape index: {}]   ;;  %s1313_s4 = inlined_call_operand.vmem [shape: f32[128,128], index: 4, kind: output, shape index: {}]  }
   0x1   :  { %s1136_s17 = smov 0   ;;  %s1138_s18 = smov 0  }
   0x2   :  { %s1140_s19 = smov 0  }
   0x3 LB: > { %s26_s20 = sadd.s32 1, %s1100_s18  ;;  %p49_p1 = scmp.ne.s32.totalorder %s1092_s16, %s1088_s15  ;;  %s1104_s19 = sphi %s1140_s19, %s14_s19   ;;  %s1100_s18 = sphi %s1138_s18, %s1317_s18   ;;  %s1096_s17 = sphi %s1136_s17, %s1316_s17   ;;  %s1092_s16 = sphi %s1134_s16, %s1315_s16   ;;  %s1088_s15 = sphi %s1132_s15, %s1314_s15  }
   0x4   : > { %p27_p0 = scmp.ge.s32.totalorder %s26_s20, 5  ;;  %p50_p2 = scmp.eq.s32.totalorder %s1104_s19, 0 }
   0x5   : > { %s42_s22 = sadd.s32 1, %s1092_s16  ;;  %p914_p5 = scmp.ge.s32.totalorder %s1104_s19, 5 }
   0x6   : > { %s1319_s20 = smov (%p27_p0, %s26_s20), 0  ;;  %p51_p3 = por %p50_p2, %p49_p1 }
   0x7   : > { %s38_s21 = ssub.s32 %s1100_s18, %s1319_s20  ;;  %195 = sbr.rel (%p914_p5) target bundleno = 26 (0x1a), region = 24 }
   0x8   : > { %p40_p4 = scmp.eq.s32.totalorder %s38_s21, 0 }
   0xa   : > { %s1167_s23 = scalar_select %p40_p4, %s1092_s16, %s42_s22  }
   0xc   : > { %198 = sbr.rel (!%p51_p3) target bundleno = 26 (0x1a), region = 28  ;;  %s200_s24 = sand.u32 (%p51_p3), 1, %s1092_s16  }
   0xd   : > { %s916_s25 = sshll.u32 (%p51_p3), %s1100_s18, 2  ;;  %s915_s26 = sshll.u32 (%p51_p3), %s200_s24, 6 }
   0xe   : > { %s1175_s29 = scalar_lea.vmem (%p51_p3), %s1309_s0, %s916_s25  ;;  %s202_s30 = scalar_lea.vmem (%p51_p3), [#allocation3], %s915_s26 }
   0xf   : > { %v224_v0 = vld [vmem:[%s1175_s29] sm:$0xf] (%p51_p3)  ;;  %v226_v1 = vld [vmem:[%s1175_s29 + $0x14] sm:$0xf] (%p51_p3)  ;;  %v228_v2 = vld [vmem:[%s1175_s29 + $0x28] sm:$0xf] (%p51_p3) }
  0x10   : > { %225 = vst [vmem:[%s202_s30] sm:$0xf] (%p51_p3), %v224_v0  ;;  %227 = vst [vmem:[%s202_s30 + $0x4] sm:$0xf] (%p51_p3), %v226_v1  ;;  %v230_v3 = vld [vmem:[%s1175_s29 + $0x3c] sm:$0xf] (%p51_p3) }
  0x11   : > { %v232_v4 = vld [vmem:[%s1175_s29 + $0x50] sm:$0xf]  ;;  %229 = vst [vmem:[%s202_s30 + $0x8] sm:$0xf] %v228_v2  ;;  %231 = vst [vmem:[%s202_s30 + $0xc] sm:$0xf] %v230_v3 }
  0x12   : > { %233 = vst [vmem:[%s202_s30 + $0x10] sm:$0xf] %v232_v4  ;;  %v234_v5 = vld [vmem:[%s1175_s29 + $0x64] sm:$0xf]  ;;  %v236_v6 = vld [vmem:[%s1175_s29 + $0x78] sm:$0xf] }
  0x13   : > { %v238_v7 = vld [vmem:[%s1175_s29 + $0x8c] sm:$0xf]  ;;  %235 = vst [vmem:[%s202_s30 + $0x14] sm:$0xf] %v234_v5  ;;  %237 = vst [vmem:[%s202_s30 + $0x18] sm:$0xf] %v236_v6 }
  0x14   : > { %239 = vst [vmem:[%s202_s30 + $0x1c] sm:$0xf] %v238_v7  ;;  %v240_v8 = vld [vmem:[%s1175_s29 + $0xa0] sm:$0xf]  ;;  %v242_v9 = vld [vmem:[%s1175_s29 + $0xb4] sm:$0xf] }
  0x15   : > { %v244_v10 = vld [vmem:[%s1175_s29 + $0xc8] sm:$0xf]  ;;  %241 = vst [vmem:[%s202_s30 + $0x20] sm:$0xf] %v240_v8  ;;  %243 = vst [vmem:[%s202_s30 + $0x24] sm:$0xf] %v242_v9 }
  0x16   : > { %245 = vst [vmem:[%s202_s30 + $0x28] sm:$0xf] %v244_v10  ;;  %v246_v11 = vld [vmem:[%s1175_s29 + $0xdc] sm:$0xf]  ;;  %v248_v12 = vld [vmem:[%s1175_s29 + $0xf0] sm:$0xf] }
  0x17   : > { %v250_v13 = vld [vmem:[%s1175_s29 + $0x104] sm:$0xf]  ;;  %247 = vst [vmem:[%s202_s30 + $0x2c] sm:$0xf] %v246_v11  ;;  %249 = vst [vmem:[%s202_s30 + $0x30] sm:$0xf] %v248_v12 }
  0x18   : > { %251 = vst [vmem:[%s202_s30 + $0x34] sm:$0xf] %v250_v13  ;;  %v252_v14 = vld [vmem:[%s1175_s29 + $0x118] sm:$0xf]  ;;  %v254_v15 = vld [vmem:[%s1175_s29 + $0x12c] sm:$0xf] }
  0x19   : > { %253 = vst [vmem:[%s202_s30 + $0x38] sm:$0xf] %v252_v14  ;;  %255 = vst [vmem:[%s202_s30 + $0x3c] sm:$0xf] %v254_v15 }
  0x1a PF: > { %p917_p6 = scmp.ge.s32.totalorder %s1104_s19, 1  ;;  %p322_p7 = scmp.lt.s32.totalorder %s1104_s19, 6 }
  0x1c   : > { %p323_p8 = pnand %p917_p6, %p322_p7 }
  0x1d   : > { %s329_s5 = sand.u32 (!%p323_p8), 1, %s1088_s15   ;;  %s919_s6 = sshll.u32 (!%p323_p8), %s1096_s17, 4 }
  0x1e   : > { %326 = sbr.rel (%p323_p8) target bundleno = 310 (0x136), region = 73  ;;  %s918_s7 = sshll.u32 (!%p323_p8), %s329_s5, 6 }
  0x1f   : > { %p373_p9 = scmp.lt.s32.totalorder (!%p323_p8), %s919_s6, 79  ;;  %s1202_s12 = scalar_lea.vmem (!%p323_p8), [#allocation3], %s918_s7 }
  0x20   : > { %p921_p10 = scmp.ne.s32.totalorder (!%p323_p8), %s1096_s17, 0 }
  0x23   : > { %s1321_s6 = smov (!%p373_p9, %s919_s6), 79  ;;  %400 = sbr.rel (%p921_p10) target bundleno = 49 (0x31), region = 81 }
  0x24   : > { %s920_s8 = sshll.u32 %s1321_s6, 2 }
  0x25   : > { %s1200_s11 = scalar_lea.vmem %s1310_s1, %s920_s8 }
  0x28   : > { %v1106_v16 = vmov 0.0  }
  0x29   : > { %401 = vst [vmem:[#allocation2 + $0x30] sm:$0xff] %v1106_v16  ;;  %402 = vst [vmem:[#allocation2] sm:$0xff] %v1106_v16 }
  0x2a   : > { %403 = vst [vmem:[#allocation2 + $0x58] sm:$0xff] %v1106_v16  ;;  %404 = vst [vmem:[#allocation2 + $0x18] sm:$0xff] %v1106_v16 }
  0x2b   : > { %405 = vst [vmem:[#allocation2 + $0x50] sm:$0xff] %v1106_v16  ;;  %406 = vst [vmem:[#allocation2 + $0x68] sm:$0xff] %v1106_v16 }
  0x2c   : > { %407 = vst [vmem:[#allocation2 + $0x8] sm:$0xff] %v1106_v16  ;;  %408 = vst [vmem:[#allocation2 + $0x48] sm:$0xff] %v1106_v16 }
  0x2d   : > { %409 = vst [vmem:[#allocation2 + $0x40] sm:$0xff] %v1106_v16  ;;  %410 = vst [vmem:[#allocation2 + $0x20] sm:$0xff] %v1106_v16 }
  0x2e   : > { %411 = vst [vmem:[#allocation2 + $0x10] sm:$0xff] %v1106_v16  ;;  %412 = vst [vmem:[#allocation2 + $0x38] sm:$0xff] %v1106_v16 }
  0x2f   : > { %413 = vst [vmem:[#allocation2 + $0x60] sm:$0xff] %v1106_v16  ;;  %414 = vst [vmem:[#allocation2 + $0x70] sm:$0xff] %v1106_v16 }
  0x30   : > { %415 = vst [vmem:[#allocation2 + $0x78] sm:$0xff] %v1106_v16  ;;  %416 = vst [vmem:[#allocation2 + $0x28] sm:$0xff] %v1106_v16 }
  0x31 PF: > { %v1050_v17 = vld [vmem:[%s1200_s11 + $0x38] sm:$0xff]   ;;  %v1051_v18 = vld [vmem:[%s1200_s11 + $0x30] sm:$0xff]   ;;  %v1052_v19 = vld [vmem:[%s1200_s11 + $0x28] sm:$0xff]   ;;  %p938_p11 = scmp.ne.s32.totalorder %s1096_s17, 4 }
  0x32   : > { %961 = vmatprep.subr.bf16.mxu0 %v1050_v17  ;;  %993 = vmatprep.subr.bf16.mxu1 %v1050_v17  ;;  %v1053_v20 = vld [vmem:[%s1200_s11 + $0x20] sm:$0xff]   ;;  %v1054_v23 = vld [vmem:[%s1200_s11 + $0x18] sm:$0xff]   ;;  %v1055_v24 = vld [vmem:[%s1200_s11 + $0x10] sm:$0xff]  }
  0x33   : > { %962 = vmatpush3.bf16.msra.mxu0 %v1050_v17  ;;  %1001 = vmatpush3.bf16.msra.mxu1 %v1050_v17  ;;  %v1058_v21 = vld [vmem:[%s1202_s12] sm:$0xff]   ;;  %v1056_v25 = vld [vmem:[%s1200_s11 + $0x8] sm:$0xff]   ;;  %v1062_v29 = vld [vmem:[%s1202_s12 + $0x10] sm:$0xff]  }
  0x34   : > { %963 = vmatprep.subr.bf16.mxu0 %v1051_v18  ;;  %994 = vmatprep.subr.bf16.mxu1 %v1051_v18  ;;  %v1059_v22 = vld [vmem:[%s1202_s12 + $0x20] sm:$0xff]   ;;  %v1060_v27 = vld [vmem:[%s1202_s12 + $0x8] sm:$0xff]   ;;  %v1063_v30 = vld [vmem:[%s1202_s12 + $0x30] sm:$0xff]  }
  0x35   : > { %977 = vmatprep.mubr.bf16.mxu0 %v1058_v21  ;;  %985 = vmatprep.mubr.bf16.mxu1 %v1059_v22  ;;  %v1057_v26 = vld [vmem:[%s1200_s11] sm:$0xff]   ;;  %v1061_v28 = vld [vmem:[%s1202_s12 + $0x28] sm:$0xff]   ;;  %v1064_v31 = vld [vmem:[%s1202_s12 + $0x18] sm:$0xff]  }
  0x36   : > { %v1065_v32 = vld [vmem:[%s1202_s12 + $0x38] sm:$0xff]   ;;  %v427_v34 = vld [vmem:[#allocation2 + $0x10] sm:$0xff]  ;;  %v425_v38 = vld [vmem:[#allocation2 + $0x40] sm:$0xff] }
  0x37   : > { %964 = vmatpush3.bf16.msra.mxu0 %v1051_v18  ;;  %1002 = vmatpush3.bf16.msra.mxu1 %v1051_v18  ;;  %v419_v33 = vld [vmem:[#allocation2 + $0x58] sm:$0xff]  ;;  %v417_v37 = vld [vmem:[#allocation2 + $0x30] sm:$0xff]  ;;  %v418_v49 = vld [vmem:[#allocation2] sm:$0xff] }
  0x38   : > { %965 = vmatprep.subr.bf16.mxu0 %v1052_v19  ;;  %995 = vmatprep.subr.bf16.mxu1 %v1052_v19  ;;  %v420_v43 = vld [vmem:[#allocation2 + $0x18] sm:$0xff]  ;;  %v426_v50 = vld [vmem:[#allocation2 + $0x20] sm:$0xff]  ;;  %v423_v55 = vld [vmem:[#allocation2 + $0x8] sm:$0xff] }
  0x39   : > { %v428_v44 = vld [vmem:[#allocation2 + $0x38] sm:$0xff]  ;;  %v421_v61 = vld [vmem:[#allocation2 + $0x50] sm:$0xff]  ;;  %v429_v62 = vld [vmem:[#allocation2 + $0x60] sm:$0xff] }
  0x3a   : > { %v431_v56 = vld [vmem:[#allocation2 + $0x78] sm:$0xff]  ;;  %v424_v3 = vld [vmem:[#allocation2 + $0x48] sm:$0xff]  ;;  %v430_v10 = vld [vmem:[#allocation2 + $0x70] sm:$0xff] }
  0x3b   : > { %966 = vmatpush3.bf16.msra.mxu0 %v1052_v19  ;;  %1003 = vmatpush3.bf16.msra.mxu1 %v1052_v19  ;;  %v432_v4 = vld [vmem:[#allocation2 + $0x28] sm:$0xff] }
  0x3c   : > { %967 = vmatprep.subr.bf16.mxu0 %v1053_v20  ;;  %996 = vmatprep.subr.bf16.mxu1 %v1053_v20  ;;  %v422_v9 = vld [vmem:[#allocation2 + $0x68] sm:$0xff] }
  0x3f   : > { %968 = vmatpush3.bf16.msra.mxu0 %v1053_v20  ;;  %1004 = vmatpush3.bf16.msra.mxu1 %v1053_v20 }
  0x40   : > { %969 = vmatprep.subr.bf16.mxu0 %v1054_v23  ;;  %997 = vmatprep.subr.bf16.mxu1 %v1054_v23 }
  0x43   : > { %970 = vmatpush3.bf16.msra.mxu0 %v1054_v23  ;;  %1005 = vmatpush3.bf16.msra.mxu1 %v1054_v23 }
  0x44   : > { %971 = vmatprep.subr.bf16.mxu0 %v1055_v24  ;;  %998 = vmatprep.subr.bf16.mxu1 %v1055_v24 }
  0x47   : > { %972 = vmatpush3.bf16.msra.mxu0 %v1055_v24  ;;  %1006 = vmatpush3.bf16.msra.mxu1 %v1055_v24 }
  0x48   : > { %973 = vmatprep.subr.bf16.mxu0 %v1056_v25  ;;  %999 = vmatprep.subr.bf16.mxu1 %v1056_v25 }
  0x4b   : > { %974 = vmatpush3.bf16.msra.mxu0 %v1056_v25  ;;  %1007 = vmatpush3.bf16.msra.mxu1 %v1056_v25 }
  0x4c   : > { %975 = vmatprep.subr.bf16.mxu0 %v1057_v26  ;;  %1000 = vmatprep.subr.bf16.mxu1 %v1057_v26 }
  0x4f   : > { %976 = vmatpush3.bf16.msra.mxu0 %v1057_v26  ;;  %1008 = vmatpush3.bf16.msra.mxu1 %v1057_v26 }
  0x52   : > { %978 = vmatmul.mubr.bf16.vlgmr.msra.gmra.mxu0 %v1060_v27  ;;  %986 = vmatmul.mubr.bf16.vlgmr.msra.gmra.mxu1 %v1061_v28 }
  0x53   : > { %981 = vmatprep.mubr.bf16.mxu0 %v1062_v29  ;;  %989 = vmatprep.mubr.bf16.mxu1 %v1063_v30 }
  0x5a   : > { %982 = vmatmul.mubr.bf16.gmra.mxu0 %v1064_v31  ;;  %990 = vmatmul.mubr.bf16.gmra.mxu1 %v1065_v32 }
 0x112   : > { %v979_v35 = vpop.f32.mrf.mxu0  ;;  %v987_v36 = vpop.f32.mrf.mxu1 }
 0x113   : > { %v660_v39 = vadd.f32 %v979_v35, %v419_v33  ;;  %v668_v40 = vadd.f32 %v987_v36, %v427_v34 }
 0x114   : > { %v595_v41 = vpop.f32.mrf.mxu0  ;;  %v627_v42 = vpop.f32.mrf.mxu1 }
 0x115   : > { %676 = vst [vmem:[#allocation2 + $0x58] sm:$0xff] %v660_v39  ;;  %684 = vst [vmem:[#allocation2 + $0x10] sm:$0xff] %v668_v40  ;;  %v658_v45 = vadd.f32 %v595_v41, %v417_v37  ;;  %v666_v46 = vadd.f32 %v627_v42, %v425_v38 }
 0x116   : > { %v980_v47 = vpop.f32.mrf.mxu0  ;;  %v988_v48 = vpop.f32.mrf.mxu1 }
 0x117   : > { %674 = vst [vmem:[#allocation2 + $0x30] sm:$0xff] %v658_v45  ;;  %682 = vst [vmem:[#allocation2 + $0x40] sm:$0xff] %v666_v46  ;;  %v661_v51 = vadd.f32 %v980_v47, %v420_v43  ;;  %v669_v52 = vadd.f32 %v988_v48, %v428_v44 }
 0x118   : > { %v598_v53 = vpop.f32.mrf.mxu0  ;;  %v630_v54 = vpop.f32.mrf.mxu1 }
 0x119   : > { %677 = vst [vmem:[#allocation2 + $0x18] sm:$0xff] %v661_v51  ;;  %685 = vst [vmem:[#allocation2 + $0x38] sm:$0xff] %v669_v52  ;;  %v659_v57 = vadd.f32 %v598_v53, %v418_v49  ;;  %v667_v58 = vadd.f32 %v630_v54, %v426_v50 }
 0x11a   : > { %v983_v59 = vpop.f32.mrf.mxu0  ;;  %v991_v60 = vpop.f32.mrf.mxu1 }
 0x11b   : > { %675 = vst [vmem:[#allocation2] sm:$0xff] %v659_v57  ;;  %683 = vst [vmem:[#allocation2 + $0x20] sm:$0xff] %v667_v58  ;;  %v664_v63 = vadd.f32 %v983_v59, %v423_v55  ;;  %v672_v0 = vadd.f32 %v991_v60, %v431_v56 }
 0x11c   : > { %v611_v1 = vpop.f32.mrf.mxu0  ;;  %v643_v2 = vpop.f32.mrf.mxu1 }
 0x11d   : > { %680 = vst [vmem:[#allocation2 + $0x8] sm:$0xff] %v664_v63  ;;  %688 = vst [vmem:[#allocation2 + $0x78] sm:$0xff] %v672_v0  ;;  %v662_v5 = vadd.f32 %v611_v1, %v421_v61  ;;  %v670_v6 = vadd.f32 %v643_v2, %v429_v62 }
 0x11e   : > { %v984_v7 = vpop.f32.mrf.mxu0  ;;  %v992_v8 = vpop.f32.mrf.mxu1 }
 0x11f   : > { %678 = vst [vmem:[#allocation2 + $0x50] sm:$0xff] %v662_v5  ;;  %686 = vst [vmem:[#allocation2 + $0x60] sm:$0xff] %v670_v6  ;;  %v665_v11 = vadd.f32 %v984_v7, %v424_v3  ;;  %v673_v12 = vadd.f32 %v992_v8, %v432_v4  ;;  %693 = sbr.rel (%p938_p11) target bundleno = 310 (0x136), region = 85 }
 0x120   : > { %v614_v13 = vpop.f32.mrf.mxu0  ;;  %v646_v14 = vpop.f32.mrf.mxu1 }
 0x121   : > { %681 = vst [vmem:[#allocation2 + $0x48] sm:$0xff] %v665_v11  ;;  %689 = vst [vmem:[#allocation2 + $0x28] sm:$0xff] %v673_v12  ;;  %v663_v15 = vadd.f32 %v614_v13, %v422_v9  ;;  %v671_v16 = vadd.f32 %v646_v14, %v430_v10 }
 0x123   : > { %679 = vst [vmem:[#allocation2 + $0x68] sm:$0xff] %v663_v15  ;;  %687 = vst [vmem:[#allocation2 + $0x70] sm:$0xff] %v671_v16 }
 0x124   : > { %v694_v17 = vld [vmem:[#allocation2 + $0x30] sm:$0xff]  ;;  %v939_v18 = vld [vmem:[%s1311_s2] ss:$0 sm:$0xff]  ;;  %v696_v22 = vld [vmem:[#allocation2 + $0x58] sm:$0xff] }
 0x125   : > { %v1228_v19 = vld [vmem:[%s1312_s3] ss:$0 sm:$0xff]  ;;  %v717_v20 = vmul.f32 %v939_v18, %v694_v17  ;;  %v697_v23 = vld [vmem:[#allocation2 + $0x18] sm:$0xff]  ;;  %v719_v25 = vmul.f32 %v939_v18, %v696_v22  ;;  %v700_v29 = vld [vmem:[#allocation2 + $0x8] sm:$0xff] }
 0x126   : > { %v695_v21 = vld [vmem:[#allocation2] sm:$0xff]  ;;  %v720_v26 = vmul.f32 %v939_v18, %v697_v23  ;;  %v698_v27 = vld [vmem:[#allocation2 + $0x50] sm:$0xff]  ;;  %v723_v33 = vmul.f32 %v939_v18, %v700_v29  ;;  %v705_v46 = vld [vmem:[#allocation2 + $0x38] sm:$0xff] }
 0x127   : > { %v718_v24 = vmul.f32 %v939_v18, %v695_v21  ;;  %v740_v30 = vadd.f32 %v1228_v19, %v717_v20  ;;  %v721_v31 = vmul.f32 %v939_v18, %v698_v27  ;;  %v742_v36 = vadd.f32 %v1228_v19, %v719_v25  ;;  %v702_v39 = vld [vmem:[#allocation2 + $0x40] sm:$0xff]  ;;  %v704_v45 = vld [vmem:[#allocation2 + $0x10] sm:$0xff]  ;;  %v708_v53 = vld [vmem:[#allocation2 + $0x78] sm:$0xff] }
 0x128   : > { %v701_v34 = vld [vmem:[#allocation2 + $0x48] sm:$0xff]  ;;  %v743_v37 = vadd.f32 %v1228_v19, %v720_v26  ;;  %v746_v43 = vadd.f32 %v1228_v19, %v723_v33  ;;  %v703_v44 = vld [vmem:[#allocation2 + $0x20] sm:$0xff]  ;;  %v725_v57 = vmul.f32 %v939_v18, %v702_v39  ;;  %v727_v61 = vmul.f32 %v939_v18, %v704_v45 }
 0x129   : > { %v741_v35 = vadd.f32 %v1228_v19, %v718_v24  ;;  %v724_v38 = vmul.f32 %v939_v18, %v701_v34  ;;  %v756_v40 = vmax.f32 %v740_v30, 0.0  ;;  %v744_v41 = vadd.f32 %v1228_v19, %v721_v31  ;;  %v706_v51 = vld [vmem:[#allocation2 + $0x60] sm:$0xff]  ;;  %v709_v58 = vld [vmem:[#allocation2 + $0x28] sm:$0xff] }
 0x12a   : > { %v699_v28 = vld [vmem:[#allocation2 + $0x68] sm:$0xff]  ;;  %v758_v48 = vmax.f32 %v742_v36, 0.0  ;;  %v759_v49 = vmax.f32 %v743_v37, 0.0  ;;  %v707_v52 = vld [vmem:[#allocation2 + $0x70] sm:$0xff]  ;;  %v762_v56 = vmax.f32 %v746_v43, 0.0  ;;  %v726_v60 = vmul.f32 %v939_v18, %v703_v44 }
 0x12b   : > { %v722_v32 = vmul.f32 %v939_v18, %v699_v28  ;;  %v757_v47 = vmax.f32 %v741_v35, 0.0  ;;  %v747_v50 = vadd.f32 %v1228_v19, %v724_v38  ;;  %772 = vst [vmem:[%s1313_s4] sm:$0xff] %v756_v40  ;;  %v760_v54 = vmax.f32 %v744_v41, 0.0 }
 0x12c   : > { %774 = vst [vmem:[%s1313_s4 + $0x10] sm:$0xff] %v758_v48  ;;  %775 = vst [vmem:[%s1313_s4 + $0x18] sm:$0xff] %v759_v49  ;;  %v728_v62 = vmul.f32 %v939_v18, %v705_v46  ;;  %v748_v63 = vadd.f32 %v1228_v19, %v725_v57  ;;  %v729_v0 = vmul.f32 %v939_v18, %v706_v51 }
 0x12d   : > { %v745_v42 = vadd.f32 %v1228_v19, %v722_v32  ;;  %773 = vst [vmem:[%s1313_s4 + $0x8] sm:$0xff] %v757_v47  ;;  %v763_v59 = vmax.f32 %v747_v50, 0.0  ;;  %776 = vst [vmem:[%s1313_s4 + $0x20] sm:$0xff] %v760_v54  ;;  %v730_v1 = vmul.f32 %v939_v18, %v707_v52  ;;  %v731_v2 = vmul.f32 %v939_v18, %v708_v53 }
 0x12e   : > { %778 = vst [vmem:[%s1313_s4 + $0x30] sm:$0xff] %v762_v56  ;;  %v749_v3 = vadd.f32 %v1228_v19, %v726_v60  ;;  %v750_v4 = vadd.f32 %v1228_v19, %v727_v61  ;;  %v751_v5 = vadd.f32 %v1228_v19, %v728_v62  ;;  %v732_v6 = vmul.f32 %v939_v18, %v709_v58 }
 0x12f   : > { %v761_v55 = vmax.f32 %v745_v42, 0.0  ;;  %779 = vst [vmem:[%s1313_s4 + $0x38] sm:$0xff] %v763_v59  ;;  %v764_v7 = vmax.f32 %v748_v63, 0.0  ;;  %v752_v8 = vadd.f32 %v1228_v19, %v729_v0  ;;  %v753_v9 = vadd.f32 %v1228_v19, %v730_v1 }
 0x130   : > { %v754_v10 = vadd.f32 %v1228_v19, %v731_v2  ;;  %v765_v11 = vmax.f32 %v749_v3, 0.0  ;;  %v766_v12 = vmax.f32 %v750_v4, 0.0  ;;  %v767_v13 = vmax.f32 %v751_v5, 0.0 }
 0x131   : > { %777 = vst [vmem:[%s1313_s4 + $0x28] sm:$0xff] %v761_v55  ;;  %v755_v14 = vadd.f32 %v1228_v19, %v732_v6  ;;  %780 = vst [vmem:[%s1313_s4 + $0x40] sm:$0xff] %v764_v7  ;;  %v768_v15 = vmax.f32 %v752_v8, 0.0  ;;  %v769_v16 = vmax.f32 %v753_v9, 0.0 }
 0x132   : > { %v770_v17 = vmax.f32 %v754_v10, 0.0  ;;  %781 = vst [vmem:[%s1313_s4 + $0x48] sm:$0xff] %v765_v11  ;;  %782 = vst [vmem:[%s1313_s4 + $0x50] sm:$0xff] %v766_v12 }
 0x133   : > { %783 = vst [vmem:[%s1313_s4 + $0x58] sm:$0xff] %v767_v13  ;;  %v771_v18 = vmax.f32 %v755_v14, 0.0  ;;  %784 = vst [vmem:[%s1313_s4 + $0x60] sm:$0xff] %v768_v15 }
 0x134   : > { %785 = vst [vmem:[%s1313_s4 + $0x68] sm:$0xff] %v769_v16  ;;  %786 = vst [vmem:[%s1313_s4 + $0x70] sm:$0xff] %v770_v17 }
 0x135   : > { %787 = vst [vmem:[%s1313_s4 + $0x78] sm:$0xff] %v771_v18 }
 0x136 PF: > { %s14_s19 = sadd.s32 1, %s1104_s19   ;;  %s1314_s15 = smov %s1092_s16 }
 0x137   : > { %p11_p12 = scmp.ge.s32.totalorder %s14_s19, 7   ;;  %s1315_s16 = smov %s1167_s23 }
 0x138   : > { %s1316_s17 = smov %s1100_s18  ;;  %s1317_s18 = smov %s1319_s20 }
 0x139   :  { %13 = sbr.rel (!%p11_p12) target bundleno = 3 (0x3), region = 129 }

// kernel: simclr_forward.41
= control target key start
LH: loop header
LB: loop body
LE: loop exit
PB: predicated region body
PF: predicated region fallthrough
CT: control target
= control target key end

     0   :  { %s1248_s18 = smov 0   ;;  %s1250_s19 = smov 0   ;;  %s1491_s0 = inlined_call_operand.vmem [shape: bf16[128,640], index: 0, kind: input, shape index: {}]   ;;  %s1492_s1 = inlined_call_operand.vmem [shape: bf16[640,128], index: 1, kind: input, shape index: {}]   ;;  %s1493_s2 = inlined_call_operand.vmem [shape: f32[1,128], index: 2, kind: input, shape index: {}]   ;;  %s1494_s3 = inlined_call_operand.vmem [shape: f32[1,128], index: 3, kind: input, shape index: {}]   ;;  %s1495_s4 = inlined_call_operand.vmem [shape: f32[128,128], index: 4, kind: input, shape index: {}]   ;;  %s1496_s5 = inlined_call_operand.vmem [shape: f32[128,128], index: 5, kind: output, shape index: {}]  }
   0x1   :  { %s1252_s20 = smov 0   ;;  %s1254_s21 = smov 0  }
   0x2   :  { %s1256_s22 = smov 0  }
   0x3 LB: > { %s27_s23 = sadd.s32 1, %s1211_s21  ;;  %p50_p1 = scmp.ne.s32.totalorder %s1203_s19, %s1199_s18  ;;  %s1215_s22 = sphi %s1256_s22, %s15_s22   ;;  %s1211_s21 = sphi %s1254_s21, %s1500_s21   ;;  %s1207_s20 = sphi %s1252_s20, %s1499_s20   ;;  %s1203_s19 = sphi %s1250_s19, %s1498_s19   ;;  %s1199_s18 = sphi %s1248_s18, %s1497_s18  }
   0x4   : > { %p28_p0 = scmp.ge.s32.totalorder %s27_s23, 5  ;;  %p51_p2 = scmp.eq.s32.totalorder %s1215_s22, 0 }
   0x5   : > { %s43_s25 = sadd.s32 1, %s1203_s19  ;;  %p1025_p5 = scmp.ge.s32.totalorder %s1215_s22, 5 }
   0x6   : > { %s1502_s23 = smov (%p28_p0, %s27_s23), 0  ;;  %p52_p3 = por %p51_p2, %p50_p1 }
   0x7   : > { %s39_s24 = ssub.s32 %s1211_s21, %s1502_s23  ;;  %236 = sbr.rel (%p1025_p5) target bundleno = 26 (0x1a), region = 28 }
   0x8   : > { %p41_p4 = scmp.eq.s32.totalorder %s39_s24, 0 }
   0xa   : > { %s1283_s26 = scalar_select %p41_p4, %s1203_s19, %s43_s25  }
   0xc   : > { %239 = sbr.rel (!%p52_p3) target bundleno = 26 (0x1a), region = 32  ;;  %s241_s27 = sand.u32 (%p52_p3), 1, %s1203_s19  }
   0xd   : > { %s1027_s28 = sshll.u32 (%p52_p3), %s1211_s21, 2  ;;  %s1026_s29 = sshll.u32 (%p52_p3), %s241_s27, 6 }
   0xe   : > { %s1291_s7 = scalar_lea.vmem (%p52_p3), %s1491_s0, %s1027_s28  ;;  %s243_s8 = scalar_lea.vmem (%p52_p3), [#allocation3], %s1026_s29 }
   0xf   : > { %v265_v0 = vld [vmem:[%s1291_s7] sm:$0xf] (%p52_p3)  ;;  %v267_v1 = vld [vmem:[%s1291_s7 + $0x14] sm:$0xf] (%p52_p3)  ;;  %v269_v2 = vld [vmem:[%s1291_s7 + $0x28] sm:$0xf] (%p52_p3) }
  0x10   : > { %266 = vst [vmem:[%s243_s8] sm:$0xf] (%p52_p3), %v265_v0  ;;  %268 = vst [vmem:[%s243_s8 + $0x4] sm:$0xf] (%p52_p3), %v267_v1  ;;  %v271_v3 = vld [vmem:[%s1291_s7 + $0x3c] sm:$0xf] (%p52_p3) }
  0x11   : > { %v273_v4 = vld [vmem:[%s1291_s7 + $0x50] sm:$0xf]  ;;  %270 = vst [vmem:[%s243_s8 + $0x8] sm:$0xf] %v269_v2  ;;  %272 = vst [vmem:[%s243_s8 + $0xc] sm:$0xf] %v271_v3 }
  0x12   : > { %274 = vst [vmem:[%s243_s8 + $0x10] sm:$0xf] %v273_v4  ;;  %v275_v5 = vld [vmem:[%s1291_s7 + $0x64] sm:$0xf]  ;;  %v277_v6 = vld [vmem:[%s1291_s7 + $0x78] sm:$0xf] }
  0x13   : > { %v279_v7 = vld [vmem:[%s1291_s7 + $0x8c] sm:$0xf]  ;;  %276 = vst [vmem:[%s243_s8 + $0x14] sm:$0xf] %v275_v5  ;;  %278 = vst [vmem:[%s243_s8 + $0x18] sm:$0xf] %v277_v6 }
  0x14   : > { %280 = vst [vmem:[%s243_s8 + $0x1c] sm:$0xf] %v279_v7  ;;  %v281_v8 = vld [vmem:[%s1291_s7 + $0xa0] sm:$0xf]  ;;  %v283_v9 = vld [vmem:[%s1291_s7 + $0xb4] sm:$0xf] }
  0x15   : > { %v285_v10 = vld [vmem:[%s1291_s7 + $0xc8] sm:$0xf]  ;;  %282 = vst [vmem:[%s243_s8 + $0x20] sm:$0xf] %v281_v8  ;;  %284 = vst [vmem:[%s243_s8 + $0x24] sm:$0xf] %v283_v9 }
  0x16   : > { %286 = vst [vmem:[%s243_s8 + $0x28] sm:$0xf] %v285_v10  ;;  %v287_v11 = vld [vmem:[%s1291_s7 + $0xdc] sm:$0xf]  ;;  %v289_v12 = vld [vmem:[%s1291_s7 + $0xf0] sm:$0xf] }
  0x17   : > { %v291_v13 = vld [vmem:[%s1291_s7 + $0x104] sm:$0xf]  ;;  %288 = vst [vmem:[%s243_s8 + $0x2c] sm:$0xf] %v287_v11  ;;  %290 = vst [vmem:[%s243_s8 + $0x30] sm:$0xf] %v289_v12 }
  0x18   : > { %292 = vst [vmem:[%s243_s8 + $0x34] sm:$0xf] %v291_v13  ;;  %v293_v14 = vld [vmem:[%s1291_s7 + $0x118] sm:$0xf]  ;;  %v295_v15 = vld [vmem:[%s1291_s7 + $0x12c] sm:$0xf] }
  0x19   : > { %294 = vst [vmem:[%s243_s8 + $0x38] sm:$0xf] %v293_v14  ;;  %296 = vst [vmem:[%s243_s8 + $0x3c] sm:$0xf] %v295_v15 }
  0x1a PF: > { %p1028_p6 = scmp.ge.s32.totalorder %s1215_s22, 1  ;;  %p363_p7 = scmp.lt.s32.totalorder %s1215_s22, 6 }
  0x1c   : > { %p364_p8 = pnand %p1028_p6, %p363_p7 }
  0x1d   : > { %s370_s9 = sand.u32 (!%p364_p8), 1, %s1199_s18   ;;  %s1030_s10 = sshll.u32 (!%p364_p8), %s1207_s20, 4 }
  0x1e   : > { %367 = sbr.rel (%p364_p8) target bundleno = 315 (0x13b), region = 77  ;;  %s1029_s11 = sshll.u32 (!%p364_p8), %s370_s9, 6 }
  0x1f   : > { %p424_p9 = scmp.lt.s32.totalorder (!%p364_p8), %s1030_s10, 79  ;;  %s1318_s16 = scalar_lea.vmem (!%p364_p8), [#allocation3], %s1029_s11 }
  0x20   : > { %p1032_p10 = scmp.ne.s32.totalorder (!%p364_p8), %s1207_s20, 0 }
  0x23   : > { %s1504_s10 = smov (!%p424_p9, %s1030_s10), 79  ;;  %460 = sbr.rel (%p1032_p10) target bundleno = 49 (0x31), region = 85 }
  0x24   : > { %s1031_s12 = sshll.u32 %s1504_s10, 2 }
  0x25   : > { %s1316_s15 = scalar_lea.vmem %s1492_s1, %s1031_s12 }
  0x28   : > { %v1217_v16 = vmov 0.0  }
  0x29   : > { %461 = vst [vmem:[#allocation2 + $0x30] sm:$0xff] %v1217_v16  ;;  %462 = vst [vmem:[#allocation2] sm:$0xff] %v1217_v16 }
  0x2a   : > { %463 = vst [vmem:[#allocation2 + $0x58] sm:$0xff] %v1217_v16  ;;  %464 = vst [vmem:[#allocation2 + $0x18] sm:$0xff] %v1217_v16 }
  0x2b   : > { %465 = vst [vmem:[#allocation2 + $0x50] sm:$0xff] %v1217_v16  ;;  %466 = vst [vmem:[#allocation2 + $0x68] sm:$0xff] %v1217_v16 }
  0x2c   : > { %467 = vst [vmem:[#allocation2 + $0x8] sm:$0xff] %v1217_v16  ;;  %468 = vst [vmem:[#allocation2 + $0x48] sm:$0xff] %v1217_v16 }
  0x2d   : > { %469 = vst [vmem:[#allocation2 + $0x40] sm:$0xff] %v1217_v16  ;;  %470 = vst [vmem:[#allocation2 + $0x20] sm:$0xff] %v1217_v16 }
  0x2e   : > { %471 = vst [vmem:[#allocation2 + $0x10] sm:$0xff] %v1217_v16  ;;  %472 = vst [vmem:[#allocation2 + $0x38] sm:$0xff] %v1217_v16 }
  0x2f   : > { %473 = vst [vmem:[#allocation2 + $0x60] sm:$0xff] %v1217_v16  ;;  %474 = vst [vmem:[#allocation2 + $0x70] sm:$0xff] %v1217_v16 }
  0x30   : > { %475 = vst [vmem:[#allocation2 + $0x78] sm:$0xff] %v1217_v16  ;;  %476 = vst [vmem:[#allocation2 + $0x28] sm:$0xff] %v1217_v16 }
  0x31 PF: > { %v1161_v17 = vld [vmem:[%s1316_s15 + $0x38] sm:$0xff]   ;;  %v1162_v18 = vld [vmem:[%s1316_s15 + $0x30] sm:$0xff]   ;;  %v1163_v19 = vld [vmem:[%s1316_s15 + $0x28] sm:$0xff]   ;;  %p1049_p11 = scmp.ne.s32.totalorder %s1207_s20, 4 }
  0x32   : > { %1072 = vmatprep.subr.bf16.mxu0 %v1161_v17  ;;  %1104 = vmatprep.subr.bf16.mxu1 %v1161_v17  ;;  %v1164_v20 = vld [vmem:[%s1316_s15 + $0x20] sm:$0xff]   ;;  %v1165_v23 = vld [vmem:[%s1316_s15 + $0x18] sm:$0xff]   ;;  %v1166_v24 = vld [vmem:[%s1316_s15 + $0x10] sm:$0xff]  }
  0x33   : > { %1073 = vmatpush3.bf16.msra.mxu0 %v1161_v17  ;;  %1112 = vmatpush3.bf16.msra.mxu1 %v1161_v17  ;;  %v1169_v21 = vld [vmem:[%s1318_s16] sm:$0xff]   ;;  %v1167_v25 = vld [vmem:[%s1316_s15 + $0x8] sm:$0xff]   ;;  %v1173_v29 = vld [vmem:[%s1318_s16 + $0x10] sm:$0xff]  }
  0x34   : > { %1074 = vmatprep.subr.bf16.mxu0 %v1162_v18  ;;  %1105 = vmatprep.subr.bf16.mxu1 %v1162_v18  ;;  %v1170_v22 = vld [vmem:[%s1318_s16 + $0x20] sm:$0xff]   ;;  %v1171_v27 = vld [vmem:[%s1318_s16 + $0x8] sm:$0xff]   ;;  %v1174_v30 = vld [vmem:[%s1318_s16 + $0x30] sm:$0xff]  }
  0x35   : > { %1088 = vmatprep.mubr.bf16.mxu0 %v1169_v21  ;;  %1096 = vmatprep.mubr.bf16.mxu1 %v1170_v22  ;;  %v1168_v26 = vld [vmem:[%s1316_s15] sm:$0xff]   ;;  %v1172_v28 = vld [vmem:[%s1318_s16 + $0x28] sm:$0xff]   ;;  %v1175_v31 = vld [vmem:[%s1318_s16 + $0x18] sm:$0xff]  }
  0x36   : > { %v1176_v32 = vld [vmem:[%s1318_s16 + $0x38] sm:$0xff]   ;;  %v487_v34 = vld [vmem:[#allocation2 + $0x10] sm:$0xff]  ;;  %v485_v38 = vld [vmem:[#allocation2 + $0x40] sm:$0xff] }
  0x37   : > { %1075 = vmatpush3.bf16.msra.mxu0 %v1162_v18  ;;  %1113 = vmatpush3.bf16.msra.mxu1 %v1162_v18  ;;  %v479_v33 = vld [vmem:[#allocation2 + $0x58] sm:$0xff]  ;;  %v477_v37 = vld [vmem:[#allocation2 + $0x30] sm:$0xff]  ;;  %v478_v49 = vld [vmem:[#allocation2] sm:$0xff] }
  0x38   : > { %1076 = vmatprep.subr.bf16.mxu0 %v1163_v19  ;;  %1106 = vmatprep.subr.bf16.mxu1 %v1163_v19  ;;  %v480_v43 = vld [vmem:[#allocation2 + $0x18] sm:$0xff]  ;;  %v486_v50 = vld [vmem:[#allocation2 + $0x20] sm:$0xff]  ;;  %v483_v55 = vld [vmem:[#allocation2 + $0x8] sm:$0xff] }
  0x39   : > { %v488_v44 = vld [vmem:[#allocation2 + $0x38] sm:$0xff]  ;;  %v481_v61 = vld [vmem:[#allocation2 + $0x50] sm:$0xff]  ;;  %v489_v62 = vld [vmem:[#allocation2 + $0x60] sm:$0xff] }
  0x3a   : > { %v491_v56 = vld [vmem:[#allocation2 + $0x78] sm:$0xff]  ;;  %v484_v3 = vld [vmem:[#allocation2 + $0x48] sm:$0xff]  ;;  %v490_v10 = vld [vmem:[#allocation2 + $0x70] sm:$0xff] }
  0x3b   : > { %1077 = vmatpush3.bf16.msra.mxu0 %v1163_v19  ;;  %1114 = vmatpush3.bf16.msra.mxu1 %v1163_v19  ;;  %v492_v4 = vld [vmem:[#allocation2 + $0x28] sm:$0xff] }
  0x3c   : > { %1078 = vmatprep.subr.bf16.mxu0 %v1164_v20  ;;  %1107 = vmatprep.subr.bf16.mxu1 %v1164_v20  ;;  %v482_v9 = vld [vmem:[#allocation2 + $0x68] sm:$0xff] }
  0x3f   : > { %1079 = vmatpush3.bf16.msra.mxu0 %v1164_v20  ;;  %1115 = vmatpush3.bf16.msra.mxu1 %v1164_v20 }
  0x40   : > { %1080 = vmatprep.subr.bf16.mxu0 %v1165_v23  ;;  %1108 = vmatprep.subr.bf16.mxu1 %v1165_v23 }
  0x43   : > { %1081 = vmatpush3.bf16.msra.mxu0 %v1165_v23  ;;  %1116 = vmatpush3.bf16.msra.mxu1 %v1165_v23 }
  0x44   : > { %1082 = vmatprep.subr.bf16.mxu0 %v1166_v24  ;;  %1109 = vmatprep.subr.bf16.mxu1 %v1166_v24 }
  0x47   : > { %1083 = vmatpush3.bf16.msra.mxu0 %v1166_v24  ;;  %1117 = vmatpush3.bf16.msra.mxu1 %v1166_v24 }
  0x48   : > { %1084 = vmatprep.subr.bf16.mxu0 %v1167_v25  ;;  %1110 = vmatprep.subr.bf16.mxu1 %v1167_v25 }
  0x4b   : > { %1085 = vmatpush3.bf16.msra.mxu0 %v1167_v25  ;;  %1118 = vmatpush3.bf16.msra.mxu1 %v1167_v25 }
  0x4c   : > { %1086 = vmatprep.subr.bf16.mxu0 %v1168_v26  ;;  %1111 = vmatprep.subr.bf16.mxu1 %v1168_v26 }
  0x4f   : > { %1087 = vmatpush3.bf16.msra.mxu0 %v1168_v26  ;;  %1119 = vmatpush3.bf16.msra.mxu1 %v1168_v26 }
  0x52   : > { %1089 = vmatmul.mubr.bf16.vlgmr.msra.gmra.mxu0 %v1171_v27  ;;  %1097 = vmatmul.mubr.bf16.vlgmr.msra.gmra.mxu1 %v1172_v28 }
  0x53   : > { %1092 = vmatprep.mubr.bf16.mxu0 %v1173_v29  ;;  %1100 = vmatprep.mubr.bf16.mxu1 %v1174_v30 }
  0x5a   : > { %1093 = vmatmul.mubr.bf16.gmra.mxu0 %v1175_v31  ;;  %1101 = vmatmul.mubr.bf16.gmra.mxu1 %v1176_v32 }
 0x112   : > { %v1090_v35 = vpop.f32.mrf.mxu0  ;;  %v1098_v36 = vpop.f32.mrf.mxu1 }
 0x113   : > { %v720_v39 = vadd.f32 %v1090_v35, %v479_v33  ;;  %v728_v40 = vadd.f32 %v1098_v36, %v487_v34 }
 0x114   : > { %v655_v41 = vpop.f32.mrf.mxu0  ;;  %v687_v42 = vpop.f32.mrf.mxu1 }
 0x115   : > { %736 = vst [vmem:[#allocation2 + $0x58] sm:$0xff] %v720_v39  ;;  %744 = vst [vmem:[#allocation2 + $0x10] sm:$0xff] %v728_v40  ;;  %v718_v45 = vadd.f32 %v655_v41, %v477_v37  ;;  %v726_v46 = vadd.f32 %v687_v42, %v485_v38 }
 0x116   : > { %v1091_v47 = vpop.f32.mrf.mxu0  ;;  %v1099_v48 = vpop.f32.mrf.mxu1 }
 0x117   : > { %734 = vst [vmem:[#allocation2 + $0x30] sm:$0xff] %v718_v45  ;;  %742 = vst [vmem:[#allocation2 + $0x40] sm:$0xff] %v726_v46  ;;  %v721_v51 = vadd.f32 %v1091_v47, %v480_v43  ;;  %v729_v52 = vadd.f32 %v1099_v48, %v488_v44 }
 0x118   : > { %v658_v53 = vpop.f32.mrf.mxu0  ;;  %v690_v54 = vpop.f32.mrf.mxu1 }
 0x119   : > { %737 = vst [vmem:[#allocation2 + $0x18] sm:$0xff] %v721_v51  ;;  %745 = vst [vmem:[#allocation2 + $0x38] sm:$0xff] %v729_v52  ;;  %v719_v57 = vadd.f32 %v658_v53, %v478_v49  ;;  %v727_v58 = vadd.f32 %v690_v54, %v486_v50 }
 0x11a   : > { %v1094_v59 = vpop.f32.mrf.mxu0  ;;  %v1102_v60 = vpop.f32.mrf.mxu1 }
 0x11b   : > { %735 = vst [vmem:[#allocation2] sm:$0xff] %v719_v57  ;;  %743 = vst [vmem:[#allocation2 + $0x20] sm:$0xff] %v727_v58  ;;  %v724_v63 = vadd.f32 %v1094_v59, %v483_v55  ;;  %v732_v0 = vadd.f32 %v1102_v60, %v491_v56 }
 0x11c   : > { %v671_v1 = vpop.f32.mrf.mxu0  ;;  %v703_v2 = vpop.f32.mrf.mxu1 }
 0x11d   : > { %740 = vst [vmem:[#allocation2 + $0x8] sm:$0xff] %v724_v63  ;;  %748 = vst [vmem:[#allocation2 + $0x78] sm:$0xff] %v732_v0  ;;  %v722_v5 = vadd.f32 %v671_v1, %v481_v61  ;;  %v730_v6 = vadd.f32 %v703_v2, %v489_v62 }
 0x11e   : > { %v1095_v7 = vpop.f32.mrf.mxu0  ;;  %v1103_v8 = vpop.f32.mrf.mxu1 }
 0x11f   : > { %738 = vst [vmem:[#allocation2 + $0x50] sm:$0xff] %v722_v5  ;;  %746 = vst [vmem:[#allocation2 + $0x60] sm:$0xff] %v730_v6  ;;  %v725_v11 = vadd.f32 %v1095_v7, %v484_v3  ;;  %v733_v12 = vadd.f32 %v1103_v8, %v492_v4  ;;  %753 = sbr.rel (%p1049_p11) target bundleno = 315 (0x13b), region = 89 }
 0x120   : > { %v674_v13 = vpop.f32.mrf.mxu0  ;;  %v706_v14 = vpop.f32.mrf.mxu1 }
 0x121   : > { %741 = vst [vmem:[#allocation2 + $0x48] sm:$0xff] %v725_v11  ;;  %749 = vst [vmem:[#allocation2 + $0x28] sm:$0xff] %v733_v12  ;;  %v723_v15 = vadd.f32 %v674_v13, %v482_v9  ;;  %v731_v16 = vadd.f32 %v706_v14, %v490_v10 }
 0x123   : > { %739 = vst [vmem:[#allocation2 + $0x68] sm:$0xff] %v723_v15  ;;  %747 = vst [vmem:[#allocation2 + $0x70] sm:$0xff] %v731_v16 }
 0x124   : > { %v754_v17 = vld [vmem:[#allocation2 + $0x30] sm:$0xff]  ;;  %v1341_v18 = vld [vmem:[%s1493_s2] ss:$0 sm:$0xff]  ;;  %v756_v24 = vld [vmem:[#allocation2 + $0x58] sm:$0xff] }
 0x125   : > { %v1346_v19 = vld [vmem:[%s1494_s3] ss:$0 sm:$0xff]  ;;  %v777_v20 = vmul.f32 %v1341_v18, %v754_v17  ;;  %v757_v25 = vld [vmem:[#allocation2 + $0x18] sm:$0xff]  ;;  %v817_v27 = vld [vmem:[%s1495_s4 + $0x8] sm:$0xff]  ;;  %v779_v28 = vmul.f32 %v1341_v18, %v756_v24 }
 0x126   : > { %v755_v21 = vld [vmem:[#allocation2] sm:$0xff]  ;;  %v818_v29 = vld [vmem:[%s1495_s4 + $0x10] sm:$0xff]  ;;  %v780_v30 = vmul.f32 %v1341_v18, %v757_v25  ;;  %v819_v33 = vld [vmem:[%s1495_s4 + $0x18] sm:$0xff] }
 0x127   : > { %v816_v22 = vld [vmem:[%s1495_s4] sm:$0xff]  ;;  %v778_v23 = vmul.f32 %v1341_v18, %v755_v21  ;;  %v800_v26 = vadd.f32 %v1346_v19, %v777_v20  ;;  %v758_v31 = vld [vmem:[#allocation2 + $0x50] sm:$0xff]  ;;  %v760_v36 = vld [vmem:[#allocation2 + $0x8] sm:$0xff]  ;;  %v802_v38 = vadd.f32 %v1346_v19, %v779_v28 }
 0x128   : > { %v781_v34 = vmul.f32 %v1341_v18, %v758_v31  ;;  %v803_v39 = vadd.f32 %v1346_v19, %v780_v30  ;;  %v820_v40 = vld [vmem:[%s1495_s4 + $0x20] sm:$0xff]  ;;  %v761_v42 = vld [vmem:[#allocation2 + $0x48] sm:$0xff]  ;;  %v783_v46 = vmul.f32 %v1341_v18, %v760_v36  ;;  %v822_v53 = vld [vmem:[%s1495_s4 + $0x30] sm:$0xff] }
 0x129   : > { %v801_v32 = vadd.f32 %v1346_v19, %v778_v23  ;;  %v832_v37 = vadd.f32 %v816_v22, %v800_v26  ;;  %v821_v45 = vld [vmem:[%s1495_s4 + $0x28] sm:$0xff]  ;;  %v784_v47 = vmul.f32 %v1341_v18, %v761_v42  ;;  %v762_v48 = vld [vmem:[#allocation2 + $0x40] sm:$0xff]  ;;  %v834_v50 = vadd.f32 %v818_v29, %v802_v38  ;;  %v823_v54 = vld [vmem:[%s1495_s4 + $0x38] sm:$0xff] }
 0x12a   : > { %v759_v35 = vld [vmem:[#allocation2 + $0x68] sm:$0xff]  ;;  %v804_v44 = vadd.f32 %v1346_v19, %v781_v34  ;;  %v835_v51 = vadd.f32 %v819_v33, %v803_v39  ;;  %v763_v55 = vld [vmem:[#allocation2 + $0x20] sm:$0xff]  ;;  %v806_v58 = vadd.f32 %v1346_v19, %v783_v46  ;;  %v764_v60 = vld [vmem:[#allocation2 + $0x10] sm:$0xff]  ;;  %v785_v1 = vmul.f32 %v1341_v18, %v762_v48 }
 0x12b   : > { %v782_v41 = vmul.f32 %v1341_v18, %v759_v35  ;;  %v833_v43 = vadd.f32 %v817_v27, %v801_v32  ;;  %v848_v49 = vmax.f32 %v832_v37, 0.0  ;;  %v807_v59 = vadd.f32 %v1346_v19, %v784_v47  ;;  %v765_v61 = vld [vmem:[#allocation2 + $0x38] sm:$0xff]  ;;  %v766_v2 = vld [vmem:[#allocation2 + $0x60] sm:$0xff]  ;;  %v767_v8 = vld [vmem:[#allocation2 + $0x70] sm:$0xff] }
 0x12c   : > { %v836_v57 = vadd.f32 %v820_v40, %v804_v44  ;;  %v850_v62 = vmax.f32 %v834_v50, 0.0  ;;  %v851_v63 = vmax.f32 %v835_v51, 0.0  ;;  %v838_v4 = vadd.f32 %v822_v53, %v806_v58  ;;  %v824_v6 = vld [vmem:[%s1495_s4 + $0x40] sm:$0xff]  ;;  %v825_v11 = vld [vmem:[%s1495_s4 + $0x48] sm:$0xff]  ;;  %v768_v14 = vld [vmem:[#allocation2 + $0x78] sm:$0xff] }
 0x12d   : > { %v805_v52 = vadd.f32 %v1346_v19, %v782_v41  ;;  %v849_v56 = vmax.f32 %v833_v43, 0.0  ;;  %864 = vst [vmem:[%s1496_s5] sm:$0xff] %v848_v49  ;;  %v839_v5 = vadd.f32 %v823_v54, %v807_v59  ;;  %v786_v7 = vmul.f32 %v1341_v18, %v763_v55  ;;  %v769_v15 = vld [vmem:[#allocation2 + $0x28] sm:$0xff]  ;;  %v826_v21 = vld [vmem:[%s1495_s4 + $0x50] sm:$0xff]  ;;  %v827_v22 = vld [vmem:[%s1495_s4 + $0x58] sm:$0xff] }
 0x12e   : > { %v852_v3 = vmax.f32 %v836_v57, 0.0  ;;  %866 = vst [vmem:[%s1496_s5 + $0x10] sm:$0xff] %v850_v62  ;;  %867 = vst [vmem:[%s1496_s5 + $0x18] sm:$0xff] %v851_v63  ;;  %v808_v10 = vadd.f32 %v1346_v19, %v785_v1  ;;  %v787_v12 = vmul.f32 %v1341_v18, %v764_v60  ;;  %v788_v13 = vmul.f32 %v1341_v18, %v765_v61  ;;  %v828_v27 = vld [vmem:[%s1495_s4 + $0x60] sm:$0xff]  ;;  %v829_v31 = vld [vmem:[%s1495_s4 + $0x68] sm:$0xff] }
 0x12f   : > { %v837_v0 = vadd.f32 %v821_v45, %v805_v52  ;;  %865 = vst [vmem:[%s1496_s5 + $0x8] sm:$0xff] %v849_v56  ;;  %v854_v16 = vmax.f32 %v838_v4, 0.0  ;;  %v855_v17 = vmax.f32 %v839_v5, 0.0  ;;  %v809_v20 = vadd.f32 %v1346_v19, %v786_v7  ;;  %v830_v38 = vld [vmem:[%s1495_s4 + $0x70] sm:$0xff]  ;;  %v831_v39 = vld [vmem:[%s1495_s4 + $0x78] sm:$0xff] }
 0x130   : > { %868 = vst [vmem:[%s1496_s5 + $0x20] sm:$0xff] %v852_v3  ;;  %v789_v23 = vmul.f32 %v1341_v18, %v766_v2  ;;  %v840_v24 = vadd.f32 %v824_v6, %v808_v10  ;;  %v810_v25 = vadd.f32 %v1346_v19, %v787_v12  ;;  %v811_v26 = vadd.f32 %v1346_v19, %v788_v13 }
 0x131   : > { %v853_v9 = vmax.f32 %v837_v0, 0.0  ;;  %v790_v28 = vmul.f32 %v1341_v18, %v767_v8  ;;  %870 = vst [vmem:[%s1496_s5 + $0x30] sm:$0xff] %v854_v16  ;;  %871 = vst [vmem:[%s1496_s5 + $0x38] sm:$0xff] %v855_v17  ;;  %v841_v29 = vadd.f32 %v825_v11, %v809_v20  ;;  %v791_v32 = vmul.f32 %v1341_v18, %v768_v14 }
 0x132   : > { %v812_v30 = vadd.f32 %v1346_v19, %v789_v23  ;;  %v792_v33 = vmul.f32 %v1341_v18, %v769_v15  ;;  %v856_v34 = vmax.f32 %v840_v24, 0.0  ;;  %v842_v35 = vadd.f32 %v826_v21, %v810_v25 }
 0x133   : > { %869 = vst [vmem:[%s1496_s5 + $0x28] sm:$0xff] %v853_v9  ;;  %v843_v36 = vadd.f32 %v827_v22, %v811_v26  ;;  %v813_v37 = vadd.f32 %v1346_v19, %v790_v28  ;;  %v857_v40 = vmax.f32 %v841_v29, 0.0  ;;  %v814_v42 = vadd.f32 %v1346_v19, %v791_v32 }
 0x134   : > { %v844_v41 = vadd.f32 %v828_v27, %v812_v30  ;;  %v815_v43 = vadd.f32 %v1346_v19, %v792_v33  ;;  %872 = vst [vmem:[%s1496_s5 + $0x40] sm:$0xff] %v856_v34  ;;  %v858_v18 = vmax.f32 %v842_v35, 0.0 }
 0x135   : > { %v859_v44 = vmax.f32 %v843_v36, 0.0  ;;  %v845_v45 = vadd.f32 %v829_v31, %v813_v37  ;;  %873 = vst [vmem:[%s1496_s5 + $0x48] sm:$0xff] %v857_v40  ;;  %v846_v47 = vadd.f32 %v830_v38, %v814_v42 }
 0x136   : > { %v860_v46 = vmax.f32 %v844_v41, 0.0  ;;  %v847_v48 = vadd.f32 %v831_v39, %v815_v43  ;;  %874 = vst [vmem:[%s1496_s5 + $0x50] sm:$0xff] %v858_v18 }
 0x137   : > { %875 = vst [vmem:[%s1496_s5 + $0x58] sm:$0xff] %v859_v44  ;;  %v861_v19 = vmax.f32 %v845_v45, 0.0  ;;  %v862_v49 = vmax.f32 %v846_v47, 0.0 }
 0x138   : > { %876 = vst [vmem:[%s1496_s5 + $0x60] sm:$0xff] %v860_v46  ;;  %v863_v50 = vmax.f32 %v847_v48, 0.0 }
 0x139   : > { %877 = vst [vmem:[%s1496_s5 + $0x68] sm:$0xff] %v861_v19  ;;  %878 = vst [vmem:[%s1496_s5 + $0x70] sm:$0xff] %v862_v49 }
 0x13a   : > { %879 = vst [vmem:[%s1496_s5 + $0x78] sm:$0xff] %v863_v50 }
 0x13b PF: > { %s15_s22 = sadd.s32 1, %s1215_s22   ;;  %s1497_s18 = smov %s1203_s19 }
 0x13c   : > { %p12_p12 = scmp.ge.s32.totalorder %s15_s22, 7   ;;  %s1498_s19 = smov %s1283_s26 }
 0x13d   : > { %s1499_s20 = smov %s1211_s21  ;;  %s1500_s21 = smov %s1502_s23 }
 0x13e   :  { %14 = sbr.rel (!%p12_p12) target bundleno = 3 (0x3), region = 136 }

// kernel: simclr_forward.46
= control target key start
LH: loop header
LB: loop body
LE: loop exit
PB: predicated region body
PF: predicated region fallthrough
CT: control target
= control target key end

     0   :  { %s834_s15 = smov 0   ;;  %s836_s16 = smov 0   ;;  %s936_s0 = inlined_call_operand.vmem [shape: bf16[32,640], index: 0, kind: input, shape index: {}]   ;;  %s937_s1 = inlined_call_operand.vmem [shape: bf16[640,128], index: 1, kind: input, shape index: {}]   ;;  %s938_s2 = inlined_call_operand.vmem [shape: f32[1,128], index: 2, kind: input, shape index: {}]   ;;  %s939_s3 = inlined_call_operand.vmem [shape: f32[1,128], index: 3, kind: input, shape index: {}]   ;;  %s940_s4 = inlined_call_operand.vmem [shape: f32[32,128], index: 4, kind: output, shape index: {}]  }
   0x1   :  { %s838_s17 = smov 0   ;;  %s840_s18 = smov 0  }
   0x2   :  { %s842_s19 = smov 0  }
   0x3 LB: > { %s26_s20 = sadd.s32 1, %s802_s18  ;;  %p49_p1 = scmp.ne.s32.totalorder %s794_s16, %s790_s15  ;;  %s806_s19 = sphi %s842_s19, %s14_s19   ;;  %s802_s18 = sphi %s840_s18, %s944_s18   ;;  %s798_s17 = sphi %s838_s17, %s943_s17   ;;  %s794_s16 = sphi %s836_s16, %s942_s16   ;;  %s790_s15 = sphi %s834_s15, %s941_s15  }
   0x4   : > { %p27_p0 = scmp.ge.s32.totalorder %s26_s20, 5  ;;  %p50_p2 = scmp.eq.s32.totalorder %s806_s19, 0 }
   0x5   : > { %s42_s22 = sadd.s32 1, %s794_s16  ;;  %p662_p5 = scmp.ge.s32.totalorder %s806_s19, 5 }
   0x6   : > { %s946_s20 = smov (%p27_p0, %s26_s20), 0  ;;  %p51_p3 = por %p50_p2, %p49_p1 }
   0x7   : > { %s38_s21 = ssub.s32 %s802_s18, %s946_s20  ;;  %195 = sbr.rel (%p662_p5) target bundleno = 18 (0x12), region = 24 }
   0x8   : > { %p40_p4 = scmp.eq.s32.totalorder %s38_s21, 0 }
   0xa   : > { %s869_s23 = scalar_select %p40_p4, %s794_s16, %s42_s22  }
   0xc   : > { %198 = sbr.rel (!%p51_p3) target bundleno = 18 (0x12), region = 28  ;;  %s200_s24 = sand.u32 (%p51_p3), 1, %s794_s16  }
   0xd   : > { %s664_s25 = sshll.u32 (%p51_p3), %s802_s18, 2  ;;  %s663_s26 = sshll.u32 (%p51_p3), %s200_s24, 4 }
   0xe   : > { %s207_s29 = scalar_lea.vmem (%p51_p3), %s936_s0, %s664_s25  ;;  %s202_s30 = scalar_lea.vmem (%p51_p3), [#allocation3], %s663_s26 }
   0xf   : > { %v224_v0 = vld [vmem:[%s207_s29] sm:$0xf] (%p51_p3)  ;;  %v226_v1 = vld [vmem:[%s207_s29 + $0x14] sm:$0xf] (%p51_p3)  ;;  %v228_v2 = vld [vmem:[%s207_s29 + $0x28] sm:$0xf] (%p51_p3) }
  0x10   : > { %225 = vst [vmem:[%s202_s30] sm:$0xf] (%p51_p3), %v224_v0  ;;  %227 = vst [vmem:[%s202_s30 + $0x4] sm:$0xf] (%p51_p3), %v226_v1  ;;  %v230_v3 = vld [vmem:[%s207_s29 + $0x3c] sm:$0xf] (%p51_p3) }
  0x11   : > { %229 = vst [vmem:[%s202_s30 + $0x8] sm:$0xf] %v228_v2  ;;  %231 = vst [vmem:[%s202_s30 + $0xc] sm:$0xf] %v230_v3 }
  0x12 PF: > { %p665_p6 = scmp.ge.s32.totalorder %s806_s19, 1  ;;  %p274_p7 = scmp.lt.s32.totalorder %s806_s19, 6 }
  0x14   : > { %p275_p8 = pnand %p665_p6, %p274_p7 }
  0x15   : > { %s281_s5 = sand.u32 (!%p275_p8), 1, %s790_s15   ;;  %s667_s6 = sshll.u32 (!%p275_p8), %s798_s17, 4 }
  0x16   : > { %278 = sbr.rel (%p275_p8) target bundleno = 284 (0x11c), region = 73  ;;  %s881_s7 = sshll.u32 (!%p275_p8), %s281_s5, 4 }
  0x17   : > { %p325_p9 = scmp.lt.s32.totalorder (!%p275_p8), %s667_s6, 79  ;;  %s283_s12 = scalar_lea.vmem (!%p275_p8), [#allocation3], %s881_s7 }
  0x18   : > { %p669_p10 = scmp.ne.s32.totalorder (!%p275_p8), %s798_s17, 0 }
  0x1b   : > { %s948_s6 = smov (!%p325_p9, %s667_s6), 79  ;;  %352 = sbr.rel (%p669_p10) target bundleno = 35 (0x23), region = 81 }
  0x1c   : > { %s668_s8 = sshll.u32 %s948_s6, 2 }
  0x1d   : > { %s886_s11 = scalar_lea.vmem %s937_s1, %s668_s8 }
  0x20   : > { %v808_v4 = vmov 0.0  }
  0x21   : > { %353 = vst [vmem:[#allocation2 + $0x10] sm:$0xff] %v808_v4  ;;  %354 = vst [vmem:[#allocation2] sm:$0xff] %v808_v4 }
  0x22   : > { %355 = vst [vmem:[#allocation2 + $0x18] sm:$0xff] %v808_v4  ;;  %356 = vst [vmem:[#allocation2 + $0x8] sm:$0xff] %v808_v4 }
  0x23 PF: > { %v758_v5 = vld [vmem:[%s886_s11 + $0x38] sm:$0xff]   ;;  %v759_v6 = vld [vmem:[%s886_s11 + $0x30] sm:$0xff]   ;;  %v760_v7 = vld [vmem:[%s886_s11 + $0x28] sm:$0xff]   ;;  %p680_p11 = scmp.ne.s32.totalorder %s798_s17, 4 }
  0x24   : > { %697 = vmatprep.subr.bf16.mxu0 %v758_v5  ;;  %v761_v8 = vld [vmem:[%s886_s11 + $0x20] sm:$0xff]   ;;  %v762_v10 = vld [vmem:[%s886_s11 + $0x18] sm:$0xff]   ;;  %v763_v11 = vld [vmem:[%s886_s11 + $0x10] sm:$0xff]  }
  0x25   : > { %698 = vmatpush3.bf16.msra.mxu0 %v758_v5  ;;  %v766_v9 = vld [vmem:[%s283_s12] sm:$0xff]   ;;  %v764_v12 = vld [vmem:[%s886_s11 + $0x8] sm:$0xff]  }
  0x26   : > { %699 = vmatprep.subr.bf16.mxu0 %v759_v6  ;;  %713 = vmatprep.mubr.bf16.mxu0 %v766_v9  ;;  %v765_v13 = vld [vmem:[%s886_s11] sm:$0xff]   ;;  %v767_v14 = vld [vmem:[%s283_s12 + $0x8] sm:$0xff]  }
  0x28   : > { %v357_v17 = vld [vmem:[#allocation2 + $0x10] sm:$0xff]  ;;  %v358_v23 = vld [vmem:[#allocation2] sm:$0xff] }
  0x29   : > { %700 = vmatpush3.bf16.msra.mxu0 %v759_v6  ;;  %v359_v15 = vld [vmem:[#allocation2 + $0x18] sm:$0xff]  ;;  %v360_v20 = vld [vmem:[#allocation2 + $0x8] sm:$0xff] }
  0x2a   : > { %701 = vmatprep.subr.bf16.mxu0 %v760_v7 }
  0x2d   : > { %702 = vmatpush3.bf16.msra.mxu0 %v760_v7 }
  0x2e   : > { %703 = vmatprep.subr.bf16.mxu0 %v761_v8 }
  0x31   : > { %704 = vmatpush3.bf16.msra.mxu0 %v761_v8 }
  0x32   : > { %705 = vmatprep.subr.bf16.mxu0 %v762_v10 }
  0x35   : > { %706 = vmatpush3.bf16.msra.mxu0 %v762_v10 }
  0x36   : > { %707 = vmatprep.subr.bf16.mxu0 %v763_v11 }
  0x39   : > { %708 = vmatpush3.bf16.msra.mxu0 %v763_v11 }
  0x3a   : > { %709 = vmatprep.subr.bf16.mxu0 %v764_v12 }
  0x3d   : > { %710 = vmatpush3.bf16.msra.mxu0 %v764_v12 }
  0x3e   : > { %711 = vmatprep.subr.bf16.mxu0 %v765_v13 }
  0x41   : > { %712 = vmatpush3.bf16.msra.mxu0 %v765_v13 }
  0x44   : > { %714 = vmatmul.mubr.bf16.vlgmr.msra.gmra.mxu0 %v767_v14 }
 0x104   : > { %v715_v16 = vpop.f32.mrf.mxu0 }
 0x105   : > { %v492_v18 = vadd.f32 %v715_v16, %v359_v15 }
 0x106   : > { %v475_v19 = vpop.f32.mrf.mxu0 }
 0x107   : > { %496 = vst [vmem:[#allocation2 + $0x18] sm:$0xff] %v492_v18  ;;  %v490_v21 = vadd.f32 %v475_v19, %v357_v17 }
 0x108   : > { %v716_v22 = vpop.f32.mrf.mxu0 }
 0x109   : > { %494 = vst [vmem:[#allocation2 + $0x10] sm:$0xff] %v490_v21  ;;  %v493_v24 = vadd.f32 %v716_v22, %v360_v20  ;;  %501 = sbr.rel (%p680_p11) target bundleno = 284 (0x11c), region = 85 }
 0x10a   : > { %v478_v25 = vpop.f32.mrf.mxu0 }
 0x10b   : > { %497 = vst [vmem:[#allocation2 + $0x8] sm:$0xff] %v493_v24  ;;  %v491_v26 = vadd.f32 %v478_v25, %v358_v23 }
 0x10d   : > { %495 = vst [vmem:[#allocation2] sm:$0xff] %v491_v26 }
 0x10e   : > { %v681_v28 = vld [vmem:[%s938_s2] ss:$0 sm:$0xff]  ;;  %v504_v32 = vld [vmem:[#allocation2 + $0x18] sm:$0xff] }
 0x10f   : > { %v682_v29 = vld [vmem:[%s939_s3] ss:$0 sm:$0xff]  ;;  %v515_v35 = vmul.f32 %v681_v28, %v504_v32 }
 0x110   : > { %v502_v27 = vld [vmem:[#allocation2 + $0x10] sm:$0xff] }
 0x111   : > { %v513_v30 = vmul.f32 %v681_v28, %v502_v27  ;;  %v526_v39 = vadd.f32 %v682_v29, %v515_v35 }
 0x112   : > { %v505_v33 = vld [vmem:[#allocation2 + $0x8] sm:$0xff] }
 0x113   : > { %v516_v36 = vmul.f32 %v681_v28, %v505_v33  ;;  %v524_v37 = vadd.f32 %v682_v29, %v513_v30  ;;  %v530_v43 = vmax.f32 %v526_v39, 0.0 }
 0x114   : > { %v503_v31 = vld [vmem:[#allocation2] sm:$0xff] }
 0x115   : > { %v514_v34 = vmul.f32 %v681_v28, %v503_v31  ;;  %v527_v40 = vadd.f32 %v682_v29, %v516_v36  ;;  %v528_v41 = vmax.f32 %v524_v37, 0.0  ;;  %534 = vst [vmem:[%s940_s4 + $0x10] sm:$0xff] %v530_v43 }
 0x117   : > { %v525_v38 = vadd.f32 %v682_v29, %v514_v34  ;;  %v531_v44 = vmax.f32 %v527_v40, 0.0  ;;  %532 = vst [vmem:[%s940_s4] sm:$0xff] %v528_v41 }
 0x119   : > { %v529_v42 = vmax.f32 %v525_v38, 0.0  ;;  %535 = vst [vmem:[%s940_s4 + $0x18] sm:$0xff] %v531_v44 }
 0x11b   : > { %533 = vst [vmem:[%s940_s4 + $0x8] sm:$0xff] %v529_v42 }
 0x11c PF: > { %s14_s19 = sadd.s32 1, %s806_s19   ;;  %s941_s15 = smov %s794_s16 }
 0x11d   : > { %p11_p12 = scmp.ge.s32.totalorder %s14_s19, 7   ;;  %s942_s16 = smov %s869_s23 }
 0x11e   : > { %s943_s17 = smov %s802_s18  ;;  %s944_s18 = smov %s946_s20 }
 0x11f   :  { %13 = sbr.rel (!%p11_p12) target bundleno = 3 (0x3), region = 129 }

// kernel: simclr_forward.47
= control target key start
LH: loop header
LB: loop body
LE: loop exit
PB: predicated region body
PF: predicated region fallthrough
CT: control target
= control target key end

     0   :  { %s329_s1 = inlined_call_operand.vmem [shape: bf16[128,128], index: 1, kind: input, shape index: {}]   ;;  %s330_s0 = inlined_call_operand.vmem [shape: bf16[32,128], index: 0, kind: input, shape index: {}]   ;;  %s331_s2 = inlined_call_operand.vmem [shape: f32[1,128], index: 2, kind: input, shape index: {}]   ;;  %s332_s3 = inlined_call_operand.vmem [shape: f32[1,128], index: 3, kind: input, shape index: {}]   ;;  %s333_s4 = inlined_call_operand.vmem [shape: f32[32,128], index: 4, kind: output, shape index: {}]  }
   0x1   :  { %v246_v0 = vld [vmem:[%s329_s1 + $0x38] sm:$0xff]   ;;  %v247_v1 = vld [vmem:[%s329_s1 + $0x30] sm:$0xff]   ;;  %v248_v2 = vld [vmem:[%s329_s1 + $0x28] sm:$0xff]  }
   0x2   :  { %226 = vmatprep.subr.bf16.mxu0 %v246_v0  ;;  %v249_v3 = vld [vmem:[%s329_s1 + $0x20] sm:$0xff]   ;;  %v250_v5 = vld [vmem:[%s329_s1 + $0x18] sm:$0xff]   ;;  %v251_v6 = vld [vmem:[%s329_s1 + $0x10] sm:$0xff]  }
   0x3   :  { %227 = vmatpush3.bf16.msra.mxu0 %v246_v0  ;;  %v254_v4 = vld [vmem:[%s330_s0] sm:$0xff]   ;;  %v252_v7 = vld [vmem:[%s329_s1 + $0x8] sm:$0xff]  }
   0x4   :  { %228 = vmatprep.subr.bf16.mxu0 %v247_v1  ;;  %242 = vmatprep.mubr.bf16.mxu0 %v254_v4  ;;  %v253_v8 = vld [vmem:[%s329_s1] sm:$0xff]   ;;  %v255_v9 = vld [vmem:[%s330_s0 + $0x8] sm:$0xff]  }
   0x5   :  { %v214_v10 = vld [vmem:[%s331_s2] ss:$0 sm:$0xff] }
   0x6   :  { %v215_v12 = vld [vmem:[%s332_s3] ss:$0 sm:$0xff] }
   0x7   :  { %229 = vmatpush3.bf16.msra.mxu0 %v247_v1 }
   0x8   :  { %230 = vmatprep.subr.bf16.mxu0 %v248_v2 }
   0xb   :  { %231 = vmatpush3.bf16.msra.mxu0 %v248_v2 }
   0xc   :  { %232 = vmatprep.subr.bf16.mxu0 %v249_v3 }
   0xf   :  { %233 = vmatpush3.bf16.msra.mxu0 %v249_v3 }
  0x10   :  { %234 = vmatprep.subr.bf16.mxu0 %v250_v5 }
  0x13   :  { %235 = vmatpush3.bf16.msra.mxu0 %v250_v5 }
  0x14   :  { %236 = vmatprep.subr.bf16.mxu0 %v251_v6 }
  0x17   :  { %237 = vmatpush3.bf16.msra.mxu0 %v251_v6 }
  0x18   :  { %238 = vmatprep.subr.bf16.mxu0 %v252_v7 }
  0x1b   :  { %239 = vmatpush3.bf16.msra.mxu0 %v252_v7 }
  0x1c   :  { %240 = vmatprep.subr.bf16.mxu0 %v253_v8 }
  0x1f   :  { %241 = vmatpush3.bf16.msra.mxu0 %v253_v8 }
  0x22   :  { %243 = vmatmul.mubr.bf16.vlgmr.msra.gmra.mxu0 %v255_v9 }
  0xe2   :  { %v244_v11 = vpop.f32.mrf.mxu0 }
  0xe3   :  { %v183_v13 = vmul.f32 %v244_v11, %v214_v10 }
  0xe4   :  { %v144_v14 = vpop.f32.mrf.mxu0 }
  0xe5   :  { %v194_v15 = vadd.f32 %v215_v12, %v183_v13  ;;  %v181_v16 = vmul.f32 %v214_v10, %v144_v14 }
  0xe6   :  { %v245_v17 = vpop.f32.mrf.mxu0 }
  0xe7   :  { %198 = vst [vmem:[%s333_s4 + $0x10] sm:$0xff] %v194_v15  ;;  %v192_v18 = vadd.f32 %v215_v12, %v181_v16  ;;  %v184_v19 = vmul.f32 %v245_v17, %v214_v10 }
  0xe8   :  { %v147_v20 = vpop.f32.mrf.mxu0 }
  0xe9   :  { %196 = vst [vmem:[%s333_s4] sm:$0xff] %v192_v18  ;;  %v195_v21 = vadd.f32 %v215_v12, %v184_v19  ;;  %v182_v22 = vmul.f32 %v214_v10, %v147_v20 }
  0xeb   :  { %199 = vst [vmem:[%s333_s4 + $0x18] sm:$0xff] %v195_v21  ;;  %v193_v23 = vadd.f32 %v215_v12, %v182_v22 }
  0xed   :  { %197 = vst [vmem:[%s333_s4 + $0x8] sm:$0xff] %v193_v23 }

// kernel: simclr_forward.48
= control target key start
LH: loop header
LB: loop body
LE: loop exit
PB: predicated region body
PF: predicated region fallthrough
CT: control target
= control target key end

     0   :  { %s926_s18 = smov 0   ;;  %s928_s19 = smov 0   ;;  %s1040_s0 = inlined_call_operand.vmem [shape: bf16[32,1152], index: 0, kind: input, shape index: {}]   ;;  %s1041_s1 = inlined_call_operand.vmem [shape: bf16[1152,128], index: 1, kind: input, shape index: {}]   ;;  %s1042_s2 = inlined_call_operand.vmem [shape: f32[1,128], index: 2, kind: input, shape index: {}]   ;;  %s1043_s3 = inlined_call_operand.vmem [shape: f32[1,128], index: 3, kind: input, shape index: {}]   ;;  %s1044_s4 = inlined_call_operand.vmem [shape: f32[32,128], index: 4, kind: input, shape index: {}]   ;;  %s1045_s5 = inlined_call_operand.vmem [shape: f32[32,128], index: 5, kind: output, shape index: {}]  }
   0x1   :  { %s930_s20 = smov 0   ;;  %s932_s21 = smov 0  }
   0x2   :  { %s934_s22 = smov 0  }
   0x3 LB: > { %s27_s23 = sadd.s32 1, %s889_s21  ;;  %p50_p1 = scmp.ne.s32.totalorder %s881_s19, %s877_s18  ;;  %s893_s22 = sphi %s934_s22, %s15_s22   ;;  %s889_s21 = sphi %s932_s21, %s1049_s21   ;;  %s885_s20 = sphi %s930_s20, %s1048_s20   ;;  %s881_s19 = sphi %s928_s19, %s1047_s19   ;;  %s877_s18 = sphi %s926_s18, %s1046_s18  }
   0x4   : > { %p28_p0 = scmp.ge.s32.totalorder %s27_s23, 9  ;;  %p51_p2 = scmp.eq.s32.totalorder %s893_s22, 0 }
   0x5   : > { %s43_s25 = sadd.s32 1, %s881_s19  ;;  %p749_p5 = scmp.ge.s32.totalorder %s893_s22, 9 }
   0x6   : > { %s1051_s23 = smov (%p28_p0, %s27_s23), 0  ;;  %p52_p3 = por %p51_p2, %p50_p1 }
   0x7   : > { %s39_s24 = ssub.s32 %s889_s21, %s1051_s23  ;;  %236 = sbr.rel (%p749_p5) target bundleno = 18 (0x12), region = 28 }
   0x8   : > { %p41_p4 = scmp.eq.s32.totalorder %s39_s24, 0 }
   0xa   : > { %s961_s26 = scalar_select %p41_p4, %s881_s19, %s43_s25  }
   0xc   : > { %239 = sbr.rel (!%p52_p3) target bundleno = 18 (0x12), region = 32  ;;  %s241_s27 = sand.u32 (%p52_p3), 1, %s881_s19  }
   0xd   : > { %s751_s28 = sshll.u32 (%p52_p3), %s889_s21, 2  ;;  %s750_s29 = sshll.u32 (%p52_p3), %s241_s27, 4 }
   0xe   : > { %s248_s7 = scalar_lea.vmem (%p52_p3), %s1040_s0, %s751_s28  ;;  %s243_s8 = scalar_lea.vmem (%p52_p3), [#allocation3], %s750_s29 }
   0xf   : > { %v265_v0 = vld [vmem:[%s248_s7] sm:$0xf] (%p52_p3)  ;;  %v267_v1 = vld [vmem:[%s248_s7 + $0x24] sm:$0xf] (%p52_p3)  ;;  %v269_v2 = vld [vmem:[%s248_s7 + $0x48] sm:$0xf] (%p52_p3) }
  0x10   : > { %266 = vst [vmem:[%s243_s8] sm:$0xf] (%p52_p3), %v265_v0  ;;  %268 = vst [vmem:[%s243_s8 + $0x4] sm:$0xf] (%p52_p3), %v267_v1  ;;  %v271_v3 = vld [vmem:[%s248_s7 + $0x6c] sm:$0xf] (%p52_p3) }
  0x11   : > { %270 = vst [vmem:[%s243_s8 + $0x8] sm:$0xf] %v269_v2  ;;  %272 = vst [vmem:[%s243_s8 + $0xc] sm:$0xf] %v271_v3 }
  0x12 PF: > { %p752_p6 = scmp.ge.s32.totalorder %s893_s22, 1  ;;  %p315_p7 = scmp.lt.s32.totalorder %s893_s22, 10 }
  0x14   : > { %p316_p8 = pnand %p752_p6, %p315_p7 }
  0x15   : > { %s322_s9 = sand.u32 (!%p316_p8), 1, %s877_s18   ;;  %s754_s10 = sshll.u32 (!%p316_p8), %s885_s20, 4 }
  0x16   : > { %319 = sbr.rel (%p316_p8) target bundleno = 286 (0x11e), region = 77  ;;  %s973_s11 = sshll.u32 (!%p316_p8), %s322_s9, 4 }
  0x17   : > { %p376_p9 = scmp.lt.s32.totalorder (!%p316_p8), %s754_s10, 143  ;;  %s324_s16 = scalar_lea.vmem (!%p316_p8), [#allocation3], %s973_s11 }
  0x18   : > { %p756_p10 = scmp.ne.s32.totalorder (!%p316_p8), %s885_s20, 0 }
  0x1b   : > { %s1053_s10 = smov (!%p376_p9, %s754_s10), 143  ;;  %412 = sbr.rel (%p756_p10) target bundleno = 35 (0x23), region = 85 }
  0x1c   : > { %s755_s12 = sshll.u32 %s1053_s10, 2 }
  0x1d   : > { %s978_s15 = scalar_lea.vmem %s1041_s1, %s755_s12 }
  0x20   : > { %v895_v4 = vmov 0.0  }
  0x21   : > { %413 = vst [vmem:[#allocation2 + $0x10] sm:$0xff] %v895_v4  ;;  %414 = vst [vmem:[#allocation2] sm:$0xff] %v895_v4 }
  0x22   : > { %415 = vst [vmem:[#allocation2 + $0x18] sm:$0xff] %v895_v4  ;;  %416 = vst [vmem:[#allocation2 + $0x8] sm:$0xff] %v895_v4 }
  0x23 PF: > { %v845_v5 = vld [vmem:[%s978_s15 + $0x38] sm:$0xff]   ;;  %v846_v6 = vld [vmem:[%s978_s15 + $0x30] sm:$0xff]   ;;  %v847_v7 = vld [vmem:[%s978_s15 + $0x28] sm:$0xff]   ;;  %p767_p11 = scmp.ne.s32.totalorder %s885_s20, 8 }
  0x24   : > { %784 = vmatprep.subr.bf16.mxu0 %v845_v5  ;;  %v848_v8 = vld [vmem:[%s978_s15 + $0x20] sm:$0xff]   ;;  %v849_v10 = vld [vmem:[%s978_s15 + $0x18] sm:$0xff]   ;;  %v850_v11 = vld [vmem:[%s978_s15 + $0x10] sm:$0xff]  }
  0x25   : > { %785 = vmatpush3.bf16.msra.mxu0 %v845_v5  ;;  %v853_v9 = vld [vmem:[%s324_s16] sm:$0xff]   ;;  %v851_v12 = vld [vmem:[%s978_s15 + $0x8] sm:$0xff]  }
  0x26   : > { %786 = vmatprep.subr.bf16.mxu0 %v846_v6  ;;  %800 = vmatprep.mubr.bf16.mxu0 %v853_v9  ;;  %v852_v13 = vld [vmem:[%s978_s15] sm:$0xff]   ;;  %v854_v14 = vld [vmem:[%s324_s16 + $0x8] sm:$0xff]  }
  0x28   : > { %v417_v17 = vld [vmem:[#allocation2 + $0x10] sm:$0xff]  ;;  %v418_v23 = vld [vmem:[#allocation2] sm:$0xff] }
  0x29   : > { %787 = vmatpush3.bf16.msra.mxu0 %v846_v6  ;;  %v419_v15 = vld [vmem:[#allocation2 + $0x18] sm:$0xff]  ;;  %v420_v20 = vld [vmem:[#allocation2 + $0x8] sm:$0xff] }
  0x2a   : > { %788 = vmatprep.subr.bf16.mxu0 %v847_v7 }
  0x2d   : > { %789 = vmatpush3.bf16.msra.mxu0 %v847_v7 }
  0x2e   : > { %790 = vmatprep.subr.bf16.mxu0 %v848_v8 }
  0x31   : > { %791 = vmatpush3.bf16.msra.mxu0 %v848_v8 }
  0x32   : > { %792 = vmatprep.subr.bf16.mxu0 %v849_v10 }
  0x35   : > { %793 = vmatpush3.bf16.msra.mxu0 %v849_v10 }
  0x36   : > { %794 = vmatprep.subr.bf16.mxu0 %v850_v11 }
  0x39   : > { %795 = vmatpush3.bf16.msra.mxu0 %v850_v11 }
  0x3a   : > { %796 = vmatprep.subr.bf16.mxu0 %v851_v12 }
  0x3d   : > { %797 = vmatpush3.bf16.msra.mxu0 %v851_v12 }
  0x3e   : > { %798 = vmatprep.subr.bf16.mxu0 %v852_v13 }
  0x41   : > { %799 = vmatpush3.bf16.msra.mxu0 %v852_v13 }
  0x44   : > { %801 = vmatmul.mubr.bf16.vlgmr.msra.gmra.mxu0 %v854_v14 }
 0x104   : > { %v802_v16 = vpop.f32.mrf.mxu0 }
 0x105   : > { %v552_v18 = vadd.f32 %v802_v16, %v419_v15 }
 0x106   : > { %v535_v19 = vpop.f32.mrf.mxu0 }
 0x107   : > { %556 = vst [vmem:[#allocation2 + $0x18] sm:$0xff] %v552_v18  ;;  %v550_v21 = vadd.f32 %v535_v19, %v417_v17 }
 0x108   : > { %v803_v22 = vpop.f32.mrf.mxu0 }
 0x109   : > { %554 = vst [vmem:[#allocation2 + $0x10] sm:$0xff] %v550_v21  ;;  %v553_v24 = vadd.f32 %v803_v22, %v420_v20  ;;  %561 = sbr.rel (%p767_p11) target bundleno = 286 (0x11e), region = 89 }
 0x10a   : > { %v538_v25 = vpop.f32.mrf.mxu0 }
 0x10b   : > { %557 = vst [vmem:[#allocation2 + $0x8] sm:$0xff] %v553_v24  ;;  %v551_v26 = vadd.f32 %v538_v25, %v418_v23 }
 0x10d   : > { %555 = vst [vmem:[#allocation2] sm:$0xff] %v551_v26 }
 0x10e   : > { %v768_v28 = vld [vmem:[%s1042_s2] ss:$0 sm:$0xff]  ;;  %v564_v34 = vld [vmem:[#allocation2 + $0x18] sm:$0xff]  ;;  %v589_v37 = vld [vmem:[%s1044_s4 + $0x8] sm:$0xff] }
 0x10f   : > { %v769_v29 = vld [vmem:[%s1043_s3] ss:$0 sm:$0xff]  ;;  %v575_v38 = vmul.f32 %v768_v28, %v564_v34  ;;  %v590_v41 = vld [vmem:[%s1044_s4 + $0x10] sm:$0xff]  ;;  %v591_v42 = vld [vmem:[%s1044_s4 + $0x18] sm:$0xff] }
 0x110   : > { %v562_v27 = vld [vmem:[#allocation2 + $0x10] sm:$0xff]  ;;  %v588_v32 = vld [vmem:[%s1044_s4] sm:$0xff] }
 0x111   : > { %v573_v30 = vmul.f32 %v768_v28, %v562_v27  ;;  %v586_v44 = vadd.f32 %v769_v29, %v575_v38 }
 0x112   : > { %v565_v35 = vld [vmem:[#allocation2 + $0x8] sm:$0xff] }
 0x113   : > { %v584_v36 = vadd.f32 %v769_v29, %v573_v30  ;;  %v576_v39 = vmul.f32 %v768_v28, %v565_v35  ;;  %v594_v48 = vadd.f32 %v590_v41, %v586_v44 }
 0x114   : > { %v563_v31 = vld [vmem:[#allocation2] sm:$0xff] }
 0x115   : > { %v574_v33 = vmul.f32 %v768_v28, %v563_v31  ;;  %v592_v43 = vadd.f32 %v588_v32, %v584_v36  ;;  %v587_v45 = vadd.f32 %v769_v29, %v576_v39  ;;  %v598_v51 = vmax.f32 %v594_v48, 0.0 }
 0x117   : > { %v585_v40 = vadd.f32 %v769_v29, %v574_v33  ;;  %v596_v47 = vmax.f32 %v592_v43, 0.0  ;;  %v595_v49 = vadd.f32 %v591_v42, %v587_v45  ;;  %602 = vst [vmem:[%s1045_s5 + $0x10] sm:$0xff] %v598_v51 }
 0x119   : > { %v593_v46 = vadd.f32 %v589_v37, %v585_v40  ;;  %600 = vst [vmem:[%s1045_s5] sm:$0xff] %v596_v47  ;;  %v599_v52 = vmax.f32 %v595_v49, 0.0 }
 0x11b   : > { %v597_v50 = vmax.f32 %v593_v46, 0.0  ;;  %603 = vst [vmem:[%s1045_s5 + $0x18] sm:$0xff] %v599_v52 }
 0x11d   : > { %601 = vst [vmem:[%s1045_s5 + $0x8] sm:$0xff] %v597_v50 }
 0x11e PF: > { %s15_s22 = sadd.s32 1, %s893_s22   ;;  %s1046_s18 = smov %s881_s19 }
 0x11f   : > { %p12_p12 = scmp.ge.s32.totalorder %s15_s22, 11   ;;  %s1047_s19 = smov %s961_s26 }
 0x120   : > { %s1048_s20 = smov %s889_s21  ;;  %s1049_s21 = smov %s1051_s23 }
 0x121   :  { %14 = sbr.rel (!%p12_p12) target bundleno = 3 (0x3), region = 136 }

// kernel: simclr_forward.49
= control target key start
LH: loop header
LB: loop body
LE: loop exit
PB: predicated region body
PF: predicated region fallthrough
CT: control target
= control target key end

     0   :  { %s834_s15 = smov 0   ;;  %s836_s16 = smov 0   ;;  %s936_s0 = inlined_call_operand.vmem [shape: bf16[32,1152], index: 0, kind: input, shape index: {}]   ;;  %s937_s1 = inlined_call_operand.vmem [shape: bf16[1152,128], index: 1, kind: input, shape index: {}]   ;;  %s938_s2 = inlined_call_operand.vmem [shape: f32[1,128], index: 2, kind: input, shape index: {}]   ;;  %s939_s3 = inlined_call_operand.vmem [shape: f32[1,128], index: 3, kind: input, shape index: {}]   ;;  %s940_s4 = inlined_call_operand.vmem [shape: f32[32,128], index: 4, kind: output, shape index: {}]  }
   0x1   :  { %s838_s17 = smov 0   ;;  %s840_s18 = smov 0  }
   0x2   :  { %s842_s19 = smov 0  }
   0x3 LB: > { %s26_s20 = sadd.s32 1, %s802_s18  ;;  %p49_p1 = scmp.ne.s32.totalorder %s794_s16, %s790_s15  ;;  %s806_s19 = sphi %s842_s19, %s14_s19   ;;  %s802_s18 = sphi %s840_s18, %s944_s18   ;;  %s798_s17 = sphi %s838_s17, %s943_s17   ;;  %s794_s16 = sphi %s836_s16, %s942_s16   ;;  %s790_s15 = sphi %s834_s15, %s941_s15  }
   0x4   : > { %p27_p0 = scmp.ge.s32.totalorder %s26_s20, 9  ;;  %p50_p2 = scmp.eq.s32.totalorder %s806_s19, 0 }
   0x5   : > { %s42_s22 = sadd.s32 1, %s794_s16  ;;  %p662_p5 = scmp.ge.s32.totalorder %s806_s19, 9 }
   0x6   : > { %s946_s20 = smov (%p27_p0, %s26_s20), 0  ;;  %p51_p3 = por %p50_p2, %p49_p1 }
   0x7   : > { %s38_s21 = ssub.s32 %s802_s18, %s946_s20  ;;  %195 = sbr.rel (%p662_p5) target bundleno = 18 (0x12), region = 24 }
   0x8   : > { %p40_p4 = scmp.eq.s32.totalorder %s38_s21, 0 }
   0xa   : > { %s869_s23 = scalar_select %p40_p4, %s794_s16, %s42_s22  }
   0xc   : > { %198 = sbr.rel (!%p51_p3) target bundleno = 18 (0x12), region = 28  ;;  %s200_s24 = sand.u32 (%p51_p3), 1, %s794_s16  }
   0xd   : > { %s664_s25 = sshll.u32 (%p51_p3), %s802_s18, 2  ;;  %s663_s26 = sshll.u32 (%p51_p3), %s200_s24, 4 }
   0xe   : > { %s207_s29 = scalar_lea.vmem (%p51_p3), %s936_s0, %s664_s25  ;;  %s202_s30 = scalar_lea.vmem (%p51_p3), [#allocation3], %s663_s26 }
   0xf   : > { %v224_v0 = vld [vmem:[%s207_s29] sm:$0xf] (%p51_p3)  ;;  %v226_v1 = vld [vmem:[%s207_s29 + $0x24] sm:$0xf] (%p51_p3)  ;;  %v228_v2 = vld [vmem:[%s207_s29 + $0x48] sm:$0xf] (%p51_p3) }
  0x10   : > { %225 = vst [vmem:[%s202_s30] sm:$0xf] (%p51_p3), %v224_v0  ;;  %227 = vst [vmem:[%s202_s30 + $0x4] sm:$0xf] (%p51_p3), %v226_v1  ;;  %v230_v3 = vld [vmem:[%s207_s29 + $0x6c] sm:$0xf] (%p51_p3) }
  0x11   : > { %229 = vst [vmem:[%s202_s30 + $0x8] sm:$0xf] %v228_v2  ;;  %231 = vst [vmem:[%s202_s30 + $0xc] sm:$0xf] %v230_v3 }
  0x12 PF: > { %p665_p6 = scmp.ge.s32.totalorder %s806_s19, 1  ;;  %p274_p7 = scmp.lt.s32.totalorder %s806_s19, 10 }
  0x14   : > { %p275_p8 = pnand %p665_p6, %p274_p7 }
  0x15   : > { %s281_s5 = sand.u32 (!%p275_p8), 1, %s790_s15   ;;  %s667_s6 = sshll.u32 (!%p275_p8), %s798_s17, 4 }
  0x16   : > { %278 = sbr.rel (%p275_p8) target bundleno = 284 (0x11c), region = 73  ;;  %s881_s7 = sshll.u32 (!%p275_p8), %s281_s5, 4 }
  0x17   : > { %p325_p9 = scmp.lt.s32.totalorder (!%p275_p8), %s667_s6, 143  ;;  %s283_s12 = scalar_lea.vmem (!%p275_p8), [#allocation3], %s881_s7 }
  0x18   : > { %p669_p10 = scmp.ne.s32.totalorder (!%p275_p8), %s798_s17, 0 }
  0x1b   : > { %s948_s6 = smov (!%p325_p9, %s667_s6), 143  ;;  %352 = sbr.rel (%p669_p10) target bundleno = 35 (0x23), region = 81 }
  0x1c   : > { %s668_s8 = sshll.u32 %s948_s6, 2 }
  0x1d   : > { %s886_s11 = scalar_lea.vmem %s937_s1, %s668_s8 }
  0x20   : > { %v808_v4 = vmov 0.0  }
  0x21   : > { %353 = vst [vmem:[#allocation2 + $0x10] sm:$0xff] %v808_v4  ;;  %354 = vst [vmem:[#allocation2] sm:$0xff] %v808_v4 }
  0x22   : > { %355 = vst [vmem:[#allocation2 + $0x18] sm:$0xff] %v808_v4  ;;  %356 = vst [vmem:[#allocation2 + $0x8] sm:$0xff] %v808_v4 }
  0x23 PF: > { %v758_v5 = vld [vmem:[%s886_s11 + $0x38] sm:$0xff]   ;;  %v759_v6 = vld [vmem:[%s886_s11 + $0x30] sm:$0xff]   ;;  %v760_v7 = vld [vmem:[%s886_s11 + $0x28] sm:$0xff]   ;;  %p680_p11 = scmp.ne.s32.totalorder %s798_s17, 8 }
  0x24   : > { %697 = vmatprep.subr.bf16.mxu0 %v758_v5  ;;  %v761_v8 = vld [vmem:[%s886_s11 + $0x20] sm:$0xff]   ;;  %v762_v10 = vld [vmem:[%s886_s11 + $0x18] sm:$0xff]   ;;  %v763_v11 = vld [vmem:[%s886_s11 + $0x10] sm:$0xff]  }
  0x25   : > { %698 = vmatpush3.bf16.msra.mxu0 %v758_v5  ;;  %v766_v9 = vld [vmem:[%s283_s12] sm:$0xff]   ;;  %v764_v12 = vld [vmem:[%s886_s11 + $0x8] sm:$0xff]  }
  0x26   : > { %699 = vmatprep.subr.bf16.mxu0 %v759_v6  ;;  %713 = vmatprep.mubr.bf16.mxu0 %v766_v9  ;;  %v765_v13 = vld [vmem:[%s886_s11] sm:$0xff]   ;;  %v767_v14 = vld [vmem:[%s283_s12 + $0x8] sm:$0xff]  }
  0x28   : > { %v357_v17 = vld [vmem:[#allocation2 + $0x10] sm:$0xff]  ;;  %v358_v23 = vld [vmem:[#allocation2] sm:$0xff] }
  0x29   : > { %700 = vmatpush3.bf16.msra.mxu0 %v759_v6  ;;  %v359_v15 = vld [vmem:[#allocation2 + $0x18] sm:$0xff]  ;;  %v360_v20 = vld [vmem:[#allocation2 + $0x8] sm:$0xff] }
  0x2a   : > { %701 = vmatprep.subr.bf16.mxu0 %v760_v7 }
  0x2d   : > { %702 = vmatpush3.bf16.msra.mxu0 %v760_v7 }
  0x2e   : > { %703 = vmatprep.subr.bf16.mxu0 %v761_v8 }
  0x31   : > { %704 = vmatpush3.bf16.msra.mxu0 %v761_v8 }
  0x32   : > { %705 = vmatprep.subr.bf16.mxu0 %v762_v10 }
  0x35   : > { %706 = vmatpush3.bf16.msra.mxu0 %v762_v10 }
  0x36   : > { %707 = vmatprep.subr.bf16.mxu0 %v763_v11 }
  0x39   : > { %708 = vmatpush3.bf16.msra.mxu0 %v763_v11 }
  0x3a   : > { %709 = vmatprep.subr.bf16.mxu0 %v764_v12 }
  0x3d   : > { %710 = vmatpush3.bf16.msra.mxu0 %v764_v12 }
  0x3e   : > { %711 = vmatprep.subr.bf16.mxu0 %v765_v13 }
  0x41   : > { %712 = vmatpush3.bf16.msra.mxu0 %v765_v13 }
  0x44   : > { %714 = vmatmul.mubr.bf16.vlgmr.msra.gmra.mxu0 %v767_v14 }
 0x104   : > { %v715_v16 = vpop.f32.mrf.mxu0 }
 0x105   : > { %v492_v18 = vadd.f32 %v715_v16, %v359_v15 }
 0x106   : > { %v475_v19 = vpop.f32.mrf.mxu0 }
 0x107   : > { %496 = vst [vmem:[#allocation2 + $0x18] sm:$0xff] %v492_v18  ;;  %v490_v21 = vadd.f32 %v475_v19, %v357_v17 }
 0x108   : > { %v716_v22 = vpop.f32.mrf.mxu0 }
 0x109   : > { %494 = vst [vmem:[#allocation2 + $0x10] sm:$0xff] %v490_v21  ;;  %v493_v24 = vadd.f32 %v716_v22, %v360_v20  ;;  %501 = sbr.rel (%p680_p11) target bundleno = 284 (0x11c), region = 85 }
 0x10a   : > { %v478_v25 = vpop.f32.mrf.mxu0 }
 0x10b   : > { %497 = vst [vmem:[#allocation2 + $0x8] sm:$0xff] %v493_v24  ;;  %v491_v26 = vadd.f32 %v478_v25, %v358_v23 }
 0x10d   : > { %495 = vst [vmem:[#allocation2] sm:$0xff] %v491_v26 }
 0x10e   : > { %v681_v28 = vld [vmem:[%s938_s2] ss:$0 sm:$0xff]  ;;  %v504_v32 = vld [vmem:[#allocation2 + $0x18] sm:$0xff] }
 0x10f   : > { %v682_v29 = vld [vmem:[%s939_s3] ss:$0 sm:$0xff]  ;;  %v515_v35 = vmul.f32 %v681_v28, %v504_v32 }
 0x110   : > { %v502_v27 = vld [vmem:[#allocation2 + $0x10] sm:$0xff] }
 0x111   : > { %v513_v30 = vmul.f32 %v681_v28, %v502_v27  ;;  %v526_v39 = vadd.f32 %v682_v29, %v515_v35 }
 0x112   : > { %v505_v33 = vld [vmem:[#allocation2 + $0x8] sm:$0xff] }
 0x113   : > { %v516_v36 = vmul.f32 %v681_v28, %v505_v33  ;;  %v524_v37 = vadd.f32 %v682_v29, %v513_v30  ;;  %v530_v43 = vmax.f32 %v526_v39, 0.0 }
 0x114   : > { %v503_v31 = vld [vmem:[#allocation2] sm:$0xff] }
 0x115   : > { %v514_v34 = vmul.f32 %v681_v28, %v503_v31  ;;  %v527_v40 = vadd.f32 %v682_v29, %v516_v36  ;;  %v528_v41 = vmax.f32 %v524_v37, 0.0  ;;  %534 = vst [vmem:[%s940_s4 + $0x10] sm:$0xff] %v530_v43 }
 0x117   : > { %v525_v38 = vadd.f32 %v682_v29, %v514_v34  ;;  %v531_v44 = vmax.f32 %v527_v40, 0.0  ;;  %532 = vst [vmem:[%s940_s4] sm:$0xff] %v528_v41 }
 0x119   : > { %v529_v42 = vmax.f32 %v525_v38, 0.0  ;;  %535 = vst [vmem:[%s940_s4 + $0x18] sm:$0xff] %v531_v44 }
 0x11b   : > { %533 = vst [vmem:[%s940_s4 + $0x8] sm:$0xff] %v529_v42 }
 0x11c PF: > { %s14_s19 = sadd.s32 1, %s806_s19   ;;  %s941_s15 = smov %s794_s16 }
 0x11d   : > { %p11_p12 = scmp.ge.s32.totalorder %s14_s19, 11   ;;  %s942_s16 = smov %s869_s23 }
 0x11e   : > { %s943_s17 = smov %s802_s18  ;;  %s944_s18 = smov %s946_s20 }
 0x11f   :  { %13 = sbr.rel (!%p11_p12) target bundleno = 3 (0x3), region = 129 }

// kernel: simclr_forward.55
= control target key start
LH: loop header
LB: loop body
LE: loop exit
PB: predicated region body
PF: predicated region fallthrough
CT: control target
= control target key end

     0   :  { %s770_s15 = smov 0   ;;  %s772_s16 = smov 0   ;;  %s843_s0 = inlined_call_operand.vmem [shape: bf16[8,1152], index: 0, kind: input, shape index: {}]   ;;  %s844_s1 = inlined_call_operand.vmem [shape: bf16[1152,256], index: 1, kind: input, shape index: {}]   ;;  %s845_s2 = inlined_call_operand.vmem [shape: f32[1,256], index: 2, kind: input, shape index: {}]   ;;  %s846_s3 = inlined_call_operand.vmem [shape: f32[1,256], index: 3, kind: input, shape index: {}]   ;;  %s847_s4 = inlined_call_operand.vmem [shape: f32[8,256], index: 4, kind: output, shape index: {}]  }
   0x1   :  { %s774_s17 = smov 0  }
   0x2 LB: > { %s26_s18 = sadd.s32 1, %s737_s16  ;;  %p641_p0 = scmp.ge.s32.totalorder %s741_s17, 1  ;;  %s741_s17 = sphi %s774_s17, %s14_s17   ;;  %s737_s16 = sphi %s772_s16, %s849_s16   ;;  %s733_s15 = sphi %s770_s15, %s848_s15  }
   0x3   : > { %p27_p1 = scmp.ge.s32.totalorder %s26_s18, 9  ;;  %p227_p2 = scmp.lt.s32.totalorder %s741_s17, 10 }
   0x5   : > { %s851_s18 = smov (%p27_p1, %s26_s18), 0  ;;  %p228_p3 = pnand %p641_p0, %p227_p2 }
   0x6   : > { %p280_p4 = scmp.lt.s32.totalorder (!%p228_p3), %s733_s15, 8  ;;  %s643_s19 = sshll.u32 (!%p228_p3), %s733_s15, 4 }
   0x7   : > { %231 = sbr.rel (%p228_p3) target bundleno = 267 (0x10b), region = 36  ;;  %p288_p5 = scmp.lt.s32.totalorder (!%p228_p3), %s643_s19, 143 }
   0x8   : > { %p646_p6 = scmp.ne.s32.totalorder (!%p228_p3), %s733_s15, 0 }
   0xc   : > { %s281_s20 = scalar_select %p280_p4, %s733_s15, 8 }
   0xd   : > { %s853_s19 = smov (!%p288_p5, %s643_s19), 143  ;;  %322 = sbr.rel (%p646_p6) target bundleno = 20 (0x14), region = 40 }
   0xe   : > { %s642_s21 = sshll.u32 %s281_s20, 2  ;;  %s668_s25 = sshll.u32 %s853_s19, 3 }
   0xf   : > { %s796_s24 = scalar_lea.vmem %s843_s0, %s642_s21  ;;  %s801_s28 = scalar_lea.vmem %s844_s1, %s668_s25 }
  0x12   : > { %v743_v0 = vmov 0.0  }
  0x13   : > { %323 = vst [vmem:[#allocation2] sm:$0xff] %v743_v0  ;;  %324 = vst [vmem:[#allocation2 + $0x8] sm:$0xff] %v743_v0 }
  0x14 PF: > { %v695_v1 = vld [vmem:[%s801_s28 + $0x74] ss:$8 sps:$4 sm:$0xff]   ;;  %v697_v2 = vld [vmem:[%s801_s28 + $0x70] ss:$8 sps:$4 sm:$0xff]   ;;  %v744_v3 = vmov 0   ;;  %p663_p7 = scmp.ne.s32.totalorder %s733_s15, 8 }
  0x15   : > { %456 = vmatprep.mubr.bf16.mxu0 %v744_v3  ;;  %424 = vmatprep.subr.bf16.mxu0 %v695_v1  ;;  %v698_v4 = vld [vmem:[%s801_s28 + $0x64] ss:$8 sps:$4 sm:$0xff]   ;;  %v700_v5 = vld [vmem:[%s801_s28 + $0x60] ss:$8 sps:$4 sm:$0xff]   ;;  %v701_v6 = vld [vmem:[%s801_s28 + $0x54] ss:$8 sps:$4 sm:$0xff]  }
  0x16   : > { %425 = vmatpush1.bf16.msra.mxu0 %v697_v2  ;;  %v703_v7 = vld [vmem:[%s801_s28 + $0x50] ss:$8 sps:$4 sm:$0xff]   ;;  %v704_v8 = vld [vmem:[%s801_s28 + $0x44] ss:$8 sps:$4 sm:$0xff]   ;;  %v706_v9 = vld [vmem:[%s801_s28 + $0x40] ss:$8 sps:$4 sm:$0xff]  }
  0x17   : > { %426 = vmatprep.subr.bf16.mxu0 %v698_v4  ;;  %v707_v10 = vld [vmem:[%s801_s28 + $0x34] ss:$8 sps:$4 sm:$0xff]   ;;  %v709_v11 = vld [vmem:[%s801_s28 + $0x30] ss:$8 sps:$4 sm:$0xff]   ;;  %v710_v12 = vld [vmem:[%s801_s28 + $0x24] ss:$8 sps:$4 sm:$0xff]  }
  0x18   : > { %v712_v13 = vld [vmem:[%s801_s28 + $0x20] ss:$8 sps:$4 sm:$0xff]   ;;  %v713_v14 = vld [vmem:[%s801_s28 + $0x14] ss:$8 sps:$4 sm:$0xff]   ;;  %v715_v15 = vld [vmem:[%s801_s28 + $0x10] ss:$8 sps:$4 sm:$0xff]  }
  0x19   : > { %v716_v16 = vld [vmem:[%s801_s28 + $0x4] ss:$8 sps:$4 sm:$0xff]   ;;  %v718_v17 = vld [vmem:[%s801_s28] ss:$8 sps:$4 sm:$0xff]  }
  0x1a   : > { %427 = vmatpush1.bf16.msra.mxu0 %v700_v5  ;;  %v327_v18 = vld [vmem:[%s796_s24] sm:$0xf]  ;;  %v326_v21 = vld [vmem:[#allocation2 + $0x8] sm:$0xff] }
  0x1b   : > { %428 = vmatprep.subr.bf16.mxu0 %v701_v6  ;;  %v325_v19 = vld [vmem:[#allocation2] sm:$0xff] }
  0x1e   : > { %429 = vmatpush1.bf16.msra.mxu0 %v703_v7 }
  0x1f   : > { %430 = vmatprep.subr.bf16.mxu0 %v704_v8 }
  0x22   : > { %431 = vmatpush1.bf16.msra.mxu0 %v706_v9 }
  0x23   : > { %432 = vmatprep.subr.bf16.mxu0 %v707_v10 }
  0x26   : > { %433 = vmatpush1.bf16.msra.mxu0 %v709_v11 }
  0x27   : > { %434 = vmatprep.subr.bf16.mxu0 %v710_v12 }
  0x2a   : > { %435 = vmatpush1.bf16.msra.mxu0 %v712_v13 }
  0x2b   : > { %436 = vmatprep.subr.bf16.mxu0 %v713_v14 }
  0x2e   : > { %437 = vmatpush1.bf16.msra.mxu0 %v715_v15 }
  0x2f   : > { %438 = vmatprep.subr.bf16.mxu0 %v716_v16 }
  0x32   : > { %439 = vmatpush1.bf16.msra.mxu0 %v718_v17 }
  0x35   : > { %457 = vmatmul.mubr.bf16.vlgmr.msra.gmra.mxu0 %v327_v18 }
  0xf5   : > { %v458_v20 = vpop.f32.mrf.mxu0 }
  0xf6   : > { %v465_v22 = vadd.f32 %v458_v20, %v325_v19 }
  0xf7   : > { %v460_v23 = vpop.f32.mrf.mxu0  ;;  %472 = sbr.rel (%p663_p7) target bundleno = 267 (0x10b), region = 44 }
  0xf8   : > { %467 = vst [vmem:[#allocation2] sm:$0xff] %v465_v22  ;;  %v466_v24 = vadd.f32 %v460_v23, %v326_v21 }
  0xf9   : > { %v462_v25 = vpop.f32.mrf.mxu0 }
  0xfa   : > { %468 = vst [vmem:[#allocation2 + $0x8] sm:$0xff] %v466_v24 }
  0xfb   : > { %v463_v26 = vpop.f32.mrf.mxu0 }
  0xfc   : > { %v477_v27 = vlaneseq  ;;  %v475_v29 = vld [vmem:[%s845_s2] sm:$0x3] }
  0xfd   : > { %v489_v30 = vld [vmem:[%s846_s3] sm:$0x3] }
  0xfe   : > { %v478_v28 = vshrl.u32 %v477_v27, 7 }
  0xff   : > { %v473_v33 = vld [vmem:[#allocation2] sm:$0xff] }
 0x100   : > { %v479_v31 = vsub.s32 0, %v478_v28  ;;  %v483_v32 = vsub.s32 1, %v478_v28 }
 0x101   : > { %v474_v34 = vld [vmem:[#allocation2 + $0x8] sm:$0xff] }
 0x102   : > { %v480_v35 = vrot.slane %v475_v29, %v479_v31  ;;  %v494_v36 = vrot.slane %v489_v30, %v479_v31  ;;  %v484_v37 = vrot.slane %v475_v29, %v483_v32  ;;  %v498_v38 = vrot.slane %v489_v30, %v483_v32 }
 0x104   : > { %v487_v39 = vmul.f32 %v480_v35, %v473_v33  ;;  %v488_v40 = vmul.f32 %v484_v37, %v474_v34 }
 0x106   : > { %v501_v41 = vadd.f32 %v494_v36, %v487_v39  ;;  %v502_v42 = vadd.f32 %v498_v38, %v488_v40 }
 0x108   : > { %v503_v43 = vmax.f32 %v501_v41, 0.0  ;;  %v504_v44 = vmax.f32 %v502_v42, 0.0 }
 0x10a   : > { %505 = vst [vmem:[%s847_s4] sm:$0xff] %v503_v43  ;;  %506 = vst [vmem:[%s847_s4 + $0x8] sm:$0xff] %v504_v44 }
 0x10b PF: > { %s14_s17 = sadd.s32 1, %s741_s17   ;;  %s848_s15 = smov %s737_s16 }
 0x10c   : > { %p11_p8 = scmp.ge.s32.totalorder %s14_s17, 11   ;;  %s849_s16 = smov %s851_s18 }
 0x10e   :  { %13 = sbr.rel (!%p11_p8) target bundleno = 2 (0x2), region = 83 }

// kernel: simclr_forward.56
= control target key start
LH: loop header
LB: loop body
LE: loop exit
PB: predicated region body
PF: predicated region fallthrough
CT: control target
= control target key end

     0   :  { %v248_v1 = vmov 0   ;;  %v175_v18 = vlaneseq  ;;  %s337_s1 = inlined_call_operand.vmem [shape: bf16[128,256], index: 1, kind: input, shape index: {}]   ;;  %s338_s0 = inlined_call_operand.vmem [shape: bf16[8,128], index: 0, kind: input, shape index: {}]   ;;  %s339_s2 = inlined_call_operand.vmem [shape: f32[1,256], index: 2, kind: input, shape index: {}]   ;;  %s340_s3 = inlined_call_operand.vmem [shape: f32[1,256], index: 3, kind: input, shape index: {}]   ;;  %s341_s4 = inlined_call_operand.vmem [shape: f32[8,256], index: 4, kind: output, shape index: {}]  }
   0x1   :  { %v224_v0 = vld [vmem:[%s337_s1 + $0x74] ss:$8 sps:$4 sm:$0xff]   ;;  %155 = vmatprep.mubr.bf16.mxu0 %v248_v1  ;;  %v226_v2 = vld [vmem:[%s337_s1 + $0x70] ss:$8 sps:$4 sm:$0xff]   ;;  %v227_v3 = vld [vmem:[%s337_s1 + $0x64] ss:$8 sps:$4 sm:$0xff]  }
   0x2   :  { %123 = vmatprep.subr.bf16.mxu0 %v224_v0  ;;  %v229_v4 = vld [vmem:[%s337_s1 + $0x60] ss:$8 sps:$4 sm:$0xff]   ;;  %v230_v5 = vld [vmem:[%s337_s1 + $0x54] ss:$8 sps:$4 sm:$0xff]   ;;  %v232_v6 = vld [vmem:[%s337_s1 + $0x50] ss:$8 sps:$4 sm:$0xff]  }
   0x3   :  { %124 = vmatpush1.bf16.msra.mxu0 %v226_v2  ;;  %v233_v7 = vld [vmem:[%s337_s1 + $0x44] ss:$8 sps:$4 sm:$0xff]   ;;  %v235_v8 = vld [vmem:[%s337_s1 + $0x40] ss:$8 sps:$4 sm:$0xff]   ;;  %v236_v9 = vld [vmem:[%s337_s1 + $0x34] ss:$8 sps:$4 sm:$0xff]  }
   0x4   :  { %125 = vmatprep.subr.bf16.mxu0 %v227_v3  ;;  %v238_v10 = vld [vmem:[%s337_s1 + $0x30] ss:$8 sps:$4 sm:$0xff]   ;;  %v239_v11 = vld [vmem:[%s337_s1 + $0x24] ss:$8 sps:$4 sm:$0xff]   ;;  %v241_v12 = vld [vmem:[%s337_s1 + $0x20] ss:$8 sps:$4 sm:$0xff]  }
   0x5   :  { %v242_v13 = vld [vmem:[%s337_s1 + $0x14] ss:$8 sps:$4 sm:$0xff]   ;;  %v244_v14 = vld [vmem:[%s337_s1 + $0x10] ss:$8 sps:$4 sm:$0xff]   ;;  %v245_v15 = vld [vmem:[%s337_s1 + $0x4] ss:$8 sps:$4 sm:$0xff]  }
   0x6   :  { %v247_v16 = vld [vmem:[%s337_s1] ss:$8 sps:$4 sm:$0xff]   ;;  %v176_v19 = vshrl.u32 %v175_v18, 7 }
   0x7   :  { %126 = vmatpush1.bf16.msra.mxu0 %v229_v4  ;;  %v26_v17 = vld [vmem:[%s338_s0] sm:$0xf] }
   0x8   :  { %127 = vmatprep.subr.bf16.mxu0 %v230_v5  ;;  %v177_v20 = vsub.s32 0, %v176_v19  ;;  %v173_v21 = vld [vmem:[%s339_s2] sm:$0x3]  ;;  %v181_v22 = vsub.s32 1, %v176_v19 }
   0x9   :  { %v187_v23 = vld [vmem:[%s340_s3] sm:$0x3] }
   0xa   :  { %v178_v24 = vrot.slane %v173_v21, %v177_v20  ;;  %v192_v25 = vrot.slane %v187_v23, %v177_v20  ;;  %v182_v26 = vrot.slane %v173_v21, %v181_v22  ;;  %v196_v29 = vrot.slane %v187_v23, %v181_v22 }
   0xb   :  { %128 = vmatpush1.bf16.msra.mxu0 %v232_v6 }
   0xc   :  { %129 = vmatprep.subr.bf16.mxu0 %v233_v7 }
   0xf   :  { %130 = vmatpush1.bf16.msra.mxu0 %v235_v8 }
  0x10   :  { %131 = vmatprep.subr.bf16.mxu0 %v236_v9 }
  0x13   :  { %132 = vmatpush1.bf16.msra.mxu0 %v238_v10 }
  0x14   :  { %133 = vmatprep.subr.bf16.mxu0 %v239_v11 }
  0x17   :  { %134 = vmatpush1.bf16.msra.mxu0 %v241_v12 }
  0x18   :  { %135 = vmatprep.subr.bf16.mxu0 %v242_v13 }
  0x1b   :  { %136 = vmatpush1.bf16.msra.mxu0 %v244_v14 }
  0x1c   :  { %137 = vmatprep.subr.bf16.mxu0 %v245_v15 }
  0x1f   :  { %138 = vmatpush1.bf16.msra.mxu0 %v247_v16 }
  0x22   :  { %156 = vmatmul.mubr.bf16.vlgmr.msra.gmra.mxu0 %v26_v17 }
  0xe2   :  { %v157_v27 = vpop.f32.mrf.mxu0 }
  0xe3   :  { %v185_v28 = vmul.f32 %v178_v24, %v157_v27 }
  0xe4   :  { %v159_v30 = vpop.f32.mrf.mxu0 }
  0xe5   :  { %v199_v31 = vadd.f32 %v192_v25, %v185_v28  ;;  %v186_v32 = vmul.f32 %v182_v26, %v159_v30 }
  0xe6   :  { %v161_v33 = vpop.f32.mrf.mxu0 }
  0xe7   :  { %201 = vst [vmem:[%s341_s4] sm:$0xff] %v199_v31  ;;  %v200_v34 = vadd.f32 %v196_v29, %v186_v32 }
  0xe8   :  { %v162_v35 = vpop.f32.mrf.mxu0 }
  0xe9   :  { %202 = vst [vmem:[%s341_s4 + $0x8] sm:$0xff] %v200_v34 }

// kernel: simclr_forward.57
= control target key start
LH: loop header
LB: loop body
LE: loop exit
PB: predicated region body
PF: predicated region fallthrough
CT: control target
= control target key end

     0   :  { %s1014_s18 = smov 0   ;;  %s1016_s19 = smov 0   ;;  %s1108_s0 = inlined_call_operand.vmem [shape: bf16[8,2304], index: 0, kind: input, shape index: {}]   ;;  %s1109_s1 = inlined_call_operand.vmem [shape: bf16[2304,256], index: 1, kind: input, shape index: {}]   ;;  %s1110_s2 = inlined_call_operand.vmem [shape: f32[1,256], index: 2, kind: input, shape index: {}]   ;;  %s1111_s3 = inlined_call_operand.vmem [shape: f32[1,256], index: 3, kind: input, shape index: {}]   ;;  %s1112_s4 = inlined_call_operand.vmem [shape: f32[8,256], index: 4, kind: input, shape index: {}]   ;;  %s1113_s5 = inlined_call_operand.vmem [shape: f32[8,256], index: 5, kind: output, shape index: {}]  }
   0x1   :  { %s1018_s20 = smov 0  }
   0x2 LB: > { %s27_s21 = sadd.s32 1, %s977_s19  ;;  %p837_p0 = scmp.ge.s32.totalorder %s981_s20, 1  ;;  %s981_s20 = sphi %s1018_s20, %s15_s20   ;;  %s977_s19 = sphi %s1016_s19, %s1115_s19   ;;  %s973_s18 = sphi %s1014_s18, %s1114_s18  }
   0x3   : > { %p28_p1 = scmp.ge.s32.totalorder %s27_s21, 9  ;;  %p271_p2 = scmp.lt.s32.totalorder %s981_s20, 10 }
   0x5   : > { %s1117_s21 = smov (%p28_p1, %s27_s21), 0  ;;  %p272_p3 = pnand %p837_p0, %p271_p2 }
   0x6   : > { %s838_s22 = sshll.u32 (!%p272_p3), %s973_s18, 1  ;;  %s840_s23 = sshll.u32 (!%p272_p3), %s973_s18, 5 }
   0x7   : > { %275 = sbr.rel (%p272_p3) target bundleno = 303 (0x12f), region = 40  ;;  %p337_p4 = scmp.lt.s32.totalorder (!%p272_p3), %s838_s22, 17 }
   0x8   : > { %p346_p5 = scmp.lt.s32.totalorder (!%p272_p3), %s840_s23, 287  ;;  %p843_p6 = scmp.ne.s32.totalorder (!%p272_p3), %s973_s18, 0 }
   0xc   : > { %s1119_s22 = smov (!%p337_p4, %s838_s22), 17  ;;  %s1121_s23 = smov (!%p346_p5, %s840_s23), 287 }
   0xd   : > { %s839_s24 = sshll.u32 %s1119_s22, 2  ;;  %s883_s28 = sshll.u32 %s1121_s23, 3 }
   0xe   : > { %s1039_s27 = scalar_lea.vmem %s1108_s0, %s839_s24  ;;  %s1044_s6 = scalar_lea.vmem %s1109_s1, %s883_s28 }
   0xf   : > { %389 = sbr.rel (%p843_p6) target bundleno = 22 (0x16), region = 44 }
  0x14   : > { %v983_v0 = vmov 0.0  }
  0x15   : > { %390 = vst [vmem:[#allocation2] sm:$0xff] %v983_v0  ;;  %391 = vst [vmem:[#allocation2 + $0x8] sm:$0xff] %v983_v0 }
  0x16 PF: > { %v909_v1 = vld [vmem:[%s1044_s6 + $0x74] ss:$8 sps:$4 sm:$0xff]   ;;  %v911_v2 = vld [vmem:[%s1044_s6 + $0x70] ss:$8 sps:$4 sm:$0xff]   ;;  %v912_v3 = vld [vmem:[%s1044_s6 + $0x64] ss:$8 sps:$4 sm:$0xff]  }
  0x17   : > { %594 = vmatprep.subr.bf16.mxu0 %v909_v1  ;;  %v914_v4 = vld [vmem:[%s1044_s6 + $0x60] ss:$8 sps:$4 sm:$0xff]   ;;  %v915_v5 = vld [vmem:[%s1044_s6 + $0x54] ss:$8 sps:$4 sm:$0xff]   ;;  %v917_v6 = vld [vmem:[%s1044_s6 + $0x50] ss:$8 sps:$4 sm:$0xff]  }
  0x18   : > { %595 = vmatpush1.bf16.msra.mxu0 %v911_v2  ;;  %v918_v7 = vld [vmem:[%s1044_s6 + $0x44] ss:$8 sps:$4 sm:$0xff]   ;;  %v920_v8 = vld [vmem:[%s1044_s6 + $0x40] ss:$8 sps:$4 sm:$0xff]   ;;  %v921_v9 = vld [vmem:[%s1044_s6 + $0x34] ss:$8 sps:$4 sm:$0xff]  }
  0x19   : > { %596 = vmatprep.subr.bf16.mxu0 %v912_v3  ;;  %v923_v10 = vld [vmem:[%s1044_s6 + $0x30] ss:$8 sps:$4 sm:$0xff]   ;;  %v924_v11 = vld [vmem:[%s1044_s6 + $0x24] ss:$8 sps:$4 sm:$0xff]   ;;  %v926_v12 = vld [vmem:[%s1044_s6 + $0x20] ss:$8 sps:$4 sm:$0xff]  }
  0x1a   : > { %v927_v13 = vld [vmem:[%s1044_s6 + $0x14] ss:$8 sps:$4 sm:$0xff]   ;;  %v394_v14 = vld [vmem:[%s1039_s27] sm:$0xff]  ;;  %v929_v16 = vld [vmem:[%s1044_s6 + $0x10] ss:$8 sps:$4 sm:$0xff]   ;;  %p878_p7 = scmp.ne.s32.totalorder %s973_s18, 8 }
  0x1b   : > { %v845_v15 = vcombine.high %v394_v14, %v394_v14  ;;  %v930_v17 = vld [vmem:[%s1044_s6 + $0x4] ss:$8 sps:$4 sm:$0xff]   ;;  %v932_v18 = vld [vmem:[%s1044_s6] ss:$8 sps:$4 sm:$0xff]   ;;  %v933_v19 = vld [vmem:[%s1044_s6 + $0xf4] ss:$8 sps:$4 sm:$0xff]   ;;  %v844_v35 = vcombine.low %v394_v14, %v394_v14 }
  0x1c   : > { %597 = vmatpush1.bf16.msra.mxu0 %v914_v4  ;;  %v935_v20 = vld [vmem:[%s1044_s6 + $0xf0] ss:$8 sps:$4 sm:$0xff]   ;;  %v936_v21 = vld [vmem:[%s1044_s6 + $0xe4] ss:$8 sps:$4 sm:$0xff]   ;;  %v938_v22 = vld [vmem:[%s1044_s6 + $0xe0] ss:$8 sps:$4 sm:$0xff]  }
  0x1d   : > { %598 = vmatprep.subr.bf16.mxu0 %v915_v5  ;;  %626 = vmatprep.mubr.bf16.mxu0 %v845_v15  ;;  %v939_v23 = vld [vmem:[%s1044_s6 + $0xd4] ss:$8 sps:$4 sm:$0xff]   ;;  %v941_v24 = vld [vmem:[%s1044_s6 + $0xd0] ss:$8 sps:$4 sm:$0xff]   ;;  %v942_v25 = vld [vmem:[%s1044_s6 + $0xc4] ss:$8 sps:$4 sm:$0xff]  }
  0x1e   : > { %v944_v26 = vld [vmem:[%s1044_s6 + $0xc0] ss:$8 sps:$4 sm:$0xff]   ;;  %v945_v27 = vld [vmem:[%s1044_s6 + $0xb4] ss:$8 sps:$4 sm:$0xff]   ;;  %v947_v28 = vld [vmem:[%s1044_s6 + $0xb0] ss:$8 sps:$4 sm:$0xff]  }
  0x1f   : > { %v948_v29 = vld [vmem:[%s1044_s6 + $0xa4] ss:$8 sps:$4 sm:$0xff]   ;;  %v950_v30 = vld [vmem:[%s1044_s6 + $0xa0] ss:$8 sps:$4 sm:$0xff]   ;;  %v951_v31 = vld [vmem:[%s1044_s6 + $0x94] ss:$8 sps:$4 sm:$0xff]  }
  0x20   : > { %599 = vmatpush1.bf16.msra.mxu0 %v917_v6  ;;  %v953_v32 = vld [vmem:[%s1044_s6 + $0x90] ss:$8 sps:$4 sm:$0xff]   ;;  %v954_v33 = vld [vmem:[%s1044_s6 + $0x84] ss:$8 sps:$4 sm:$0xff]   ;;  %v956_v34 = vld [vmem:[%s1044_s6 + $0x80] ss:$8 sps:$4 sm:$0xff]  }
  0x21   : > { %600 = vmatprep.subr.bf16.mxu0 %v918_v7  ;;  %v392_v36 = vld [vmem:[#allocation2] sm:$0xff]  ;;  %v393_v38 = vld [vmem:[#allocation2 + $0x8] sm:$0xff] }
  0x24   : > { %601 = vmatpush1.bf16.msra.mxu0 %v920_v8 }
  0x25   : > { %602 = vmatprep.subr.bf16.mxu0 %v921_v9 }
  0x28   : > { %603 = vmatpush1.bf16.msra.mxu0 %v923_v10 }
  0x29   : > { %604 = vmatprep.subr.bf16.mxu0 %v924_v11 }
  0x2c   : > { %605 = vmatpush1.bf16.msra.mxu0 %v926_v12 }
  0x2d   : > { %606 = vmatprep.subr.bf16.mxu0 %v927_v13 }
  0x30   : > { %607 = vmatpush1.bf16.msra.mxu0 %v929_v16 }
  0x31   : > { %608 = vmatprep.subr.bf16.mxu0 %v930_v17 }
  0x34   : > { %609 = vmatpush1.bf16.msra.mxu0 %v932_v18 }
  0x35   : > { %610 = vmatprep.subr.bf16.mxu0 %v933_v19 }
  0x38   : > { %611 = vmatpush2.bf16.msra.mxu0 %v935_v20 }
  0x39   : > { %612 = vmatprep.subr.bf16.mxu0 %v936_v21 }
  0x3c   : > { %613 = vmatpush2.bf16.msra.mxu0 %v938_v22 }
  0x3d   : > { %614 = vmatprep.subr.bf16.mxu0 %v939_v23 }
  0x40   : > { %615 = vmatpush2.bf16.msra.mxu0 %v941_v24 }
  0x41   : > { %616 = vmatprep.subr.bf16.mxu0 %v942_v25 }
  0x44   : > { %617 = vmatpush2.bf16.msra.mxu0 %v944_v26 }
  0x45   : > { %618 = vmatprep.subr.bf16.mxu0 %v945_v27 }
  0x48   : > { %619 = vmatpush2.bf16.msra.mxu0 %v947_v28 }
  0x49   : > { %620 = vmatprep.subr.bf16.mxu0 %v948_v29 }
  0x4c   : > { %621 = vmatpush2.bf16.msra.mxu0 %v950_v30 }
  0x4d   : > { %622 = vmatprep.subr.bf16.mxu0 %v951_v31 }
  0x50   : > { %623 = vmatpush2.bf16.msra.mxu0 %v953_v32 }
  0x51   : > { %624 = vmatprep.subr.bf16.mxu0 %v954_v33 }
  0x54   : > { %625 = vmatpush2.bf16.msra.mxu0 %v956_v34 }
  0x57   : > { %627 = vmatmul.mubr.bf16.vlgmr.msra.gmra.mxu0 %v844_v35 }
 0x117   : > { %v628_v37 = vpop.f32.mrf.mxu0 }
 0x118   : > { %v635_v39 = vadd.f32 %v628_v37, %v392_v36 }
 0x119   : > { %v630_v40 = vpop.f32.mrf.mxu0  ;;  %642 = sbr.rel (%p878_p7) target bundleno = 303 (0x12f), region = 48 }
 0x11a   : > { %637 = vst [vmem:[#allocation2] sm:$0xff] %v635_v39  ;;  %v636_v41 = vadd.f32 %v630_v40, %v393_v38 }
 0x11b   : > { %v632_v42 = vpop.f32.mrf.mxu0 }
 0x11c   : > { %638 = vst [vmem:[#allocation2 + $0x8] sm:$0xff] %v636_v41 }
 0x11d   : > { %v633_v43 = vpop.f32.mrf.mxu0 }
 0x11e   : > { %v647_v44 = vlaneseq  ;;  %v645_v46 = vld [vmem:[%s1110_s2] sm:$0x3]  ;;  %v674_v59 = vld [vmem:[%s1112_s4 + $0x8] sm:$0xff] }
 0x11f   : > { %v659_v47 = vld [vmem:[%s1111_s3] sm:$0x3] }
 0x120   : > { %v648_v45 = vshrl.u32 %v647_v44, 7  ;;  %v673_v58 = vld [vmem:[%s1112_s4] sm:$0xff] }
 0x121   : > { %v643_v50 = vld [vmem:[#allocation2] sm:$0xff] }
 0x122   : > { %v649_v48 = vsub.s32 0, %v648_v45  ;;  %v653_v49 = vsub.s32 1, %v648_v45 }
 0x123   : > { %v644_v51 = vld [vmem:[#allocation2 + $0x8] sm:$0xff] }
 0x124   : > { %v650_v52 = vrot.slane %v645_v46, %v649_v48  ;;  %v664_v53 = vrot.slane %v659_v47, %v649_v48  ;;  %v654_v54 = vrot.slane %v645_v46, %v653_v49  ;;  %v668_v55 = vrot.slane %v659_v47, %v653_v49 }
 0x126   : > { %v657_v56 = vmul.f32 %v650_v52, %v643_v50  ;;  %v658_v57 = vmul.f32 %v654_v54, %v644_v51 }
 0x128   : > { %v671_v60 = vadd.f32 %v664_v53, %v657_v56  ;;  %v672_v61 = vadd.f32 %v668_v55, %v658_v57 }
 0x12a   : > { %v675_v62 = vadd.f32 %v673_v58, %v671_v60  ;;  %v676_v63 = vadd.f32 %v674_v59, %v672_v61 }
 0x12c   : > { %v677_v0 = vmax.f32 %v675_v62, 0.0  ;;  %v678_v1 = vmax.f32 %v676_v63, 0.0 }
 0x12e   : > { %679 = vst [vmem:[%s1113_s5] sm:$0xff] %v677_v0  ;;  %680 = vst [vmem:[%s1113_s5 + $0x8] sm:$0xff] %v678_v1 }
 0x12f PF: > { %s15_s20 = sadd.s32 1, %s981_s20   ;;  %s1114_s18 = smov %s977_s19 }
 0x130   : > { %p12_p8 = scmp.ge.s32.totalorder %s15_s20, 11   ;;  %s1115_s19 = smov %s1117_s21 }
 0x132   :  { %14 = sbr.rel (!%p12_p8) target bundleno = 2 (0x2), region = 90 }

// kernel: simclr_forward.58
= control target key start
LH: loop header
LB: loop body
LE: loop exit
PB: predicated region body
PF: predicated region fallthrough
CT: control target
= control target key end

     0   :  { %s920_s15 = smov 0   ;;  %s922_s16 = smov 0   ;;  %s1008_s0 = inlined_call_operand.vmem [shape: bf16[8,2304], index: 0, kind: input, shape index: {}]   ;;  %s1009_s1 = inlined_call_operand.vmem [shape: bf16[2304,256], index: 1, kind: input, shape index: {}]   ;;  %s1010_s2 = inlined_call_operand.vmem [shape: f32[1,256], index: 2, kind: input, shape index: {}]   ;;  %s1011_s3 = inlined_call_operand.vmem [shape: f32[1,256], index: 3, kind: input, shape index: {}]   ;;  %s1012_s4 = inlined_call_operand.vmem [shape: f32[8,256], index: 4, kind: output, shape index: {}]  }
   0x1   :  { %s924_s17 = smov 0  }
   0x2 LB: > { %s26_s18 = sadd.s32 1, %s888_s16  ;;  %p748_p0 = scmp.ge.s32.totalorder %s892_s17, 1  ;;  %s892_s17 = sphi %s924_s17, %s14_s17   ;;  %s888_s16 = sphi %s922_s16, %s1014_s16   ;;  %s884_s15 = sphi %s920_s15, %s1013_s15  }
   0x3   : > { %p27_p1 = scmp.ge.s32.totalorder %s26_s18, 9  ;;  %p229_p2 = scmp.lt.s32.totalorder %s892_s17, 10 }
   0x5   : > { %s1016_s18 = smov (%p27_p1, %s26_s18), 0  ;;  %p230_p3 = pnand %p748_p0, %p229_p2 }
   0x6   : > { %s749_s19 = sshll.u32 (!%p230_p3), %s884_s15, 1  ;;  %s751_s20 = sshll.u32 (!%p230_p3), %s884_s15, 5 }
   0x7   : > { %233 = sbr.rel (%p230_p3) target bundleno = 301 (0x12d), region = 36  ;;  %p284_p4 = scmp.lt.s32.totalorder (!%p230_p3), %s749_s19, 17 }
   0x8   : > { %p293_p5 = scmp.lt.s32.totalorder (!%p230_p3), %s751_s20, 287  ;;  %p754_p6 = scmp.ne.s32.totalorder (!%p230_p3), %s884_s15, 0 }
   0xc   : > { %s1018_s19 = smov (!%p284_p4, %s749_s19), 17  ;;  %s1020_s20 = smov (!%p293_p5, %s751_s20), 287 }
   0xd   : > { %s750_s21 = sshll.u32 %s1018_s19, 2  ;;  %s794_s25 = sshll.u32 %s1020_s20, 3 }
   0xe   : > { %s945_s24 = scalar_lea.vmem %s1008_s0, %s750_s21  ;;  %s950_s28 = scalar_lea.vmem %s1009_s1, %s794_s25 }
   0xf   : > { %326 = sbr.rel (%p754_p6) target bundleno = 22 (0x16), region = 40 }
  0x14   : > { %v894_v0 = vmov 0.0  }
  0x15   : > { %327 = vst [vmem:[#allocation2] sm:$0xff] %v894_v0  ;;  %328 = vst [vmem:[#allocation2 + $0x8] sm:$0xff] %v894_v0 }
  0x16 PF: > { %v820_v1 = vld [vmem:[%s950_s28 + $0x74] ss:$8 sps:$4 sm:$0xff]   ;;  %v822_v2 = vld [vmem:[%s950_s28 + $0x70] ss:$8 sps:$4 sm:$0xff]   ;;  %v823_v3 = vld [vmem:[%s950_s28 + $0x64] ss:$8 sps:$4 sm:$0xff]  }
  0x17   : > { %531 = vmatprep.subr.bf16.mxu0 %v820_v1  ;;  %v825_v4 = vld [vmem:[%s950_s28 + $0x60] ss:$8 sps:$4 sm:$0xff]   ;;  %v826_v5 = vld [vmem:[%s950_s28 + $0x54] ss:$8 sps:$4 sm:$0xff]   ;;  %v828_v6 = vld [vmem:[%s950_s28 + $0x50] ss:$8 sps:$4 sm:$0xff]  }
  0x18   : > { %532 = vmatpush1.bf16.msra.mxu0 %v822_v2  ;;  %v829_v7 = vld [vmem:[%s950_s28 + $0x44] ss:$8 sps:$4 sm:$0xff]   ;;  %v831_v8 = vld [vmem:[%s950_s28 + $0x40] ss:$8 sps:$4 sm:$0xff]   ;;  %v832_v9 = vld [vmem:[%s950_s28 + $0x34] ss:$8 sps:$4 sm:$0xff]  }
  0x19   : > { %533 = vmatprep.subr.bf16.mxu0 %v823_v3  ;;  %v834_v10 = vld [vmem:[%s950_s28 + $0x30] ss:$8 sps:$4 sm:$0xff]   ;;  %v835_v11 = vld [vmem:[%s950_s28 + $0x24] ss:$8 sps:$4 sm:$0xff]   ;;  %v837_v12 = vld [vmem:[%s950_s28 + $0x20] ss:$8 sps:$4 sm:$0xff]  }
  0x1a   : > { %v838_v13 = vld [vmem:[%s950_s28 + $0x14] ss:$8 sps:$4 sm:$0xff]   ;;  %v331_v14 = vld [vmem:[%s945_s24] sm:$0xff]  ;;  %v840_v16 = vld [vmem:[%s950_s28 + $0x10] ss:$8 sps:$4 sm:$0xff]   ;;  %p789_p7 = scmp.ne.s32.totalorder %s884_s15, 8 }
  0x1b   : > { %v756_v15 = vcombine.high %v331_v14, %v331_v14  ;;  %v841_v17 = vld [vmem:[%s950_s28 + $0x4] ss:$8 sps:$4 sm:$0xff]   ;;  %v843_v18 = vld [vmem:[%s950_s28] ss:$8 sps:$4 sm:$0xff]   ;;  %v844_v19 = vld [vmem:[%s950_s28 + $0xf4] ss:$8 sps:$4 sm:$0xff]   ;;  %v755_v35 = vcombine.low %v331_v14, %v331_v14 }
  0x1c   : > { %534 = vmatpush1.bf16.msra.mxu0 %v825_v4  ;;  %v846_v20 = vld [vmem:[%s950_s28 + $0xf0] ss:$8 sps:$4 sm:$0xff]   ;;  %v847_v21 = vld [vmem:[%s950_s28 + $0xe4] ss:$8 sps:$4 sm:$0xff]   ;;  %v849_v22 = vld [vmem:[%s950_s28 + $0xe0] ss:$8 sps:$4 sm:$0xff]  }
  0x1d   : > { %535 = vmatprep.subr.bf16.mxu0 %v826_v5  ;;  %563 = vmatprep.mubr.bf16.mxu0 %v756_v15  ;;  %v850_v23 = vld [vmem:[%s950_s28 + $0xd4] ss:$8 sps:$4 sm:$0xff]   ;;  %v852_v24 = vld [vmem:[%s950_s28 + $0xd0] ss:$8 sps:$4 sm:$0xff]   ;;  %v853_v25 = vld [vmem:[%s950_s28 + $0xc4] ss:$8 sps:$4 sm:$0xff]  }
  0x1e   : > { %v855_v26 = vld [vmem:[%s950_s28 + $0xc0] ss:$8 sps:$4 sm:$0xff]   ;;  %v856_v27 = vld [vmem:[%s950_s28 + $0xb4] ss:$8 sps:$4 sm:$0xff]   ;;  %v858_v28 = vld [vmem:[%s950_s28 + $0xb0] ss:$8 sps:$4 sm:$0xff]  }
  0x1f   : > { %v859_v29 = vld [vmem:[%s950_s28 + $0xa4] ss:$8 sps:$4 sm:$0xff]   ;;  %v861_v30 = vld [vmem:[%s950_s28 + $0xa0] ss:$8 sps:$4 sm:$0xff]   ;;  %v862_v31 = vld [vmem:[%s950_s28 + $0x94] ss:$8 sps:$4 sm:$0xff]  }
  0x20   : > { %536 = vmatpush1.bf16.msra.mxu0 %v828_v6  ;;  %v864_v32 = vld [vmem:[%s950_s28 + $0x90] ss:$8 sps:$4 sm:$0xff]   ;;  %v865_v33 = vld [vmem:[%s950_s28 + $0x84] ss:$8 sps:$4 sm:$0xff]   ;;  %v867_v34 = vld [vmem:[%s950_s28 + $0x80] ss:$8 sps:$4 sm:$0xff]  }
  0x21   : > { %537 = vmatprep.subr.bf16.mxu0 %v829_v7  ;;  %v329_v36 = vld [vmem:[#allocation2] sm:$0xff]  ;;  %v330_v38 = vld [vmem:[#allocation2 + $0x8] sm:$0xff] }
  0x24   : > { %538 = vmatpush1.bf16.msra.mxu0 %v831_v8 }
  0x25   : > { %539 = vmatprep.subr.bf16.mxu0 %v832_v9 }
  0x28   : > { %540 = vmatpush1.bf16.msra.mxu0 %v834_v10 }
  0x29   : > { %541 = vmatprep.subr.bf16.mxu0 %v835_v11 }
  0x2c   : > { %542 = vmatpush1.bf16.msra.mxu0 %v837_v12 }
  0x2d   : > { %543 = vmatprep.subr.bf16.mxu0 %v838_v13 }
  0x30   : > { %544 = vmatpush1.bf16.msra.mxu0 %v840_v16 }
  0x31   : > { %545 = vmatprep.subr.bf16.mxu0 %v841_v17 }
  0x34   : > { %546 = vmatpush1.bf16.msra.mxu0 %v843_v18 }
  0x35   : > { %547 = vmatprep.subr.bf16.mxu0 %v844_v19 }
  0x38   : > { %548 = vmatpush2.bf16.msra.mxu0 %v846_v20 }
  0x39   : > { %549 = vmatprep.subr.bf16.mxu0 %v847_v21 }
  0x3c   : > { %550 = vmatpush2.bf16.msra.mxu0 %v849_v22 }
  0x3d   : > { %551 = vmatprep.subr.bf16.mxu0 %v850_v23 }
  0x40   : > { %552 = vmatpush2.bf16.msra.mxu0 %v852_v24 }
  0x41   : > { %553 = vmatprep.subr.bf16.mxu0 %v853_v25 }
  0x44   : > { %554 = vmatpush2.bf16.msra.mxu0 %v855_v26 }
  0x45   : > { %555 = vmatprep.subr.bf16.mxu0 %v856_v27 }
  0x48   : > { %556 = vmatpush2.bf16.msra.mxu0 %v858_v28 }
  0x49   : > { %557 = vmatprep.subr.bf16.mxu0 %v859_v29 }
  0x4c   : > { %558 = vmatpush2.bf16.msra.mxu0 %v861_v30 }
  0x4d   : > { %559 = vmatprep.subr.bf16.mxu0 %v862_v31 }
  0x50   : > { %560 = vmatpush2.bf16.msra.mxu0 %v864_v32 }
  0x51   : > { %561 = vmatprep.subr.bf16.mxu0 %v865_v33 }
  0x54   : > { %562 = vmatpush2.bf16.msra.mxu0 %v867_v34 }
  0x57   : > { %564 = vmatmul.mubr.bf16.vlgmr.msra.gmra.mxu0 %v755_v35 }
 0x117   : > { %v565_v37 = vpop.f32.mrf.mxu0 }
 0x118   : > { %v572_v39 = vadd.f32 %v565_v37, %v329_v36 }
 0x119   : > { %v567_v40 = vpop.f32.mrf.mxu0  ;;  %579 = sbr.rel (%p789_p7) target bundleno = 301 (0x12d), region = 44 }
 0x11a   : > { %574 = vst [vmem:[#allocation2] sm:$0xff] %v572_v39  ;;  %v573_v41 = vadd.f32 %v567_v40, %v330_v38 }
 0x11b   : > { %v569_v42 = vpop.f32.mrf.mxu0 }
 0x11c   : > { %575 = vst [vmem:[#allocation2 + $0x8] sm:$0xff] %v573_v41 }
 0x11d   : > { %v570_v43 = vpop.f32.mrf.mxu0 }
 0x11e   : > { %v584_v44 = vlaneseq  ;;  %v582_v46 = vld [vmem:[%s1010_s2] sm:$0x3] }
 0x11f   : > { %v596_v47 = vld [vmem:[%s1011_s3] sm:$0x3] }
 0x120   : > { %v585_v45 = vshrl.u32 %v584_v44, 7 }
 0x121   : > { %v580_v50 = vld [vmem:[#allocation2] sm:$0xff] }
 0x122   : > { %v586_v48 = vsub.s32 0, %v585_v45  ;;  %v590_v49 = vsub.s32 1, %v585_v45 }
 0x123   : > { %v581_v51 = vld [vmem:[#allocation2 + $0x8] sm:$0xff] }
 0x124   : > { %v587_v52 = vrot.slane %v582_v46, %v586_v48  ;;  %v601_v53 = vrot.slane %v596_v47, %v586_v48  ;;  %v591_v54 = vrot.slane %v582_v46, %v590_v49  ;;  %v605_v55 = vrot.slane %v596_v47, %v590_v49 }
 0x126   : > { %v594_v56 = vmul.f32 %v587_v52, %v580_v50  ;;  %v595_v57 = vmul.f32 %v591_v54, %v581_v51 }
 0x128   : > { %v608_v58 = vadd.f32 %v601_v53, %v594_v56  ;;  %v609_v59 = vadd.f32 %v605_v55, %v595_v57 }
 0x12a   : > { %v610_v60 = vmax.f32 %v608_v58, 0.0  ;;  %v611_v61 = vmax.f32 %v609_v59, 0.0 }
 0x12c   : > { %612 = vst [vmem:[%s1012_s4] sm:$0xff] %v610_v60  ;;  %613 = vst [vmem:[%s1012_s4 + $0x8] sm:$0xff] %v611_v61 }
 0x12d PF: > { %s14_s17 = sadd.s32 1, %s892_s17   ;;  %s1013_s15 = smov %s888_s16 }
 0x12e   : > { %p11_p8 = scmp.ge.s32.totalorder %s14_s17, 11   ;;  %s1014_s16 = smov %s1016_s18 }
 0x130   :  { %13 = sbr.rel (!%p11_p8) target bundleno = 2 (0x2), region = 83 }

// kernel: simclr_forward.68
= control target key start
LH: loop header
LB: loop body
LE: loop exit
PB: predicated region body
PF: predicated region fallthrough
CT: control target
= control target key end

     0   :  { %s1137_s15 = smov 0   ;;  %s1139_s16 = smov 0   ;;  %s1361_s0 = inlined_call_operand.vmem [shape: bf16[8,2304], index: 0, kind: input, shape index: {}]   ;;  %s1362_s1 = inlined_call_operand.vmem [shape: bf16[2304,512], index: 1, kind: input, shape index: {}]   ;;  %s1363_s2 = inlined_call_operand.vmem [shape: f32[1,512], index: 2, kind: input, shape index: {}]   ;;  %s1364_s3 = inlined_call_operand.vmem [shape: f32[1,512], index: 3, kind: input, shape index: {}]   ;;  %s1365_s4 = inlined_call_operand.vmem [shape: f32[8,512], index: 4, kind: output, shape index: {}]  }
   0x1   :  { %s1141_s17 = smov 0   ;;  %s1143_s18 = smov 0  }
   0x2   :  { %s1145_s19 = smov 0   ;;  %s1147_s20 = smov 0  }
   0x3   :  { %s1149_s21 = smov 0  }
   0x4 LB: > { %s26_s22 = sadd.s32 1, %s1101_s19  ;;  %s29_s23 = sadd.s32 1, %s1105_s20  ;;  %s1109_s21 = sphi %s1149_s21, %s14_s21   ;;  %s1105_s20 = sphi %s1147_s20, %s1371_s20   ;;  %s1101_s19 = sphi %s1145_s19, %s1370_s19   ;;  %s1097_s18 = sphi %s1143_s18, %s1369_s18   ;;  %s1093_s17 = sphi %s1141_s17, %s1368_s17   ;;  %s1089_s16 = sphi %s1139_s16, %s1367_s16   ;;  %s1085_s15 = sphi %s1137_s15, %s1366_s15  }
   0x5   : > { %p27_p0 = scmp.ge.s32.totalorder %s26_s22, 9  ;;  %p77_p1 = scmp.ne.s32.totalorder %s1089_s16, %s1085_s15 }
   0x6   : > { %p78_p2 = scmp.eq.s32.totalorder %s1109_s21, 0  ;;  %s70_s27 = sadd.s32 1, %s1089_s16 }
   0x7   : > { %s1373_s22 = smov (%p27_p0, %s26_s22), 0  ;;  %s1375_s23 = smov (!%p27_p0, %s29_s23), %s1105_s20 }
   0x8   : > { %p79_p3 = por %p78_p2, %p77_p1  ;;  %p31_p4 = scmp.ge.s32.totalorder %s1375_s23, 2 }
   0x9   : > { %s65_s24 = ssub.s32 %s1101_s19, %s1373_s22  ;;  %p895_p6 = scmp.ge.s32.totalorder %s1109_s21, 18 }
   0xa   : > { %s1377_s23 = smov (%p31_p4, %s1375_s23), 0 }
   0xb   : > { %s66_s25 = ssub.s32 %s1105_s20, %s1377_s23  ;;  %183 = sbr.rel (%p895_p6) target bundleno = 39 (0x27), region = 16 }
   0xc   : > { %s67_s26 = sor.u32 %s66_s25, %s65_s24 }
   0xd   : > { %p68_p5 = scmp.eq.s32.totalorder %s67_s26, 0 }
   0xf   : > { %s1188_s28 = scalar_select %p68_p5, %s1089_s16, %s70_s27  }
  0x10   : > { %199 = sbr.rel (!%p79_p3) target bundleno = 39 (0x27), region = 24  ;;  %s201_s29 = sand.u32 (%p79_p3), 1, %s1089_s16  }
  0x11   : > { %s898_s30 = sshll.u32 (%p79_p3), %s1105_s20, 1  ;;  %s896_s5 = sshll.u32 (%p79_p3), %s201_s29, 8 }
  0x12   : > { %s947_s6 = sshll.u32 (%p79_p3), %s1101_s19, 7  ;;  %s1202_s12 = scalar_lea.vmem (%p79_p3), [#allocation3], %s896_s5 }
  0x13   : > { %s207_s7 = sadd.s32 (%p79_p3), %s947_s6, %s898_s30 }
  0x14   : > { %s900_s8 = sshll.u32 (%p79_p3), %s207_s7, 2 }
  0x15   : > { %s1197_s11 = scalar_lea.vmem %s1362_s1, %s900_s8 }
  0x16   : > { %v300_v0 = vld [vmem:[%s1197_s11] sm:$0xff]  ;;  %v302_v1 = vld [vmem:[%s1197_s11 + $0x10] sm:$0xff] }
  0x17   : > { %v304_v2 = vld [vmem:[%s1197_s11 + $0x20] sm:$0xff]  ;;  %301 = vst [vmem:[%s1202_s12] sm:$0xff] %v300_v0  ;;  %303 = vst [vmem:[%s1202_s12 + $0x8] sm:$0xff] %v302_v1  ;;  %v306_v3 = vld [vmem:[%s1197_s11 + $0x30] sm:$0xff] }
  0x18   : > { %305 = vst [vmem:[%s1202_s12 + $0x10] sm:$0xff] %v304_v2  ;;  %v308_v4 = vld [vmem:[%s1197_s11 + $0x40] sm:$0xff]  ;;  %v310_v5 = vld [vmem:[%s1197_s11 + $0x50] sm:$0xff]  ;;  %307 = vst [vmem:[%s1202_s12 + $0x18] sm:$0xff] %v306_v3 }
  0x19   : > { %309 = vst [vmem:[%s1202_s12 + $0x20] sm:$0xff] %v308_v4  ;;  %311 = vst [vmem:[%s1202_s12 + $0x28] sm:$0xff] %v310_v5  ;;  %v312_v6 = vld [vmem:[%s1197_s11 + $0x60] sm:$0xff]  ;;  %v314_v7 = vld [vmem:[%s1197_s11 + $0x70] sm:$0xff] }
  0x1a   : > { %v316_v8 = vld [vmem:[%s1197_s11 + $0x80] sm:$0xff]  ;;  %313 = vst [vmem:[%s1202_s12 + $0x30] sm:$0xff] %v312_v6  ;;  %315 = vst [vmem:[%s1202_s12 + $0x38] sm:$0xff] %v314_v7  ;;  %v318_v9 = vld [vmem:[%s1197_s11 + $0x90] sm:$0xff] }
  0x1b   : > { %317 = vst [vmem:[%s1202_s12 + $0x40] sm:$0xff] %v316_v8  ;;  %v320_v10 = vld [vmem:[%s1197_s11 + $0xa0] sm:$0xff]  ;;  %v322_v11 = vld [vmem:[%s1197_s11 + $0xb0] sm:$0xff]  ;;  %319 = vst [vmem:[%s1202_s12 + $0x48] sm:$0xff] %v318_v9 }
  0x1c   : > { %321 = vst [vmem:[%s1202_s12 + $0x50] sm:$0xff] %v320_v10  ;;  %323 = vst [vmem:[%s1202_s12 + $0x58] sm:$0xff] %v322_v11  ;;  %v324_v12 = vld [vmem:[%s1197_s11 + $0xc0] sm:$0xff]  ;;  %v326_v13 = vld [vmem:[%s1197_s11 + $0xd0] sm:$0xff] }
  0x1d   : > { %v328_v14 = vld [vmem:[%s1197_s11 + $0xe0] sm:$0xff]  ;;  %325 = vst [vmem:[%s1202_s12 + $0x60] sm:$0xff] %v324_v12  ;;  %327 = vst [vmem:[%s1202_s12 + $0x68] sm:$0xff] %v326_v13  ;;  %v330_v15 = vld [vmem:[%s1197_s11 + $0xf0] sm:$0xff] }
  0x1e   : > { %329 = vst [vmem:[%s1202_s12 + $0x70] sm:$0xff] %v328_v14  ;;  %v332_v16 = vld [vmem:[%s1197_s11 + $0x100] sm:$0xff]  ;;  %v334_v17 = vld [vmem:[%s1197_s11 + $0x110] sm:$0xff]  ;;  %331 = vst [vmem:[%s1202_s12 + $0x78] sm:$0xff] %v330_v15 }
  0x1f   : > { %333 = vst [vmem:[%s1202_s12 + $0x80] sm:$0xff] %v332_v16  ;;  %335 = vst [vmem:[%s1202_s12 + $0x88] sm:$0xff] %v334_v17  ;;  %v336_v18 = vld [vmem:[%s1197_s11 + $0x120] sm:$0xff]  ;;  %v338_v19 = vld [vmem:[%s1197_s11 + $0x130] sm:$0xff] }
  0x20   : > { %v340_v20 = vld [vmem:[%s1197_s11 + $0x140] sm:$0xff]  ;;  %337 = vst [vmem:[%s1202_s12 + $0x90] sm:$0xff] %v336_v18  ;;  %339 = vst [vmem:[%s1202_s12 + $0x98] sm:$0xff] %v338_v19  ;;  %v342_v21 = vld [vmem:[%s1197_s11 + $0x150] sm:$0xff] }
  0x21   : > { %341 = vst [vmem:[%s1202_s12 + $0xa0] sm:$0xff] %v340_v20  ;;  %v344_v22 = vld [vmem:[%s1197_s11 + $0x160] sm:$0xff]  ;;  %v346_v23 = vld [vmem:[%s1197_s11 + $0x170] sm:$0xff]  ;;  %343 = vst [vmem:[%s1202_s12 + $0xa8] sm:$0xff] %v342_v21 }
  0x22   : > { %345 = vst [vmem:[%s1202_s12 + $0xb0] sm:$0xff] %v344_v22  ;;  %347 = vst [vmem:[%s1202_s12 + $0xb8] sm:$0xff] %v346_v23  ;;  %v348_v24 = vld [vmem:[%s1197_s11 + $0x180] sm:$0xff]  ;;  %v350_v25 = vld [vmem:[%s1197_s11 + $0x190] sm:$0xff] }
  0x23   : > { %v352_v26 = vld [vmem:[%s1197_s11 + $0x1a0] sm:$0xff]  ;;  %349 = vst [vmem:[%s1202_s12 + $0xc0] sm:$0xff] %v348_v24  ;;  %351 = vst [vmem:[%s1202_s12 + $0xc8] sm:$0xff] %v350_v25  ;;  %v354_v27 = vld [vmem:[%s1197_s11 + $0x1b0] sm:$0xff] }
  0x24   : > { %353 = vst [vmem:[%s1202_s12 + $0xd0] sm:$0xff] %v352_v26  ;;  %v356_v28 = vld [vmem:[%s1197_s11 + $0x1c0] sm:$0xff]  ;;  %v358_v29 = vld [vmem:[%s1197_s11 + $0x1d0] sm:$0xff]  ;;  %355 = vst [vmem:[%s1202_s12 + $0xd8] sm:$0xff] %v354_v27 }
  0x25   : > { %357 = vst [vmem:[%s1202_s12 + $0xe0] sm:$0xff] %v356_v28  ;;  %359 = vst [vmem:[%s1202_s12 + $0xe8] sm:$0xff] %v358_v29  ;;  %v360_v30 = vld [vmem:[%s1197_s11 + $0x1e0] sm:$0xff]  ;;  %v362_v31 = vld [vmem:[%s1197_s11 + $0x1f0] sm:$0xff] }
  0x26   : > { %361 = vst [vmem:[%s1202_s12 + $0xf0] sm:$0xff] %v360_v30  ;;  %363 = vst [vmem:[%s1202_s12 + $0xf8] sm:$0xff] %v362_v31 }
  0x27 PF: > { %p901_p7 = scmp.ge.s32.totalorder %s1109_s21, 1  ;;  %p384_p8 = scmp.lt.s32.totalorder %s1109_s21, 19 }
  0x29   : > { %p385_p9 = pnand %p901_p7, %p384_p8 }
  0x2a   : > { %s391_s13 = sand.u32 (!%p385_p9), 1, %s1085_s15   ;;  %s903_s14 = sshll.u32 (!%p385_p9), %s1093_s17, 1 }
  0x2b   : > { %388 = sbr.rel (%p385_p9) target bundleno = 337 (0x151), region = 70  ;;  %s902_s24 = sshll.u32 (!%p385_p9), %s391_s13, 8 }
  0x2c   : > { %p440_p10 = scmp.lt.s32.totalorder (!%p385_p9), %s903_s14, 17  ;;  %s905_s25 = sshll.u32 (!%p385_p9), %s1097_s18, 1 }
  0x2d   : > { %p450_p11 = scmp.lt.s32.totalorder (!%p385_p9), %s905_s25, 3  ;;  %s1291_s13 = scalar_lea.vmem (!%p385_p9), [#allocation3], %s902_s24 }
  0x2e   : > { %p909_p12 = scmp.ne.s32.totalorder (!%p385_p9), %s1093_s17, 0 }
  0x30   : > { %s1379_s14 = smov (!%p440_p10, %s903_s14), 17  ;;  %s1381_s25 = smov (!%p450_p11, %s905_s25), 3 }
  0x31   : > { %s904_s26 = sshll.u32 %s1379_s14, 2  ;;  %s452_s15 = scalar_lea.vmem %s1363_s2, %s1381_s25 }
  0x32   : > { %s1273_s30 = scalar_lea.vmem %s1361_s0, %s904_s26  ;;  %s457_s18 = scalar_lea.vmem %s1364_s3, %s1381_s25 }
  0x33   : > { %s908_s9 = sshll.u32 %s1381_s25, 3  ;;  %472 = sbr.rel (%p909_p12) target bundleno = 58 (0x3a), region = 78 }
  0x34   : > { %s1289_s12 = scalar_lea.vmem %s1365_s4, %s908_s9 }
  0x38   : > { %v1111_v32 = vmov 0.0  }
  0x39   : > { %473 = vst [vmem:[#allocation2] sm:$0xff] %v1111_v32  ;;  %474 = vst [vmem:[#allocation2 + $0x8] sm:$0xff] %v1111_v32 }
  0x3a PF: > { %v1005_v33 = vld [vmem:[%s1291_s13 + $0x74] ss:$8 sps:$4 sm:$0xff]   ;;  %v1007_v34 = vld [vmem:[%s1291_s13 + $0x70] ss:$8 sps:$4 sm:$0xff]   ;;  %v1008_v35 = vld [vmem:[%s1291_s13 + $0x64] ss:$8 sps:$4 sm:$0xff]  }
  0x3b   : > { %677 = vmatprep.subr.bf16.mxu0 %v1005_v33  ;;  %v1010_v36 = vld [vmem:[%s1291_s13 + $0x60] ss:$8 sps:$4 sm:$0xff]   ;;  %v1011_v37 = vld [vmem:[%s1291_s13 + $0x54] ss:$8 sps:$4 sm:$0xff]   ;;  %v1013_v38 = vld [vmem:[%s1291_s13 + $0x50] ss:$8 sps:$4 sm:$0xff]  }
  0x3c   : > { %678 = vmatpush1.bf16.msra.mxu0 %v1007_v34  ;;  %v1014_v39 = vld [vmem:[%s1291_s13 + $0x44] ss:$8 sps:$4 sm:$0xff]   ;;  %v1016_v40 = vld [vmem:[%s1291_s13 + $0x40] ss:$8 sps:$4 sm:$0xff]   ;;  %v1017_v41 = vld [vmem:[%s1291_s13 + $0x34] ss:$8 sps:$4 sm:$0xff]  }
  0x3d   : > { %679 = vmatprep.subr.bf16.mxu0 %v1008_v35  ;;  %v1019_v42 = vld [vmem:[%s1291_s13 + $0x30] ss:$8 sps:$4 sm:$0xff]   ;;  %v1020_v43 = vld [vmem:[%s1291_s13 + $0x24] ss:$8 sps:$4 sm:$0xff]   ;;  %v1022_v44 = vld [vmem:[%s1291_s13 + $0x20] ss:$8 sps:$4 sm:$0xff]  }
  0x3e   : > { %v1023_v45 = vld [vmem:[%s1291_s13 + $0x14] ss:$8 sps:$4 sm:$0xff]   ;;  %v1025_v48 = vld [vmem:[%s1291_s13 + $0x10] ss:$8 sps:$4 sm:$0xff]   ;;  %v1026_v49 = vld [vmem:[%s1291_s13 + $0x4] ss:$8 sps:$4 sm:$0xff]  }
  0x3f   : > { %v477_v46 = vld [vmem:[%s1273_s30] sm:$0xff]  ;;  %v1028_v50 = vld [vmem:[%s1291_s13] ss:$8 sps:$4 sm:$0xff]   ;;  %v1032_v53 = vld [vmem:[%s1291_s13 + $0xe4] ss:$8 sps:$4 sm:$0xff]   ;;  %p944_p13 = scmp.ne.s32.totalorder %s1093_s17, 8 }
  0x40   : > { %680 = vmatpush1.bf16.msra.mxu0 %v1010_v36  ;;  %v911_v47 = vcombine.high %v477_v46, %v477_v46  ;;  %v1029_v51 = vld [vmem:[%s1291_s13 + $0xf4] ss:$8 sps:$4 sm:$0xff]   ;;  %v1031_v52 = vld [vmem:[%s1291_s13 + $0xf0] ss:$8 sps:$4 sm:$0xff]   ;;  %v1034_v54 = vld [vmem:[%s1291_s13 + $0xe0] ss:$8 sps:$4 sm:$0xff]   ;;  %v910_v3 = vcombine.low %v477_v46, %v477_v46 }
  0x41   : > { %681 = vmatprep.subr.bf16.mxu0 %v1011_v37  ;;  %v1035_v55 = vld [vmem:[%s1291_s13 + $0xd4] ss:$8 sps:$4 sm:$0xff]   ;;  %v1037_v56 = vld [vmem:[%s1291_s13 + $0xd0] ss:$8 sps:$4 sm:$0xff]   ;;  %v1038_v57 = vld [vmem:[%s1291_s13 + $0xc4] ss:$8 sps:$4 sm:$0xff]  }
  0x42   : > { %709 = vmatprep.mubr.bf16.mxu0 %v911_v47  ;;  %v1040_v58 = vld [vmem:[%s1291_s13 + $0xc0] ss:$8 sps:$4 sm:$0xff]   ;;  %v1041_v59 = vld [vmem:[%s1291_s13 + $0xb4] ss:$8 sps:$4 sm:$0xff]   ;;  %v1043_v60 = vld [vmem:[%s1291_s13 + $0xb0] ss:$8 sps:$4 sm:$0xff]  }
  0x43   : > { %v1044_v61 = vld [vmem:[%s1291_s13 + $0xa4] ss:$8 sps:$4 sm:$0xff]   ;;  %v1046_v62 = vld [vmem:[%s1291_s13 + $0xa0] ss:$8 sps:$4 sm:$0xff]   ;;  %v1047_v63 = vld [vmem:[%s1291_s13 + $0x94] ss:$8 sps:$4 sm:$0xff]  }
  0x44   : > { %682 = vmatpush1.bf16.msra.mxu0 %v1013_v38  ;;  %v1049_v0 = vld [vmem:[%s1291_s13 + $0x90] ss:$8 sps:$4 sm:$0xff]   ;;  %v1050_v1 = vld [vmem:[%s1291_s13 + $0x84] ss:$8 sps:$4 sm:$0xff]   ;;  %v1052_v2 = vld [vmem:[%s1291_s13 + $0x80] ss:$8 sps:$4 sm:$0xff]  }
  0x45   : > { %683 = vmatprep.subr.bf16.mxu0 %v1014_v39  ;;  %v475_v4 = vld [vmem:[#allocation2] sm:$0xff]  ;;  %v476_v6 = vld [vmem:[#allocation2 + $0x8] sm:$0xff] }
  0x48   : > { %684 = vmatpush1.bf16.msra.mxu0 %v1016_v40 }
  0x49   : > { %685 = vmatprep.subr.bf16.mxu0 %v1017_v41 }
  0x4c   : > { %686 = vmatpush1.bf16.msra.mxu0 %v1019_v42 }
  0x4d   : > { %687 = vmatprep.subr.bf16.mxu0 %v1020_v43 }
  0x50   : > { %688 = vmatpush1.bf16.msra.mxu0 %v1022_v44 }
  0x51   : > { %689 = vmatprep.subr.bf16.mxu0 %v1023_v45 }
  0x54   : > { %690 = vmatpush1.bf16.msra.mxu0 %v1025_v48 }
  0x55   : > { %691 = vmatprep.subr.bf16.mxu0 %v1026_v49 }
  0x58   : > { %692 = vmatpush1.bf16.msra.mxu0 %v1028_v50 }
  0x59   : > { %693 = vmatprep.subr.bf16.mxu0 %v1029_v51 }
  0x5c   : > { %694 = vmatpush2.bf16.msra.mxu0 %v1031_v52 }
  0x5d   : > { %695 = vmatprep.subr.bf16.mxu0 %v1032_v53 }
  0x60   : > { %696 = vmatpush2.bf16.msra.mxu0 %v1034_v54 }
  0x61   : > { %697 = vmatprep.subr.bf16.mxu0 %v1035_v55 }
  0x64   : > { %698 = vmatpush2.bf16.msra.mxu0 %v1037_v56 }
  0x65   : > { %699 = vmatprep.subr.bf16.mxu0 %v1038_v57 }
  0x68   : > { %700 = vmatpush2.bf16.msra.mxu0 %v1040_v58 }
  0x69   : > { %701 = vmatprep.subr.bf16.mxu0 %v1041_v59 }
  0x6c   : > { %702 = vmatpush2.bf16.msra.mxu0 %v1043_v60 }
  0x6d   : > { %703 = vmatprep.subr.bf16.mxu0 %v1044_v61 }
  0x70   : > { %704 = vmatpush2.bf16.msra.mxu0 %v1046_v62 }
  0x71   : > { %705 = vmatprep.subr.bf16.mxu0 %v1047_v63 }
  0x74   : > { %706 = vmatpush2.bf16.msra.mxu0 %v1049_v0 }
  0x75   : > { %707 = vmatprep.subr.bf16.mxu0 %v1050_v1 }
  0x78   : > { %708 = vmatpush2.bf16.msra.mxu0 %v1052_v2 }
  0x7b   : > { %710 = vmatmul.mubr.bf16.vlgmr.msra.gmra.mxu0 %v910_v3 }
 0x13b   : > { %v711_v5 = vpop.f32.mrf.mxu0 }
 0x13c   : > { %v718_v7 = vadd.f32 %v711_v5, %v475_v4 }
 0x13d   : > { %v713_v8 = vpop.f32.mrf.mxu0  ;;  %725 = sbr.rel (%p944_p13) target bundleno = 337 (0x151), region = 82 }
 0x13e   : > { %720 = vst [vmem:[#allocation2] sm:$0xff] %v718_v7  ;;  %v719_v9 = vadd.f32 %v713_v8, %v476_v6 }
 0x13f   : > { %v715_v10 = vpop.f32.mrf.mxu0 }
 0x140   : > { %721 = vst [vmem:[#allocation2 + $0x8] sm:$0xff] %v719_v9 }
 0x141   : > { %v716_v11 = vpop.f32.mrf.mxu0 }
 0x142   : > { %v730_v12 = vlaneseq  ;;  %v728_v14 = vld [vmem:[%s452_s15] sm:$0x3] }
 0x143   : > { %v742_v15 = vld [vmem:[%s457_s18] sm:$0x3] }
 0x144   : > { %v731_v13 = vshrl.u32 %v730_v12, 7 }
 0x145   : > { %v726_v18 = vld [vmem:[#allocation2] sm:$0xff] }
 0x146   : > { %v732_v16 = vsub.s32 0, %v731_v13  ;;  %v736_v17 = vsub.s32 1, %v731_v13 }
 0x147   : > { %v727_v19 = vld [vmem:[#allocation2 + $0x8] sm:$0xff] }
 0x148   : > { %v733_v20 = vrot.slane %v728_v14, %v732_v16  ;;  %v747_v21 = vrot.slane %v742_v15, %v732_v16  ;;  %v737_v22 = vrot.slane %v728_v14, %v736_v17  ;;  %v751_v23 = vrot.slane %v742_v15, %v736_v17 }
 0x14a   : > { %v740_v24 = vmul.f32 %v733_v20, %v726_v18  ;;  %v741_v25 = vmul.f32 %v737_v22, %v727_v19 }
 0x14c   : > { %v754_v26 = vadd.f32 %v747_v21, %v740_v24  ;;  %v755_v27 = vadd.f32 %v751_v23, %v741_v25 }
 0x14e   : > { %v756_v28 = vmax.f32 %v754_v26, 0.0  ;;  %v757_v29 = vmax.f32 %v755_v27, 0.0 }
 0x150   : > { %758 = vst [vmem:[%s1289_s12] sm:$0xff] %v756_v28  ;;  %759 = vst [vmem:[%s1289_s12 + $0x8] sm:$0xff] %v757_v29 }
 0x151 PF: > { %s14_s21 = sadd.s32 1, %s1109_s21   ;;  %s1366_s15 = smov %s1089_s16 }
 0x152   : > { %p11_p0 = scmp.ge.s32.totalorder %s14_s21, 20   ;;  %s1367_s16 = smov %s1188_s28 }
 0x153   : > { %s1368_s17 = smov %s1101_s19  ;;  %s1369_s18 = smov %s1105_s20 }
 0x154   : > { %s1370_s19 = smov %s1373_s22  ;;  %s1371_s20 = smov %s1377_s23 }
 0x155   :  { %13 = sbr.rel (!%p11_p0) target bundleno = 4 (0x4), region = 126 }

// kernel: simclr_forward.70
= control target key start
LH: loop header
LB: loop body
LE: loop exit
PB: predicated region body
PF: predicated region fallthrough
CT: control target
= control target key end

     0   :  { %s1229_s18 = smov 0   ;;  %s1231_s19 = smov 0   ;;  %s1460_s0 = inlined_call_operand.vmem [shape: bf16[8,4608], index: 0, kind: input, shape index: {}]   ;;  %s1461_s1 = inlined_call_operand.vmem [shape: bf16[4608,512], index: 1, kind: input, shape index: {}]   ;;  %s1462_s2 = inlined_call_operand.vmem [shape: f32[1,512], index: 2, kind: input, shape index: {}]   ;;  %s1463_s3 = inlined_call_operand.vmem [shape: f32[1,512], index: 3, kind: input, shape index: {}]   ;;  %s1464_s4 = inlined_call_operand.vmem [shape: f32[8,512], index: 4, kind: input, shape index: {}]   ;;  %s1465_s5 = inlined_call_operand.vmem [shape: f32[8,512], index: 5, kind: output, shape index: {}]  }
   0x1   :  { %s1233_s20 = smov 0   ;;  %s1235_s21 = smov 0  }
   0x2   :  { %s1237_s22 = smov 0   ;;  %s1239_s23 = smov 0  }
   0x3   :  { %s1241_s24 = smov 0  }
   0x4 LB: > { %s27_s25 = sadd.s32 1, %s1188_s22  ;;  %s30_s26 = sadd.s32 1, %s1192_s23  ;;  %s1196_s24 = sphi %s1241_s24, %s15_s24   ;;  %s1192_s23 = sphi %s1239_s23, %s1471_s23   ;;  %s1188_s22 = sphi %s1237_s22, %s1470_s22   ;;  %s1184_s21 = sphi %s1235_s21, %s1469_s21   ;;  %s1180_s20 = sphi %s1233_s20, %s1468_s20   ;;  %s1176_s19 = sphi %s1231_s19, %s1467_s19   ;;  %s1172_s18 = sphi %s1229_s18, %s1466_s18  }
   0x5   : > { %p28_p0 = scmp.ge.s32.totalorder %s27_s25, 18  ;;  %p78_p1 = scmp.ne.s32.totalorder %s1176_s19, %s1172_s18 }
   0x6   : > { %p79_p2 = scmp.eq.s32.totalorder %s1196_s24, 0  ;;  %s71_s30 = sadd.s32 1, %s1176_s19 }
   0x7   : > { %s1473_s25 = smov (%p28_p0, %s27_s25), 0  ;;  %s1475_s26 = smov (!%p28_p0, %s30_s26), %s1192_s23 }
   0x8   : > { %p80_p3 = por %p79_p2, %p78_p1  ;;  %p32_p4 = scmp.ge.s32.totalorder %s1475_s26, 2 }
   0x9   : > { %s66_s27 = ssub.s32 %s1188_s22, %s1473_s25  ;;  %p980_p6 = scmp.ge.s32.totalorder %s1196_s24, 36 }
   0xa   : > { %s1477_s26 = smov (%p32_p4, %s1475_s26), 0 }
   0xb   : > { %s67_s28 = ssub.s32 %s1192_s23, %s1477_s26  ;;  %212 = sbr.rel (%p980_p6) target bundleno = 39 (0x27), region = 16 }
   0xc   : > { %s68_s29 = sor.u32 %s67_s28, %s66_s27 }
   0xd   : > { %p69_p5 = scmp.eq.s32.totalorder %s68_s29, 0 }
   0xf   : > { %s1280_s6 = scalar_select %p69_p5, %s1176_s19, %s71_s30  }
  0x10   : > { %228 = sbr.rel (!%p80_p3) target bundleno = 39 (0x27), region = 24  ;;  %s230_s7 = sand.u32 (%p80_p3), 1, %s1176_s19  }
  0x11   : > { %s983_s8 = sshll.u32 (%p80_p3), %s1192_s23, 1  ;;  %s981_s9 = sshll.u32 (%p80_p3), %s230_s7, 8 }
  0x12   : > { %s1034_s10 = sshll.u32 (%p80_p3), %s1188_s22, 7  ;;  %s1294_s16 = scalar_lea.vmem (%p80_p3), [#allocation3], %s981_s9 }
  0x13   : > { %s236_s11 = sadd.s32 (%p80_p3), %s1034_s10, %s983_s8 }
  0x14   : > { %s985_s12 = sshll.u32 (%p80_p3), %s236_s11, 2 }
  0x15   : > { %s1289_s15 = scalar_lea.vmem %s1461_s1, %s985_s12 }
  0x16   : > { %v329_v0 = vld [vmem:[%s1289_s15] sm:$0xff]  ;;  %v331_v1 = vld [vmem:[%s1289_s15 + $0x10] sm:$0xff] }
  0x17   : > { %v333_v2 = vld [vmem:[%s1289_s15 + $0x20] sm:$0xff]  ;;  %330 = vst [vmem:[%s1294_s16] sm:$0xff] %v329_v0  ;;  %332 = vst [vmem:[%s1294_s16 + $0x8] sm:$0xff] %v331_v1  ;;  %v335_v3 = vld [vmem:[%s1289_s15 + $0x30] sm:$0xff] }
  0x18   : > { %334 = vst [vmem:[%s1294_s16 + $0x10] sm:$0xff] %v333_v2  ;;  %v337_v4 = vld [vmem:[%s1289_s15 + $0x40] sm:$0xff]  ;;  %v339_v5 = vld [vmem:[%s1289_s15 + $0x50] sm:$0xff]  ;;  %336 = vst [vmem:[%s1294_s16 + $0x18] sm:$0xff] %v335_v3 }
  0x19   : > { %338 = vst [vmem:[%s1294_s16 + $0x20] sm:$0xff] %v337_v4  ;;  %340 = vst [vmem:[%s1294_s16 + $0x28] sm:$0xff] %v339_v5  ;;  %v341_v6 = vld [vmem:[%s1289_s15 + $0x60] sm:$0xff]  ;;  %v343_v7 = vld [vmem:[%s1289_s15 + $0x70] sm:$0xff] }
  0x1a   : > { %v345_v8 = vld [vmem:[%s1289_s15 + $0x80] sm:$0xff]  ;;  %342 = vst [vmem:[%s1294_s16 + $0x30] sm:$0xff] %v341_v6  ;;  %344 = vst [vmem:[%s1294_s16 + $0x38] sm:$0xff] %v343_v7  ;;  %v347_v9 = vld [vmem:[%s1289_s15 + $0x90] sm:$0xff] }
  0x1b   : > { %346 = vst [vmem:[%s1294_s16 + $0x40] sm:$0xff] %v345_v8  ;;  %v349_v10 = vld [vmem:[%s1289_s15 + $0xa0] sm:$0xff]  ;;  %v351_v11 = vld [vmem:[%s1289_s15 + $0xb0] sm:$0xff]  ;;  %348 = vst [vmem:[%s1294_s16 + $0x48] sm:$0xff] %v347_v9 }
  0x1c   : > { %350 = vst [vmem:[%s1294_s16 + $0x50] sm:$0xff] %v349_v10  ;;  %352 = vst [vmem:[%s1294_s16 + $0x58] sm:$0xff] %v351_v11  ;;  %v353_v12 = vld [vmem:[%s1289_s15 + $0xc0] sm:$0xff]  ;;  %v355_v13 = vld [vmem:[%s1289_s15 + $0xd0] sm:$0xff] }
  0x1d   : > { %v357_v14 = vld [vmem:[%s1289_s15 + $0xe0] sm:$0xff]  ;;  %354 = vst [vmem:[%s1294_s16 + $0x60] sm:$0xff] %v353_v12  ;;  %356 = vst [vmem:[%s1294_s16 + $0x68] sm:$0xff] %v355_v13  ;;  %v359_v15 = vld [vmem:[%s1289_s15 + $0xf0] sm:$0xff] }
  0x1e   : > { %358 = vst [vmem:[%s1294_s16 + $0x70] sm:$0xff] %v357_v14  ;;  %v361_v16 = vld [vmem:[%s1289_s15 + $0x100] sm:$0xff]  ;;  %v363_v17 = vld [vmem:[%s1289_s15 + $0x110] sm:$0xff]  ;;  %360 = vst [vmem:[%s1294_s16 + $0x78] sm:$0xff] %v359_v15 }
  0x1f   : > { %362 = vst [vmem:[%s1294_s16 + $0x80] sm:$0xff] %v361_v16  ;;  %364 = vst [vmem:[%s1294_s16 + $0x88] sm:$0xff] %v363_v17  ;;  %v365_v18 = vld [vmem:[%s1289_s15 + $0x120] sm:$0xff]  ;;  %v367_v19 = vld [vmem:[%s1289_s15 + $0x130] sm:$0xff] }
  0x20   : > { %v369_v20 = vld [vmem:[%s1289_s15 + $0x140] sm:$0xff]  ;;  %366 = vst [vmem:[%s1294_s16 + $0x90] sm:$0xff] %v365_v18  ;;  %368 = vst [vmem:[%s1294_s16 + $0x98] sm:$0xff] %v367_v19  ;;  %v371_v21 = vld [vmem:[%s1289_s15 + $0x150] sm:$0xff] }
  0x21   : > { %370 = vst [vmem:[%s1294_s16 + $0xa0] sm:$0xff] %v369_v20  ;;  %v373_v22 = vld [vmem:[%s1289_s15 + $0x160] sm:$0xff]  ;;  %v375_v23 = vld [vmem:[%s1289_s15 + $0x170] sm:$0xff]  ;;  %372 = vst [vmem:[%s1294_s16 + $0xa8] sm:$0xff] %v371_v21 }
  0x22   : > { %374 = vst [vmem:[%s1294_s16 + $0xb0] sm:$0xff] %v373_v22  ;;  %376 = vst [vmem:[%s1294_s16 + $0xb8] sm:$0xff] %v375_v23  ;;  %v377_v24 = vld [vmem:[%s1289_s15 + $0x180] sm:$0xff]  ;;  %v379_v25 = vld [vmem:[%s1289_s15 + $0x190] sm:$0xff] }
  0x23   : > { %v381_v26 = vld [vmem:[%s1289_s15 + $0x1a0] sm:$0xff]  ;;  %378 = vst [vmem:[%s1294_s16 + $0xc0] sm:$0xff] %v377_v24  ;;  %380 = vst [vmem:[%s1294_s16 + $0xc8] sm:$0xff] %v379_v25  ;;  %v383_v27 = vld [vmem:[%s1289_s15 + $0x1b0] sm:$0xff] }
  0x24   : > { %382 = vst [vmem:[%s1294_s16 + $0xd0] sm:$0xff] %v381_v26  ;;  %v385_v28 = vld [vmem:[%s1289_s15 + $0x1c0] sm:$0xff]  ;;  %v387_v29 = vld [vmem:[%s1289_s15 + $0x1d0] sm:$0xff]  ;;  %384 = vst [vmem:[%s1294_s16 + $0xd8] sm:$0xff] %v383_v27 }
  0x25   : > { %386 = vst [vmem:[%s1294_s16 + $0xe0] sm:$0xff] %v385_v28  ;;  %388 = vst [vmem:[%s1294_s16 + $0xe8] sm:$0xff] %v387_v29  ;;  %v389_v30 = vld [vmem:[%s1289_s15 + $0x1e0] sm:$0xff]  ;;  %v391_v31 = vld [vmem:[%s1289_s15 + $0x1f0] sm:$0xff] }
  0x26   : > { %390 = vst [vmem:[%s1294_s16 + $0xf0] sm:$0xff] %v389_v30  ;;  %392 = vst [vmem:[%s1294_s16 + $0xf8] sm:$0xff] %v391_v31 }
  0x27 PF: > { %p986_p7 = scmp.ge.s32.totalorder %s1196_s24, 1  ;;  %p426_p8 = scmp.lt.s32.totalorder %s1196_s24, 37 }
  0x29   : > { %p427_p9 = pnand %p986_p7, %p426_p8 }
  0x2a   : > { %s433_s17 = sand.u32 (!%p427_p9), 1, %s1172_s18   ;;  %s988_s27 = sshll.u32 (!%p427_p9), %s1180_s20, 1 }
  0x2b   : > { %430 = sbr.rel (%p427_p9) target bundleno = 339 (0x153), region = 74  ;;  %s987_s28 = sshll.u32 (!%p427_p9), %s433_s17, 8 }
  0x2c   : > { %p493_p10 = scmp.lt.s32.totalorder (!%p427_p9), %s988_s27, 35  ;;  %s990_s29 = sshll.u32 (!%p427_p9), %s1184_s21, 1 }
  0x2d   : > { %p503_p11 = scmp.lt.s32.totalorder (!%p427_p9), %s990_s29, 3  ;;  %s1388_s8 = scalar_lea.vmem (!%p427_p9), [#allocation3], %s987_s28 }
  0x2e   : > { %p996_p12 = scmp.ne.s32.totalorder (!%p427_p9), %s1180_s20, 0 }
  0x30   : > { %s1479_s27 = smov (!%p493_p10, %s988_s27), 35  ;;  %s1481_s29 = smov (!%p503_p11, %s990_s29), 3 }
  0x31   : > { %s989_s30 = sshll.u32 %s1479_s27, 2  ;;  %s505_s18 = scalar_lea.vmem %s1462_s2, %s1481_s29 }
  0x32   : > { %s1365_s9 = scalar_lea.vmem %s1460_s0, %s989_s30  ;;  %s510_s21 = scalar_lea.vmem %s1463_s3, %s1481_s29 }
  0x33   : > { %s993_s14 = sshll.u32 %s1481_s29, 3  ;;  %535 = sbr.rel (%p996_p12) target bundleno = 58 (0x3a), region = 82 }
  0x34   : > { %s1381_s17 = scalar_lea.vmem %s1464_s4, %s993_s14  ;;  %s1386_s7 = scalar_lea.vmem %s1465_s5, %s993_s14 }
  0x38   : > { %v1198_v32 = vmov 0.0  }
  0x39   : > { %536 = vst [vmem:[#allocation2] sm:$0xff] %v1198_v32  ;;  %537 = vst [vmem:[#allocation2 + $0x8] sm:$0xff] %v1198_v32 }
  0x3a PF: > { %v1092_v33 = vld [vmem:[%s1388_s8 + $0x74] ss:$8 sps:$4 sm:$0xff]   ;;  %v1094_v34 = vld [vmem:[%s1388_s8 + $0x70] ss:$8 sps:$4 sm:$0xff]   ;;  %v1095_v35 = vld [vmem:[%s1388_s8 + $0x64] ss:$8 sps:$4 sm:$0xff]  }
  0x3b   : > { %740 = vmatprep.subr.bf16.mxu0 %v1092_v33  ;;  %v1097_v36 = vld [vmem:[%s1388_s8 + $0x60] ss:$8 sps:$4 sm:$0xff]   ;;  %v1098_v37 = vld [vmem:[%s1388_s8 + $0x54] ss:$8 sps:$4 sm:$0xff]   ;;  %v1100_v38 = vld [vmem:[%s1388_s8 + $0x50] ss:$8 sps:$4 sm:$0xff]  }
  0x3c   : > { %741 = vmatpush1.bf16.msra.mxu0 %v1094_v34  ;;  %v1101_v39 = vld [vmem:[%s1388_s8 + $0x44] ss:$8 sps:$4 sm:$0xff]   ;;  %v1103_v40 = vld [vmem:[%s1388_s8 + $0x40] ss:$8 sps:$4 sm:$0xff]   ;;  %v1104_v41 = vld [vmem:[%s1388_s8 + $0x34] ss:$8 sps:$4 sm:$0xff]  }
  0x3d   : > { %742 = vmatprep.subr.bf16.mxu0 %v1095_v35  ;;  %v1106_v42 = vld [vmem:[%s1388_s8 + $0x30] ss:$8 sps:$4 sm:$0xff]   ;;  %v1107_v43 = vld [vmem:[%s1388_s8 + $0x24] ss:$8 sps:$4 sm:$0xff]   ;;  %v1109_v44 = vld [vmem:[%s1388_s8 + $0x20] ss:$8 sps:$4 sm:$0xff]  }
  0x3e   : > { %v1110_v45 = vld [vmem:[%s1388_s8 + $0x14] ss:$8 sps:$4 sm:$0xff]   ;;  %v1112_v48 = vld [vmem:[%s1388_s8 + $0x10] ss:$8 sps:$4 sm:$0xff]   ;;  %v1113_v49 = vld [vmem:[%s1388_s8 + $0x4] ss:$8 sps:$4 sm:$0xff]  }
  0x3f   : > { %v540_v46 = vld [vmem:[%s1365_s9] sm:$0xff]  ;;  %v1115_v50 = vld [vmem:[%s1388_s8] ss:$8 sps:$4 sm:$0xff]   ;;  %v1119_v53 = vld [vmem:[%s1388_s8 + $0xe4] ss:$8 sps:$4 sm:$0xff]   ;;  %p1031_p13 = scmp.ne.s32.totalorder %s1180_s20, 17 }
  0x40   : > { %743 = vmatpush1.bf16.msra.mxu0 %v1097_v36  ;;  %v998_v47 = vcombine.high %v540_v46, %v540_v46  ;;  %v1116_v51 = vld [vmem:[%s1388_s8 + $0xf4] ss:$8 sps:$4 sm:$0xff]   ;;  %v1118_v52 = vld [vmem:[%s1388_s8 + $0xf0] ss:$8 sps:$4 sm:$0xff]   ;;  %v1121_v54 = vld [vmem:[%s1388_s8 + $0xe0] ss:$8 sps:$4 sm:$0xff]   ;;  %v997_v3 = vcombine.low %v540_v46, %v540_v46 }
  0x41   : > { %744 = vmatprep.subr.bf16.mxu0 %v1098_v37  ;;  %v1122_v55 = vld [vmem:[%s1388_s8 + $0xd4] ss:$8 sps:$4 sm:$0xff]   ;;  %v1124_v56 = vld [vmem:[%s1388_s8 + $0xd0] ss:$8 sps:$4 sm:$0xff]   ;;  %v1125_v57 = vld [vmem:[%s1388_s8 + $0xc4] ss:$8 sps:$4 sm:$0xff]  }
  0x42   : > { %772 = vmatprep.mubr.bf16.mxu0 %v998_v47  ;;  %v1127_v58 = vld [vmem:[%s1388_s8 + $0xc0] ss:$8 sps:$4 sm:$0xff]   ;;  %v1128_v59 = vld [vmem:[%s1388_s8 + $0xb4] ss:$8 sps:$4 sm:$0xff]   ;;  %v1130_v60 = vld [vmem:[%s1388_s8 + $0xb0] ss:$8 sps:$4 sm:$0xff]  }
  0x43   : > { %v1131_v61 = vld [vmem:[%s1388_s8 + $0xa4] ss:$8 sps:$4 sm:$0xff]   ;;  %v1133_v62 = vld [vmem:[%s1388_s8 + $0xa0] ss:$8 sps:$4 sm:$0xff]   ;;  %v1134_v63 = vld [vmem:[%s1388_s8 + $0x94] ss:$8 sps:$4 sm:$0xff]  }
  0x44   : > { %745 = vmatpush1.bf16.msra.mxu0 %v1100_v38  ;;  %v1136_v0 = vld [vmem:[%s1388_s8 + $0x90] ss:$8 sps:$4 sm:$0xff]   ;;  %v1137_v1 = vld [vmem:[%s1388_s8 + $0x84] ss:$8 sps:$4 sm:$0xff]   ;;  %v1139_v2 = vld [vmem:[%s1388_s8 + $0x80] ss:$8 sps:$4 sm:$0xff]  }
  0x45   : > { %746 = vmatprep.subr.bf16.mxu0 %v1101_v39  ;;  %v538_v4 = vld [vmem:[#allocation2] sm:$0xff]  ;;  %v539_v6 = vld [vmem:[#allocation2 + $0x8] sm:$0xff] }
  0x48   : > { %747 = vmatpush1.bf16.msra.mxu0 %v1103_v40 }
  0x49   : > { %748 = vmatprep.subr.bf16.mxu0 %v1104_v41 }
  0x4c   : > { %749 = vmatpush1.bf16.msra.mxu0 %v1106_v42 }
  0x4d   : > { %750 = vmatprep.subr.bf16.mxu0 %v1107_v43 }
  0x50   : > { %751 = vmatpush1.bf16.msra.mxu0 %v1109_v44 }
  0x51   : > { %752 = vmatprep.subr.bf16.mxu0 %v1110_v45 }
  0x54   : > { %753 = vmatpush1.bf16.msra.mxu0 %v1112_v48 }
  0x55   : > { %754 = vmatprep.subr.bf16.mxu0 %v1113_v49 }
  0x58   : > { %755 = vmatpush1.bf16.msra.mxu0 %v1115_v50 }
  0x59   : > { %756 = vmatprep.subr.bf16.mxu0 %v1116_v51 }
  0x5c   : > { %757 = vmatpush2.bf16.msra.mxu0 %v1118_v52 }
  0x5d   : > { %758 = vmatprep.subr.bf16.mxu0 %v1119_v53 }
  0x60   : > { %759 = vmatpush2.bf16.msra.mxu0 %v1121_v54 }
  0x61   : > { %760 = vmatprep.subr.bf16.mxu0 %v1122_v55 }
  0x64   : > { %761 = vmatpush2.bf16.msra.mxu0 %v1124_v56 }
  0x65   : > { %762 = vmatprep.subr.bf16.mxu0 %v1125_v57 }
  0x68   : > { %763 = vmatpush2.bf16.msra.mxu0 %v1127_v58 }
  0x69   : > { %764 = vmatprep.subr.bf16.mxu0 %v1128_v59 }
  0x6c   : > { %765 = vmatpush2.bf16.msra.mxu0 %v1130_v60 }
  0x6d   : > { %766 = vmatprep.subr.bf16.mxu0 %v1131_v61 }
  0x70   : > { %767 = vmatpush2.bf16.msra.mxu0 %v1133_v62 }
  0x71   : > { %768 = vmatprep.subr.bf16.mxu0 %v1134_v63 }
  0x74   : > { %769 = vmatpush2.bf16.msra.mxu0 %v1136_v0 }
  0x75   : > { %770 = vmatprep.subr.bf16.mxu0 %v1137_v1 }
  0x78   : > { %771 = vmatpush2.bf16.msra.mxu0 %v1139_v2 }
  0x7b   : > { %773 = vmatmul.mubr.bf16.vlgmr.msra.gmra.mxu0 %v997_v3 }
 0x13b   : > { %v774_v5 = vpop.f32.mrf.mxu0 }
 0x13c   : > { %v781_v7 = vadd.f32 %v774_v5, %v538_v4 }
 0x13d   : > { %v776_v8 = vpop.f32.mrf.mxu0  ;;  %788 = sbr.rel (%p1031_p13) target bundleno = 339 (0x153), region = 86 }
 0x13e   : > { %783 = vst [vmem:[#allocation2] sm:$0xff] %v781_v7  ;;  %v782_v9 = vadd.f32 %v776_v8, %v539_v6 }
 0x13f   : > { %v778_v10 = vpop.f32.mrf.mxu0 }
 0x140   : > { %784 = vst [vmem:[#allocation2 + $0x8] sm:$0xff] %v782_v9 }
 0x141   : > { %v779_v11 = vpop.f32.mrf.mxu0 }
 0x142   : > { %v793_v12 = vlaneseq  ;;  %v791_v14 = vld [vmem:[%s505_s18] sm:$0x3]  ;;  %v820_v27 = vld [vmem:[%s1381_s17 + $0x8] sm:$0xff] }
 0x143   : > { %v805_v15 = vld [vmem:[%s510_s21] sm:$0x3] }
 0x144   : > { %v794_v13 = vshrl.u32 %v793_v12, 7  ;;  %v819_v26 = vld [vmem:[%s1381_s17] sm:$0xff] }
 0x145   : > { %v789_v18 = vld [vmem:[#allocation2] sm:$0xff] }
 0x146   : > { %v795_v16 = vsub.s32 0, %v794_v13  ;;  %v799_v17 = vsub.s32 1, %v794_v13 }
 0x147   : > { %v790_v19 = vld [vmem:[#allocation2 + $0x8] sm:$0xff] }
 0x148   : > { %v796_v20 = vrot.slane %v791_v14, %v795_v16  ;;  %v810_v21 = vrot.slane %v805_v15, %v795_v16  ;;  %v800_v22 = vrot.slane %v791_v14, %v799_v17  ;;  %v814_v23 = vrot.slane %v805_v15, %v799_v17 }
 0x14a   : > { %v803_v24 = vmul.f32 %v796_v20, %v789_v18  ;;  %v804_v25 = vmul.f32 %v800_v22, %v790_v19 }
 0x14c   : > { %v817_v28 = vadd.f32 %v810_v21, %v803_v24  ;;  %v818_v29 = vadd.f32 %v814_v23, %v804_v25 }
 0x14e   : > { %v821_v30 = vadd.f32 %v819_v26, %v817_v28  ;;  %v822_v31 = vadd.f32 %v820_v27, %v818_v29 }
 0x150   : > { %v823_v32 = vmax.f32 %v821_v30, 0.0  ;;  %v824_v33 = vmax.f32 %v822_v31, 0.0 }
 0x152   : > { %825 = vst [vmem:[%s1386_s7] sm:$0xff] %v823_v32  ;;  %826 = vst [vmem:[%s1386_s7 + $0x8] sm:$0xff] %v824_v33 }
 0x153 PF: > { %s15_s24 = sadd.s32 1, %s1196_s24   ;;  %s1466_s18 = smov %s1176_s19 }
 0x154   : > { %p12_p0 = scmp.ge.s32.totalorder %s15_s24, 38   ;;  %s1467_s19 = smov %s1280_s6 }
 0x155   : > { %s1468_s20 = smov %s1188_s22  ;;  %s1469_s21 = smov %s1192_s23 }
 0x156   : > { %s1470_s22 = smov %s1473_s25  ;;  %s1471_s23 = smov %s1477_s26 }
 0x157   :  { %14 = sbr.rel (!%p12_p0) target bundleno = 4 (0x4), region = 133 }

// kernel: simclr_forward.69
= control target key start
LH: loop header
LB: loop body
LE: loop exit
PB: predicated region body
PF: predicated region fallthrough
CT: control target
= control target key end

     0   :  { %s1095_s15 = smov 0   ;;  %s1097_s16 = smov 0   ;;  %s1277_s0 = inlined_call_operand.vmem [shape: bf16[8,256], index: 0, kind: input, shape index: {}]   ;;  %s1278_s1 = inlined_call_operand.vmem [shape: bf16[256,512], index: 1, kind: input, shape index: {}]   ;;  %s1279_s2 = inlined_call_operand.vmem [shape: f32[1,512], index: 2, kind: input, shape index: {}]   ;;  %s1280_s3 = inlined_call_operand.vmem [shape: f32[1,512], index: 3, kind: input, shape index: {}]   ;;  %s1281_s4 = inlined_call_operand.vmem [shape: f32[8,512], index: 4, kind: output, shape index: {}]  }
   0x1   :  { %s1099_s17 = smov 0   ;;  %s1101_s18 = smov 0  }
   0x2   :  { %s1103_s19 = smov 0  }
   0x3 LB: > { %s29_s20 = sadd.s32 1, %s1064_s18  ;;  %p77_p1 = scmp.ne.s32.totalorder %s1056_s16, %s1052_s15  ;;  %s1068_s19 = sphi %s1103_s19, %s14_s19   ;;  %s1064_s18 = sphi %s1101_s18, %s1285_s18   ;;  %s1060_s17 = sphi %s1099_s17, %s1284_s17   ;;  %s1056_s16 = sphi %s1097_s16, %s1283_s16   ;;  %s1052_s15 = sphi %s1095_s15, %s1282_s15  }
   0x4   : > { %p31_p0 = scmp.ge.s32.totalorder %s29_s20, 2  ;;  %p78_p2 = scmp.eq.s32.totalorder %s1068_s19, 0 }
   0x5   : > { %s70_s22 = sadd.s32 1, %s1056_s16  ;;  %p893_p5 = scmp.ge.s32.totalorder %s1068_s19, 2 }
   0x6   : > { %s1287_s20 = smov (%p31_p0, %s29_s20), 0  ;;  %p79_p3 = por %p78_p2, %p77_p1 }
   0x7   : > { %s66_s21 = ssub.s32 %s1064_s18, %s1287_s20  ;;  %196 = sbr.rel (%p893_p5) target bundleno = 32 (0x20), region = 20 }
   0x8   : > { %p68_p4 = scmp.eq.s32.totalorder %s66_s21, 0 }
   0xa   : > { %s1130_s23 = scalar_select %p68_p4, %s1056_s16, %s70_s22  }
   0xc   : > { %199 = sbr.rel (!%p79_p3) target bundleno = 32 (0x20), region = 24  ;;  %s201_s24 = sand.u32 (%p79_p3), 1, %s1056_s16  }
   0xd   : > { %s939_s25 = sshll.u32 (%p79_p3), %s1064_s18, 3  ;;  %s894_s26 = sshll.u32 (%p79_p3), %s201_s24, 8 }
   0xe   : > { %s1138_s29 = scalar_lea.vmem (%p79_p3), %s1278_s1, %s939_s25  ;;  %s1143_s30 = scalar_lea.vmem (%p79_p3), [#allocation3], %s894_s26 }
   0xf   : > { %v300_v0 = vld [vmem:[%s1138_s29] sm:$0xff] (%p79_p3)  ;;  %v302_v1 = vld [vmem:[%s1138_s29 + $0x10] sm:$0xff] (%p79_p3) }
  0x10   : > { %v304_v2 = vld [vmem:[%s1138_s29 + $0x20] sm:$0xff] (%p79_p3)  ;;  %301 = vst [vmem:[%s1143_s30] sm:$0xff] (%p79_p3), %v300_v0  ;;  %303 = vst [vmem:[%s1143_s30 + $0x8] sm:$0xff] (%p79_p3), %v302_v1  ;;  %v306_v3 = vld [vmem:[%s1138_s29 + $0x30] sm:$0xff] (%p79_p3) }
  0x11   : > { %305 = vst [vmem:[%s1143_s30 + $0x10] sm:$0xff] %v304_v2  ;;  %v308_v4 = vld [vmem:[%s1138_s29 + $0x40] sm:$0xff]  ;;  %v310_v5 = vld [vmem:[%s1138_s29 + $0x50] sm:$0xff]  ;;  %307 = vst [vmem:[%s1143_s30 + $0x18] sm:$0xff] %v306_v3 }
  0x12   : > { %309 = vst [vmem:[%s1143_s30 + $0x20] sm:$0xff] %v308_v4  ;;  %311 = vst [vmem:[%s1143_s30 + $0x28] sm:$0xff] %v310_v5  ;;  %v312_v6 = vld [vmem:[%s1138_s29 + $0x60] sm:$0xff]  ;;  %v314_v7 = vld [vmem:[%s1138_s29 + $0x70] sm:$0xff] }
  0x13   : > { %v316_v8 = vld [vmem:[%s1138_s29 + $0x80] sm:$0xff]  ;;  %313 = vst [vmem:[%s1143_s30 + $0x30] sm:$0xff] %v312_v6  ;;  %315 = vst [vmem:[%s1143_s30 + $0x38] sm:$0xff] %v314_v7  ;;  %v318_v9 = vld [vmem:[%s1138_s29 + $0x90] sm:$0xff] }
  0x14   : > { %317 = vst [vmem:[%s1143_s30 + $0x40] sm:$0xff] %v316_v8  ;;  %v320_v10 = vld [vmem:[%s1138_s29 + $0xa0] sm:$0xff]  ;;  %v322_v11 = vld [vmem:[%s1138_s29 + $0xb0] sm:$0xff]  ;;  %319 = vst [vmem:[%s1143_s30 + $0x48] sm:$0xff] %v318_v9 }
  0x15   : > { %321 = vst [vmem:[%s1143_s30 + $0x50] sm:$0xff] %v320_v10  ;;  %323 = vst [vmem:[%s1143_s30 + $0x58] sm:$0xff] %v322_v11  ;;  %v324_v12 = vld [vmem:[%s1138_s29 + $0xc0] sm:$0xff]  ;;  %v326_v13 = vld [vmem:[%s1138_s29 + $0xd0] sm:$0xff] }
  0x16   : > { %v328_v14 = vld [vmem:[%s1138_s29 + $0xe0] sm:$0xff]  ;;  %325 = vst [vmem:[%s1143_s30 + $0x60] sm:$0xff] %v324_v12  ;;  %327 = vst [vmem:[%s1143_s30 + $0x68] sm:$0xff] %v326_v13  ;;  %v330_v15 = vld [vmem:[%s1138_s29 + $0xf0] sm:$0xff] }
  0x17   : > { %329 = vst [vmem:[%s1143_s30 + $0x70] sm:$0xff] %v328_v14  ;;  %v332_v16 = vld [vmem:[%s1138_s29 + $0x100] sm:$0xff]  ;;  %v334_v17 = vld [vmem:[%s1138_s29 + $0x110] sm:$0xff]  ;;  %331 = vst [vmem:[%s1143_s30 + $0x78] sm:$0xff] %v330_v15 }
  0x18   : > { %333 = vst [vmem:[%s1143_s30 + $0x80] sm:$0xff] %v332_v16  ;;  %335 = vst [vmem:[%s1143_s30 + $0x88] sm:$0xff] %v334_v17  ;;  %v336_v18 = vld [vmem:[%s1138_s29 + $0x120] sm:$0xff]  ;;  %v338_v19 = vld [vmem:[%s1138_s29 + $0x130] sm:$0xff] }
  0x19   : > { %v340_v20 = vld [vmem:[%s1138_s29 + $0x140] sm:$0xff]  ;;  %337 = vst [vmem:[%s1143_s30 + $0x90] sm:$0xff] %v336_v18  ;;  %339 = vst [vmem:[%s1143_s30 + $0x98] sm:$0xff] %v338_v19  ;;  %v342_v21 = vld [vmem:[%s1138_s29 + $0x150] sm:$0xff] }
  0x1a   : > { %341 = vst [vmem:[%s1143_s30 + $0xa0] sm:$0xff] %v340_v20  ;;  %v344_v22 = vld [vmem:[%s1138_s29 + $0x160] sm:$0xff]  ;;  %v346_v23 = vld [vmem:[%s1138_s29 + $0x170] sm:$0xff]  ;;  %343 = vst [vmem:[%s1143_s30 + $0xa8] sm:$0xff] %v342_v21 }
  0x1b   : > { %345 = vst [vmem:[%s1143_s30 + $0xb0] sm:$0xff] %v344_v22  ;;  %347 = vst [vmem:[%s1143_s30 + $0xb8] sm:$0xff] %v346_v23  ;;  %v348_v24 = vld [vmem:[%s1138_s29 + $0x180] sm:$0xff]  ;;  %v350_v25 = vld [vmem:[%s1138_s29 + $0x190] sm:$0xff] }
  0x1c   : > { %v352_v26 = vld [vmem:[%s1138_s29 + $0x1a0] sm:$0xff]  ;;  %349 = vst [vmem:[%s1143_s30 + $0xc0] sm:$0xff] %v348_v24  ;;  %351 = vst [vmem:[%s1143_s30 + $0xc8] sm:$0xff] %v350_v25  ;;  %v354_v27 = vld [vmem:[%s1138_s29 + $0x1b0] sm:$0xff] }
  0x1d   : > { %353 = vst [vmem:[%s1143_s30 + $0xd0] sm:$0xff] %v352_v26  ;;  %v356_v28 = vld [vmem:[%s1138_s29 + $0x1c0] sm:$0xff]  ;;  %v358_v29 = vld [vmem:[%s1138_s29 + $0x1d0] sm:$0xff]  ;;  %355 = vst [vmem:[%s1143_s30 + $0xd8] sm:$0xff] %v354_v27 }
  0x1e   : > { %357 = vst [vmem:[%s1143_s30 + $0xe0] sm:$0xff] %v356_v28  ;;  %359 = vst [vmem:[%s1143_s30 + $0xe8] sm:$0xff] %v358_v29  ;;  %v360_v30 = vld [vmem:[%s1138_s29 + $0x1e0] sm:$0xff]  ;;  %v362_v31 = vld [vmem:[%s1138_s29 + $0x1f0] sm:$0xff] }
  0x1f   : > { %361 = vst [vmem:[%s1143_s30 + $0xf0] sm:$0xff] %v360_v30  ;;  %363 = vst [vmem:[%s1143_s30 + $0xf8] sm:$0xff] %v362_v31 }
  0x20 PF: > { %p897_p6 = scmp.ge.s32.totalorder %s1068_s19, 1  ;;  %p384_p7 = scmp.lt.s32.totalorder %s1068_s19, 3 }
  0x22   : > { %p385_p8 = pnand %p897_p6, %p384_p7 }
  0x23   : > { %s391_s5 = sand.u32 (!%p385_p8), 1, %s1052_s15   ;;  %s899_s10 = sshll.u32 (!%p385_p8), %s1060_s17, 1 }
  0x24   : > { %388 = sbr.rel (%p385_p8) target bundleno = 306 (0x132), region = 70  ;;  %s898_s8 = sshll.u32 (!%p385_p8), %s391_s5, 8 }
  0x25   : > { %s1216_s9 = scalar_lea.vmem (!%p385_p8), [#allocation3], %s898_s8  ;;  %p450_p9 = scmp.lt.s32.totalorder (!%p385_p8), %s899_s10, 3 }
  0x29   : > { %v1212_v32 = vld [vmem:[%s1277_s0] sm:$0xff]  ;;  %v980_v34 = vld [vmem:[%s1216_s9 + $0x74] ss:$8 sps:$4 sm:$0xff]   ;;  %v982_v35 = vld [vmem:[%s1216_s9 + $0x70] ss:$8 sps:$4 sm:$0xff]   ;;  %v729_v3 = vlaneseq  ;;  %s1289_s10 = smov (!%p450_p9, %s899_s10), 3 }
  0x2a   : > { %v904_v33 = vcombine.high %v1212_v32, %v1212_v32  ;;  %677 = vmatprep.subr.bf16.mxu0 %v980_v34  ;;  %v983_v36 = vld [vmem:[%s1216_s9 + $0x64] ss:$8 sps:$4 sm:$0xff]   ;;  %v985_v37 = vld [vmem:[%s1216_s9 + $0x60] ss:$8 sps:$4 sm:$0xff]   ;;  %v986_v38 = vld [vmem:[%s1216_s9 + $0x54] ss:$8 sps:$4 sm:$0xff]   ;;  %v903_v2 = vcombine.low %v1212_v32, %v1212_v32  ;;  %s452_s13 = scalar_lea.vmem %s1279_s2, %s1289_s10  ;;  %s457_s21 = scalar_lea.vmem %s1280_s3, %s1289_s10 }
  0x2b   : > { %678 = vmatpush1.bf16.msra.mxu0 %v982_v35  ;;  %v988_v39 = vld [vmem:[%s1216_s9 + $0x50] ss:$8 sps:$4 sm:$0xff]   ;;  %v989_v40 = vld [vmem:[%s1216_s9 + $0x44] ss:$8 sps:$4 sm:$0xff]   ;;  %v991_v41 = vld [vmem:[%s1216_s9 + $0x40] ss:$8 sps:$4 sm:$0xff]  }
  0x2c   : > { %709 = vmatprep.mubr.bf16.mxu0 %v904_v33  ;;  %679 = vmatprep.subr.bf16.mxu0 %v983_v36  ;;  %v992_v42 = vld [vmem:[%s1216_s9 + $0x34] ss:$8 sps:$4 sm:$0xff]   ;;  %v994_v43 = vld [vmem:[%s1216_s9 + $0x30] ss:$8 sps:$4 sm:$0xff]   ;;  %v995_v44 = vld [vmem:[%s1216_s9 + $0x24] ss:$8 sps:$4 sm:$0xff]  }
  0x2d   : > { %v997_v45 = vld [vmem:[%s1216_s9 + $0x20] ss:$8 sps:$4 sm:$0xff]   ;;  %v998_v46 = vld [vmem:[%s1216_s9 + $0x14] ss:$8 sps:$4 sm:$0xff]   ;;  %v1000_v47 = vld [vmem:[%s1216_s9 + $0x10] ss:$8 sps:$4 sm:$0xff]  }
  0x2e   : > { %v1001_v48 = vld [vmem:[%s1216_s9 + $0x4] ss:$8 sps:$4 sm:$0xff]   ;;  %v1003_v49 = vld [vmem:[%s1216_s9] ss:$8 sps:$4 sm:$0xff]   ;;  %v1004_v50 = vld [vmem:[%s1216_s9 + $0xf4] ss:$8 sps:$4 sm:$0xff]  }
  0x2f   : > { %680 = vmatpush1.bf16.msra.mxu0 %v985_v37  ;;  %v1006_v51 = vld [vmem:[%s1216_s9 + $0xf0] ss:$8 sps:$4 sm:$0xff]   ;;  %v1007_v52 = vld [vmem:[%s1216_s9 + $0xe4] ss:$8 sps:$4 sm:$0xff]   ;;  %v1009_v53 = vld [vmem:[%s1216_s9 + $0xe0] ss:$8 sps:$4 sm:$0xff]  }
  0x30   : > { %681 = vmatprep.subr.bf16.mxu0 %v986_v38  ;;  %v1010_v54 = vld [vmem:[%s1216_s9 + $0xd4] ss:$8 sps:$4 sm:$0xff]   ;;  %v1012_v55 = vld [vmem:[%s1216_s9 + $0xd0] ss:$8 sps:$4 sm:$0xff]   ;;  %v1013_v56 = vld [vmem:[%s1216_s9 + $0xc4] ss:$8 sps:$4 sm:$0xff]  }
  0x31   : > { %v1015_v57 = vld [vmem:[%s1216_s9 + $0xc0] ss:$8 sps:$4 sm:$0xff]   ;;  %v1016_v58 = vld [vmem:[%s1216_s9 + $0xb4] ss:$8 sps:$4 sm:$0xff]   ;;  %v1018_v59 = vld [vmem:[%s1216_s9 + $0xb0] ss:$8 sps:$4 sm:$0xff]  }
  0x32   : > { %v1019_v60 = vld [vmem:[%s1216_s9 + $0xa4] ss:$8 sps:$4 sm:$0xff]   ;;  %v1021_v61 = vld [vmem:[%s1216_s9 + $0xa0] ss:$8 sps:$4 sm:$0xff]   ;;  %v1022_v62 = vld [vmem:[%s1216_s9 + $0x94] ss:$8 sps:$4 sm:$0xff]  }
  0x33   : > { %682 = vmatpush1.bf16.msra.mxu0 %v988_v39  ;;  %v1024_v63 = vld [vmem:[%s1216_s9 + $0x90] ss:$8 sps:$4 sm:$0xff]   ;;  %v1025_v0 = vld [vmem:[%s1216_s9 + $0x84] ss:$8 sps:$4 sm:$0xff]   ;;  %v1027_v1 = vld [vmem:[%s1216_s9 + $0x80] ss:$8 sps:$4 sm:$0xff]  }
  0x34   : > { %683 = vmatprep.subr.bf16.mxu0 %v989_v40  ;;  %v730_v4 = vshrl.u32 %v729_v3, 7  ;;  %v727_v6 = vld [vmem:[%s452_s13] sm:$0x3]  ;;  %s902_s22 = sshll.u32 %s1289_s10, 3 }
  0x35   : > { %v741_v8 = vld [vmem:[%s457_s21] sm:$0x3]  ;;  %s467_s25 = scalar_lea.vmem %s1281_s4, %s902_s22 }
  0x36   : > { %v731_v5 = vsub.s32 0, %v730_v4  ;;  %v735_v7 = vsub.s32 1, %v730_v4 }
  0x37   : > { %684 = vmatpush1.bf16.msra.mxu0 %v991_v41 }
  0x38   : > { %685 = vmatprep.subr.bf16.mxu0 %v992_v42  ;;  %v732_v9 = vrot.slane %v727_v6, %v731_v5  ;;  %v746_v10 = vrot.slane %v741_v8, %v731_v5  ;;  %v736_v11 = vrot.slane %v727_v6, %v735_v7  ;;  %v750_v14 = vrot.slane %v741_v8, %v735_v7 }
  0x3b   : > { %686 = vmatpush1.bf16.msra.mxu0 %v994_v43 }
  0x3c   : > { %687 = vmatprep.subr.bf16.mxu0 %v995_v44 }
  0x3f   : > { %688 = vmatpush1.bf16.msra.mxu0 %v997_v45 }
  0x40   : > { %689 = vmatprep.subr.bf16.mxu0 %v998_v46 }
  0x43   : > { %690 = vmatpush1.bf16.msra.mxu0 %v1000_v47 }
  0x44   : > { %691 = vmatprep.subr.bf16.mxu0 %v1001_v48 }
  0x47   : > { %692 = vmatpush1.bf16.msra.mxu0 %v1003_v49 }
  0x48   : > { %693 = vmatprep.subr.bf16.mxu0 %v1004_v50 }
  0x4b   : > { %694 = vmatpush2.bf16.msra.mxu0 %v1006_v51 }
  0x4c   : > { %695 = vmatprep.subr.bf16.mxu0 %v1007_v52 }
  0x4f   : > { %696 = vmatpush2.bf16.msra.mxu0 %v1009_v53 }
  0x50   : > { %697 = vmatprep.subr.bf16.mxu0 %v1010_v54 }
  0x53   : > { %698 = vmatpush2.bf16.msra.mxu0 %v1012_v55 }
  0x54   : > { %699 = vmatprep.subr.bf16.mxu0 %v1013_v56 }
  0x57   : > { %700 = vmatpush2.bf16.msra.mxu0 %v1015_v57 }
  0x58   : > { %701 = vmatprep.subr.bf16.mxu0 %v1016_v58 }
  0x5b   : > { %702 = vmatpush2.bf16.msra.mxu0 %v1018_v59 }
  0x5c   : > { %703 = vmatprep.subr.bf16.mxu0 %v1019_v60 }
  0x5f   : > { %704 = vmatpush2.bf16.msra.mxu0 %v1021_v61 }
  0x60   : > { %705 = vmatprep.subr.bf16.mxu0 %v1022_v62 }
  0x63   : > { %706 = vmatpush2.bf16.msra.mxu0 %v1024_v63 }
  0x64   : > { %707 = vmatprep.subr.bf16.mxu0 %v1025_v0 }
  0x67   : > { %708 = vmatpush2.bf16.msra.mxu0 %v1027_v1 }
  0x6a   : > { %710 = vmatmul.mubr.bf16.vlgmr.msra.gmra.mxu0 %v903_v2 }
 0x12a   : > { %v711_v12 = vpop.f32.mrf.mxu0 }
 0x12b   : > { %v739_v13 = vmul.f32 %v732_v9, %v711_v12 }
 0x12c   : > { %v713_v15 = vpop.f32.mrf.mxu0 }
 0x12d   : > { %v753_v16 = vadd.f32 %v746_v10, %v739_v13  ;;  %v740_v17 = vmul.f32 %v736_v11, %v713_v15 }
 0x12e   : > { %v715_v18 = vpop.f32.mrf.mxu0 }
 0x12f   : > { %755 = vst [vmem:[%s467_s25] sm:$0xff] %v753_v16  ;;  %v754_v19 = vadd.f32 %v750_v14, %v740_v17 }
 0x130   : > { %v716_v20 = vpop.f32.mrf.mxu0 }
 0x131   : > { %756 = vst [vmem:[%s467_s25 + $0x8] sm:$0xff] %v754_v19 }
 0x132 PF: > { %s14_s19 = sadd.s32 1, %s1068_s19   ;;  %s1282_s15 = smov %s1056_s16 }
 0x133   : > { %p11_p10 = scmp.ge.s32.totalorder %s14_s19, 4   ;;  %s1283_s16 = smov %s1130_s23 }
 0x134   : > { %s1284_s17 = smov %s1064_s18  ;;  %s1285_s18 = smov %s1287_s20 }
 0x135   :  { %13 = sbr.rel (!%p11_p10) target bundleno = 3 (0x3), region = 126 }

// kernel: simclr_forward.75
= control target key start
LH: loop header
LB: loop body
LE: loop exit
PB: predicated region body
PF: predicated region fallthrough
CT: control target
= control target key end

     0   :  { %s46_s0 = inlined_call_operand.vmem [shape: f32[2,1,512], index: 0, kind: input, shape index: {}]   ;;  %s47_s1 = inlined_call_operand.vmem [shape: f32[2,512], index: 1, kind: output, shape index: {}]  }
   0x1   :  { %v29_v0 = vld [vmem:[%s46_s0] sm:$0xff]  }
   0x2   :  { %28 = vst.sshfl [vmem:[%s47_s1] sm:$0xff pattern:$0x75316420] %v29_v0 }

// kernel: simclr_forward.71
= control target key start
LH: loop header
LB: loop body
LE: loop exit
PB: predicated region body
PF: predicated region fallthrough
CT: control target
= control target key end

     0   :  { %s1137_s15 = smov 0   ;;  %s1139_s16 = smov 0   ;;  %s1361_s0 = inlined_call_operand.vmem [shape: bf16[8,4608], index: 0, kind: input, shape index: {}]   ;;  %s1362_s1 = inlined_call_operand.vmem [shape: bf16[4608,512], index: 1, kind: input, shape index: {}]   ;;  %s1363_s2 = inlined_call_operand.vmem [shape: f32[1,512], index: 2, kind: input, shape index: {}]   ;;  %s1364_s3 = inlined_call_operand.vmem [shape: f32[1,512], index: 3, kind: input, shape index: {}]   ;;  %s1365_s4 = inlined_call_operand.vmem [shape: f32[8,512], index: 4, kind: output, shape index: {}]  }
   0x1   :  { %s1141_s17 = smov 0   ;;  %s1143_s18 = smov 0  }
   0x2   :  { %s1145_s19 = smov 0   ;;  %s1147_s20 = smov 0  }
   0x3   :  { %s1149_s21 = smov 0  }
   0x4 LB: > { %s26_s22 = sadd.s32 1, %s1101_s19  ;;  %s29_s23 = sadd.s32 1, %s1105_s20  ;;  %s1109_s21 = sphi %s1149_s21, %s14_s21   ;;  %s1105_s20 = sphi %s1147_s20, %s1371_s20   ;;  %s1101_s19 = sphi %s1145_s19, %s1370_s19   ;;  %s1097_s18 = sphi %s1143_s18, %s1369_s18   ;;  %s1093_s17 = sphi %s1141_s17, %s1368_s17   ;;  %s1089_s16 = sphi %s1139_s16, %s1367_s16   ;;  %s1085_s15 = sphi %s1137_s15, %s1366_s15  }
   0x5   : > { %p27_p0 = scmp.ge.s32.totalorder %s26_s22, 18  ;;  %p77_p1 = scmp.ne.s32.totalorder %s1089_s16, %s1085_s15 }
   0x6   : > { %p78_p2 = scmp.eq.s32.totalorder %s1109_s21, 0  ;;  %s70_s27 = sadd.s32 1, %s1089_s16 }
   0x7   : > { %s1373_s22 = smov (%p27_p0, %s26_s22), 0  ;;  %s1375_s23 = smov (!%p27_p0, %s29_s23), %s1105_s20 }
   0x8   : > { %p79_p3 = por %p78_p2, %p77_p1  ;;  %p31_p4 = scmp.ge.s32.totalorder %s1375_s23, 2 }
   0x9   : > { %s65_s24 = ssub.s32 %s1101_s19, %s1373_s22  ;;  %p895_p6 = scmp.ge.s32.totalorder %s1109_s21, 36 }
   0xa   : > { %s1377_s23 = smov (%p31_p4, %s1375_s23), 0 }
   0xb   : > { %s66_s25 = ssub.s32 %s1105_s20, %s1377_s23  ;;  %183 = sbr.rel (%p895_p6) target bundleno = 39 (0x27), region = 16 }
   0xc   : > { %s67_s26 = sor.u32 %s66_s25, %s65_s24 }
   0xd   : > { %p68_p5 = scmp.eq.s32.totalorder %s67_s26, 0 }
   0xf   : > { %s1188_s28 = scalar_select %p68_p5, %s1089_s16, %s70_s27  }
  0x10   : > { %199 = sbr.rel (!%p79_p3) target bundleno = 39 (0x27), region = 24  ;;  %s201_s29 = sand.u32 (%p79_p3), 1, %s1089_s16  }
  0x11   : > { %s898_s30 = sshll.u32 (%p79_p3), %s1105_s20, 1  ;;  %s896_s5 = sshll.u32 (%p79_p3), %s201_s29, 8 }
  0x12   : > { %s947_s6 = sshll.u32 (%p79_p3), %s1101_s19, 7  ;;  %s1202_s12 = scalar_lea.vmem (%p79_p3), [#allocation3], %s896_s5 }
  0x13   : > { %s207_s7 = sadd.s32 (%p79_p3), %s947_s6, %s898_s30 }
  0x14   : > { %s900_s8 = sshll.u32 (%p79_p3), %s207_s7, 2 }
  0x15   : > { %s1197_s11 = scalar_lea.vmem %s1362_s1, %s900_s8 }
  0x16   : > { %v300_v0 = vld [vmem:[%s1197_s11] sm:$0xff]  ;;  %v302_v1 = vld [vmem:[%s1197_s11 + $0x10] sm:$0xff] }
  0x17   : > { %v304_v2 = vld [vmem:[%s1197_s11 + $0x20] sm:$0xff]  ;;  %301 = vst [vmem:[%s1202_s12] sm:$0xff] %v300_v0  ;;  %303 = vst [vmem:[%s1202_s12 + $0x8] sm:$0xff] %v302_v1  ;;  %v306_v3 = vld [vmem:[%s1197_s11 + $0x30] sm:$0xff] }
  0x18   : > { %305 = vst [vmem:[%s1202_s12 + $0x10] sm:$0xff] %v304_v2  ;;  %v308_v4 = vld [vmem:[%s1197_s11 + $0x40] sm:$0xff]  ;;  %v310_v5 = vld [vmem:[%s1197_s11 + $0x50] sm:$0xff]  ;;  %307 = vst [vmem:[%s1202_s12 + $0x18] sm:$0xff] %v306_v3 }
  0x19   : > { %309 = vst [vmem:[%s1202_s12 + $0x20] sm:$0xff] %v308_v4  ;;  %311 = vst [vmem:[%s1202_s12 + $0x28] sm:$0xff] %v310_v5  ;;  %v312_v6 = vld [vmem:[%s1197_s11 + $0x60] sm:$0xff]  ;;  %v314_v7 = vld [vmem:[%s1197_s11 + $0x70] sm:$0xff] }
  0x1a   : > { %v316_v8 = vld [vmem:[%s1197_s11 + $0x80] sm:$0xff]  ;;  %313 = vst [vmem:[%s1202_s12 + $0x30] sm:$0xff] %v312_v6  ;;  %315 = vst [vmem:[%s1202_s12 + $0x38] sm:$0xff] %v314_v7  ;;  %v318_v9 = vld [vmem:[%s1197_s11 + $0x90] sm:$0xff] }
  0x1b   : > { %317 = vst [vmem:[%s1202_s12 + $0x40] sm:$0xff] %v316_v8  ;;  %v320_v10 = vld [vmem:[%s1197_s11 + $0xa0] sm:$0xff]  ;;  %v322_v11 = vld [vmem:[%s1197_s11 + $0xb0] sm:$0xff]  ;;  %319 = vst [vmem:[%s1202_s12 + $0x48] sm:$0xff] %v318_v9 }
  0x1c   : > { %321 = vst [vmem:[%s1202_s12 + $0x50] sm:$0xff] %v320_v10  ;;  %323 = vst [vmem:[%s1202_s12 + $0x58] sm:$0xff] %v322_v11  ;;  %v324_v12 = vld [vmem:[%s1197_s11 + $0xc0] sm:$0xff]  ;;  %v326_v13 = vld [vmem:[%s1197_s11 + $0xd0] sm:$0xff] }
  0x1d   : > { %v328_v14 = vld [vmem:[%s1197_s11 + $0xe0] sm:$0xff]  ;;  %325 = vst [vmem:[%s1202_s12 + $0x60] sm:$0xff] %v324_v12  ;;  %327 = vst [vmem:[%s1202_s12 + $0x68] sm:$0xff] %v326_v13  ;;  %v330_v15 = vld [vmem:[%s1197_s11 + $0xf0] sm:$0xff] }
  0x1e   : > { %329 = vst [vmem:[%s1202_s12 + $0x70] sm:$0xff] %v328_v14  ;;  %v332_v16 = vld [vmem:[%s1197_s11 + $0x100] sm:$0xff]  ;;  %v334_v17 = vld [vmem:[%s1197_s11 + $0x110] sm:$0xff]  ;;  %331 = vst [vmem:[%s1202_s12 + $0x78] sm:$0xff] %v330_v15 }
  0x1f   : > { %333 = vst [vmem:[%s1202_s12 + $0x80] sm:$0xff] %v332_v16  ;;  %335 = vst [vmem:[%s1202_s12 + $0x88] sm:$0xff] %v334_v17  ;;  %v336_v18 = vld [vmem:[%s1197_s11 + $0x120] sm:$0xff]  ;;  %v338_v19 = vld [vmem:[%s1197_s11 + $0x130] sm:$0xff] }
  0x20   : > { %v340_v20 = vld [vmem:[%s1197_s11 + $0x140] sm:$0xff]  ;;  %337 = vst [vmem:[%s1202_s12 + $0x90] sm:$0xff] %v336_v18  ;;  %339 = vst [vmem:[%s1202_s12 + $0x98] sm:$0xff] %v338_v19  ;;  %v342_v21 = vld [vmem:[%s1197_s11 + $0x150] sm:$0xff] }
  0x21   : > { %341 = vst [vmem:[%s1202_s12 + $0xa0] sm:$0xff] %v340_v20  ;;  %v344_v22 = vld [vmem:[%s1197_s11 + $0x160] sm:$0xff]  ;;  %v346_v23 = vld [vmem:[%s1197_s11 + $0x170] sm:$0xff]  ;;  %343 = vst [vmem:[%s1202_s12 + $0xa8] sm:$0xff] %v342_v21 }
  0x22   : > { %345 = vst [vmem:[%s1202_s12 + $0xb0] sm:$0xff] %v344_v22  ;;  %347 = vst [vmem:[%s1202_s12 + $0xb8] sm:$0xff] %v346_v23  ;;  %v348_v24 = vld [vmem:[%s1197_s11 + $0x180] sm:$0xff]  ;;  %v350_v25 = vld [vmem:[%s1197_s11 + $0x190] sm:$0xff] }
  0x23   : > { %v352_v26 = vld [vmem:[%s1197_s11 + $0x1a0] sm:$0xff]  ;;  %349 = vst [vmem:[%s1202_s12 + $0xc0] sm:$0xff] %v348_v24  ;;  %351 = vst [vmem:[%s1202_s12 + $0xc8] sm:$0xff] %v350_v25  ;;  %v354_v27 = vld [vmem:[%s1197_s11 + $0x1b0] sm:$0xff] }
  0x24   : > { %353 = vst [vmem:[%s1202_s12 + $0xd0] sm:$0xff] %v352_v26  ;;  %v356_v28 = vld [vmem:[%s1197_s11 + $0x1c0] sm:$0xff]  ;;  %v358_v29 = vld [vmem:[%s1197_s11 + $0x1d0] sm:$0xff]  ;;  %355 = vst [vmem:[%s1202_s12 + $0xd8] sm:$0xff] %v354_v27 }
  0x25   : > { %357 = vst [vmem:[%s1202_s12 + $0xe0] sm:$0xff] %v356_v28  ;;  %359 = vst [vmem:[%s1202_s12 + $0xe8] sm:$0xff] %v358_v29  ;;  %v360_v30 = vld [vmem:[%s1197_s11 + $0x1e0] sm:$0xff]  ;;  %v362_v31 = vld [vmem:[%s1197_s11 + $0x1f0] sm:$0xff] }
  0x26   : > { %361 = vst [vmem:[%s1202_s12 + $0xf0] sm:$0xff] %v360_v30  ;;  %363 = vst [vmem:[%s1202_s12 + $0xf8] sm:$0xff] %v362_v31 }
  0x27 PF: > { %p901_p7 = scmp.ge.s32.totalorder %s1109_s21, 1  ;;  %p384_p8 = scmp.lt.s32.totalorder %s1109_s21, 37 }
  0x29   : > { %p385_p9 = pnand %p901_p7, %p384_p8 }
  0x2a   : > { %s391_s13 = sand.u32 (!%p385_p9), 1, %s1085_s15   ;;  %s903_s14 = sshll.u32 (!%p385_p9), %s1093_s17, 1 }
  0x2b   : > { %388 = sbr.rel (%p385_p9) target bundleno = 337 (0x151), region = 70  ;;  %s902_s24 = sshll.u32 (!%p385_p9), %s391_s13, 8 }
  0x2c   : > { %p440_p10 = scmp.lt.s32.totalorder (!%p385_p9), %s903_s14, 35  ;;  %s905_s25 = sshll.u32 (!%p385_p9), %s1097_s18, 1 }
  0x2d   : > { %p450_p11 = scmp.lt.s32.totalorder (!%p385_p9), %s905_s25, 3  ;;  %s1291_s13 = scalar_lea.vmem (!%p385_p9), [#allocation3], %s902_s24 }
  0x2e   : > { %p909_p12 = scmp.ne.s32.totalorder (!%p385_p9), %s1093_s17, 0 }
  0x30   : > { %s1379_s14 = smov (!%p440_p10, %s903_s14), 35  ;;  %s1381_s25 = smov (!%p450_p11, %s905_s25), 3 }
  0x31   : > { %s904_s26 = sshll.u32 %s1379_s14, 2  ;;  %s452_s15 = scalar_lea.vmem %s1363_s2, %s1381_s25 }
  0x32   : > { %s1273_s30 = scalar_lea.vmem %s1361_s0, %s904_s26  ;;  %s457_s18 = scalar_lea.vmem %s1364_s3, %s1381_s25 }
  0x33   : > { %s908_s9 = sshll.u32 %s1381_s25, 3  ;;  %472 = sbr.rel (%p909_p12) target bundleno = 58 (0x3a), region = 78 }
  0x34   : > { %s1289_s12 = scalar_lea.vmem %s1365_s4, %s908_s9 }
  0x38   : > { %v1111_v32 = vmov 0.0  }
  0x39   : > { %473 = vst [vmem:[#allocation2] sm:$0xff] %v1111_v32  ;;  %474 = vst [vmem:[#allocation2 + $0x8] sm:$0xff] %v1111_v32 }
  0x3a PF: > { %v1005_v33 = vld [vmem:[%s1291_s13 + $0x74] ss:$8 sps:$4 sm:$0xff]   ;;  %v1007_v34 = vld [vmem:[%s1291_s13 + $0x70] ss:$8 sps:$4 sm:$0xff]   ;;  %v1008_v35 = vld [vmem:[%s1291_s13 + $0x64] ss:$8 sps:$4 sm:$0xff]  }
  0x3b   : > { %677 = vmatprep.subr.bf16.mxu0 %v1005_v33  ;;  %v1010_v36 = vld [vmem:[%s1291_s13 + $0x60] ss:$8 sps:$4 sm:$0xff]   ;;  %v1011_v37 = vld [vmem:[%s1291_s13 + $0x54] ss:$8 sps:$4 sm:$0xff]   ;;  %v1013_v38 = vld [vmem:[%s1291_s13 + $0x50] ss:$8 sps:$4 sm:$0xff]  }
  0x3c   : > { %678 = vmatpush1.bf16.msra.mxu0 %v1007_v34  ;;  %v1014_v39 = vld [vmem:[%s1291_s13 + $0x44] ss:$8 sps:$4 sm:$0xff]   ;;  %v1016_v40 = vld [vmem:[%s1291_s13 + $0x40] ss:$8 sps:$4 sm:$0xff]   ;;  %v1017_v41 = vld [vmem:[%s1291_s13 + $0x34] ss:$8 sps:$4 sm:$0xff]  }
  0x3d   : > { %679 = vmatprep.subr.bf16.mxu0 %v1008_v35  ;;  %v1019_v42 = vld [vmem:[%s1291_s13 + $0x30] ss:$8 sps:$4 sm:$0xff]   ;;  %v1020_v43 = vld [vmem:[%s1291_s13 + $0x24] ss:$8 sps:$4 sm:$0xff]   ;;  %v1022_v44 = vld [vmem:[%s1291_s13 + $0x20] ss:$8 sps:$4 sm:$0xff]  }
  0x3e   : > { %v1023_v45 = vld [vmem:[%s1291_s13 + $0x14] ss:$8 sps:$4 sm:$0xff]   ;;  %v1025_v48 = vld [vmem:[%s1291_s13 + $0x10] ss:$8 sps:$4 sm:$0xff]   ;;  %v1026_v49 = vld [vmem:[%s1291_s13 + $0x4] ss:$8 sps:$4 sm:$0xff]  }
  0x3f   : > { %v477_v46 = vld [vmem:[%s1273_s30] sm:$0xff]  ;;  %v1028_v50 = vld [vmem:[%s1291_s13] ss:$8 sps:$4 sm:$0xff]   ;;  %v1032_v53 = vld [vmem:[%s1291_s13 + $0xe4] ss:$8 sps:$4 sm:$0xff]   ;;  %p944_p13 = scmp.ne.s32.totalorder %s1093_s17, 17 }
  0x40   : > { %680 = vmatpush1.bf16.msra.mxu0 %v1010_v36  ;;  %v911_v47 = vcombine.high %v477_v46, %v477_v46  ;;  %v1029_v51 = vld [vmem:[%s1291_s13 + $0xf4] ss:$8 sps:$4 sm:$0xff]   ;;  %v1031_v52 = vld [vmem:[%s1291_s13 + $0xf0] ss:$8 sps:$4 sm:$0xff]   ;;  %v1034_v54 = vld [vmem:[%s1291_s13 + $0xe0] ss:$8 sps:$4 sm:$0xff]   ;;  %v910_v3 = vcombine.low %v477_v46, %v477_v46 }
  0x41   : > { %681 = vmatprep.subr.bf16.mxu0 %v1011_v37  ;;  %v1035_v55 = vld [vmem:[%s1291_s13 + $0xd4] ss:$8 sps:$4 sm:$0xff]   ;;  %v1037_v56 = vld [vmem:[%s1291_s13 + $0xd0] ss:$8 sps:$4 sm:$0xff]   ;;  %v1038_v57 = vld [vmem:[%s1291_s13 + $0xc4] ss:$8 sps:$4 sm:$0xff]  }
  0x42   : > { %709 = vmatprep.mubr.bf16.mxu0 %v911_v47  ;;  %v1040_v58 = vld [vmem:[%s1291_s13 + $0xc0] ss:$8 sps:$4 sm:$0xff]   ;;  %v1041_v59 = vld [vmem:[%s1291_s13 + $0xb4] ss:$8 sps:$4 sm:$0xff]   ;;  %v1043_v60 = vld [vmem:[%s1291_s13 + $0xb0] ss:$8 sps:$4 sm:$0xff]  }
  0x43   : > { %v1044_v61 = vld [vmem:[%s1291_s13 + $0xa4] ss:$8 sps:$4 sm:$0xff]   ;;  %v1046_v62 = vld [vmem:[%s1291_s13 + $0xa0] ss:$8 sps:$4 sm:$0xff]   ;;  %v1047_v63 = vld [vmem:[%s1291_s13 + $0x94] ss:$8 sps:$4 sm:$0xff]  }
  0x44   : > { %682 = vmatpush1.bf16.msra.mxu0 %v1013_v38  ;;  %v1049_v0 = vld [vmem:[%s1291_s13 + $0x90] ss:$8 sps:$4 sm:$0xff]   ;;  %v1050_v1 = vld [vmem:[%s1291_s13 + $0x84] ss:$8 sps:$4 sm:$0xff]   ;;  %v1052_v2 = vld [vmem:[%s1291_s13 + $0x80] ss:$8 sps:$4 sm:$0xff]  }
  0x45   : > { %683 = vmatprep.subr.bf16.mxu0 %v1014_v39  ;;  %v475_v4 = vld [vmem:[#allocation2] sm:$0xff]  ;;  %v476_v6 = vld [vmem:[#allocation2 + $0x8] sm:$0xff] }
  0x48   : > { %684 = vmatpush1.bf16.msra.mxu0 %v1016_v40 }
  0x49   : > { %685 = vmatprep.subr.bf16.mxu0 %v1017_v41 }
  0x4c   : > { %686 = vmatpush1.bf16.msra.mxu0 %v1019_v42 }
  0x4d   : > { %687 = vmatprep.subr.bf16.mxu0 %v1020_v43 }
  0x50   : > { %688 = vmatpush1.bf16.msra.mxu0 %v1022_v44 }
  0x51   : > { %689 = vmatprep.subr.bf16.mxu0 %v1023_v45 }
  0x54   : > { %690 = vmatpush1.bf16.msra.mxu0 %v1025_v48 }
  0x55   : > { %691 = vmatprep.subr.bf16.mxu0 %v1026_v49 }
  0x58   : > { %692 = vmatpush1.bf16.msra.mxu0 %v1028_v50 }
  0x59   : > { %693 = vmatprep.subr.bf16.mxu0 %v1029_v51 }
  0x5c   : > { %694 = vmatpush2.bf16.msra.mxu0 %v1031_v52 }
  0x5d   : > { %695 = vmatprep.subr.bf16.mxu0 %v1032_v53 }
  0x60   : > { %696 = vmatpush2.bf16.msra.mxu0 %v1034_v54 }
  0x61   : > { %697 = vmatprep.subr.bf16.mxu0 %v1035_v55 }
  0x64   : > { %698 = vmatpush2.bf16.msra.mxu0 %v1037_v56 }
  0x65   : > { %699 = vmatprep.subr.bf16.mxu0 %v1038_v57 }
  0x68   : > { %700 = vmatpush2.bf16.msra.mxu0 %v1040_v58 }
  0x69   : > { %701 = vmatprep.subr.bf16.mxu0 %v1041_v59 }
  0x6c   : > { %702 = vmatpush2.bf16.msra.mxu0 %v1043_v60 }
  0x6d   : > { %703 = vmatprep.subr.bf16.mxu0 %v1044_v61 }
  0x70   : > { %704 = vmatpush2.bf16.msra.mxu0 %v1046_v62 }
  0x71   : > { %705 = vmatprep.subr.bf16.mxu0 %v1047_v63 }
  0x74   : > { %706 = vmatpush2.bf16.msra.mxu0 %v1049_v0 }
  0x75   : > { %707 = vmatprep.subr.bf16.mxu0 %v1050_v1 }
  0x78   : > { %708 = vmatpush2.bf16.msra.mxu0 %v1052_v2 }
  0x7b   : > { %710 = vmatmul.mubr.bf16.vlgmr.msra.gmra.mxu0 %v910_v3 }
 0x13b   : > { %v711_v5 = vpop.f32.mrf.mxu0 }
 0x13c   : > { %v718_v7 = vadd.f32 %v711_v5, %v475_v4 }
 0x13d   : > { %v713_v8 = vpop.f32.mrf.mxu0  ;;  %725 = sbr.rel (%p944_p13) target bundleno = 337 (0x151), region = 82 }
 0x13e   : > { %720 = vst [vmem:[#allocation2] sm:$0xff] %v718_v7  ;;  %v719_v9 = vadd.f32 %v713_v8, %v476_v6 }
 0x13f   : > { %v715_v10 = vpop.f32.mrf.mxu0 }
 0x140   : > { %721 = vst [vmem:[#allocation2 + $0x8] sm:$0xff] %v719_v9 }
 0x141   : > { %v716_v11 = vpop.f32.mrf.mxu0 }
 0x142   : > { %v730_v12 = vlaneseq  ;;  %v728_v14 = vld [vmem:[%s452_s15] sm:$0x3] }
 0x143   : > { %v742_v15 = vld [vmem:[%s457_s18] sm:$0x3] }
 0x144   : > { %v731_v13 = vshrl.u32 %v730_v12, 7 }
 0x145   : > { %v726_v18 = vld [vmem:[#allocation2] sm:$0xff] }
 0x146   : > { %v732_v16 = vsub.s32 0, %v731_v13  ;;  %v736_v17 = vsub.s32 1, %v731_v13 }
 0x147   : > { %v727_v19 = vld [vmem:[#allocation2 + $0x8] sm:$0xff] }
 0x148   : > { %v733_v20 = vrot.slane %v728_v14, %v732_v16  ;;  %v747_v21 = vrot.slane %v742_v15, %v732_v16  ;;  %v737_v22 = vrot.slane %v728_v14, %v736_v17  ;;  %v751_v23 = vrot.slane %v742_v15, %v736_v17 }
 0x14a   : > { %v740_v24 = vmul.f32 %v733_v20, %v726_v18  ;;  %v741_v25 = vmul.f32 %v737_v22, %v727_v19 }
 0x14c   : > { %v754_v26 = vadd.f32 %v747_v21, %v740_v24  ;;  %v755_v27 = vadd.f32 %v751_v23, %v741_v25 }
 0x14e   : > { %v756_v28 = vmax.f32 %v754_v26, 0.0  ;;  %v757_v29 = vmax.f32 %v755_v27, 0.0 }
 0x150   : > { %758 = vst [vmem:[%s1289_s12] sm:$0xff] %v756_v28  ;;  %759 = vst [vmem:[%s1289_s12 + $0x8] sm:$0xff] %v757_v29 }
 0x151 PF: > { %s14_s21 = sadd.s32 1, %s1109_s21   ;;  %s1366_s15 = smov %s1089_s16 }
 0x152   : > { %p11_p0 = scmp.ge.s32.totalorder %s14_s21, 38   ;;  %s1367_s16 = smov %s1188_s28 }
 0x153   : > { %s1368_s17 = smov %s1101_s19  ;;  %s1369_s18 = smov %s1105_s20 }
 0x154   : > { %s1370_s19 = smov %s1373_s22  ;;  %s1371_s20 = smov %s1377_s23 }
 0x155   :  { %13 = sbr.rel (!%p11_p0) target bundleno = 4 (0x4), region = 126 }

// kernel: simclr_forward.76
= control target key start
LH: loop header
LB: loop body
LE: loop exit
PB: predicated region body
PF: predicated region fallthrough
CT: control target
= control target key end

     0   :  { %s775_s15 = smov 0   ;;  %s777_s16 = smov 0   ;;  %s841_s0 = inlined_call_operand.vmem [shape: bf16[8,512], index: 0, kind: input, shape index: {}]   ;;  %s842_s1 = inlined_call_operand.vmem [shape: bf16[512,128], index: 1, kind: input, shape index: {}]   ;;  %s843_s2 = inlined_call_operand.vmem [shape: f32[1,128], index: 2, kind: input, shape index: {}]   ;;  %s844_s3 = inlined_call_operand.vmem [shape: f32[1,128], index: 3, kind: input, shape index: {}]   ;;  %s845_s4 = inlined_call_operand.vmem [shape: f32[8,128], index: 4, kind: output, shape index: {}]  }
   0x1   :  { %s779_s17 = smov 0  }
   0x2 LB: > { %s26_s18 = sadd.s32 1, %s743_s16  ;;  %p630_p0 = scmp.ge.s32.totalorder %s747_s17, 1  ;;  %s747_s17 = sphi %s779_s17, %s14_s17   ;;  %s743_s16 = sphi %s777_s16, %s847_s16   ;;  %s739_s15 = sphi %s775_s15, %s846_s15  }
   0x3   : > { %p27_p1 = scmp.ge.s32.totalorder %s26_s18, 2  ;;  %p222_p2 = scmp.lt.s32.totalorder %s747_s17, 3 }
   0x5   : > { %s849_s18 = smov (%p27_p1, %s26_s18), 0  ;;  %p223_p3 = pnand %p630_p0, %p222_p2 }
   0x6   : > { %s631_s19 = sshll.u32 (!%p223_p3), %s739_s15, 1  ;;  %s633_s20 = sshll.u32 (!%p223_p3), %s739_s15, 5 }
   0x7   : > { %226 = sbr.rel (%p223_p3) target bundleno = 269 (0x10d), region = 36  ;;  %p271_p4 = scmp.lt.s32.totalorder (!%p223_p3), %s631_s19, 3 }
   0x8   : > { %p279_p5 = scmp.lt.s32.totalorder (!%p223_p3), %s633_s20, 63  ;;  %p635_p6 = scmp.ne.s32.totalorder (!%p223_p3), %s739_s15, 0 }
   0xc   : > { %s851_s19 = smov (!%p271_p4, %s631_s19), 3  ;;  %s853_s20 = smov (!%p279_p5, %s633_s20), 63 }
   0xd   : > { %s632_s21 = sshll.u32 %s851_s19, 2  ;;  %s634_s25 = sshll.u32 %s853_s20, 2 }
   0xe   : > { %s276_s24 = scalar_lea.vmem %s841_s0, %s632_s21  ;;  %s803_s28 = scalar_lea.vmem %s842_s1, %s634_s25 }
   0xf   : > { %304 = sbr.rel (%p635_p6) target bundleno = 22 (0x16), region = 40 }
  0x14   : > { %v749_v0 = vmov 0.0  }
  0x15   : > { %305 = vst [vmem:[#allocation2] sm:$0xff] %v749_v0 }
  0x16 PF: > { %v707_v1 = vld [vmem:[%s803_s28 + $0x78] sm:$0xff]   ;;  %v709_v3 = vld [vmem:[%s803_s28 + $0x70] sm:$0xff]   ;;  %v711_v5 = vld [vmem:[%s803_s28 + $0x68] sm:$0xff]   ;;  %p654_p7 = scmp.ne.s32.totalorder %s739_s15, 1 }
  0x17   : > { %v708_v2 = vld [vmem:[%s803_s28 + $0x38] sm:$0xff]   ;;  %660 = vmatprep.subr.bf16.mxu0 %v707_v1  ;;  %v710_v4 = vld [vmem:[%s803_s28 + $0x30] sm:$0xff]   ;;  %v712_v6 = vld [vmem:[%s803_s28 + $0x28] sm:$0xff]  }
  0x18   : > { %661 = vmatpush3.bf16.msra.mxu0 %v708_v2  ;;  %v713_v7 = vld [vmem:[%s803_s28 + $0x60] sm:$0xff]   ;;  %v715_v9 = vld [vmem:[%s803_s28 + $0x58] sm:$0xff]   ;;  %v717_v11 = vld [vmem:[%s803_s28 + $0x50] sm:$0xff]  }
  0x19   : > { %662 = vmatprep.subr.bf16.mxu0 %v709_v3  ;;  %v714_v8 = vld [vmem:[%s803_s28 + $0x20] sm:$0xff]   ;;  %v716_v10 = vld [vmem:[%s803_s28 + $0x18] sm:$0xff]   ;;  %v718_v14 = vld [vmem:[%s803_s28 + $0x10] sm:$0xff]  }
  0x1a   : > { %v307_v12 = vld [vmem:[%s276_s24] sm:$0xff]  ;;  %v719_v15 = vld [vmem:[%s803_s28 + $0x48] sm:$0xff]  }
  0x1b   : > { %v637_v13 = vcombine.high %v307_v12, %v307_v12  ;;  %v720_v16 = vld [vmem:[%s803_s28 + $0x8] sm:$0xff]   ;;  %v721_v17 = vld [vmem:[%s803_s28 + $0x40] sm:$0xff]   ;;  %v636_v19 = vcombine.low %v307_v12, %v307_v12 }
  0x1c   : > { %663 = vmatpush3.bf16.msra.mxu0 %v710_v4  ;;  %v722_v18 = vld [vmem:[%s803_s28] sm:$0xff]  }
  0x1d   : > { %664 = vmatprep.subr.bf16.mxu0 %v711_v5  ;;  %475 = vmatprep.mubr.bf16.mxu0 %v637_v13  ;;  %v306_v21 = vld [vmem:[#allocation2] sm:$0xff] }
  0x20   : > { %665 = vmatpush3.bf16.msra.mxu0 %v712_v6 }
  0x21   : > { %666 = vmatprep.subr.bf16.mxu0 %v713_v7 }
  0x24   : > { %667 = vmatpush3.bf16.msra.mxu0 %v714_v8 }
  0x25   : > { %668 = vmatprep.subr.bf16.mxu0 %v715_v9 }
  0x28   : > { %669 = vmatpush3.bf16.msra.mxu0 %v716_v10 }
  0x29   : > { %670 = vmatprep.subr.bf16.mxu0 %v717_v11 }
  0x2c   : > { %671 = vmatpush3.bf16.msra.mxu0 %v718_v14 }
  0x2d   : > { %672 = vmatprep.subr.bf16.mxu0 %v719_v15 }
  0x30   : > { %673 = vmatpush3.bf16.msra.mxu0 %v720_v16 }
  0x31   : > { %674 = vmatprep.subr.bf16.mxu0 %v721_v17 }
  0x34   : > { %675 = vmatpush3.bf16.msra.mxu0 %v722_v18 }
  0x37   : > { %476 = vmatmul.mubr.bf16.vlgmr.msra.gmra.mxu0 %v636_v19 }
  0xf7   : > { %v676_v20 = vpop.f32.mrf.mxu0 }
  0xf9   : > { %v677_v22 = vpop.f32.mrf.mxu0 }
  0xfa   : > { %v678_v23 = vadd.f32 %v677_v22, %v676_v20  ;;  %488 = sbr.rel (%p654_p7) target bundleno = 269 (0x10d), region = 44 }
  0xfb   : > { %v679_v24 = vpop.f32.mrf.mxu0 }
  0xfc   : > { %v483_v25 = vadd.f32 %v678_v23, %v306_v21 }
  0xfd   : > { %v680_v26 = vpop.f32.mrf.mxu0 }
  0xfe   : > { %484 = vst [vmem:[#allocation2] sm:$0xff] %v483_v25 }
  0xff   : > { %v655_v28 = vld [vmem:[%s843_s2] ss:$0 sm:$0xff] }
 0x100   : > { %v656_v29 = vld [vmem:[%s844_s3] ss:$0 sm:$0xff] }
 0x105   : > { %v489_v27 = vld [vmem:[#allocation2] sm:$0xff] }
 0x106   : > { %v497_v30 = vmul.f32 %v655_v28, %v489_v27 }
 0x108   : > { %v505_v31 = vadd.f32 %v656_v29, %v497_v30 }
 0x10a   : > { %v506_v32 = vmax.f32 %v505_v31, 0.0 }
 0x10c   : > { %507 = vst [vmem:[%s845_s4] sm:$0xff] %v506_v32 }
 0x10d PF: > { %s14_s17 = sadd.s32 1, %s747_s17   ;;  %s846_s15 = smov %s743_s16 }
 0x10e   : > { %p11_p8 = scmp.ge.s32.totalorder %s14_s17, 4   ;;  %s847_s16 = smov %s849_s18 }
 0x110   :  { %13 = sbr.rel (!%p11_p8) target bundleno = 2 (0x2), region = 83 }

// kernel: simclr_forward.77
= control target key start
LH: loop header
LB: loop body
LE: loop exit
PB: predicated region body
PF: predicated region fallthrough
CT: control target
= control target key end

     0   :  { %v205_v0 = vmov 0.0   ;;  %vm206_vm0 = vmmov 0   ;;  %s268_s1 = inlined_call_operand.vmem [shape: bf16[128,128], index: 1, kind: input, shape index: {}]   ;;  %s269_s0 = inlined_call_operand.vmem [shape: bf16[8,128], index: 0, kind: input, shape index: {}]   ;;  %s270_s2 = inlined_call_operand.vmem [shape: f32[1,128], index: 2, kind: input, shape index: {}]   ;;  %s271_s3 = inlined_call_operand.vmem [shape: f32[1,128], index: 3, kind: input, shape index: {}]   ;;  %s272_s4 = inlined_call_operand.vmem [shape: f32[8,128], index: 4, kind: output, shape index: {}]  }
   0x1   :  { %175 = vmatprep.subr.bf16.mxu0 %v205_v0  ;;  %v197_v1 = vld [vmem:[%s268_s1 + $0x38] sm:$0xff]   ;;  %191 = vmatprep.mubr.msk.bf16.mxu0 %vm206_vm0, %v205_v0  ;;  %v198_v2 = vld [vmem:[%s268_s1 + $0x30] sm:$0xff]   ;;  %v199_v3 = vld [vmem:[%s268_s1 + $0x28] sm:$0xff]  }
   0x2   :  { %176 = vmatpush3.bf16.msra.mxu0 %v197_v1  ;;  %v200_v4 = vld [vmem:[%s268_s1 + $0x20] sm:$0xff]   ;;  %v201_v5 = vld [vmem:[%s268_s1 + $0x18] sm:$0xff]   ;;  %v202_v6 = vld [vmem:[%s268_s1 + $0x10] sm:$0xff]  }
   0x3   :  { %177 = vmatprep.subr.bf16.mxu0 %v205_v0  ;;  %v203_v7 = vld [vmem:[%s268_s1 + $0x8] sm:$0xff]   ;;  %v204_v8 = vld [vmem:[%s268_s1] sm:$0xff]  }
   0x4   :  { %v24_v9 = vld [vmem:[%s269_s0] sm:$0xf] }
   0x5   :  { %v164_v10 = vld [vmem:[%s270_s2] ss:$0 sm:$0xff] }
   0x6   :  { %178 = vmatpush3.bf16.msra.mxu0 %v198_v2  ;;  %v165_v12 = vld [vmem:[%s271_s3] ss:$0 sm:$0xff] }
   0x7   :  { %179 = vmatprep.subr.bf16.mxu0 %v205_v0 }
   0xa   :  { %180 = vmatpush3.bf16.msra.mxu0 %v199_v3 }
   0xb   :  { %181 = vmatprep.subr.bf16.mxu0 %v205_v0 }
   0xe   :  { %182 = vmatpush3.bf16.msra.mxu0 %v200_v4 }
   0xf   :  { %183 = vmatprep.subr.bf16.mxu0 %v205_v0 }
  0x12   :  { %184 = vmatpush3.bf16.msra.mxu0 %v201_v5 }
  0x13   :  { %185 = vmatprep.subr.bf16.mxu0 %v205_v0 }
  0x16   :  { %186 = vmatpush3.bf16.msra.mxu0 %v202_v6 }
  0x17   :  { %187 = vmatprep.subr.bf16.mxu0 %v205_v0 }
  0x1a   :  { %188 = vmatpush3.bf16.msra.mxu0 %v203_v7 }
  0x1b   :  { %189 = vmatprep.subr.bf16.mxu0 %v205_v0 }
  0x1e   :  { %190 = vmatpush3.bf16.msra.mxu0 %v204_v8 }
  0x21   :  { %192 = vmatmul.mubr.bf16.vlgmr.msra.gmra.mxu0 %v24_v9 }
  0xe1   :  { %v123_v11 = vpop.f32.mrf.mxu0 }
  0xe2   :  { %v142_v13 = vmul.f32 %v164_v10, %v123_v11 }
  0xe3   :  { %v193_v14 = vpop.f32.mrf.mxu0 }
  0xe4   :  { %v150_v15 = vadd.f32 %v165_v12, %v142_v13 }
  0xe5   :  { %v126_v16 = vpop.f32.mrf.mxu0 }
  0xe6   :  { %151 = vst [vmem:[%s272_s4] sm:$0xff] %v150_v15 }
  0xe7   :  { %v194_v17 = vpop.f32.mrf.mxu0 }

</bundles_post_ra>
